<compile_context>
chip_gen: v7x
topology: tpu7x:2x2x1
jax: 0.10.0
libtpu: 0.0.40
codegen_flags: <defaults>
</compile_context>

<pallas_src>
import functools
import math

import jax
import jax.numpy as jnp
from jax.experimental import pallas as pl
from jax.experimental.pallas import tpu as pltpu

# ---------------- config ----------------
VOCAB = 100
TYPE_VOCAB = 2
MAX_POS = 16
HIDDEN = 768
HEADS = 12
HEAD_DIM = HIDDEN // HEADS
LAYERS = 2
INTERMEDIATE = 3072
EPS = 1e-12
NUM_CLASSES = 2

# plain Python floats only -- no traced constants may be captured by kernels
_GELU_C0 = 0.7978845608028654   # sqrt(2/pi)
_GELU_C1 = 0.044715


# ---------------- in-kernel helpers (traced inside kernels) ----------------
def _gelu(x):
    # tanh-form GELU (all constants are Python floats; tanh lowers to the EUP).
    # TODO(synk): HF BERT default is exact erf-GELU; tanh form differs by ~1e-3.
    return 0.5 * x * (1.0 + jnp.tanh(_GELU_C0 * (x + _GELU_C1 * x * x * x)))


def _layernorm(x, g, b, eps):
    mean = jnp.mean(x, axis=-1, keepdims=True)
    c = x - mean
    var = jnp.mean(c * c, axis=-1, keepdims=True)
    return c * jax.lax.rsqrt(var + eps) * g + b


# ---------------- Pallas kernels ----------------
def _embed_ln_kernel(w_ref, t_ref, p_ref, g_ref, b_ref, o_ref, *, eps):
    # word + token_type + position embeddings, then LayerNorm.
    x = w_ref[...] + t_ref[...] + p_ref[...]
    o_ref[...] = _layernorm(x, g_ref[...], b_ref[...], eps)


def _qkv_kernel(x_ref, w_ref, b_ref, o_ref, acc_ref):
    # grid = (N tiles [parallel], K tiles [arbitrary]); f32 accumulator in scratch.
    k = pl.program_id(1)

    @pl.when(k == 0)
    def _():
        acc_ref[...] = jnp.zeros_like(acc_ref)

    acc_ref[...] += jnp.dot(x_ref[...].astype(jnp.bfloat16), w_ref[...],
                            preferred_element_type=jnp.float32)

    @pl.when(k == pl.num_programs(1) - 1)
    def _():
        o_ref[...] = acc_ref[...] + b_ref[...]


def _attention_kernel(qkv_ref, m_ref, o_ref, *, scale):
    # One batch element per grid step. qkv block is (S, 3*HIDDEN); heads are read as
    # static 64-lane slices (no JAX-side split/merge transposes). Softmax in f32.
    qkv = qkv_ref[...]
    seq = qkv.shape[0]
    mask = m_ref[...].reshape(1, seq)          # additive HF-style mask, broadcast over queries
    outs = []
    for h in range(HEADS):
        off = h * HEAD_DIM
        qh = qkv[:, off:off + HEAD_DIM]
        kh = qkv[:, HIDDEN + off:HIDDEN + off + HEAD_DIM]
        vh = qkv[:, 2 * HIDDEN + off:2 * HIDDEN + off + HEAD_DIM]
        s = jax.lax.dot_general(qh, kh, (((1,), (1,)), ((), ())),
                                preferred_element_type=jnp.float32) * scale
        s = s + mask
        s = s - jnp.max(s, axis=-1, keepdims=True)
        p = jnp.exp(s)
        p = p / jnp.sum(p, axis=-1, keepdims=True)
        outs.append(jnp.dot(p, vh, preferred_element_type=jnp.float32))
    o_ref[...] = jnp.concatenate(outs, axis=-1)    # lane-dense (S, HIDDEN) store


def _proj_res_ln_kernel(x_ref, w_ref, b_ref, r_ref, g_ref, be_ref, o_ref, acc_ref, *, eps):
    # attention output projection + residual add + LayerNorm, K-tiled reduction.
    k = pl.program_id(0)

    @pl.when(k == 0)
    def _():
        acc_ref[...] = jnp.zeros_like(acc_ref)

    acc_ref[...] += jnp.dot(x_ref[...].astype(jnp.bfloat16), w_ref[...],
                            preferred_element_type=jnp.float32)

    @pl.when(k == pl.num_programs(0) - 1)
    def _():
        x = acc_ref[...] + b_ref[...] + r_ref[...]
        o_ref[...] = _layernorm(x, g_ref[...], be_ref[...], eps)


def _ffn_res_ln_kernel(h_ref, w1_ref, b1_ref, w2_ref, b2_ref, g_ref, be_ref,
                       o_ref, acc_ref, *, eps):
    # Fused FFN: per K-tile compute GELU(h @ w1_tile + b1_tile) @ w2_tile and accumulate;
    # bias2 + residual (= h itself) + LayerNorm only on the last step.
    k = pl.program_id(0)

    @pl.when(k == 0)
    def _():
        acc_ref[...] = jnp.zeros_like(acc_ref)

    inter = jnp.dot(h_ref[...].astype(jnp.bfloat16), w1_ref[...],
                    preferred_element_type=jnp.float32) + b1_ref[...]
    inter = _gelu(inter)
    acc_ref[...] += jnp.dot(inter.astype(jnp.bfloat16), w2_ref[...],
                            preferred_element_type=jnp.float32)

    @pl.when(k == pl.num_programs(0) - 1)
    def _():
        x = acc_ref[...] + b2_ref[...] + h_ref[...]
        o_ref[...] = _layernorm(x, g_ref[...], be_ref[...], eps)


# ---------------- pallas_call wrappers ----------------
def embed_layernorm(word, tok, pos, gamma, beta, *, batch, seq, eps=EPS):
    M, H = word.shape
    return pl.pallas_call(
        functools.partial(_embed_ln_kernel, eps=eps),
        out_shape=jax.ShapeDtypeStruct((M, H), jnp.float32),
        grid_spec=pltpu.PrefetchScalarGridSpec(
            num_scalar_prefetch=0,
            grid=(batch,),
            in_specs=[
                pl.BlockSpec((seq, H), lambda b: (b, 0)),
                pl.BlockSpec((seq, H), lambda b: (b, 0)),
                pl.BlockSpec((seq, H), lambda b: (0, 0)),
                pl.BlockSpec((1, H), lambda b: (0, 0)),
                pl.BlockSpec((1, H), lambda b: (0, 0)),
            ],
            out_specs=pl.BlockSpec((seq, H), lambda b: (b, 0)),
        ),
        compiler_params=pltpu.CompilerParams(dimension_semantics=("parallel",)),
    )(word, tok, pos, gamma.reshape(1, H), beta.reshape(1, H))


def qkv_projection(x, w_qkv, b_qkv, *, tn=HIDDEN, tk=256):
    M, K = x.shape
    N = w_qkv.shape[1]
    return pl.pallas_call(
        _qkv_kernel,
        out_shape=jax.ShapeDtypeStruct((M, N), jnp.float32),
        grid_spec=pltpu.PrefetchScalarGridSpec(
            num_scalar_prefetch=0,
            grid=(N // tn, K // tk),
            in_specs=[
                pl.BlockSpec((M, tk), lambda n, k: (0, k)),
                pl.BlockSpec((tk, tn), lambda n, k: (k, n)),
                pl.BlockSpec((1, tn), lambda n, k: (0, n)),
            ],
            out_specs=pl.BlockSpec((M, tn), lambda n, k: (0, n)),
            scratch_shapes=[pltpu.VMEM((M, tn), jnp.float32)],
        ),
        compiler_params=pltpu.CompilerParams(
            dimension_semantics=("parallel", "arbitrary")),
    )(x, w_qkv, b_qkv.reshape(1, N))


def attention(qkv, ext_mask, *, batch, seq, scale):
    M = qkv.shape[0]
    return pl.pallas_call(
        functools.partial(_attention_kernel, scale=scale),
        out_shape=jax.ShapeDtypeStruct((M, HIDDEN), jnp.float32),
        grid_spec=pltpu.PrefetchScalarGridSpec(
            num_scalar_prefetch=0,
            grid=(batch,),
            in_specs=[
                pl.BlockSpec((seq, 3 * HIDDEN), lambda b: (b, 0)),
                pl.BlockSpec((1, 1, seq), lambda b: (b, 0, 0)),
            ],
            out_specs=pl.BlockSpec((seq, HIDDEN), lambda b: (b, 0)),
        ),
        compiler_params=pltpu.CompilerParams(dimension_semantics=("parallel",)),
    )(qkv, ext_mask)


def proj_residual_layernorm(x, w, b, residual, gamma, beta, *, tk=256, eps=EPS):
    M, K = x.shape
    N = w.shape[1]
    return pl.pallas_call(
        functools.partial(_proj_res_ln_kernel, eps=eps),
        out_shape=jax.ShapeDtypeStruct((M, N), jnp.float32),
        grid_spec=pltpu.PrefetchScalarGridSpec(
            num_scalar_prefetch=0,
            grid=(K // tk,),
            in_specs=[
                pl.BlockSpec((M, tk), lambda k: (0, k)),
                pl.BlockSpec((tk, N), lambda k: (k, 0)),
                pl.BlockSpec((1, N), lambda k: (0, 0)),
                pl.BlockSpec((M, N), lambda k: (0, 0)),
                pl.BlockSpec((1, N), lambda k: (0, 0)),
                pl.BlockSpec((1, N), lambda k: (0, 0)),
            ],
            out_specs=pl.BlockSpec((M, N), lambda k: (0, 0)),
            scratch_shapes=[pltpu.VMEM((M, N), jnp.float32)],
        ),
        compiler_params=pltpu.CompilerParams(dimension_semantics=("arbitrary",)),
    )(x, w, b.reshape(1, N), residual, gamma.reshape(1, N), beta.reshape(1, N))


def ffn_residual_layernorm(h, w1, b1, w2, b2, gamma, beta, *, tk=512, eps=EPS):
    M, K1 = h.shape
    KI = w1.shape[1]
    N = w2.shape[1]
    return pl.pallas_call(
        functools.partial(_ffn_res_ln_kernel, eps=eps),
        out_shape=jax.ShapeDtypeStruct((M, N), jnp.float32),
        grid_spec=pltpu.PrefetchScalarGridSpec(
            num_scalar_prefetch=0,
            grid=(KI // tk,),
            in_specs=[
                pl.BlockSpec((M, K1), lambda k: (0, 0)),
                pl.BlockSpec((K1, tk), lambda k: (0, k)),
                pl.BlockSpec((1, tk), lambda k: (0, k)),
                pl.BlockSpec((tk, N), lambda k: (k, 0)),
                pl.BlockSpec((1, N), lambda k: (0, 0)),
                pl.BlockSpec((1, N), lambda k: (0, 0)),
                pl.BlockSpec((1, N), lambda k: (0, 0)),
            ],
            out_specs=pl.BlockSpec((M, N), lambda k: (0, 0)),
            scratch_shapes=[pltpu.VMEM((M, N), jnp.float32)],
        ),
        compiler_params=pltpu.CompilerParams(dimension_semantics=("arbitrary",)),
    )(h, w1, b1.reshape(1, KI), w2, b2.reshape(1, N),
      gamma.reshape(1, N), beta.reshape(1, N))


# ---------------- parameters (deterministic synthetic init) ----------------
def init_params(key):
    def nrm(k, shape, dtype=jnp.float32, scale=0.02):
        return (scale * jax.random.normal(k, shape, dtype=jnp.float32)).astype(dtype)

    keys = jax.random.split(key, 4 + LAYERS)
    params = {
        "word_emb": nrm(keys[0], (VOCAB, HIDDEN)),
        "pos_emb": nrm(keys[1], (MAX_POS, HIDDEN)),
        "type_emb": nrm(keys[2], (TYPE_VOCAB, HIDDEN)),
        "emb_ln_g": jnp.ones((HIDDEN,), jnp.float32),
        "emb_ln_b": jnp.zeros((HIDDEN,), jnp.float32),
        "fc_w": nrm(keys[3], (HIDDEN, NUM_CLASSES)),
        "fc_b": jnp.zeros((NUM_CLASSES,), jnp.float32),
        "layers": [],
    }
    for l in range(LAYERS):
        lk = jax.random.split(keys[4 + l], 4)
        params["layers"].append({
            # fused Q|K|V weight (bf16); matmul weights in bf16, everything else f32
            "w_qkv": nrm(lk[0], (HIDDEN, 3 * HIDDEN), dtype=jnp.bfloat16),
            "b_qkv": jnp.zeros((3 * HIDDEN,), jnp.float32),
            "wo": nrm(lk[1], (HIDDEN, HIDDEN), dtype=jnp.bfloat16),
            "bo": jnp.zeros((HIDDEN,), jnp.float32),
            "attn_ln_g": jnp.ones((HIDDEN,), jnp.float32),
            "attn_ln_b": jnp.zeros((HIDDEN,), jnp.float32),
            "w1": nrm(lk[2], (HIDDEN, INTERMEDIATE), dtype=jnp.bfloat16),
            "b1": jnp.zeros((INTERMEDIATE,), jnp.float32),
            "w2": nrm(lk[3], (INTERMEDIATE, HIDDEN), dtype=jnp.bfloat16),
            "b2": jnp.zeros((HIDDEN,), jnp.float32),
            "out_ln_g": jnp.ones((HIDDEN,), jnp.float32),
            "out_ln_b": jnp.zeros((HIDDEN,), jnp.float32),
        })
    return params


# ---------------- forward pass (== CustomBertModel.forward) ----------------
def custom_bert_forward(params, input_ids, attention_mask, token_type_ids):
    B, S = input_ids.shape

    # Embedding gathers are plain-JAX glue; sum + LayerNorm run fused in Pallas.
    word = jnp.take(params["word_emb"], input_ids.reshape(-1), axis=0)       # (B*S, H)
    tok = jnp.take(params["type_emb"], token_type_ids.reshape(-1), axis=0)   # (B*S, H)
    pos = params["pos_emb"][:S]                                              # (S, H)
    h = embed_layernorm(word, tok, pos, params["emb_ln_g"], params["emb_ln_b"],
                        batch=B, seq=S)

    # extended additive attention mask, HF-style: (1 - mask) * -10000, shape (B, 1, S)
    ext_mask = ((1.0 - attention_mask.astype(jnp.float32)) * -10000.0).reshape(B, 1, S)
    scale = 1.0 / math.sqrt(HEAD_DIM)

    for lp in params["layers"]:
        qkv = qkv_projection(h, lp["w_qkv"], lp["b_qkv"])                    # (B*S, 3H)
        ctx = attention(qkv, ext_mask, batch=B, seq=S, scale=scale)          # (B*S, H)
        h = proj_residual_layernorm(ctx, lp["wo"], lp["bo"], h,
                                    lp["attn_ln_g"], lp["attn_ln_b"])
        h = ffn_residual_layernorm(h, lp["w1"], lp["b1"], lp["w2"], lp["b2"],
                                   lp["out_ln_g"], lp["out_ln_b"])

    # CLS token -> Dropout(p=0.5) is identity at inference -> Linear(768, 2).
    # The 2x768 @ 768x2 head stays in plain JAX (a pallas_call here is pure launch
    # overhead with a 2-lane masked store).
    cls = h.reshape(B, S, HIDDEN)[:, 0, :]
    logits = jnp.dot(cls, params["fc_w"]) + params["fc_b"]
    return logits


if __name__ == "__main__":
    key = jax.random.PRNGKey(0)
    pkey, ikey = jax.random.split(key)
    params = init_params(pkey)

    B, S = 2, 8
    input_ids = jax.random.randint(ikey, (B, S), 0, VOCAB, dtype=jnp.int32)
    attention_mask = jnp.ones((B, S), dtype=jnp.int32)
    token_type_ids = jnp.zeros((B, S), dtype=jnp.int32)

    fwd = jax.jit(custom_bert_forward)
    logits = fwd(params, input_ids, attention_mask, token_type_ids)
    jax.block_until_ready(logits)
    assert logits.shape == (B, NUM_CLASSES) and logits.dtype == jnp.float32
    print("KERNEL_OK")
</pallas_src>

<mosaic_0001>
module attributes {stable_mosaic.version = 11 : i64} {
  func.func @_qkv_kernel(%arg0: i32, %arg1: i32, %arg2: memref<16x256xf32, #tpu.memory_space<vmem>>, %arg3: memref<256x768xbf16, #tpu.memory_space<vmem>>, %arg4: memref<1x768xf32, #tpu.memory_space<vmem>>, %arg5: memref<16x768xf32, #tpu.memory_space<vmem>>, %arg6: memref<16x768xf32, #tpu.memory_space<vmem>>) attributes {dimension_semantics = [#tpu.dimension_semantics<parallel>, #tpu.dimension_semantics<arbitrary>], iteration_bounds = array<i64: 3, 3>, scalar_prefetch = 0 : i64, scratch_operands = 1 : i64, tpu.core_type = #tpu.core_type<tc>, window_params = [{transform_indices = @transform_0, window_bounds = array<i64: 16, 256>}, {transform_indices = @transform_1, window_bounds = array<i64: 256, 768>}, {transform_indices = @transform_2, window_bounds = array<i64: 1, 768>}, {transform_indices = @transform_3, window_bounds = array<i64: 16, 768>}]} {
    %c0_i32 = arith.constant 0 : i32
    %0 = arith.cmpi eq, %arg1, %c0_i32 : i32
    %1 = arith.extui %0 : i1 to i32
    %c0_i32_0 = arith.constant 0 : i32
    %2 = arith.cmpi ne, %1, %c0_i32_0 : i32
    scf.if %2 {
      %cst_9 = arith.constant 0.000000e+00 : f32
      %13 = vector.broadcast %cst_9 : f32 to vector<16x768xf32>
      %c0_10 = arith.constant 0 : index
      %c0_11 = arith.constant 0 : index
      %14 = vector.load %arg6[%c0_10, %c0_11] : memref<16x768xf32, #tpu.memory_space<vmem>>, vector<16x768xf32>
      tpu.vector_store %arg6[%c0_10, %c0_11], %13 {strides = array<i32>} : memref<16x768xf32, #tpu.memory_space<vmem>>, vector<16x768xf32>,
    } else {
    }
    %c0 = arith.constant 0 : index
    %c0_1 = arith.constant 0 : index
    %3 = vector.load %arg6[%c0, %c0_1] : memref<16x768xf32, #tpu.memory_space<vmem>>, vector<16x768xf32>
    %c0_2 = arith.constant 0 : index
    %c0_3 = arith.constant 0 : index
    %4 = vector.load %arg2[%c0_2, %c0_3] : memref<16x256xf32, #tpu.memory_space<vmem>>, vector<16x256xf32>
    %5 = arith.truncf %4 : vector<16x256xf32> to vector<16x256xbf16>
    %c0_4 = arith.constant 0 : index
    %c0_5 = arith.constant 0 : index
    %6 = vector.load %arg3[%c0_4, %c0_5] : memref<256x768xbf16, #tpu.memory_space<vmem>>, vector<256x768xbf16>
    %cst = arith.constant dense<0.000000e+00> : vector<16x768xf32>
    %7 = tpu.matmul %5, %6, %cst {dimension_numbers = #tpu.dot_dimension_numbers<[1], [0], [0], [1], [0, 0, 1, 1], [], []>} : vector<16x256xbf16>, vector<256x768xbf16>, vector<16x768xf32> -> vector<16x768xf32>
    %8 = arith.addf %3, %7 : vector<16x768xf32>
    %c0_6 = arith.constant 0 : index
    %c0_7 = arith.constant 0 : index
    %9 = vector.load %arg6[%c0_6, %c0_7] : memref<16x768xf32, #tpu.memory_space<vmem>>, vector<16x768xf32>
    tpu.vector_store %arg6[%c0_6, %c0_7], %8 {strides = array<i32>} : memref<16x768xf32, #tpu.memory_space<vmem>>, vector<16x768xf32>,
    %c2_i32 = arith.constant 2 : i32
    %10 = arith.cmpi eq, %arg1, %c2_i32 : i32
    %11 = arith.extui %10 : i1 to i32
    %c0_i32_8 = arith.constant 0 : i32
    %12 = arith.cmpi ne, %11, %c0_i32_8 : i32
    scf.if %12 {
      %c0_9 = arith.constant 0 : index
      %c0_10 = arith.constant 0 : index
      %13 = vector.load %arg6[%c0_9, %c0_10] : memref<16x768xf32, #tpu.memory_space<vmem>>, vector<16x768xf32>
      %c0_11 = arith.constant 0 : index
      %c0_12 = arith.constant 0 : index
      %14 = vector.load %arg4[%c0_11, %c0_12] : memref<1x768xf32, #tpu.memory_space<vmem>>, vector<1x768xf32>
      %15 = vector.broadcast %14 : vector<1x768xf32> to vector<16x768xf32>
      %16 = arith.addf %13, %15 : vector<16x768xf32>
      %c0_13 = arith.constant 0 : index
      %c0_14 = arith.constant 0 : index
      %17 = vector.load %arg5[%c0_13, %c0_14] : memref<16x768xf32, #tpu.memory_space<vmem>>, vector<16x768xf32>
      tpu.vector_store %arg5[%c0_13, %c0_14], %16 {strides = array<i32>} : memref<16x768xf32, #tpu.memory_space<vmem>>, vector<16x768xf32>,
    } else {
    }
    return
  }
  func.func @transform_0(%arg0: i32, %arg1: i32) -> (i32, i32) {
    %c0_i32 = arith.constant 0 : i32
    %c0_i32_0 = arith.constant 0 : i32
    return %c0_i32, %arg1 : i32, i32
  }
  func.func @transform_1(%arg0: i32, %arg1: i32) -> (i32, i32) {
    %c0_i32 = arith.constant 0 : i32
    return %arg1, %arg0 : i32, i32
  }
  func.func @transform_2(%arg0: i32, %arg1: i32) -> (i32, i32) {
    %c0_i32 = arith.constant 0 : i32
    %c0_i32_0 = arith.constant 0 : i32
    return %c0_i32, %arg0 : i32, i32
  }
  func.func @transform_3(%arg0: i32, %arg1: i32) -> (i32, i32) {
    %c0_i32 = arith.constant 0 : i32
    %c0_i32_0 = arith.constant 0 : i32
    return %c0_i32, %arg0 : i32, i32
  }
}

module attributes {stable_mosaic.version = 11 : i64} {
  func.func @_embed_ln_kernel(%arg0: i32, %arg1: memref<8x768xf32, #tpu.memory_space<vmem>>, %arg2: memref<8x768xf32, #tpu.memory_space<vmem>>, %arg3: memref<8x768xf32, #tpu.memory_space<vmem>>, %arg4: memref<1x768xf32, #tpu.memory_space<vmem>>, %arg5: memref<1x768xf32, #tpu.memory_space<vmem>>, %arg6: memref<8x768xf32, #tpu.memory_space<vmem>>) attributes {dimension_semantics = [#tpu.dimension_semantics<parallel>], iteration_bounds = array<i64: 2>, scalar_prefetch = 0 : i64, scratch_operands = 0 : i64, tpu.core_type = #tpu.core_type<tc>, window_params = [{transform_indices = @transform_0, window_bounds = array<i64: 8, 768>}, {transform_indices = @transform_1, window_bounds = array<i64: 8, 768>}, {pipeline_mode = #tpu.pipeline_mode<synchronous>, transform_indices = @transform_2, window_bounds = array<i64: 8, 768>}, {pipeline_mode = #tpu.pipeline_mode<synchronous>, transform_indices = @transform_3, window_bounds = array<i64: 1, 768>}, {pipeline_mode = #tpu.pipeline_mode<synchronous>, transform_indices = @transform_4, window_bounds = array<i64: 1, 768>}, {transform_indices = @transform_5, window_bounds = array<i64: 8, 768>}]} {
    %c0 = arith.constant 0 : index
    %c0_0 = arith.constant 0 : index
    %0 = vector.load %arg1[%c0, %c0_0] : memref<8x768xf32, #tpu.memory_space<vmem>>, vector<8x768xf32>
    %c0_1 = arith.constant 0 : index
    %c0_2 = arith.constant 0 : index
    %1 = vector.load %arg2[%c0_1, %c0_2] : memref<8x768xf32, #tpu.memory_space<vmem>>, vector<8x768xf32>
    %2 = arith.addf %0, %1 : vector<8x768xf32>
    %c0_3 = arith.constant 0 : index
    %c0_4 = arith.constant 0 : index
    %3 = vector.load %arg3[%c0_3, %c0_4] : memref<8x768xf32, #tpu.memory_space<vmem>>, vector<8x768xf32>
    %4 = arith.addf %2, %3 : vector<8x768xf32>
    %c0_5 = arith.constant 0 : index
    %c0_6 = arith.constant 0 : index
    %5 = vector.load %arg4[%c0_5, %c0_6] : memref<1x768xf32, #tpu.memory_space<vmem>>, vector<1x768xf32>
    %c0_7 = arith.constant 0 : index
    %c0_8 = arith.constant 0 : index
    %6 = vector.load %arg5[%c0_7, %c0_8] : memref<1x768xf32, #tpu.memory_space<vmem>>, vector<1x768xf32>
    %cst = arith.constant dense<0.000000e+00> : vector<8xf32>
    %7 = vector.multi_reduction <add>, %4, %cst [1] : vector<8x768xf32> to vector<8xf32>
    %8 = vector.shape_cast %7 : vector<8xf32> to vector<8x1xf32>
    %cst_9 = arith.constant 7.680000e+02 : f32
    %9 = vector.broadcast %cst_9 : f32 to vector<8x1xf32>
    %10 = arith.divf %8, %9 : vector<8x1xf32>
    %11 = vector.broadcast %10 : vector<8x1xf32> to vector<8x768xf32>
    %12 = arith.subf %4, %11 : vector<8x768xf32>
    %13 = arith.mulf %12, %12 : vector<8x768xf32>
    %cst_10 = arith.constant dense<0.000000e+00> : vector<8xf32>
    %14 = vector.multi_reduction <add>, %13, %cst_10 [1] : vector<8x768xf32> to vector<8xf32>
    %15 = vector.shape_cast %14 : vector<8xf32> to vector<8x1xf32>
    %cst_11 = arith.constant 7.680000e+02 : f32
    %16 = vector.broadcast %cst_11 : f32 to vector<8x1xf32>
    %17 = arith.divf %15, %16 : vector<8x1xf32>
    %cst_12 = arith.constant 9.99999996E-13 : f32
    %18 = vector.broadcast %cst_12 : f32 to vector<8x1xf32>
    %19 = arith.addf %17, %18 : vector<8x1xf32>
    %20 = math.rsqrt %19 : vector<8x1xf32>
    %21 = vector.broadcast %20 : vector<8x1xf32> to vector<8x768xf32>
    %22 = arith.mulf %12, %21 : vector<8x768xf32>
    %23 = vector.broadcast %5 : vector<1x768xf32> to vector<8x768xf32>
    %24 = arith.mulf %22, %23 : vector<8x768xf32>
    %25 = vector.broadcast %6 : vector<1x768xf32> to vector<8x768xf32>
    %26 = arith.addf %24, %25 : vector<8x768xf32>
    %c0_13 = arith.constant 0 : index
    %c0_14 = arith.constant 0 : index
    %27 = vector.load %arg6[%c0_13, %c0_14] : memref<8x768xf32, #tpu.memory_space<vmem>>, vector<8x768xf32>
    tpu.vector_store %arg6[%c0_13, %c0_14], %26 {strides = array<i32>} : memref<8x768xf32, #tpu.memory_space<vmem>>, vector<8x768xf32>,
    return
  }
  func.func @transform_0(%arg0: i32) -> (i32, i32) {
    %c0_i32 = arith.constant 0 : i32
    %c0_i32_0 = arith.constant 0 : i32
    return %arg0, %c0_i32 : i32, i32
  }
  func.func @transform_1(%arg0: i32) -> (i32, i32) {
    %c0_i32 = arith.constant 0 : i32
    %c0_i32_0 = arith.constant 0 : i32
    return %arg0, %c0_i32 : i32, i32
  }
  func.func @transform_2(%arg0: i32) -> (i32, i32) {
    %c0_i32 = arith.constant 0 : i32
    %c0_i32_0 = arith.constant 0 : i32
    %c0_i32_1 = arith.constant 0 : i32
    return %c0_i32, %c0_i32_0 : i32, i32
  }
  func.func @transform_3(%arg0: i32) -> (i32, i32) {
    %c0_i32 = arith.constant 0 : i32
    %c0_i32_0 = arith.constant 0 : i32
    %c0_i32_1 = arith.constant 0 : i32
    return %c0_i32, %c0_i32_0 : i32, i32
  }
  func.func @transform_4(%arg0: i32) -> (i32, i32) {
    %c0_i32 = arith.constant 0 : i32
    %c0_i32_0 = arith.constant 0 : i32
    %c0_i32_1 = arith.constant 0 : i32
    return %c0_i32, %c0_i32_0 : i32, i32
  }
  func.func @transform_5(%arg0: i32) -> (i32, i32) {
    %c0_i32 = arith.constant 0 : i32
    %c0_i32_0 = arith.constant 0 : i32
    return %arg0, %c0_i32 : i32, i32
  }
}

module attributes {stable_mosaic.version = 11 : i64} {
  func.func @_attention_kernel(%arg0: i32, %arg1: memref<8x2304xf32, #tpu.memory_space<vmem>>, %arg2: memref<1x1x8xf32, #tpu.memory_space<vmem>>, %arg3: memref<8x768xf32, #tpu.memory_space<vmem>>) attributes {dimension_semantics = [#tpu.dimension_semantics<parallel>], iteration_bounds = array<i64: 2>, scalar_prefetch = 0 : i64, scratch_operands = 0 : i64, tpu.core_type = #tpu.core_type<tc>, window_params = [{transform_indices = @transform_0, window_bounds = array<i64: 8, 2304>}, {transform_indices = @transform_1, window_bounds = array<i64: 1, 1, 8>}, {transform_indices = @transform_2, window_bounds = array<i64: 8, 768>}]} {
    %c0 = arith.constant 0 : index
    %c0_0 = arith.constant 0 : index
    %0 = vector.load %arg1[%c0, %c0_0] : memref<8x2304xf32, #tpu.memory_space<vmem>>, vector<8x2304xf32>
    %c0_1 = arith.constant 0 : index
    %c0_2 = arith.constant 0 : index
    %c0_3 = arith.constant 0 : index
    %1 = vector.load %arg2[%c0_1, %c0_2, %c0_3] : memref<1x1x8xf32, #tpu.memory_space<vmem>>, vector<1x1x8xf32>
    %2 = vector.shape_cast %1 : vector<1x1x8xf32> to vector<1x8xf32>
    %3 = vector.extract_strided_slice %0 {offsets = [0, 0], sizes = [8, 64], strides = [1, 1]} : vector<8x2304xf32> to vector<8x64xf32>
    %4 = vector.extract_strided_slice %0 {offsets = [0, 768], sizes = [8, 64], strides = [1, 1]} : vector<8x2304xf32> to vector<8x64xf32>
    %5 = vector.extract_strided_slice %0 {offsets = [0, 1536], sizes = [8, 64], strides = [1, 1]} : vector<8x2304xf32> to vector<8x64xf32>
    %cst = arith.constant dense<0.000000e+00> : vector<8x8xf32>
    %6 = tpu.matmul %3, %4, %cst {dimension_numbers = #tpu.dot_dimension_numbers<[1], [1], [0], [0], [0, 0, 1, 0], [], []>} : vector<8x64xf32>, vector<8x64xf32>, vector<8x8xf32> -> vector<8x8xf32>
    %cst_4 = arith.constant 1.250000e-01 : f32
    %7 = vector.broadcast %cst_4 : f32 to vector<8x8xf32>
    %8 = arith.mulf %6, %7 : vector<8x8xf32>
    %9 = vector.broadcast %2 : vector<1x8xf32> to vector<8x8xf32>
    %10 = arith.addf %8, %9 : vector<8x8xf32>
    %cst_5 = arith.constant dense<0xFF800000> : vector<8xf32>
    %11 = vector.multi_reduction <maximumf>, %10, %cst_5 [1] : vector<8x8xf32> to vector<8xf32>
    %12 = vector.shape_cast %11 : vector<8xf32> to vector<8x1xf32>
    %13 = vector.broadcast %12 : vector<8x1xf32> to vector<8x8xf32>
    %14 = arith.subf %10, %13 : vector<8x8xf32>
    %15 = math.exp %14 : vector<8x8xf32>
    %cst_6 = arith.constant dense<0.000000e+00> : vector<8xf32>
    %16 = vector.multi_reduction <add>, %15, %cst_6 [1] : vector<8x8xf32> to vector<8xf32>
    %17 = vector.shape_cast %16 : vector<8xf32> to vector<8x1xf32>
    %18 = vector.broadcast %17 : vector<8x1xf32> to vector<8x8xf32>
    %19 = arith.divf %15, %18 : vector<8x8xf32>
    %cst_7 = arith.constant dense<0.000000e+00> : vector<8x64xf32>
    %20 = tpu.matmul %19, %5, %cst_7 {dimension_numbers = #tpu.dot_dimension_numbers<[1], [0], [0], [1], [0, 0, 1, 1], [], []>} : vector<8x8xf32>, vector<8x64xf32>, vector<8x64xf32> -> vector<8x64xf32>
    %21 = vector.extract_strided_slice %0 {offsets = [0, 64], sizes = [8, 64], strides = [1, 1]} : vector<8x2304xf32> to vector<8x64xf32>
    %22 = vector.extract_strided_slice %0 {offsets = [0, 832], sizes = [8, 64], strides = [1, 1]} : vector<8x2304xf32> to vector<8x64xf32>
    %23 = vector.extract_strided_slice %0 {offsets = [0, 1600], sizes = [8, 64], strides = [1, 1]} : vector<8x2304xf32> to vector<8x64xf32>
    %cst_8 = arith.constant dense<0.000000e+00> : vector<8x8xf32>
    %24 = tpu.matmul %21, %22, %cst_8 {dimension_numbers = #tpu.dot_dimension_numbers<[1], [1], [0], [0], [0, 0, 1, 0], [], []>} : vector<8x64xf32>, vector<8x64xf32>, vector<8x8xf32> -> vector<8x8xf32>
    %cst_9 = arith.constant 1.250000e-01 : f32
    %25 = vector.broadcast %cst_9 : f32 to vector<8x8xf32>
    %26 = arith.mulf %24, %25 : vector<8x8xf32>
    %27 = vector.broadcast %2 : vector<1x8xf32> to vector<8x8xf32>
    %28 = arith.addf %26, %27 : vector<8x8xf32>
    %cst_10 = arith.constant dense<0xFF800000> : vector<8xf32>
    %29 = vector.multi_reduction <maximumf>, %28, %cst_10 [1] : vector<8x8xf32> to vector<8xf32>
    %30 = vector.shape_cast %29 : vector<8xf32> to vector<8x1xf32>
    %31 = vector.broadcast %30 : vector<8x1xf32> to vector<8x8xf32>
    %32 = arith.subf %28, %31 : vector<8x8xf32>
    %33 = math.exp %32 : vector<8x8xf32>
    %cst_11 = arith.constant dense<0.000000e+00> : vector<8xf32>
    %34 = vector.multi_reduction <add>, %33, %cst_11 [1] : vector<8x8xf32> to vector<8xf32>
    %35 = vector.shape_cast %34 : vector<8xf32> to vector<8x1xf32>
    %36 = vector.broadcast %35 : vector<8x1xf32> to vector<8x8xf32>
    %37 = arith.divf %33, %36 : vector<8x8xf32>
    %cst_12 = arith.constant dense<0.000000e+00> : vector<8x64xf32>
    %38 = tpu.matmul %37, %23, %cst_12 {dimension_numbers = #tpu.dot_dimension_numbers<[1], [0], [0], [1], [0, 0, 1, 1], [], []>} : vector<8x8xf32>, vector<8x64xf32>, vector<8x64xf32> -> vector<8x64xf32>
    %39 = vector.extract_strided_slice %0 {offsets = [0, 128], sizes = [8, 64], strides = [1, 1]} : vector<8x2304xf32> to vector<8x64xf32>
    %40 = vector.extract_strided_slice %0 {offsets = [0, 896], sizes = [8, 64], strides = [1, 1]} : vector<8x2304xf32> to vector<8x64xf32>
    %41 = vector.extract_strided_slice %0 {offsets = [0, 1664], sizes = [8, 64], strides = [1, 1]} : vector<8x2304xf32> to vector<8x64xf32>
    %cst_13 = arith.constant dense<0.000000e+00> : vector<8x8xf32>
    %42 = tpu.matmul %39, %40, %cst_13 {dimension_numbers = #tpu.dot_dimension_numbers<[1], [1], [0], [0], [0, 0, 1, 0], [], []>} : vector<8x64xf32>, vector<8x64xf32>, vector<8x8xf32> -> vector<8x8xf32>
    %cst_14 = arith.constant 1.250000e-01 : f32
    %43 = vector.broadcast %cst_14 : f32 to vector<8x8xf32>
    %44 = arith.mulf %42, %43 : vector<8x8xf32>
    %45 = vector.broadcast %2 : vector<1x8xf32> to vector<8x8xf32>
    %46 = arith.addf %44, %45 : vector<8x8xf32>
    %cst_15 = arith.constant dense<0xFF800000> : vector<8xf32>
    %47 = vector.multi_reduction <maximumf>, %46, %cst_15 [1] : vector<8x8xf32> to vector<8xf32>
    %48 = vector.shape_cast %47 : vector<8xf32> to vector<8x1xf32>
    %49 = vector.broadcast %48 : vector<8x1xf32> to vector<8x8xf32>
    %50 = arith.subf %46, %49 : vector<8x8xf32>
    %51 = math.exp %50 : vector<8x8xf32>
    %cst_16 = arith.constant dense<0.000000e+00> : vector<8xf32>
    %52 = vector.multi_reduction <add>, %51, %cst_16 [1] : vector<8x8xf32> to vector<8xf32>
    %53 = vector.shape_cast %52 : vector<8xf32> to vector<8x1xf32>
    %54 = vector.broadcast %53 : vector<8x1xf32> to vector<8x8xf32>
    %55 = arith.divf %51, %54 : vector<8x8xf32>
    %cst_17 = arith.constant dense<0.000000e+00> : vector<8x64xf32>
    %56 = tpu.matmul %55, %41, %cst_17 {dimension_numbers = #tpu.dot_dimension_numbers<[1], [0], [0], [1], [0, 0, 1, 1], [], []>} : vector<8x8xf32>, vector<8x64xf32>, vector<8x64xf32> -> vector<8x64xf32>
    %57 = vector.extract_strided_slice %0 {offsets = [0, 192], sizes = [8, 64], strides = [1, 1]} : vector<8x2304xf32> to vector<8x64xf32>
    %58 = vector.extract_strided_slice %0 {offsets = [0, 960], sizes = [8, 64], strides = [1, 1]} : vector<8x2304xf32> to vector<8x64xf32>
    %59 = vector.extract_strided_slice %0 {offsets = [0, 1728], sizes = [8, 64], strides = [1, 1]} : vector<8x2304xf32> to vector<8x64xf32>
    %cst_18 = arith.constant dense<0.000000e+00> : vector<8x8xf32>
    %60 = tpu.matmul %57, %58, %cst_18 {dimension_numbers = #tpu.dot_dimension_numbers<[1], [1], [0], [0], [0, 0, 1, 0], [], []>} : vector<8x64xf32>, vector<8x64xf32>, vector<8x8xf32> -> vector<8x8xf32>
    %cst_19 = arith.constant 1.250000e-01 : f32
    %61 = vector.broadcast %cst_19 : f32 to vector<8x8xf32>
    %62 = arith.mulf %60, %61 : vector<8x8xf32>
    %63 = vector.broadcast %2 : vector<1x8xf32> to vector<8x8xf32>
    %64 = arith.addf %62, %63 : vector<8x8xf32>
    %cst_20 = arith.constant dense<0xFF800000> : vector<8xf32>
    %65 = vector.multi_reduction <maximumf>, %64, %cst_20 [1] : vector<8x8xf32> to vector<8xf32>
    %66 = vector.shape_cast %65 : vector<8xf32> to vector<8x1xf32>
    %67 = vector.broadcast %66 : vector<8x1xf32> to vector<8x8xf32>
    %68 = arith.subf %64, %67 : vector<8x8xf32>
    %69 = math.exp %68 : vector<8x8xf32>
    %cst_21 = arith.constant dense<0.000000e+00> : vector<8xf32>
    %70 = vector.multi_reduction <add>, %69, %cst_21 [1] : vector<8x8xf32> to vector<8xf32>
    %71 = vector.shape_cast %70 : vector<8xf32> to vector<8x1xf32>
    %72 = vector.broadcast %71 : vector<8x1xf32> to vector<8x8xf32>
    %73 = arith.divf %69, %72 : vector<8x8xf32>
    %cst_22 = arith.constant dense<0.000000e+00> : vector<8x64xf32>
    %74 = tpu.matmul %73, %59, %cst_22 {dimension_numbers = #tpu.dot_dimension_numbers<[1], [0], [0], [1], [0, 0, 1, 1], [], []>} : vector<8x8xf32>, vector<8x64xf32>, vector<8x64xf32> -> vector<8x64xf32>
    %75 = vector.extract_strided_slice %0 {offsets = [0, 256], sizes = [8, 64], strides = [1, 1]} : vector<8x2304xf32> to vector<8x64xf32>
    %76 = vector.extract_strided_slice %0 {offsets = [0, 1024], sizes = [8, 64], strides = [1, 1]} : vector<8x2304xf32> to vector<8x64xf32>
    %77 = vector.extract_strided_slice %0 {offsets = [0, 1792], sizes = [8, 64], strides = [1, 1]} : vector<8x2304xf32> to vector<8x64xf32>
    %cst_23 = arith.constant dense<0.000000e+00> : vector<8x8xf32>
    %78 = tpu.matmul %75, %76, %cst_23 {dimension_numbers = #tpu.dot_dimension_numbers<[1], [1], [0], [0], [0, 0, 1, 0], [], []>} : vector<8x64xf32>, vector<8x64xf32>, vector<8x8xf32> -> vector<8x8xf32>
    %cst_24 = arith.constant 1.250000e-01 : f32
    %79 = vector.broadcast %cst_24 : f32 to vector<8x8xf32>
    %80 = arith.mulf %78, %79 : vector<8x8xf32>
    %81 = vector.broadcast %2 : vector<1x8xf32> to vector<8x8xf32>
    %82 = arith.addf %80, %81 : vector<8x8xf32>
    %cst_25 = arith.constant dense<0xFF800000> : vector<8xf32>
    %83 = vector.multi_reduction <maximumf>, %82, %cst_25 [1] : vector<8x8xf32> to vector<8xf32>
    %84 = vector.shape_cast %83 : vector<8xf32> to vector<8x1xf32>
    %85 = vector.broadcast %84 : vector<8x1xf32> to vector<8x8xf32>
    %86 = arith.subf %82, %85 : vector<8x8xf32>
    %87 = math.exp %86 : vector<8x8xf32>
    %cst_26 = arith.constant dense<0.000000e+00> : vector<8xf32>
    %88 = vector.multi_reduction <add>, %87, %cst_26 [1] : vector<8x8xf32> to vector<8xf32>
    %89 = vector.shape_cast %88 : vector<8xf32> to vector<8x1xf32>
    %90 = vector.broadcast %89 : vector<8x1xf32> to vector<8x8xf32>
    %91 = arith.divf %87, %90 : vector<8x8xf32>
    %cst_27 = arith.constant dense<0.000000e+00> : vector<8x64xf32>
    %92 = tpu.matmul %91, %77, %cst_27 {dimension_numbers = #tpu.dot_dimension_numbers<[1], [0], [0], [1], [0, 0, 1, 1], [], []>} : vector<8x8xf32>, vector<8x64xf32>, vector<8x64xf32> -> vector<8x64xf32>
    %93 = vector.extract_strided_slice %0 {offsets = [0, 320], sizes = [8, 64], strides = [1, 1]} : vector<8x2304xf32> to vector<8x64xf32>
    %94 = vector.extract_strided_slice %0 {offsets = [0, 1088], sizes = [8, 64], strides = [1, 1]} : vector<8x2304xf32> to vector<8x64xf32>
    %95 = vector.extract_strided_slice %0 {offsets = [0, 1856], sizes = [8, 64], strides = [1, 1]} : vector<8x2304xf32> to vector<8x64xf32>
    %cst_28 = arith.constant dense<0.000000e+00> : vector<8x8xf32>
    %96 = tpu.matmul %93, %94, %cst_28 {dimension_numbers = #tpu.dot_dimension_numbers<[1], [1], [0], [0], [0, 0, 1, 0], [], []>} : vector<8x64xf32>, vector<8x64xf32>, vector<8x8xf32> -> vector<8x8xf32>
    %cst_29 = arith.constant 1.250000e-01 : f32
    %97 = vector.broadcast %cst_29 : f32 to vector<8x8xf32>
    %98 = arith.mulf %96, %97 : vector<8x8xf32>
    %99 = vector.broadcast %2 : vector<1x8xf32> to vector<8x8xf32>
    %100 = arith.addf %98, %99 : vector<8x8xf32>
    %cst_30 = arith.constant dense<0xFF800000> : vector<8xf32>
    %101 = vector.multi_reduction <maximumf>, %100, %cst_30 [1] : vector<8x8xf32> to vector<8xf32>
    %102 = vector.shape_cast %101 : vector<8xf32> to vector<8x1xf32>
    %103 = vector.broadcast %102 : vector<8x1xf32> to vector<8x8xf32>
    %104 = arith.subf %100, %103 : vector<8x8xf32>
    %105 = math.exp %104 : vector<8x8xf32>
    %cst_31 = arith.constant dense<0.000000e+00> : vector<8xf32>
    %106 = vector.multi_reduction <add>, %105, %cst_31 [1] : vector<8x8xf32> to vector<8xf32>
    %107 = vector.shape_cast %106 : vector<8xf32> to vector<8x1xf32>
    %108 = vector.broadcast %107 : vector<8x1xf32> to vector<8x8xf32>
    %109 = arith.divf %105, %108 : vector<8x8xf32>
    %cst_32 = arith.constant dense<0.000000e+00> : vector<8x64xf32>
    %110 = tpu.matmul %109, %95, %cst_32 {dimension_numbers = #tpu.dot_dimension_numbers<[1], [0], [0], [1], [0, 0, 1, 1], [], []>} : vector<8x8xf32>, vector<8x64xf32>, vector<8x64xf32> -> vector<8x64xf32>
    %111 = vector.extract_strided_slice %0 {offsets = [0, 384], sizes = [8, 64], strides = [1, 1]} : vector<8x2304xf32> to vector<8x64xf32>
    %112 = vector.extract_strided_slice %0 {offsets = [0, 1152], sizes = [8, 64], strides = [1, 1]} : vector<8x2304xf32> to vector<8x64xf32>
    %113 = vector.extract_strided_slice %0 {offsets = [0, 1920], sizes = [8, 64], strides = [1, 1]} : vector<8x2304xf32> to vector<8x64xf32>
    %cst_33 = arith.constant dense<0.000000e+00> : vector<8x8xf32>
    %114 = tpu.matmul %111, %112, %cst_33 {dimension_numbers = #tpu.dot_dimension_numbers<[1], [1], [0], [0], [0, 0, 1, 0], [], []>} : vector<8x64xf32>, vector<8x64xf32>, vector<8x8xf32> -> vector<8x8xf32>
    %cst_34 = arith.constant 1.250000e-01 : f32
    %115 = vector.broadcast %cst_34 : f32 to vector<8x8xf32>
    %116 = arith.mulf %114, %115 : vector<8x8xf32>
    %117 = vector.broadcast %2 : vector<1x8xf32> to vector<8x8xf32>
    %118 = arith.addf %116, %117 : vector<8x8xf32>
    %cst_35 = arith.constant dense<0xFF800000> : vector<8xf32>
    %119 = vector.multi_reduction <maximumf>, %118, %cst_35 [1] : vector<8x8xf32> to vector<8xf32>
    %120 = vector.shape_cast %119 : vector<8xf32> to vector<8x1xf32>
    %121 = vector.broadcast %120 : vector<8x1xf32> to vector<8x8xf32>
    %122 = arith.subf %118, %121 : vector<8x8xf32>
    %123 = math.exp %122 : vector<8x8xf32>
    %cst_36 = arith.constant dense<0.000000e+00> : vector<8xf32>
    %124 = vector.multi_reduction <add>, %123, %cst_36 [1] : vector<8x8xf32> to vector<8xf32>
    %125 = vector.shape_cast %124 : vector<8xf32> to vector<8x1xf32>
    %126 = vector.broadcast %125 : vector<8x1xf32> to vector<8x8xf32>
    %127 = arith.divf %123, %126 : vector<8x8xf32>
    %cst_37 = arith.constant dense<0.000000e+00> : vector<8x64xf32>
    %128 = tpu.matmul %127, %113, %cst_37 {dimension_numbers = #tpu.dot_dimension_numbers<[1], [0], [0], [1], [0, 0, 1, 1], [], []>} : vector<8x8xf32>, vector<8x64xf32>, vector<8x64xf32> -> vector<8x64xf32>
    %129 = vector.extract_strided_slice %0 {offsets = [0, 448], sizes = [8, 64], strides = [1, 1]} : vector<8x2304xf32> to vector<8x64xf32>
    %130 = vector.extract_strided_slice %0 {offsets = [0, 1216], sizes = [8, 64], strides = [1, 1]} : vector<8x2304xf32> to vector<8x64xf32>
    %131 = vector.extract_strided_slice %0 {offsets = [0, 1984], sizes = [8, 64], strides = [1, 1]} : vector<8x2304xf32> to vector<8x64xf32>
    %cst_38 = arith.constant dense<0.000000e+00> : vector<8x8xf32>
    %132 = tpu.matmul %129, %130, %cst_38 {dimension_numbers = #tpu.dot_dimension_numbers<[1], [1], [0], [0], [0, 0, 1, 0], [], []>} : vector<8x64xf32>, vector<8x64xf32>, vector<8x8xf32> -> vector<8x8xf32>
    %cst_39 = arith.constant 1.250000e-01 : f32
    %133 = vector.broadcast %cst_39 : f32 to vector<8x8xf32>
    %134 = arith.mulf %132, %133 : vector<8x8xf32>
    %135 = vector.broadcast %2 : vector<1x8xf32> to vector<8x8xf32>
    %136 = arith.addf %134, %135 : vector<8x8xf32>
    %cst_40 = arith.constant dense<0xFF800000> : vector<8xf32>
    %137 = vector.multi_reduction <maximumf>, %136, %cst_40 [1] : vector<8x8xf32> to vector<8xf32>
    %138 = vector.shape_cast %137 : vector<8xf32> to vector<8x1xf32>
    %139 = vector.broadcast %138 : vector<8x1xf32> to vector<8x8xf32>
    %140 = arith.subf %136, %139 : vector<8x8xf32>
    %141 = math.exp %140 : vector<8x8xf32>
    %cst_41 = arith.constant dense<0.000000e+00> : vector<8xf32>
    %142 = vector.multi_reduction <add>, %141, %cst_41 [1] : vector<8x8xf32> to vector<8xf32>
    %143 = vector.shape_cast %142 : vector<8xf32> to vector<8x1xf32>
    %144 = vector.broadcast %143 : vector<8x1xf32> to vector<8x8xf32>
    %145 = arith.divf %141, %144 : vector<8x8xf32>
    %cst_42 = arith.constant dense<0.000000e+00> : vector<8x64xf32>
    %146 = tpu.matmul %145, %131, %cst_42 {dimension_numbers = #tpu.dot_dimension_numbers<[1], [0], [0], [1], [0, 0, 1, 1], [], []>} : vector<8x8xf32>, vector<8x64xf32>, vector<8x64xf32> -> vector<8x64xf32>
    %147 = vector.extract_strided_slice %0 {offsets = [0, 512], sizes = [8, 64], strides = [1, 1]} : vector<8x2304xf32> to vector<8x64xf32>
    %148 = vector.extract_strided_slice %0 {offsets = [0, 1280], sizes = [8, 64], strides = [1, 1]} : vector<8x2304xf32> to vector<8x64xf32>
    %149 = vector.extract_strided_slice %0 {offsets = [0, 2048], sizes = [8, 64], strides = [1, 1]} : vector<8x2304xf32> to vector<8x64xf32>
    %cst_43 = arith.constant dense<0.000000e+00> : vector<8x8xf32>
    %150 = tpu.matmul %147, %148, %cst_43 {dimension_numbers = #tpu.dot_dimension_numbers<[1], [1], [0], [0], [0, 0, 1, 0], [], []>} : vector<8x64xf32>, vector<8x64xf32>, vector<8x8xf32> -> vector<8x8xf32>
    %cst_44 = arith.constant 1.250000e-01 : f32
    %151 = vector.broadcast %cst_44 : f32 to vector<8x8xf32>
    %152 = arith.mulf %150, %151 : vector<8x8xf32>
    %153 = vector.broadcast %2 : vector<1x8xf32> to vector<8x8xf32>
    %154 = arith.addf %152, %153 : vector<8x8xf32>
    %cst_45 = arith.constant dense<0xFF800000> : vector<8xf32>
    %155 = vector.multi_reduction <maximumf>, %154, %cst_45 [1] : vector<8x8xf32> to vector<8xf32>
    %156 = vector.shape_cast %155 : vector<8xf32> to vector<8x1xf32>
    %157 = vector.broadcast %156 : vector<8x1xf32> to vector<8x8xf32>
    %158 = arith.subf %154, %157 : vector<8x8xf32>
    %159 = math.exp %158 : vector<8x8xf32>
    %cst_46 = arith.constant dense<0.000000e+00> : vector<8xf32>
    %160 = vector.multi_reduction <add>, %159, %cst_46 [1] : vector<8x8xf32> to vector<8xf32>
    %161 = vector.shape_cast %160 : vector<8xf32> to vector<8x1xf32>
    %162 = vector.broadcast %161 : vector<8x1xf32> to vector<8x8xf32>
    %163 = arith.divf %159, %162 : vector<8x8xf32>
    %cst_47 = arith.constant dense<0.000000e+00> : vector<8x64xf32>
    %164 = tpu.matmul %163, %149, %cst_47 {dimension_numbers = #tpu.dot_dimension_numbers<[1], [0], [0], [1], [0, 0, 1, 1], [], []>} : vector<8x8xf32>, vector<8x64xf32>, vector<8x64xf32> -> vector<8x64xf32>
    %165 = vector.extract_strided_slice %0 {offsets = [0, 576], sizes = [8, 64], strides = [1, 1]} : vector<8x2304xf32> to vector<8x64xf32>
    %166 = vector.extract_strided_slice %0 {offsets = [0, 1344], sizes = [8, 64], strides = [1, 1]} : vector<8x2304xf32> to vector<8x64xf32>
    %167 = vector.extract_strided_slice %0 {offsets = [0, 2112], sizes = [8, 64], strides = [1, 1]} : vector<8x2304xf32> to vector<8x64xf32>
    %cst_48 = arith.constant dense<0.000000e+00> : vector<8x8xf32>
    %168 = tpu.matmul %165, %166, %cst_48 {dimension_numbers = #tpu.dot_dimension_numbers<[1], [1], [0], [0], [0, 0, 1, 0], [], []>} : vector<8x64xf32>, vector<8x64xf32>, vector<8x8xf32> -> vector<8x8xf32>
    %cst_49 = arith.constant 1.250000e-01 : f32
    %169 = vector.broadcast %cst_49 : f32 to vector<8x8xf32>
    %170 = arith.mulf %168, %169 : vector<8x8xf32>
    %171 = vector.broadcast %2 : vector<1x8xf32> to vector<8x8xf32>
    %172 = arith.addf %170, %171 : vector<8x8xf32>
    %cst_50 = arith.constant dense<0xFF800000> : vector<8xf32>
    %173 = vector.multi_reduction <maximumf>, %172, %cst_50 [1] : vector<8x8xf32> to vector<8xf32>
    %174 = vector.shape_cast %173 : vector<8xf32> to vector<8x1xf32>
    %175 = vector.broadcast %174 : vector<8x1xf32> to vector<8x8xf32>
    %176 = arith.subf %172, %175 : vector<8x8xf32>
    %177 = math.exp %176 : vector<8x8xf32>
    %cst_51 = arith.constant dense<0.000000e+00> : vector<8xf32>
    %178 = vector.multi_reduction <add>, %177, %cst_51 [1] : vector<8x8xf32> to vector<8xf32>
    %179 = vector.shape_cast %178 : vector<8xf32> to vector<8x1xf32>
    %180 = vector.broadcast %179 : vector<8x1xf32> to vector<8x8xf32>
    %181 = arith.divf %177, %180 : vector<8x8xf32>
    %cst_52 = arith.constant dense<0.000000e+00> : vector<8x64xf32>
    %182 = tpu.matmul %181, %167, %cst_52 {dimension_numbers = #tpu.dot_dimension_numbers<[1], [0], [0], [1], [0, 0, 1, 1], [], []>} : vector<8x8xf32>, vector<8x64xf32>, vector<8x64xf32> -> vector<8x64xf32>
    %183 = vector.extract_strided_slice %0 {offsets = [0, 640], sizes = [8, 64], strides = [1, 1]} : vector<8x2304xf32> to vector<8x64xf32>
    %184 = vector.extract_strided_slice %0 {offsets = [0, 1408], sizes = [8, 64], strides = [1, 1]} : vector<8x2304xf32> to vector<8x64xf32>
    %185 = vector.extract_strided_slice %0 {offsets = [0, 2176], sizes = [8, 64], strides = [1, 1]} : vector<8x2304xf32> to vector<8x64xf32>
    %cst_53 = arith.constant dense<0.000000e+00> : vector<8x8xf32>
    %186 = tpu.matmul %183, %184, %cst_53 {dimension_numbers = #tpu.dot_dimension_numbers<[1], [1], [0], [0], [0, 0, 1, 0], [], []>} : vector<8x64xf32>, vector<8x64xf32>, vector<8x8xf32> -> vector<8x8xf32>
    %cst_54 = arith.constant 1.250000e-01 : f32
    %187 = vector.broadcast %cst_54 : f32 to vector<8x8xf32>
    %188 = arith.mulf %186, %187 : vector<8x8xf32>
    %189 = vector.broadcast %2 : vector<1x8xf32> to vector<8x8xf32>
    %190 = arith.addf %188, %189 : vector<8x8xf32>
    %cst_55 = arith.constant dense<0xFF800000> : vector<8xf32>
    %191 = vector.multi_reduction <maximumf>, %190, %cst_55 [1] : vector<8x8xf32> to vector<8xf32>
    %192 = vector.shape_cast %191 : vector<8xf32> to vector<8x1xf32>
    %193 = vector.broadcast %192 : vector<8x1xf32> to vector<8x8xf32>
    %194 = arith.subf %190, %193 : vector<8x8xf32>
    %195 = math.exp %194 : vector<8x8xf32>
    %cst_56 = arith.constant dense<0.000000e+00> : vector<8xf32>
    %196 = vector.multi_reduction <add>, %195, %cst_56 [1] : vector<8x8xf32> to vector<8xf32>
    %197 = vector.shape_cast %196 : vector<8xf32> to vector<8x1xf32>
    %198 = vector.broadcast %197 : vector<8x1xf32> to vector<8x8xf32>
    %199 = arith.divf %195, %198 : vector<8x8xf32>
    %cst_57 = arith.constant dense<0.000000e+00> : vector<8x64xf32>
    %200 = tpu.matmul %199, %185, %cst_57 {dimension_numbers = #tpu.dot_dimension_numbers<[1], [0], [0], [1], [0, 0, 1, 1], [], []>} : vector<8x8xf32>, vector<8x64xf32>, vector<8x64xf32> -> vector<8x64xf32>
    %201 = vector.extract_strided_slice %0 {offsets = [0, 704], sizes = [8, 64], strides = [1, 1]} : vector<8x2304xf32> to vector<8x64xf32>
    %202 = vector.extract_strided_slice %0 {offsets = [0, 1472], sizes = [8, 64], strides = [1, 1]} : vector<8x2304xf32> to vector<8x64xf32>
    %203 = vector.extract_strided_slice %0 {offsets = [0, 2240], sizes = [8, 64], strides = [1, 1]} : vector<8x2304xf32> to vector<8x64xf32>
    %cst_58 = arith.constant dense<0.000000e+00> : vector<8x8xf32>
    %204 = tpu.matmul %201, %202, %cst_58 {dimension_numbers = #tpu.dot_dimension_numbers<[1], [1], [0], [0], [0, 0, 1, 0], [], []>} : vector<8x64xf32>, vector<8x64xf32>, vector<8x8xf32> -> vector<8x8xf32>
    %cst_59 = arith.constant 1.250000e-01 : f32
    %205 = vector.broadcast %cst_59 : f32 to vector<8x8xf32>
    %206 = arith.mulf %204, %205 : vector<8x8xf32>
    %207 = vector.broadcast %2 : vector<1x8xf32> to vector<8x8xf32>
    %208 = arith.addf %206, %207 : vector<8x8xf32>
    %cst_60 = arith.constant dense<0xFF800000> : vector<8xf32>
    %209 = vector.multi_reduction <maximumf>, %208, %cst_60 [1] : vector<8x8xf32> to vector<8xf32>
    %210 = vector.shape_cast %209 : vector<8xf32> to vector<8x1xf32>
    %211 = vector.broadcast %210 : vector<8x1xf32> to vector<8x8xf32>
    %212 = arith.subf %208, %211 : vector<8x8xf32>
    %213 = math.exp %212 : vector<8x8xf32>
    %cst_61 = arith.constant dense<0.000000e+00> : vector<8xf32>
    %214 = vector.multi_reduction <add>, %213, %cst_61 [1] : vector<8x8xf32> to vector<8xf32>
    %215 = vector.shape_cast %214 : vector<8xf32> to vector<8x1xf32>
    %216 = vector.broadcast %215 : vector<8x1xf32> to vector<8x8xf32>
    %217 = arith.divf %213, %216 : vector<8x8xf32>
    %cst_62 = arith.constant dense<0.000000e+00> : vector<8x64xf32>
    %218 = tpu.matmul %217, %203, %cst_62 {dimension_numbers = #tpu.dot_dimension_numbers<[1], [0], [0], [1], [0, 0, 1, 1], [], []>} : vector<8x8xf32>, vector<8x64xf32>, vector<8x64xf32> -> vector<8x64xf32>
    %219 = tpu.concatenate %20, %38, %56, %74, %92, %110, %128, %146, %164, %182, %200, %218 in 1 : vector<8x64xf32>, vector<8x64xf32>, vector<8x64xf32>, vector<8x64xf32>, vector<8x64xf32>, vector<8x64xf32>, vector<8x64xf32>, vector<8x64xf32>, vector<8x64xf32>, vector<8x64xf32>, vector<8x64xf32>, vector<8x64xf32> -> vector<8x768xf32>
    %c0_63 = arith.constant 0 : index
    %c0_64 = arith.constant 0 : index
    %220 = vector.load %arg3[%c0_63, %c0_64] : memref<8x768xf32, #tpu.memory_space<vmem>>, vector<8x768xf32>
    tpu.vector_store %arg3[%c0_63, %c0_64], %219 {strides = array<i32>} : memref<8x768xf32, #tpu.memory_space<vmem>>, vector<8x768xf32>,
    return
  }
  func.func @transform_0(%arg0: i32) -> (i32, i32) {
    %c0_i32 = arith.constant 0 : i32
    %c0_i32_0 = arith.constant 0 : i32
    return %arg0, %c0_i32 : i32, i32
  }
  func.func @transform_1(%arg0: i32) -> (i32, i32, i32) {
    %c0_i32 = arith.constant 0 : i32
    %c0_i32_0 = arith.constant 0 : i32
    %c0_i32_1 = arith.constant 0 : i32
    return %arg0, %c0_i32, %c0_i32_0 : i32, i32, i32
  }
  func.func @transform_2(%arg0: i32) -> (i32, i32) {
    %c0_i32 = arith.constant 0 : i32
    %c0_i32_0 = arith.constant 0 : i32
    return %arg0, %c0_i32 : i32, i32
  }
}

module attributes {stable_mosaic.version = 11 : i64} {
  func.func @_proj_res_ln_kernel(%arg0: i32, %arg1: memref<16x256xf32, #tpu.memory_space<vmem>>, %arg2: memref<256x768xbf16, #tpu.memory_space<vmem>>, %arg3: memref<1x768xf32, #tpu.memory_space<vmem>>, %arg4: memref<16x768xf32, #tpu.memory_space<vmem>>, %arg5: memref<1x768xf32, #tpu.memory_space<vmem>>, %arg6: memref<1x768xf32, #tpu.memory_space<vmem>>, %arg7: memref<16x768xf32, #tpu.memory_space<vmem>>, %arg8: memref<16x768xf32, #tpu.memory_space<vmem>>) attributes {dimension_semantics = [#tpu.dimension_semantics<arbitrary>], iteration_bounds = array<i64: 3>, scalar_prefetch = 0 : i64, scratch_operands = 1 : i64, tpu.core_type = #tpu.core_type<tc>, window_params = [{transform_indices = @transform_0, window_bounds = array<i64: 16, 256>}, {transform_indices = @transform_1, window_bounds = array<i64: 256, 768>}, {pipeline_mode = #tpu.pipeline_mode<synchronous>, transform_indices = @transform_2, window_bounds = array<i64: 1, 768>}, {pipeline_mode = #tpu.pipeline_mode<synchronous>, transform_indices = @transform_3, window_bounds = array<i64: 16, 768>}, {pipeline_mode = #tpu.pipeline_mode<synchronous>, transform_indices = @transform_4, window_bounds = array<i64: 1, 768>}, {pipeline_mode = #tpu.pipeline_mode<synchronous>, transform_indices = @transform_5, window_bounds = array<i64: 1, 768>}, {pipeline_mode = #tpu.pipeline_mode<synchronous>, transform_indices = @transform_6, window_bounds = array<i64: 16, 768>}]} {
    %c0_i32 = arith.constant 0 : i32
    %0 = arith.cmpi eq, %arg0, %c0_i32 : i32
    %1 = arith.extui %0 : i1 to i32
    %c0_i32_0 = arith.constant 0 : i32
    %2 = arith.cmpi ne, %1, %c0_i32_0 : i32
    scf.if %2 {
      %cst_9 = arith.constant 0.000000e+00 : f32
      %13 = vector.broadcast %cst_9 : f32 to vector<16x768xf32>
      %c0_10 = arith.constant 0 : index
      %c0_11 = arith.constant 0 : index
      %14 = vector.load %arg8[%c0_10, %c0_11] : memref<16x768xf32, #tpu.memory_space<vmem>>, vector<16x768xf32>
      tpu.vector_store %arg8[%c0_10, %c0_11], %13 {strides = array<i32>} : memref<16x768xf32, #tpu.memory_space<vmem>>, vector<16x768xf32>,
    } else {
    }
    %c0 = arith.constant 0 : index
    %c0_1 = arith.constant 0 : index
    %3 = vector.load %arg8[%c0, %c0_1] : memref<16x768xf32, #tpu.memory_space<vmem>>, vector<16x768xf32>
    %c0_2 = arith.constant 0 : index
    %c0_3 = arith.constant 0 : index
    %4 = vector.load %arg1[%c0_2, %c0_3] : memref<16x256xf32, #tpu.memory_space<vmem>>, vector<16x256xf32>
    %5 = arith.truncf %4 : vector<16x256xf32> to vector<16x256xbf16>
    %c0_4 = arith.constant 0 : index
    %c0_5 = arith.constant 0 : index
    %6 = vector.load %arg2[%c0_4, %c0_5] : memref<256x768xbf16, #tpu.memory_space<vmem>>, vector<256x768xbf16>
    %cst = arith.constant dense<0.000000e+00> : vector<16x768xf32>
    %7 = tpu.matmul %5, %6, %cst {dimension_numbers = #tpu.dot_dimension_numbers<[1], [0], [0], [1], [0, 0, 1, 1], [], []>} : vector<16x256xbf16>, vector<256x768xbf16>, vector<16x768xf32> -> vector<16x768xf32>
    %8 = arith.addf %3, %7 : vector<16x768xf32>
    %c0_6 = arith.constant 0 : index
    %c0_7 = arith.constant 0 : index
    %9 = vector.load %arg8[%c0_6, %c0_7] : memref<16x768xf32, #tpu.memory_space<vmem>>, vector<16x768xf32>
    tpu.vector_store %arg8[%c0_6, %c0_7], %8 {strides = array<i32>} : memref<16x768xf32, #tpu.memory_space<vmem>>, vector<16x768xf32>,
    %c2_i32 = arith.constant 2 : i32
    %10 = arith.cmpi eq, %arg0, %c2_i32 : i32
    %11 = arith.extui %10 : i1 to i32
    %c0_i32_8 = arith.constant 0 : i32
    %12 = arith.cmpi ne, %11, %c0_i32_8 : i32
    scf.if %12 {
      %c0_9 = arith.constant 0 : index
      %c0_10 = arith.constant 0 : index
      %13 = vector.load %arg8[%c0_9, %c0_10] : memref<16x768xf32, #tpu.memory_space<vmem>>, vector<16x768xf32>
      %c0_11 = arith.constant 0 : index
      %c0_12 = arith.constant 0 : index
      %14 = vector.load %arg3[%c0_11, %c0_12] : memref<1x768xf32, #tpu.memory_space<vmem>>, vector<1x768xf32>
      %15 = vector.broadcast %14 : vector<1x768xf32> to vector<16x768xf32>
      %16 = arith.addf %13, %15 : vector<16x768xf32>
      %c0_13 = arith.constant 0 : index
      %c0_14 = arith.constant 0 : index
      %17 = vector.load %arg4[%c0_13, %c0_14] : memref<16x768xf32, #tpu.memory_space<vmem>>, vector<16x768xf32>
      %18 = arith.addf %16, %17 : vector<16x768xf32>
      %c0_15 = arith.constant 0 : index
      %c0_16 = arith.constant 0 : index
      %19 = vector.load %arg5[%c0_15, %c0_16] : memref<1x768xf32, #tpu.memory_space<vmem>>, vector<1x768xf32>
      %c0_17 = arith.constant 0 : index
      %c0_18 = arith.constant 0 : index
      %20 = vector.load %arg6[%c0_17, %c0_18] : memref<1x768xf32, #tpu.memory_space<vmem>>, vector<1x768xf32>
      %cst_19 = arith.constant dense<0.000000e+00> : vector<16xf32>
      %21 = vector.multi_reduction <add>, %18, %cst_19 [1] : vector<16x768xf32> to vector<16xf32>
      %22 = vector.shape_cast %21 : vector<16xf32> to vector<16x1xf32>
      %cst_20 = arith.constant 7.680000e+02 : f32
      %23 = vector.broadcast %cst_20 : f32 to vector<16x1xf32>
      %24 = arith.divf %22, %23 : vector<16x1xf32>
      %25 = vector.broadcast %24 : vector<16x1xf32> to vector<16x768xf32>
      %26 = arith.subf %18, %25 : vector<16x768xf32>
      %27 = arith.mulf %26, %26 : vector<16x768xf32>
      %cst_21 = arith.constant dense<0.000000e+00> : vector<16xf32>
      %28 = vector.multi_reduction <add>, %27, %cst_21 [1] : vector<16x768xf32> to vector<16xf32>
      %29 = vector.shape_cast %28 : vector<16xf32> to vector<16x1xf32>
      %cst_22 = arith.constant 7.680000e+02 : f32
      %30 = vector.broadcast %cst_22 : f32 to vector<16x1xf32>
      %31 = arith.divf %29, %30 : vector<16x1xf32>
      %cst_23 = arith.constant 9.99999996E-13 : f32
      %32 = vector.broadcast %cst_23 : f32 to vector<16x1xf32>
      %33 = arith.addf %31, %32 : vector<16x1xf32>
      %34 = math.rsqrt %33 : vector<16x1xf32>
      %35 = vector.broadcast %34 : vector<16x1xf32> to vector<16x768xf32>
      %36 = arith.mulf %26, %35 : vector<16x768xf32>
      %37 = vector.broadcast %19 : vector<1x768xf32> to vector<16x768xf32>
      %38 = arith.mulf %36, %37 : vector<16x768xf32>
      %39 = vector.broadcast %20 : vector<1x768xf32> to vector<16x768xf32>
      %40 = arith.addf %38, %39 : vector<16x768xf32>
      %c0_24 = arith.constant 0 : index
      %c0_25 = arith.constant 0 : index
      %41 = vector.load %arg7[%c0_24, %c0_25] : memref<16x768xf32, #tpu.memory_space<vmem>>, vector<16x768xf32>
      tpu.vector_store %arg7[%c0_24, %c0_25], %40 {strides = array<i32>} : memref<16x768xf32, #tpu.memory_space<vmem>>, vector<16x768xf32>,
    } else {
    }
    return
  }
  func.func @transform_0(%arg0: i32) -> (i32, i32) {
    %c0_i32 = arith.constant 0 : i32
    %c0_i32_0 = arith.constant 0 : i32
    return %c0_i32, %arg0 : i32, i32
  }
  func.func @transform_1(%arg0: i32) -> (i32, i32) {
    %c0_i32 = arith.constant 0 : i32
    %c0_i32_0 = arith.constant 0 : i32
    return %arg0, %c0_i32 : i32, i32
  }
  func.func @transform_2(%arg0: i32) -> (i32, i32) {
    %c0_i32 = arith.constant 0 : i32
    %c0_i32_0 = arith.constant 0 : i32
    %c0_i32_1 = arith.constant 0 : i32
    return %c0_i32, %c0_i32_0 : i32, i32
  }
  func.func @transform_3(%arg0: i32) -> (i32, i32) {
    %c0_i32 = arith.constant 0 : i32
    %c0_i32_0 = arith.constant 0 : i32
    %c0_i32_1 = arith.constant 0 : i32
    return %c0_i32, %c0_i32_0 : i32, i32
  }
  func.func @transform_4(%arg0: i32) -> (i32, i32) {
    %c0_i32 = arith.constant 0 : i32
    %c0_i32_0 = arith.constant 0 : i32
    %c0_i32_1 = arith.constant 0 : i32
    return %c0_i32, %c0_i32_0 : i32, i32
  }
  func.func @transform_5(%arg0: i32) -> (i32, i32) {
    %c0_i32 = arith.constant 0 : i32
    %c0_i32_0 = arith.constant 0 : i32
    %c0_i32_1 = arith.constant 0 : i32
    return %c0_i32, %c0_i32_0 : i32, i32
  }
  func.func @transform_6(%arg0: i32) -> (i32, i32) {
    %c0_i32 = arith.constant 0 : i32
    %c0_i32_0 = arith.constant 0 : i32
    %c0_i32_1 = arith.constant 0 : i32
    return %c0_i32, %c0_i32_0 : i32, i32
  }
}

module attributes {stable_mosaic.version = 11 : i64} {
  func.func @_ffn_res_ln_kernel(%arg0: i32, %arg1: memref<16x768xf32, #tpu.memory_space<vmem>>, %arg2: memref<768x512xbf16, #tpu.memory_space<vmem>>, %arg3: memref<1x512xf32, #tpu.memory_space<vmem>>, %arg4: memref<512x768xbf16, #tpu.memory_space<vmem>>, %arg5: memref<1x768xf32, #tpu.memory_space<vmem>>, %arg6: memref<1x768xf32, #tpu.memory_space<vmem>>, %arg7: memref<1x768xf32, #tpu.memory_space<vmem>>, %arg8: memref<16x768xf32, #tpu.memory_space<vmem>>, %arg9: memref<16x768xf32, #tpu.memory_space<vmem>>) attributes {dimension_semantics = [#tpu.dimension_semantics<arbitrary>], iteration_bounds = array<i64: 6>, scalar_prefetch = 0 : i64, scratch_operands = 1 : i64, tpu.core_type = #tpu.core_type<tc>, window_params = [{pipeline_mode = #tpu.pipeline_mode<synchronous>, transform_indices = @transform_0, window_bounds = array<i64: 16, 768>}, {transform_indices = @transform_1, window_bounds = array<i64: 768, 512>}, {transform_indices = @transform_2, window_bounds = array<i64: 1, 512>}, {transform_indices = @transform_3, window_bounds = array<i64: 512, 768>}, {pipeline_mode = #tpu.pipeline_mode<synchronous>, transform_indices = @transform_4, window_bounds = array<i64: 1, 768>}, {pipeline_mode = #tpu.pipeline_mode<synchronous>, transform_indices = @transform_5, window_bounds = array<i64: 1, 768>}, {pipeline_mode = #tpu.pipeline_mode<synchronous>, transform_indices = @transform_6, window_bounds = array<i64: 1, 768>}, {pipeline_mode = #tpu.pipeline_mode<synchronous>, transform_indices = @transform_7, window_bounds = array<i64: 16, 768>}]} {
    %c0_i32 = arith.constant 0 : i32
    %0 = arith.cmpi eq, %arg0, %c0_i32 : i32
    %1 = arith.extui %0 : i1 to i32
    %c0_i32_0 = arith.constant 0 : i32
    %2 = arith.cmpi ne, %1, %c0_i32_0 : i32
    scf.if %2 {
      %cst_18 = arith.constant 0.000000e+00 : f32
      %32 = vector.broadcast %cst_18 : f32 to vector<16x768xf32>
      %c0_19 = arith.constant 0 : index
      %c0_20 = arith.constant 0 : index
      %33 = vector.load %arg9[%c0_19, %c0_20] : memref<16x768xf32, #tpu.memory_space<vmem>>, vector<16x768xf32>
      tpu.vector_store %arg9[%c0_19, %c0_20], %32 {strides = array<i32>} : memref<16x768xf32, #tpu.memory_space<vmem>>, vector<16x768xf32>,
    } else {
    }
    %c0 = arith.constant 0 : index
    %c0_1 = arith.constant 0 : index
    %3 = vector.load %arg1[%c0, %c0_1] : memref<16x768xf32, #tpu.memory_space<vmem>>, vector<16x768xf32>
    %4 = arith.truncf %3 : vector<16x768xf32> to vector<16x768xbf16>
    %c0_2 = arith.constant 0 : index
    %c0_3 = arith.constant 0 : index
    %5 = vector.load %arg2[%c0_2, %c0_3] : memref<768x512xbf16, #tpu.memory_space<vmem>>, vector<768x512xbf16>
    %cst = arith.constant dense<0.000000e+00> : vector<16x512xf32>
    %6 = tpu.matmul %4, %5, %cst {dimension_numbers = #tpu.dot_dimension_numbers<[1], [0], [0], [1], [0, 0, 1, 1], [], []>} : vector<16x768xbf16>, vector<768x512xbf16>, vector<16x512xf32> -> vector<16x512xf32>
    %c0_4 = arith.constant 0 : index
    %c0_5 = arith.constant 0 : index
    %7 = vector.load %arg3[%c0_4, %c0_5] : memref<1x512xf32, #tpu.memory_space<vmem>>, vector<1x512xf32>
    %8 = vector.broadcast %7 : vector<1x512xf32> to vector<16x512xf32>
    %9 = arith.addf %6, %8 : vector<16x512xf32>
    %cst_6 = arith.constant 5.000000e-01 : f32
    %10 = vector.broadcast %cst_6 : f32 to vector<16x512xf32>
    %11 = arith.mulf %10, %9 : vector<16x512xf32>
    %cst_7 = arith.constant 4.471500e-02 : f32
    %12 = vector.broadcast %cst_7 : f32 to vector<16x512xf32>
    %13 = arith.mulf %12, %9 : vector<16x512xf32>
    %14 = arith.mulf %13, %9 : vector<16x512xf32>
    %15 = arith.mulf %14, %9 : vector<16x512xf32>
    %16 = arith.addf %9, %15 : vector<16x512xf32>
    %cst_8 = arith.constant 0.797884583 : f32
    %17 = vector.broadcast %cst_8 : f32 to vector<16x512xf32>
    %18 = arith.mulf %17, %16 : vector<16x512xf32>
    %19 = math.tanh %18 : vector<16x512xf32>
    %cst_9 = arith.constant 1.000000e+00 : f32
    %20 = vector.broadcast %cst_9 : f32 to vector<16x512xf32>
    %21 = arith.addf %20, %19 : vector<16x512xf32>
    %22 = arith.mulf %11, %21 : vector<16x512xf32>
    %c0_10 = arith.constant 0 : index
    %c0_11 = arith.constant 0 : index
    %23 = vector.load %arg9[%c0_10, %c0_11] : memref<16x768xf32, #tpu.memory_space<vmem>>, vector<16x768xf32>
    %24 = arith.truncf %22 : vector<16x512xf32> to vector<16x512xbf16>
    %c0_12 = arith.constant 0 : index
    %c0_13 = arith.constant 0 : index
    %25 = vector.load %arg4[%c0_12, %c0_13] : memref<512x768xbf16, #tpu.memory_space<vmem>>, vector<512x768xbf16>
    %cst_14 = arith.constant dense<0.000000e+00> : vector<16x768xf32>
    %26 = tpu.matmul %24, %25, %cst_14 {dimension_numbers = #tpu.dot_dimension_numbers<[1], [0], [0], [1], [0, 0, 1, 1], [], []>} : vector<16x512xbf16>, vector<512x768xbf16>, vector<16x768xf32> -> vector<16x768xf32>
    %27 = arith.addf %23, %26 : vector<16x768xf32>
    %c0_15 = arith.constant 0 : index
    %c0_16 = arith.constant 0 : index
    %28 = vector.load %arg9[%c0_15, %c0_16] : memref<16x768xf32, #tpu.memory_space<vmem>>, vector<16x768xf32>
    tpu.vector_store %arg9[%c0_15, %c0_16], %27 {strides = array<i32>} : memref<16x768xf32, #tpu.memory_space<vmem>>, vector<16x768xf32>,
    %c5_i32 = arith.constant 5 : i32
    %29 = arith.cmpi eq, %arg0, %c5_i32 : i32
    %30 = arith.extui %29 : i1 to i32
    %c0_i32_17 = arith.constant 0 : i32
    %31 = arith.cmpi ne, %30, %c0_i32_17 : i32
    scf.if %31 {
      %c0_18 = arith.constant 0 : index
      %c0_19 = arith.constant 0 : index
      %32 = vector.load %arg9[%c0_18, %c0_19] : memref<16x768xf32, #tpu.memory_space<vmem>>, vector<16x768xf32>
      %c0_20 = arith.constant 0 : index
      %c0_21 = arith.constant 0 : index
      %33 = vector.load %arg5[%c0_20, %c0_21] : memref<1x768xf32, #tpu.memory_space<vmem>>, vector<1x768xf32>
      %34 = vector.broadcast %33 : vector<1x768xf32> to vector<16x768xf32>
      %35 = arith.addf %32, %34 : vector<16x768xf32>
      %c0_22 = arith.constant 0 : index
      %c0_23 = arith.constant 0 : index
      %36 = vector.load %arg1[%c0_22, %c0_23] : memref<16x768xf32, #tpu.memory_space<vmem>>, vector<16x768xf32>
      %37 = arith.addf %35, %36 : vector<16x768xf32>
      %c0_24 = arith.constant 0 : index
      %c0_25 = arith.constant 0 : index
      %38 = vector.load %arg6[%c0_24, %c0_25] : memref<1x768xf32, #tpu.memory_space<vmem>>, vector<1x768xf32>
      %c0_26 = arith.constant 0 : index
      %c0_27 = arith.constant 0 : index
      %39 = vector.load %arg7[%c0_26, %c0_27] : memref<1x768xf32, #tpu.memory_space<vmem>>, vector<1x768xf32>
      %cst_28 = arith.constant dense<0.000000e+00> : vector<16xf32>
      %40 = vector.multi_reduction <add>, %37, %cst_28 [1] : vector<16x768xf32> to vector<16xf32>
      %41 = vector.shape_cast %40 : vector<16xf32> to vector<16x1xf32>
      %cst_29 = arith.constant 7.680000e+02 : f32
      %42 = vector.broadcast %cst_29 : f32 to vector<16x1xf32>
      %43 = arith.divf %41, %42 : vector<16x1xf32>
      %44 = vector.broadcast %43 : vector<16x1xf32> to vector<16x768xf32>
      %45 = arith.subf %37, %44 : vector<16x768xf32>
      %46 = arith.mulf %45, %45 : vector<16x768xf32>
      %cst_30 = arith.constant dense<0.000000e+00> : vector<16xf32>
      %47 = vector.multi_reduction <add>, %46, %cst_30 [1] : vector<16x768xf32> to vector<16xf32>
      %48 = vector.shape_cast %47 : vector<16xf32> to vector<16x1xf32>
      %cst_31 = arith.constant 7.680000e+02 : f32
      %49 = vector.broadcast %cst_31 : f32 to vector<16x1xf32>
      %50 = arith.divf %48, %49 : vector<16x1xf32>
      %cst_32 = arith.constant 9.99999996E-13 : f32
      %51 = vector.broadcast %cst_32 : f32 to vector<16x1xf32>
      %52 = arith.addf %50, %51 : vector<16x1xf32>
      %53 = math.rsqrt %52 : vector<16x1xf32>
      %54 = vector.broadcast %53 : vector<16x1xf32> to vector<16x768xf32>
      %55 = arith.mulf %45, %54 : vector<16x768xf32>
      %56 = vector.broadcast %38 : vector<1x768xf32> to vector<16x768xf32>
      %57 = arith.mulf %55, %56 : vector<16x768xf32>
      %58 = vector.broadcast %39 : vector<1x768xf32> to vector<16x768xf32>
      %59 = arith.addf %57, %58 : vector<16x768xf32>
      %c0_33 = arith.constant 0 : index
      %c0_34 = arith.constant 0 : index
      %60 = vector.load %arg8[%c0_33, %c0_34] : memref<16x768xf32, #tpu.memory_space<vmem>>, vector<16x768xf32>
      tpu.vector_store %arg8[%c0_33, %c0_34], %59 {strides = array<i32>} : memref<16x768xf32, #tpu.memory_space<vmem>>, vector<16x768xf32>,
    } else {
    }
    return
  }
  func.func @transform_0(%arg0: i32) -> (i32, i32) {
    %c0_i32 = arith.constant 0 : i32
    %c0_i32_0 = arith.constant 0 : i32
    %c0_i32_1 = arith.constant 0 : i32
    return %c0_i32, %c0_i32_0 : i32, i32
  }
  func.func @transform_1(%arg0: i32) -> (i32, i32) {
    %c0_i32 = arith.constant 0 : i32
    %c0_i32_0 = arith.constant 0 : i32
    return %c0_i32, %arg0 : i32, i32
  }
  func.func @transform_2(%arg0: i32) -> (i32, i32) {
    %c0_i32 = arith.constant 0 : i32
    %c0_i32_0 = arith.constant 0 : i32
    return %c0_i32, %arg0 : i32, i32
  }
  func.func @transform_3(%arg0: i32) -> (i32, i32) {
    %c0_i32 = arith.constant 0 : i32
    %c0_i32_0 = arith.constant 0 : i32
    return %arg0, %c0_i32 : i32, i32
  }
  func.func @transform_4(%arg0: i32) -> (i32, i32) {
    %c0_i32 = arith.constant 0 : i32
    %c0_i32_0 = arith.constant 0 : i32
    %c0_i32_1 = arith.constant 0 : i32
    return %c0_i32, %c0_i32_0 : i32, i32
  }
  func.func @transform_5(%arg0: i32) -> (i32, i32) {
    %c0_i32 = arith.constant 0 : i32
    %c0_i32_0 = arith.constant 0 : i32
    %c0_i32_1 = arith.constant 0 : i32
    return %c0_i32, %c0_i32_0 : i32, i32
  }
  func.func @transform_6(%arg0: i32) -> (i32, i32) {
    %c0_i32 = arith.constant 0 : i32
    %c0_i32_0 = arith.constant 0 : i32
    %c0_i32_1 = arith.constant 0 : i32
    return %c0_i32, %c0_i32_0 : i32, i32
  }
  func.func @transform_7(%arg0: i32) -> (i32, i32) {
    %c0_i32 = arith.constant 0 : i32
    %c0_i32_0 = arith.constant 0 : i32
    %c0_i32_1 = arith.constant 0 : i32
    return %c0_i32, %c0_i32_0 : i32, i32
  }
}

module attributes {stable_mosaic.version = 11 : i64} {
  func.func @_qkv_kernel(%arg0: i32, %arg1: i32, %arg2: memref<16x256xf32, #tpu.memory_space<vmem>>, %arg3: memref<256x768xbf16, #tpu.memory_space<vmem>>, %arg4: memref<1x768xf32, #tpu.memory_space<vmem>>, %arg5: memref<16x768xf32, #tpu.memory_space<vmem>>, %arg6: memref<16x768xf32, #tpu.memory_space<vmem>>) attributes {dimension_semantics = [#tpu.dimension_semantics<parallel>, #tpu.dimension_semantics<arbitrary>], iteration_bounds = array<i64: 3, 3>, scalar_prefetch = 0 : i64, scratch_operands = 1 : i64, tpu.core_type = #tpu.core_type<tc>, window_params = [{transform_indices = @transform_0, window_bounds = array<i64: 16, 256>}, {transform_indices = @transform_1, window_bounds = array<i64: 256, 768>}, {transform_indices = @transform_2, window_bounds = array<i64: 1, 768>}, {transform_indices = @transform_3, window_bounds = array<i64: 16, 768>}]} {
    %c0_i32 = arith.constant 0 : i32
    %0 = arith.cmpi eq, %arg1, %c0_i32 : i32
    %1 = arith.extui %0 : i1 to i32
    %c0_i32_0 = arith.constant 0 : i32
    %2 = arith.cmpi ne, %1, %c0_i32_0 : i32
    scf.if %2 {
      %cst_9 = arith.constant 0.000000e+00 : f32
      %13 = vector.broadcast %cst_9 : f32 to vector<16x768xf32>
      %c0_10 = arith.constant 0 : index
      %c0_11 = arith.constant 0 : index
      %14 = vector.load %arg6[%c0_10, %c0_11] : memref<16x768xf32, #tpu.memory_space<vmem>>, vector<16x768xf32>
      tpu.vector_store %arg6[%c0_10, %c0_11], %13 {strides = array<i32>} : memref<16x768xf32, #tpu.memory_space<vmem>>, vector<16x768xf32>,
    } else {
    }
    %c0 = arith.constant 0 : index
    %c0_1 = arith.constant 0 : index
    %3 = vector.load %arg6[%c0, %c0_1] : memref<16x768xf32, #tpu.memory_space<vmem>>, vector<16x768xf32>
    %c0_2 = arith.constant 0 : index
    %c0_3 = arith.constant 0 : index
    %4 = vector.load %arg2[%c0_2, %c0_3] : memref<16x256xf32, #tpu.memory_space<vmem>>, vector<16x256xf32>
    %5 = arith.truncf %4 : vector<16x256xf32> to vector<16x256xbf16>
    %c0_4 = arith.constant 0 : index
    %c0_5 = arith.constant 0 : index
    %6 = vector.load %arg3[%c0_4, %c0_5] : memref<256x768xbf16, #tpu.memory_space<vmem>>, vector<256x768xbf16>
    %cst = arith.constant dense<0.000000e+00> : vector<16x768xf32>
    %7 = tpu.matmul %5, %6, %cst {dimension_numbers = #tpu.dot_dimension_numbers<[1], [0], [0], [1], [0, 0, 1, 1], [], []>} : vector<16x256xbf16>, vector<256x768xbf16>, vector<16x768xf32> -> vector<16x768xf32>
    %8 = arith.addf %3, %7 : vector<16x768xf32>
    %c0_6 = arith.constant 0 : index
    %c0_7 = arith.constant 0 : index
    %9 = vector.load %arg6[%c0_6, %c0_7] : memref<16x768xf32, #tpu.memory_space<vmem>>, vector<16x768xf32>
    tpu.vector_store %arg6[%c0_6, %c0_7], %8 {strides = array<i32>} : memref<16x768xf32, #tpu.memory_space<vmem>>, vector<16x768xf32>,
    %c2_i32 = arith.constant 2 : i32
    %10 = arith.cmpi eq, %arg1, %c2_i32 : i32
    %11 = arith.extui %10 : i1 to i32
    %c0_i32_8 = arith.constant 0 : i32
    %12 = arith.cmpi ne, %11, %c0_i32_8 : i32
    scf.if %12 {
      %c0_9 = arith.constant 0 : index
      %c0_10 = arith.constant 0 : index
      %13 = vector.load %arg6[%c0_9, %c0_10] : memref<16x768xf32, #tpu.memory_space<vmem>>, vector<16x768xf32>
      %c0_11 = arith.constant 0 : index
      %c0_12 = arith.constant 0 : index
      %14 = vector.load %arg4[%c0_11, %c0_12] : memref<1x768xf32, #tpu.memory_space<vmem>>, vector<1x768xf32>
      %15 = vector.broadcast %14 : vector<1x768xf32> to vector<16x768xf32>
      %16 = arith.addf %13, %15 : vector<16x768xf32>
      %c0_13 = arith.constant 0 : index
      %c0_14 = arith.constant 0 : index
      %17 = vector.load %arg5[%c0_13, %c0_14] : memref<16x768xf32, #tpu.memory_space<vmem>>, vector<16x768xf32>
      tpu.vector_store %arg5[%c0_13, %c0_14], %16 {strides = array<i32>} : memref<16x768xf32, #tpu.memory_space<vmem>>, vector<16x768xf32>,
    } else {
    }
    return
  }
  func.func @transform_0(%arg0: i32, %arg1: i32) -> (i32, i32) {
    %c0_i32 = arith.constant 0 : i32
    %c0_i32_0 = arith.constant 0 : i32
    return %c0_i32, %arg1 : i32, i32
  }
  func.func @transform_1(%arg0: i32, %arg1: i32) -> (i32, i32) {
    %c0_i32 = arith.constant 0 : i32
    return %arg1, %arg0 : i32, i32
  }
  func.func @transform_2(%arg0: i32, %arg1: i32) -> (i32, i32) {
    %c0_i32 = arith.constant 0 : i32
    %c0_i32_0 = arith.constant 0 : i32
    return %c0_i32, %arg0 : i32, i32
  }
  func.func @transform_3(%arg0: i32, %arg1: i32) -> (i32, i32) {
    %c0_i32 = arith.constant 0 : i32
    %c0_i32_0 = arith.constant 0 : i32
    return %c0_i32, %arg0 : i32, i32
  }
}

module attributes {stable_mosaic.version = 11 : i64} {
  func.func @_ffn_res_ln_kernel(%arg0: i32, %arg1: memref<16x768xf32, #tpu.memory_space<vmem>>, %arg2: memref<768x512xbf16, #tpu.memory_space<vmem>>, %arg3: memref<1x512xf32, #tpu.memory_space<vmem>>, %arg4: memref<512x768xbf16, #tpu.memory_space<vmem>>, %arg5: memref<1x768xf32, #tpu.memory_space<vmem>>, %arg6: memref<1x768xf32, #tpu.memory_space<vmem>>, %arg7: memref<1x768xf32, #tpu.memory_space<vmem>>, %arg8: memref<16x768xf32, #tpu.memory_space<vmem>>, %arg9: memref<16x768xf32, #tpu.memory_space<vmem>>) attributes {dimension_semantics = [#tpu.dimension_semantics<arbitrary>], iteration_bounds = array<i64: 6>, scalar_prefetch = 0 : i64, scratch_operands = 1 : i64, tpu.core_type = #tpu.core_type<tc>, window_params = [{pipeline_mode = #tpu.pipeline_mode<synchronous>, transform_indices = @transform_0, window_bounds = array<i64: 16, 768>}, {transform_indices = @transform_1, window_bounds = array<i64: 768, 512>}, {transform_indices = @transform_2, window_bounds = array<i64: 1, 512>}, {transform_indices = @transform_3, window_bounds = array<i64: 512, 768>}, {pipeline_mode = #tpu.pipeline_mode<synchronous>, transform_indices = @transform_4, window_bounds = array<i64: 1, 768>}, {pipeline_mode = #tpu.pipeline_mode<synchronous>, transform_indices = @transform_5, window_bounds = array<i64: 1, 768>}, {pipeline_mode = #tpu.pipeline_mode<synchronous>, transform_indices = @transform_6, window_bounds = array<i64: 1, 768>}, {pipeline_mode = #tpu.pipeline_mode<synchronous>, transform_indices = @transform_7, window_bounds = array<i64: 16, 768>}]} {
    %c0_i32 = arith.constant 0 : i32
    %0 = arith.cmpi eq, %arg0, %c0_i32 : i32
    %1 = arith.extui %0 : i1 to i32
    %c0_i32_0 = arith.constant 0 : i32
    %2 = arith.cmpi ne, %1, %c0_i32_0 : i32
    scf.if %2 {
      %cst_18 = arith.constant 0.000000e+00 : f32
      %32 = vector.broadcast %cst_18 : f32 to vector<16x768xf32>
      %c0_19 = arith.constant 0 : index
      %c0_20 = arith.constant 0 : index
      %33 = vector.load %arg9[%c0_19, %c0_20] : memref<16x768xf32, #tpu.memory_space<vmem>>, vector<16x768xf32>
      tpu.vector_store %arg9[%c0_19, %c0_20], %32 {strides = array<i32>} : memref<16x768xf32, #tpu.memory_space<vmem>>, vector<16x768xf32>,
    } else {
    }
    %c0 = arith.constant 0 : index
    %c0_1 = arith.constant 0 : index
    %3 = vector.load %arg1[%c0, %c0_1] : memref<16x768xf32, #tpu.memory_space<vmem>>, vector<16x768xf32>
    %4 = arith.truncf %3 : vector<16x768xf32> to vector<16x768xbf16>
    %c0_2 = arith.constant 0 : index
    %c0_3 = arith.constant 0 : index
    %5 = vector.load %arg2[%c0_2, %c0_3] : memref<768x512xbf16, #tpu.memory_space<vmem>>, vector<768x512xbf16>
    %cst = arith.constant dense<0.000000e+00> : vector<16x512xf32>
    %6 = tpu.matmul %4, %5, %cst {dimension_numbers = #tpu.dot_dimension_numbers<[1], [0], [0], [1], [0, 0, 1, 1], [], []>} : vector<16x768xbf16>, vector<768x512xbf16>, vector<16x512xf32> -> vector<16x512xf32>
    %c0_4 = arith.constant 0 : index
    %c0_5 = arith.constant 0 : index
    %7 = vector.load %arg3[%c0_4, %c0_5] : memref<1x512xf32, #tpu.memory_space<vmem>>, vector<1x512xf32>
    %8 = vector.broadcast %7 : vector<1x512xf32> to vector<16x512xf32>
    %9 = arith.addf %6, %8 : vector<16x512xf32>
    %cst_6 = arith.constant 5.000000e-01 : f32
    %10 = vector.broadcast %cst_6 : f32 to vector<16x512xf32>
    %11 = arith.mulf %10, %9 : vector<16x512xf32>
    %cst_7 = arith.constant 4.471500e-02 : f32
    %12 = vector.broadcast %cst_7 : f32 to vector<16x512xf32>
    %13 = arith.mulf %12, %9 : vector<16x512xf32>
    %14 = arith.mulf %13, %9 : vector<16x512xf32>
    %15 = arith.mulf %14, %9 : vector<16x512xf32>
    %16 = arith.addf %9, %15 : vector<16x512xf32>
    %cst_8 = arith.constant 0.797884583 : f32
    %17 = vector.broadcast %cst_8 : f32 to vector<16x512xf32>
    %18 = arith.mulf %17, %16 : vector<16x512xf32>
    %19 = math.tanh %18 : vector<16x512xf32>
    %cst_9 = arith.constant 1.000000e+00 : f32
    %20 = vector.broadcast %cst_9 : f32 to vector<16x512xf32>
    %21 = arith.addf %20, %19 : vector<16x512xf32>
    %22 = arith.mulf %11, %21 : vector<16x512xf32>
    %c0_10 = arith.constant 0 : index
    %c0_11 = arith.constant 0 : index
    %23 = vector.load %arg9[%c0_10, %c0_11] : memref<16x768xf32, #tpu.memory_space<vmem>>, vector<16x768xf32>
    %24 = arith.truncf %22 : vector<16x512xf32> to vector<16x512xbf16>
    %c0_12 = arith.constant 0 : index
    %c0_13 = arith.constant 0 : index
    %25 = vector.load %arg4[%c0_12, %c0_13] : memref<512x768xbf16, #tpu.memory_space<vmem>>, vector<512x768xbf16>
    %cst_14 = arith.constant dense<0.000000e+00> : vector<16x768xf32>
    %26 = tpu.matmul %24, %25, %cst_14 {dimension_numbers = #tpu.dot_dimension_numbers<[1], [0], [0], [1], [0, 0, 1, 1], [], []>} : vector<16x512xbf16>, vector<512x768xbf16>, vector<16x768xf32> -> vector<16x768xf32>
    %27 = arith.addf %23, %26 : vector<16x768xf32>
    %c0_15 = arith.constant 0 : index
    %c0_16 = arith.constant 0 : index
    %28 = vector.load %arg9[%c0_15, %c0_16] : memref<16x768xf32, #tpu.memory_space<vmem>>, vector<16x768xf32>
    tpu.vector_store %arg9[%c0_15, %c0_16], %27 {strides = array<i32>} : memref<16x768xf32, #tpu.memory_space<vmem>>, vector<16x768xf32>,
    %c5_i32 = arith.constant 5 : i32
    %29 = arith.cmpi eq, %arg0, %c5_i32 : i32
    %30 = arith.extui %29 : i1 to i32
    %c0_i32_17 = arith.constant 0 : i32
    %31 = arith.cmpi ne, %30, %c0_i32_17 : i32
    scf.if %31 {
      %c0_18 = arith.constant 0 : index
      %c0_19 = arith.constant 0 : index
      %32 = vector.load %arg9[%c0_18, %c0_19] : memref<16x768xf32, #tpu.memory_space<vmem>>, vector<16x768xf32>
      %c0_20 = arith.constant 0 : index
      %c0_21 = arith.constant 0 : index
      %33 = vector.load %arg5[%c0_20, %c0_21] : memref<1x768xf32, #tpu.memory_space<vmem>>, vector<1x768xf32>
      %34 = vector.broadcast %33 : vector<1x768xf32> to vector<16x768xf32>
      %35 = arith.addf %32, %34 : vector<16x768xf32>
      %c0_22 = arith.constant 0 : index
      %c0_23 = arith.constant 0 : index
      %36 = vector.load %arg1[%c0_22, %c0_23] : memref<16x768xf32, #tpu.memory_space<vmem>>, vector<16x768xf32>
      %37 = arith.addf %35, %36 : vector<16x768xf32>
      %c0_24 = arith.constant 0 : index
      %c0_25 = arith.constant 0 : index
      %38 = vector.load %arg6[%c0_24, %c0_25] : memref<1x768xf32, #tpu.memory_space<vmem>>, vector<1x768xf32>
      %c0_26 = arith.constant 0 : index
      %c0_27 = arith.constant 0 : index
      %39 = vector.load %arg7[%c0_26, %c0_27] : memref<1x768xf32, #tpu.memory_space<vmem>>, vector<1x768xf32>
      %cst_28 = arith.constant dense<0.000000e+00> : vector<16xf32>
      %40 = vector.multi_reduction <add>, %37, %cst_28 [1] : vector<16x768xf32> to vector<16xf32>
      %41 = vector.shape_cast %40 : vector<16xf32> to vector<16x1xf32>
      %cst_29 = arith.constant 7.680000e+02 : f32
      %42 = vector.broadcast %cst_29 : f32 to vector<16x1xf32>
      %43 = arith.divf %41, %42 : vector<16x1xf32>
      %44 = vector.broadcast %43 : vector<16x1xf32> to vector<16x768xf32>
      %45 = arith.subf %37, %44 : vector<16x768xf32>
      %46 = arith.mulf %45, %45 : vector<16x768xf32>
      %cst_30 = arith.constant dense<0.000000e+00> : vector<16xf32>
      %47 = vector.multi_reduction <add>, %46, %cst_30 [1] : vector<16x768xf32> to vector<16xf32>
      %48 = vector.shape_cast %47 : vector<16xf32> to vector<16x1xf32>
      %cst_31 = arith.constant 7.680000e+02 : f32
      %49 = vector.broadcast %cst_31 : f32 to vector<16x1xf32>
      %50 = arith.divf %48, %49 : vector<16x1xf32>
      %cst_32 = arith.constant 9.99999996E-13 : f32
      %51 = vector.broadcast %cst_32 : f32 to vector<16x1xf32>
      %52 = arith.addf %50, %51 : vector<16x1xf32>
      %53 = math.rsqrt %52 : vector<16x1xf32>
      %54 = vector.broadcast %53 : vector<16x1xf32> to vector<16x768xf32>
      %55 = arith.mulf %45, %54 : vector<16x768xf32>
      %56 = vector.broadcast %38 : vector<1x768xf32> to vector<16x768xf32>
      %57 = arith.mulf %55, %56 : vector<16x768xf32>
      %58 = vector.broadcast %39 : vector<1x768xf32> to vector<16x768xf32>
      %59 = arith.addf %57, %58 : vector<16x768xf32>
      %c0_33 = arith.constant 0 : index
      %c0_34 = arith.constant 0 : index
      %60 = vector.load %arg8[%c0_33, %c0_34] : memref<16x768xf32, #tpu.memory_space<vmem>>, vector<16x768xf32>
      tpu.vector_store %arg8[%c0_33, %c0_34], %59 {strides = array<i32>} : memref<16x768xf32, #tpu.memory_space<vmem>>, vector<16x768xf32>,
    } else {
    }
    return
  }
  func.func @transform_0(%arg0: i32) -> (i32, i32) {
    %c0_i32 = arith.constant 0 : i32
    %c0_i32_0 = arith.constant 0 : i32
    %c0_i32_1 = arith.constant 0 : i32
    return %c0_i32, %c0_i32_0 : i32, i32
  }
  func.func @transform_1(%arg0: i32) -> (i32, i32) {
    %c0_i32 = arith.constant 0 : i32
    %c0_i32_0 = arith.constant 0 : i32
    return %c0_i32, %arg0 : i32, i32
  }
  func.func @transform_2(%arg0: i32) -> (i32, i32) {
    %c0_i32 = arith.constant 0 : i32
    %c0_i32_0 = arith.constant 0 : i32
    return %c0_i32, %arg0 : i32, i32
  }
  func.func @transform_3(%arg0: i32) -> (i32, i32) {
    %c0_i32 = arith.constant 0 : i32
    %c0_i32_0 = arith.constant 0 : i32
    return %arg0, %c0_i32 : i32, i32
  }
  func.func @transform_4(%arg0: i32) -> (i32, i32) {
    %c0_i32 = arith.constant 0 : i32
    %c0_i32_0 = arith.constant 0 : i32
    %c0_i32_1 = arith.constant 0 : i32
    return %c0_i32, %c0_i32_0 : i32, i32
  }
  func.func @transform_5(%arg0: i32) -> (i32, i32) {
    %c0_i32 = arith.constant 0 : i32
    %c0_i32_0 = arith.constant 0 : i32
    %c0_i32_1 = arith.constant 0 : i32
    return %c0_i32, %c0_i32_0 : i32, i32
  }
  func.func @transform_6(%arg0: i32) -> (i32, i32) {
    %c0_i32 = arith.constant 0 : i32
    %c0_i32_0 = arith.constant 0 : i32
    %c0_i32_1 = arith.constant 0 : i32
    return %c0_i32, %c0_i32_0 : i32, i32
  }
  func.func @transform_7(%arg0: i32) -> (i32, i32) {
    %c0_i32 = arith.constant 0 : i32
    %c0_i32_0 = arith.constant 0 : i32
    %c0_i32_1 = arith.constant 0 : i32
    return %c0_i32, %c0_i32_0 : i32, i32
  }
}

</mosaic_0001>

<bundles_post_ra>
// kernel: custom_bert_forward.9
= control target key start
LH: loop header
LB: loop body
LE: loop exit
PB: predicated region body
PF: predicated region fallthrough
CT: control target
= control target key end

     0   :  { %s520_s18 = smov 0   ;;  %s569_s0 = inlined_call_operand.vmem [shape: f32[16,768], index: 0, kind: input, shape index: {}]   ;;  %s570_s1 = inlined_call_operand.vmem [shape: f32[16,768], index: 1, kind: input, shape index: {}]   ;;  %s571_s2 = inlined_call_operand.vmem [shape: f32[8,768], index: 2, kind: input, shape index: {}]   ;;  %s572_s3 = inlined_call_operand.vmem [shape: f32[1,768], index: 3, kind: input, shape index: {}]   ;;  %s573_s4 = inlined_call_operand.vmem [shape: f32[1,768], index: 4, kind: input, shape index: {}]   ;;  %s574_s5 = inlined_call_operand.vmem [shape: f32[16,768], index: 5, kind: output, shape index: {}]  }
   0x1 LB: > { %s461_s19 = sadd.s32 4294967295, %s488_s18   ;;  %p465_p0 = scmp.ge.s32.totalorder %s488_s18, 1  ;;  %s488_s18 = sphi %s520_s18, %s15_s18  }
   0x2   : > { %p197_p1 = scmp.lt.s32.totalorder %s488_s18, 3 }
   0x4   : > { %p198_p2 = pnand %p465_p0, %p197_p1 }
   0x5   : > { %p230_p3 = scmp.lt.s32.totalorder (!%p198_p2), %s461_s19, 1  ;;  %v263_v3 = vld [vmem:[%s571_s2] sm:$0xff] (!%p198_p2)  ;;  %v264_v4 = vld [vmem:[%s571_s2 + $0x8] sm:$0xff] (!%p198_p2)  ;;  %v265_v7 = vld [vmem:[%s571_s2 + $0x10] sm:$0xff] (!%p198_p2)  ;;  %v315_v55 = vlaneseq (!%p198_p2) }
   0x6   : > { %201 = sbr.rel (%p198_p2) target bundleno = 358 (0x166), region = 40  ;;  %v266_v19 = vld [vmem:[%s571_s2 + $0x18] sm:$0xff] (!%p198_p2)  ;;  %v267_v24 = vld [vmem:[%s571_s2 + $0x20] sm:$0xff] (!%p198_p2)  ;;  %v268_v28 = vld [vmem:[%s571_s2 + $0x28] sm:$0xff] (!%p198_p2) }
   0x7   : > { %v316_v58 = vshrl.u32 (!%p198_p2), %v315_v55, 7  ;;  %v275_v61 = vld [vmem:[%s572_s3] sm:$0x3f] (!%p198_p2) }
   0x9   : > { %v317_v59 = vsub.s32 (!%p198_p2), 0, %v316_v58  ;;  %v321_v60 = vsub.s32 (!%p198_p2), 1, %v316_v58  ;;  %v325_v62 = vsub.s32 (!%p198_p2), 2, %v316_v58  ;;  %v329_v63 = vsub.s32 (!%p198_p2), 3, %v316_v58 }
   0xd   : > { %s576_s19 = smov (!%p230_p3, %s461_s19), 1 }
   0xe   : > { %s528_s20 = smul.u32 48, %s576_s19 }
  0x10   : > { %s234_s23 = scalar_lea.vmem %s569_s0, %s528_s20  ;;  %s239_s26 = scalar_lea.vmem %s570_s1, %s528_s20 }
  0x11   : > { %v245_v0 = vld [vmem:[%s234_s23] sm:$0xff]  ;;  %v246_v1 = vld [vmem:[%s234_s23 + $0x8] sm:$0xff]  ;;  %v247_v2 = vld [vmem:[%s234_s23 + $0x10] sm:$0xff]  ;;  %s244_s22 = scalar_lea.vmem %s574_s5, %s528_s20 }
  0x12   : > { %v248_v5 = vld [vmem:[%s234_s23 + $0x18] sm:$0xff]  ;;  %v249_v6 = vld [vmem:[%s234_s23 + $0x20] sm:$0xff]  ;;  %v252_v9 = vld [vmem:[%s239_s26 + $0x8] sm:$0xff] }
  0x13   : > { %v251_v8 = vld [vmem:[%s239_s26] sm:$0xff]  ;;  %v253_v10 = vld [vmem:[%s239_s26 + $0x10] sm:$0xff]  ;;  %v254_v11 = vld [vmem:[%s239_s26 + $0x18] sm:$0xff]  ;;  %v258_v14 = vadd.f32 %v252_v9, %v246_v1  ;;  %v337_v1 = vsub.s32 5, %v316_v58 }
  0x14   : > { %v255_v12 = vld [vmem:[%s239_s26 + $0x20] sm:$0xff]  ;;  %v257_v13 = vadd.f32 %v251_v8, %v245_v0  ;;  %v259_v15 = vadd.f32 %v253_v10, %v247_v2  ;;  %v250_v16 = vld [vmem:[%s234_s23 + $0x28] sm:$0xff]  ;;  %v260_v18 = vadd.f32 %v254_v11, %v248_v5  ;;  %v333_v0 = vsub.s32 4, %v316_v58 }
  0x15   : > { %v256_v17 = vld [vmem:[%s239_s26 + $0x28] sm:$0xff]  ;;  %v261_v20 = vadd.f32 %v255_v12, %v249_v6  ;;  %v270_v22 = vadd.f32 %v264_v4, %v258_v14  ;;  %v276_v2 = vld [vmem:[%s573_s4] sm:$0x3f]  ;;  %v322_v4 = vrot.slane %v275_v61, %v321_v60  ;;  %v326_v5 = vrot.slane %v275_v61, %v325_v62 }
  0x16   : > { %v269_v21 = vadd.f32 %v263_v3, %v257_v13  ;;  %v271_v23 = vadd.f32 %v265_v7, %v259_v15  ;;  %v262_v25 = vadd.f32 %v256_v17, %v250_v16  ;;  %v272_v26 = vadd.f32 %v266_v19, %v260_v18 }
  0x17   : > { %v273_v29 = vadd.f32 %v267_v24, %v261_v20  ;;  %v318_v3 = vrot.slane %v275_v61, %v317_v59  ;;  %v330_v6 = vrot.slane %v275_v61, %v329_v63  ;;  %v334_v7 = vrot.slane %v275_v61, %v333_v0 }
  0x18   : > { %v277_v27 = vadd.f32 %v270_v22, %v269_v21  ;;  %v274_v31 = vadd.f32 %v268_v28, %v262_v25  ;;  %v338_v8 = vrot.slane %v275_v61, %v337_v1  ;;  %v355_v10 = vrot.slane %v276_v2, %v317_v59 }
  0x19   : > { %v359_v11 = vrot.slane %v276_v2, %v321_v60  ;;  %v363_v12 = vrot.slane %v276_v2, %v325_v62  ;;  %v367_v13 = vrot.slane %v276_v2, %v329_v63  ;;  %v371_v18 = vrot.slane %v276_v2, %v333_v0 }
  0x1a   : > { %v278_v30 = vadd.f32 %v277_v27, %v271_v23  ;;  %v375_v19 = vrot.slane %v276_v2, %v337_v1 }
  0x1c   : > { %v279_v32 = vadd.f32 %v278_v30, %v272_v26 }
  0x1e   : > { %v280_v33 = vadd.f32 %v279_v32, %v273_v29 }
  0x20   : > { %v281_v34 = vadd.f32 %v280_v33, %v274_v31 }
  0x22   : > { %282 = vadd.xlane.f32.xlu0 %v281_v34 }
  0xaf   : > { %v283_v35 = vpop.xlane.xlu0 %282 }
  0xb0   : > { %v285_v36 = vmul.f32 0.0013020834, %v283_v35 }
  0xb2   : > { %v286_v37 = vsub.f32 %v269_v21, %v285_v36  ;;  %v287_v38 = vsub.f32 %v270_v22, %v285_v36  ;;  %v288_v39 = vsub.f32 %v271_v23, %v285_v36  ;;  %v289_v40 = vsub.f32 %v272_v26, %v285_v36 }
  0xb3   : > { %v290_v43 = vsub.f32 %v273_v29, %v285_v36  ;;  %v291_v46 = vsub.f32 %v274_v31, %v285_v36 }
  0xb4   : > { %v292_v41 = vmul.f32 %v286_v37, %v286_v37  ;;  %v293_v42 = vmul.f32 %v287_v38, %v287_v38  ;;  %v294_v44 = vmul.f32 %v288_v39, %v288_v39  ;;  %v295_v47 = vmul.f32 %v289_v40, %v289_v40 }
  0xb5   : > { %v296_v49 = vmul.f32 %v290_v43, %v290_v43  ;;  %v297_v51 = vmul.f32 %v291_v46, %v291_v46 }
  0xb6   : > { %v298_v45 = vadd.f32 %v293_v42, %v292_v41 }
  0xb8   : > { %v299_v48 = vadd.f32 %v298_v45, %v294_v44 }
  0xba   : > { %v300_v50 = vadd.f32 %v299_v48, %v295_v47 }
  0xbc   : > { %v301_v52 = vadd.f32 %v300_v50, %v296_v49 }
  0xbe   : > { %v302_v53 = vadd.f32 %v301_v52, %v297_v51 }
  0xc0   : > { %303 = vadd.xlane.f32.xlu0 %v302_v53 }
 0x14d   : > { %v304_v54 = vpop.xlane.xlu0 %303 }
 0x14e   : > { %v305_v56 = vmul.f32 0.0013020834, %v304_v54 }
 0x150   : > { %v306_v57 = vadd.f32 1e-12, %v305_v56 }
 0x152   : > { %480 = vrsqrt.f32 %v306_v57 }
 0x15c   : > { %v481_v9 = vpop.eup %480 }
 0x15d   : > { %v308_v14 = vmul.f32 %v481_v9, %v286_v37  ;;  %v309_v15 = vmul.f32 %v481_v9, %v287_v38  ;;  %v310_v16 = vmul.f32 %v481_v9, %v288_v39  ;;  %v311_v17 = vmul.f32 %v481_v9, %v289_v40 }
 0x15e   : > { %v312_v20 = vmul.f32 %v481_v9, %v290_v43  ;;  %v313_v21 = vmul.f32 %v481_v9, %v291_v46 }
 0x15f   : > { %v345_v22 = vmul.f32 %v318_v3, %v308_v14  ;;  %v346_v23 = vmul.f32 %v322_v4, %v309_v15  ;;  %v347_v24 = vmul.f32 %v326_v5, %v310_v16  ;;  %v348_v25 = vmul.f32 %v330_v6, %v311_v17 }
 0x160   : > { %v349_v26 = vmul.f32 %v334_v7, %v312_v20  ;;  %v350_v27 = vmul.f32 %v338_v8, %v313_v21 }
 0x161   : > { %v382_v28 = vadd.f32 %v355_v10, %v345_v22  ;;  %v383_v29 = vadd.f32 %v359_v11, %v346_v23  ;;  %v384_v30 = vadd.f32 %v363_v12, %v347_v24  ;;  %v385_v31 = vadd.f32 %v367_v13, %v348_v25 }
 0x162   : > { %v386_v32 = vadd.f32 %v371_v18, %v349_v26  ;;  %v387_v33 = vadd.f32 %v375_v19, %v350_v27 }
 0x163   : > { %388 = vst [vmem:[%s244_s22] sm:$0xff] %v382_v28  ;;  %389 = vst [vmem:[%s244_s22 + $0x8] sm:$0xff] %v383_v29 }
 0x164   : > { %390 = vst [vmem:[%s244_s22 + $0x10] sm:$0xff] %v384_v30  ;;  %391 = vst [vmem:[%s244_s22 + $0x18] sm:$0xff] %v385_v31 }
 0x165   : > { %392 = vst [vmem:[%s244_s22 + $0x20] sm:$0xff] %v386_v32  ;;  %393 = vst [vmem:[%s244_s22 + $0x28] sm:$0xff] %v387_v33 }
 0x166 PF: > { %s15_s18 = sadd.s32 1, %s488_s18  }
 0x167   : > { %p12_p4 = scmp.ge.s32.totalorder %s15_s18, 4  }
 0x169   :  { %14 = sbr.rel (!%p12_p4) target bundleno = 1 (0x1), region = 73 }

// kernel: custom_bert_forward.10
= control target key start
LH: loop header
LB: loop body
LE: loop exit
PB: predicated region body
PF: predicated region fallthrough
CT: control target
= control target key end

     0   :  { %s2136_s0 = inlined_call_operand.vmem [shape: f32[16,768], index: 0, kind: input, shape index: {}]   ;;  %s2137_s1 = inlined_call_operand.hbm [shape: bf16[768,2304], index: 1, kind: input, shape index: {}]   ;;  %s2138_s2 = inlined_call_operand.vmem [shape: f32[1,2304], index: 2, kind: input, shape index: {}]   ;;  %s2139_s3 = inlined_call_operand.vmem [shape: f32[16,2304], index: 3, kind: output, shape index: {}]  }
   0x1   :  { %2143 = sst [smem:[#allocation12_spill]] %s2136_s0 }
   0x2   :  { %8 = vsyncpa [#allocation5], 0 }
   0x3   :  { %10 = vsyncpa [#allocation5 + $0x1], 0  ;;  %s1776_s12 = smov 0   ;;  %s1778_s13 = smov 0  }
   0x4   :  { %s1780_s14 = smov 0   ;;  %s1782_s15 = smov 0  }
   0x5   :  { %s1784_s16 = smov 0   ;;  %s1786_s17 = smov 0  }
   0x6   :  { %s1788_s18 = smov 0   ;;  %s1790_s19 = smov 0  }
   0x7   :  { %s1792_s20 = smov 0   ;;  %s1794_s21 = smov 0  }
   0x8   :  { %s1796_s22 = smov 0   ;;  %s1798_s23 = smov 0  }
   0x9 LB: > { %2144 = sst [smem:[#allocation8_spill]] %s1745_s22  ;;  %s1258_s24 = sadd.s32 4294967295, %s1749_s23   ;;  %s1749_s23 = sphi %s1798_s23, %s16_s23   ;;  %s1745_s22 = sphi %s1796_s22, %s2157_s22   ;;  %s1741_s21 = sphi %s1794_s21, %s2167_s21   ;;  %s1737_s20 = sphi %s1792_s20, %s2166_s20   ;;  %s1733_s19 = sphi %s1790_s19, %s2165_s19   ;;  %s1729_s18 = sphi %s1788_s18, %s2164_s18   ;;  %s1725_s17 = sphi %s1786_s17, %s2163_s17   ;;  %s1721_s16 = sphi %s1784_s16, %s2162_s16   ;;  %s1717_s15 = sphi %s1782_s15, %s2161_s15   ;;  %s1713_s14 = sphi %s1780_s14, %s2160_s14   ;;  %s1709_s13 = sphi %s1778_s13, %s2159_s13   ;;  %s1705_s12 = sphi %s1776_s12, %s2158_s12  }
   0xa   : > { %s25_s25 = sadd.s32 1, %s1741_s21  ;;  %s28_s26 = sadd.s32 1, %s1745_s22 }
   0xb   : > { %p26_p0 = scmp.ge.s32.totalorder %s25_s25, 3  ;;  %s35_s27 = sadd.s32 1, %s1729_s18 }
   0xc   : > { %p42_p1 = scmp.ne.s32.totalorder %s1729_s18, %s1725_s17  ;;  %p43_p2 = scmp.eq.s32.totalorder %s1749_s23, 0 }
   0xd   : > { %s2169_s25 = smov (%p26_p0, %s25_s25), 0  ;;  %s2171_s26 = smov (!%p26_p0, %s28_s26), %s1745_s22 }
   0xe   : > { %2145 = sst [smem:[#allocation9_spill]] %s2169_s25  ;;  %s32_s28 = ssub.s32 %s1741_s21, %s2169_s25 }
   0xf   : > { %p30_p3 = scmp.ge.s32.totalorder %s2171_s26, 3  ;;  %p33_p4 = scmp.eq.s32.totalorder %s32_s28, 0 }
  0x10   : > { %p1848_p5 = por %p43_p2, %p42_p1  ;;  %s63_s30 = sadd.s32 1, %s1721_s16 }
  0x11   : > { %s2173_s26 = smov (%p30_p3, %s2171_s26), 0  ;;  %p70_p6 = scmp.ne.s32.totalorder %s1721_s16, %s1717_s15 }
  0x12   : > { %2147 = sst [smem:[#allocation10_spill]] %s2173_s26  ;;  %s59_s5 = ssub.s32 %s1745_s22, %s2173_s26 }
  0x13   : > { %s1856_s4 = scalar_select %p33_p4, %s1729_s18, %s35_s27  }
  0x14   : > { %s60_s6 = sor.u32 %s59_s5, %s32_s28  ;;  %p76_p7 = scmp.ne.s32.totalorder %s1717_s15, %s1713_s14 }
  0x15   : > { %2148 = sst [smem:[#allocation11_spill]] %s1856_s4  ;;  %p61_p8 = scmp.eq.s32.totalorder %s60_s6, 0 }
  0x16   : > { %p1864_p9 = por %p70_p6, %p43_p2  ;;  %p77_p10 = scmp.eq.s32.totalorder %s1258_s24, 0 }
  0x17   : > { %p113_p11 = scmp.eq.s32.totalorder %s59_s5, 0  ;;  %s115_s10 = sadd.s32 1, %s1709_s13 }
  0x18   : > { %s1871_s8 = scalar_select %p61_p8, %s1721_s16, %s63_s30  }
  0x19   : > { %p1873_p12 = por %p77_p10, %p76_p7  ;;  %p125_p13 = scmp.ne.s32.totalorder %s1709_s13, %s1705_s12 }
  0x1a   : > { %s1879_s11 = scalar_select %p113_p11, %s1709_s13, %s115_s10  }
  0x1b   : > { %p126_p0 = scmp.eq.s32.totalorder %s1258_s24, 8  ;;  %p1261_p2 = scmp.ge.s32.totalorder %s1749_s23, 9 }
  0x1d   : > { %p1885_p1 = por %p126_p0, %p125_p13  ;;  %148 = sbr.rel (%p1261_p2) target bundleno = 78 (0x4e), region = 16 }
  0x1f   : > { %s2151_s14 = scalar_select %p1885_p1, 1, 0 }
  0x24   : > { %151 = sbr.rel (!%p1848_p5) target bundleno = 48 (0x30), region = 20  ;;  %s153_s27 = sand.u32 (%p1848_p5), 1, %s1729_s18  }
  0x25   : > { %s1371_s28 = sshll.u32 (%p1848_p5), %s1741_s21, 4  ;;  %s1262_s30 = sshll.u32 (%p1848_p5), %s153_s27, 5 }
  0x26   : > { %s2152_s0 = sld [smem:[#allocation12_spill]] (%p1848_p5)  ;;  %s155_s24 = scalar_lea.vmem (%p1848_p5), [#allocation3], %s1262_s30 }
  0x2c   : > { %s158_s10 = scalar_lea.vmem %s2152_s0, %s1371_s28 }
  0x2d   : > { %v171_v0 = vld [vmem:[%s158_s10] sm:$0xff]  ;;  %v173_v1 = vld [vmem:[%s158_s10 + $0x8] sm:$0xff]  ;;  %v175_v2 = vld [vmem:[%s158_s10 + $0x30] sm:$0xff] }
  0x2e   : > { %172 = vst [vmem:[%s155_s24] sm:$0xff] %v171_v0  ;;  %174 = vst [vmem:[%s155_s24 + $0x8] sm:$0xff] %v173_v1  ;;  %v177_v3 = vld [vmem:[%s158_s10 + $0x38] sm:$0xff] }
  0x2f   : > { %176 = vst [vmem:[%s155_s24 + $0x10] sm:$0xff] %v175_v2  ;;  %178 = vst [vmem:[%s155_s24 + $0x18] sm:$0xff] %v177_v3 }
  0x30 PF: > { %s185_s29 = sand.u32 1, %s1721_s16   ;;  %s191_s27 = smul.u32 6, %s1745_s22 }
  0x31   : > { %s1373_s26 = smul.u32 768, %s185_s29  ;;  %s1907_s24 = scalar_lea.sflag [#allocation5], %s185_s29 }
  0x32   : > { %s1374_s25 = smul.u32 576, %s1741_s21 }
  0x33   : > { %s189_s28 = scalar_lea.vmem [#allocation4], %s1373_s26 }
  0x34   : > { %s196_s5 = sadd.s32 %s1374_s25, %s191_s27  ;;  %s199_s6 = sshll.u32 %s189_s28, 4  ;;  %s1900_s6 = int_to_ptr.vmem [resolvable:$true] %s199_s6 }
  0x35   : > { %s1267_s0 = sshll.u32 %s196_s5, 6  ;;  %s1627_s27 = scalar_lea.hbm %s2137_s1, 110592 }
  0x36   : > { %s1905_s10 = scalar_lea.hbm %s2137_s1, %s1267_s0 }
  0x37   : > { %s1623_s22 = scalar_lea.hbm %s1905_s10, 12288  ;;  %p1628_p6 = scmp.lt.u32.totalorder %s1905_s10, %s2137_s1 }
  0x38   : > { %p1624_p3 = scmp.ne.s32.totalorder %s1905_s10, %s1623_s22  ;;  %p1629_p7 = scmp.lt.u32.totalorder %s1627_s27, %s1623_s22 }
  0x39   : > { %p1631_p10 = scmp.lt.u32.totalorder %s1623_s22, %s1905_s10 }
  0x3a   : > { %p1625_p4 = pnand %p1624_p3, %p1864_p9  ;;  %p1630_p8 = por %p1629_p7, %p1628_p6 }
  0x3c   : > { %p1626_p5 = pneg %p1625_p4  ;;  %p1632_p11 = por %p1631_p10, %p1630_p8 }
  0x3e   : > { %p1633_p13 = pnand %p1632_p11, %p1626_p5 }
  0x40   : > { %1636 = shalt.err (!%p1633_p13)
}
  0x41   : > { %s1637_s0 = scalar_lea.vmem %s1900_s6, 12288  ;;  %s1751_s4 = smov [#allocation4]  }
  0x42   : > { %p1638_p0 = scmp.ne.s32.totalorder %s1900_s6, %s1637_s0  ;;  %s1641_s29 = sshll.u32 %s1751_s4, 4  ;;  %s1642_s29 = int_to_ptr.vmem [resolvable:$false] %s1641_s29 }
  0x43   : > { %s1643_s30 = scalar_lea.vmem %s1642_s29, 24576  ;;  %p1644_p4 = scmp.lt.s32.totalorder %s1900_s6, %s1642_s29 }
  0x44   : > { %p1639_p2 = pnand %p1638_p0, %p1864_p9  ;;  %p1645_p1 = scmp.lt.s32.totalorder %s1643_s30, %s1637_s0 }
  0x46   : > { %p1640_p3 = pneg %p1639_p2  ;;  %p1646_p6 = por %p1645_p1, %p1644_p4 }
  0x48   : > { %p1647_p7 = pnand %p1646_p6, %p1640_p3 }
  0x4a   : > { %1650 = shalt.err (!%p1647_p7)
}
  0x4b   : > { %s1752_s22 = smov 1152   ;;  %s1753_s25 = smov 384  }
  0x4c   : > { %s1754_s26 = smov 24  }
  0x4d   : > { %1377 = dma.hbm_to_vmem [thread:$0]  (%p1864_p9), %s1905_s10, 12288, %s1900_s6, %s1907_s24, %s1752_s22, %s1753_s25, %s1754_s26  }
  0x4e PF: > { %p1268_p5 = scmp.ge.s32.totalorder %s1749_s23, 1  ;;  %p215_p8 = scmp.lt.s32.totalorder %s1749_s23, 10 }
  0x50   : > { %p216_p10 = pnand %p1268_p5, %p215_p8 }
  0x51   : > { %s222_s27 = sand.u32 (!%p216_p10), 1, %s1725_s17   ;;  %s228_s5 = sand.u32 (!%p216_p10), 1, %s1717_s15  }
  0x52   : > { %219 = sbr.rel (%p216_p10) target bundleno = 467 (0x1d3), region = 51  ;;  %s1269_s28 = sshll.u32 (!%p216_p10), %s222_s27, 5 }
  0x53   : > { %s1375_s0 = smul.u32 (!%p216_p10), 768, %s228_s5  ;;  %s1935_s4 = scalar_lea.vmem (!%p216_p10), [#allocation3], %s1269_s28 }
  0x54   : > { %s229_s29 = scalar_lea.sflag (!%p216_p10), [#allocation5], %s228_s5 }
  0x55   : > { %s1937_s30 = scalar_lea.vmem (!%p216_p10), [#allocation4], %s1375_s0 }
  0x59   : > { %1700 = dma.done.wait (%p1873_p12), %s229_s29, 12288  }
  0x5a   : > { %1702 = vsyncadd (%p1873_p12), %s229_s29, 4294955008  ;;  %s259_s7 = sand.u32 1, %s1705_s12   ;;  %s265_s6 = smul.u32 6, %s1737_s20 }
  0x5b   : > { %s1376_s10 = smul.u32 96, %s259_s7  ;;  %p1270_p1 = scmp.ne.s32.totalorder %s1733_s19, 0 }
  0x5c   : > { %p266_p9 = scmp.lt.s32.totalorder %s265_s6, 17  ;;  %v1755_v4 = vmov (!%p1270_p1), 0.0  }
  0x5d   : > { %s1951_s25 = scalar_lea.vmem [#allocation6], %s1376_s10  ;;  %274 = sbr.rel (%p1270_p1) target bundleno = 100 (0x64), region = 63  ;;  %275 = vst [vmem:[#allocation2] sm:$0xff] (!%p1270_p1), %v1755_v4  ;;  %276 = vst [vmem:[#allocation2 + $0x8] sm:$0xff] (!%p1270_p1), %v1755_v4 }
  0x5e   : > { %s2175_s6 = smov (!%p266_p9, %s265_s6), 17  ;;  %277 = vst [vmem:[#allocation2 + $0x10] sm:$0xff] (!%p1270_p1), %v1755_v4  ;;  %278 = vst [vmem:[#allocation2 + $0x18] sm:$0xff] (!%p1270_p1), %v1755_v4 }
  0x5f   : > { %s268_s22 = scalar_lea.vmem %s2138_s2, %s2175_s6  ;;  %279 = vst [vmem:[#allocation2 + $0x20] sm:$0xff] (!%p1270_p1), %v1755_v4  ;;  %280 = vst [vmem:[#allocation2 + $0x28] sm:$0xff] (!%p1270_p1), %v1755_v4 }
  0x60   : > { %281 = vst [vmem:[#allocation2 + $0x30] sm:$0xff] (!%p1270_p1), %v1755_v4  ;;  %282 = vst [vmem:[#allocation2 + $0x38] sm:$0xff] (!%p1270_p1), %v1755_v4 }
  0x61   : > { %283 = vst [vmem:[#allocation2 + $0x40] sm:$0xff] (!%p1270_p1), %v1755_v4  ;;  %284 = vst [vmem:[#allocation2 + $0x48] sm:$0xff] (!%p1270_p1), %v1755_v4 }
  0x62   : > { %285 = vst [vmem:[#allocation2 + $0x50] sm:$0xff] (!%p1270_p1), %v1755_v4  ;;  %286 = vst [vmem:[#allocation2 + $0x58] sm:$0xff] (!%p1270_p1), %v1755_v4 }
  0x64 PF: > { %v1479_v5 = vld [vmem:[%s1937_s30 + $0x4] ss:$24 sps:$4 sm:$0xff]   ;;  %v1481_v6 = vld [vmem:[%s1937_s30] ss:$24 sps:$4 sm:$0xff]   ;;  %v1482_v7 = vld [vmem:[%s1937_s30 + $0x34] ss:$24 sps:$4 sm:$0xff]  }
  0x65   : > { %881 = vmatprep.subr.bf16.mxu0 %v1479_v5  ;;  %v1484_v8 = vld [vmem:[%s1937_s30 + $0x30] ss:$24 sps:$4 sm:$0xff]   ;;  %v1485_v9 = vld [vmem:[%s1937_s30 + $0x64] ss:$24 sps:$4 sm:$0xff]   ;;  %v1487_v10 = vld [vmem:[%s1937_s30 + $0x60] ss:$24 sps:$4 sm:$0xff]  }
  0x66   : > { %882 = vmatpush1.bf16.msra.mxu0 %v1481_v6  ;;  %v1488_v11 = vld [vmem:[%s1937_s30 + $0x94] ss:$24 sps:$4 sm:$0xff]   ;;  %v1490_v12 = vld [vmem:[%s1937_s30 + $0x90] ss:$24 sps:$4 sm:$0xff]   ;;  %v1491_v13 = vld [vmem:[%s1937_s30 + $0xc4] ss:$24 sps:$4 sm:$0xff]  }
  0x67   : > { %883 = vmatprep.subr.bf16.mxu0 %v1482_v7  ;;  %v1493_v14 = vld [vmem:[%s1937_s30 + $0xc0] ss:$24 sps:$4 sm:$0xff]   ;;  %v1494_v15 = vld [vmem:[%s1937_s30 + $0xf4] ss:$24 sps:$4 sm:$0xff]   ;;  %v1496_v16 = vld [vmem:[%s1937_s30 + $0xf0] ss:$24 sps:$4 sm:$0xff]  }
  0x68   : > { %v1497_v17 = vld [vmem:[%s1937_s30 + $0x124] ss:$24 sps:$4 sm:$0xff]   ;;  %v1529_v19 = vld [vmem:[%s1937_s30 + $0x8] ss:$24 sps:$4 sm:$0xff]   ;;  %v1500_v23 = vld [vmem:[%s1937_s30 + $0x154] ss:$24 sps:$4 sm:$0xff]  }
  0x69   : > { %v1527_v18 = vld [vmem:[%s1937_s30 + $0xc] ss:$24 sps:$4 sm:$0xff]   ;;  %v1499_v21 = vld [vmem:[%s1937_s30 + $0x120] ss:$24 sps:$4 sm:$0xff]   ;;  %v1533_v25 = vld [vmem:[%s1937_s30 + $0x3c] ss:$24 sps:$4 sm:$0xff]  }
  0x6a   : > { %884 = vmatpush1.bf16.msra.mxu0 %v1484_v8  ;;  %v300_v20 = vld [vmem:[%s1935_s4 + $0x8] sm:$0xff]  ;;  %v302_v22 = vld [vmem:[%s1935_s4 + $0x18] sm:$0xff]  ;;  %924 = vmatprep.subr.bf16.mxu1 %v1527_v18  ;;  %v299_v61 = vld [vmem:[%s1935_s4] sm:$0xff]  ;;  %p1367_p12 = scmp.ne.s32.totalorder %s1733_s19, 2 }
  0x6b   : > { %885 = vmatprep.subr.bf16.mxu0 %v1485_v9  ;;  %v1973_v24 = vpack.c.bf16 %v302_v22, %v300_v20  ;;  %925 = vmatpush1.bf16.msra.mxu1 %v1529_v19  ;;  %v1535_v26 = vld [vmem:[%s1937_s30 + $0x38] ss:$24 sps:$4 sm:$0xff]   ;;  %v1503_v28 = vld [vmem:[%s1937_s30 + $0x184] ss:$24 sps:$4 sm:$0xff]   ;;  %v1541_v30 = vld [vmem:[%s1937_s30 + $0x68] ss:$24 sps:$4 sm:$0xff]  }
  0x6c   : > { %v1502_v27 = vld [vmem:[%s1937_s30 + $0x150] ss:$24 sps:$4 sm:$0xff]   ;;  %926 = vmatprep.subr.bf16.mxu1 %v1533_v25  ;;  %v1539_v29 = vld [vmem:[%s1937_s30 + $0x6c] ss:$24 sps:$4 sm:$0xff]   ;;  %v1505_v31 = vld [vmem:[%s1937_s30 + $0x180] ss:$24 sps:$4 sm:$0xff]  }
  0x6d   : > { %913 = vmatprep.mubr.bf16.mxu0 %v1973_v24  ;;  %956 = vmatprep.mubr.bf16.mxu1 %v1973_v24  ;;  %v1545_v32 = vld [vmem:[%s1937_s30 + $0x9c] ss:$24 sps:$4 sm:$0xff]   ;;  %v1547_v34 = vld [vmem:[%s1937_s30 + $0x98] ss:$24 sps:$4 sm:$0xff]   ;;  %v1551_v35 = vld [vmem:[%s1937_s30 + $0xcc] ss:$24 sps:$4 sm:$0xff]  }
  0x6e   : > { %886 = vmatpush1.bf16.msra.mxu0 %v1487_v10  ;;  %v1506_v33 = vld [vmem:[%s1937_s30 + $0x1b4] ss:$24 sps:$4 sm:$0xff]   ;;  %v1508_v36 = vld [vmem:[%s1937_s30 + $0x1b0] ss:$24 sps:$4 sm:$0xff]   ;;  %v1509_v37 = vld [vmem:[%s1937_s30 + $0x1e4] ss:$24 sps:$4 sm:$0xff]  }
  0x6f   : > { %887 = vmatprep.subr.bf16.mxu0 %v1488_v11  ;;  %927 = vmatpush1.bf16.msra.mxu1 %v1535_v26  ;;  %v1553_v38 = vld [vmem:[%s1937_s30 + $0xc8] ss:$24 sps:$4 sm:$0xff]   ;;  %v1557_v39 = vld [vmem:[%s1937_s30 + $0xfc] ss:$24 sps:$4 sm:$0xff]   ;;  %v1559_v42 = vld [vmem:[%s1937_s30 + $0xf8] ss:$24 sps:$4 sm:$0xff]  }
  0x70   : > { %928 = vmatprep.subr.bf16.mxu1 %v1539_v29  ;;  %v1511_v40 = vld [vmem:[%s1937_s30 + $0x1e0] ss:$24 sps:$4 sm:$0xff]   ;;  %v1512_v41 = vld [vmem:[%s1937_s30 + $0x214] ss:$24 sps:$4 sm:$0xff]   ;;  %v1514_v44 = vld [vmem:[%s1937_s30 + $0x210] ss:$24 sps:$4 sm:$0xff]  }
  0x71   : > { %v1563_v43 = vld [vmem:[%s1937_s30 + $0x12c] ss:$24 sps:$4 sm:$0xff]   ;;  %v1565_v46 = vld [vmem:[%s1937_s30 + $0x128] ss:$24 sps:$4 sm:$0xff]   ;;  %v1569_v47 = vld [vmem:[%s1937_s30 + $0x15c] ss:$24 sps:$4 sm:$0xff]  }
  0x72   : > { %888 = vmatpush1.bf16.msra.mxu0 %v1490_v12  ;;  %v1515_v45 = vld [vmem:[%s1937_s30 + $0x244] ss:$24 sps:$4 sm:$0xff]   ;;  %v1517_v48 = vld [vmem:[%s1937_s30 + $0x240] ss:$24 sps:$4 sm:$0xff]   ;;  %v1518_v49 = vld [vmem:[%s1937_s30 + $0x274] ss:$24 sps:$4 sm:$0xff]  }
  0x73   : > { %889 = vmatprep.subr.bf16.mxu0 %v1491_v13  ;;  %929 = vmatpush1.bf16.msra.mxu1 %v1541_v30  ;;  %v1571_v50 = vld [vmem:[%s1937_s30 + $0x158] ss:$24 sps:$4 sm:$0xff]   ;;  %v1575_v51 = vld [vmem:[%s1937_s30 + $0x18c] ss:$24 sps:$4 sm:$0xff]   ;;  %v1577_v54 = vld [vmem:[%s1937_s30 + $0x188] ss:$24 sps:$4 sm:$0xff]  }
  0x74   : > { %930 = vmatprep.subr.bf16.mxu1 %v1545_v32  ;;  %v1520_v52 = vld [vmem:[%s1937_s30 + $0x270] ss:$24 sps:$4 sm:$0xff]   ;;  %v1521_v53 = vld [vmem:[%s1937_s30 + $0x2a4] ss:$24 sps:$4 sm:$0xff]   ;;  %v1523_v56 = vld [vmem:[%s1937_s30 + $0x2a0] ss:$24 sps:$4 sm:$0xff]  }
  0x75   : > { %v1581_v55 = vld [vmem:[%s1937_s30 + $0x1bc] ss:$24 sps:$4 sm:$0xff]   ;;  %v1583_v58 = vld [vmem:[%s1937_s30 + $0x1b8] ss:$24 sps:$4 sm:$0xff]   ;;  %v1587_v60 = vld [vmem:[%s1937_s30 + $0x1ec] ss:$24 sps:$4 sm:$0xff]  }
  0x76   : > { %890 = vmatpush1.bf16.msra.mxu0 %v1493_v14  ;;  %v1524_v57 = vld [vmem:[%s1937_s30 + $0x2d4] ss:$24 sps:$4 sm:$0xff]   ;;  %v1526_v59 = vld [vmem:[%s1937_s30 + $0x2d0] ss:$24 sps:$4 sm:$0xff]   ;;  %v1538_v4 = vld [vmem:[%s1937_s30 + $0x44] ss:$24 sps:$4 sm:$0xff]  }
  0x77   : > { %891 = vmatprep.subr.bf16.mxu0 %v1494_v15  ;;  %931 = vmatpush1.bf16.msra.mxu1 %v1547_v34  ;;  %v301_v62 = vld [vmem:[%s1935_s4 + $0x10] sm:$0xff]  ;;  %v1589_v0 = vld [vmem:[%s1937_s30 + $0x1e8] ss:$24 sps:$4 sm:$0xff]   ;;  %v1599_v6 = vld [vmem:[%s1937_s30 + $0x24c] ss:$24 sps:$4 sm:$0xff]  }
  0x78   : > { %932 = vmatprep.subr.bf16.mxu1 %v1551_v35  ;;  %v1532_v63 = vld [vmem:[%s1937_s30 + $0x14] ss:$24 sps:$4 sm:$0xff]   ;;  %v2017_v1 = vpack.c.bf16 %v301_v62, %v299_v61  ;;  %v1530_v3 = vld [vmem:[%s1937_s30 + $0x10] ss:$24 sps:$4 sm:$0xff]   ;;  %v1536_v7 = vld [vmem:[%s1937_s30 + $0x40] ss:$24 sps:$4 sm:$0xff]  }
  0x79   : > { %v1593_v2 = vld [vmem:[%s1937_s30 + $0x21c] ss:$24 sps:$4 sm:$0xff]   ;;  %v1595_v5 = vld [vmem:[%s1937_s30 + $0x218] ss:$24 sps:$4 sm:$0xff]   ;;  %v1601_v9 = vld [vmem:[%s1937_s30 + $0x248] ss:$24 sps:$4 sm:$0xff]  }
  0x7a   : > { %892 = vmatpush1.bf16.msra.mxu0 %v1496_v16  ;;  %v1544_v8 = vld [vmem:[%s1937_s30 + $0x74] ss:$24 sps:$4 sm:$0xff]   ;;  %v1542_v11 = vld [vmem:[%s1937_s30 + $0x70] ss:$24 sps:$4 sm:$0xff]   ;;  %v1550_v12 = vld [vmem:[%s1937_s30 + $0xa4] ss:$24 sps:$4 sm:$0xff]  }
  0x7b   : > { %893 = vmatprep.subr.bf16.mxu0 %v1497_v17  ;;  %933 = vmatpush1.bf16.msra.mxu1 %v1553_v38  ;;  %v1605_v10 = vld [vmem:[%s1937_s30 + $0x27c] ss:$24 sps:$4 sm:$0xff]   ;;  %v1607_v13 = vld [vmem:[%s1937_s30 + $0x278] ss:$24 sps:$4 sm:$0xff]   ;;  %v1611_v14 = vld [vmem:[%s1937_s30 + $0x2ac] ss:$24 sps:$4 sm:$0xff]  }
  0x7c   : > { %934 = vmatprep.subr.bf16.mxu1 %v1557_v39  ;;  %v1548_v15 = vld [vmem:[%s1937_s30 + $0xa0] ss:$24 sps:$4 sm:$0xff]   ;;  %v1556_v16 = vld [vmem:[%s1937_s30 + $0xd4] ss:$24 sps:$4 sm:$0xff]   ;;  %v1554_v19 = vld [vmem:[%s1937_s30 + $0xd0] ss:$24 sps:$4 sm:$0xff]  }
  0x7d   : > { %v1613_v17 = vld [vmem:[%s1937_s30 + $0x2a8] ss:$24 sps:$4 sm:$0xff]   ;;  %v1617_v18 = vld [vmem:[%s1937_s30 + $0x2dc] ss:$24 sps:$4 sm:$0xff]  }
  0x7e   : > { %894 = vmatpush1.bf16.msra.mxu0 %v1499_v21  ;;  %v1562_v20 = vld [vmem:[%s1937_s30 + $0x104] ss:$24 sps:$4 sm:$0xff]   ;;  %v1619_v21 = vld [vmem:[%s1937_s30 + $0x2d8] ss:$24 sps:$4 sm:$0xff]   ;;  %v1604_v35 = vld [vmem:[%s1937_s30 + $0x254] ss:$24 sps:$4 sm:$0xff]  }
  0x7f   : > { %895 = vmatprep.subr.bf16.mxu0 %v1500_v23  ;;  %935 = vmatpush1.bf16.msra.mxu1 %v1559_v42  ;;  %v1560_v22 = vld [vmem:[%s1937_s30 + $0x100] ss:$24 sps:$4 sm:$0xff]   ;;  %v1568_v23 = vld [vmem:[%s1937_s30 + $0x134] ss:$24 sps:$4 sm:$0xff]   ;;  %v1574_v25 = vld [vmem:[%s1937_s30 + $0x164] ss:$24 sps:$4 sm:$0xff]  }
  0x80   : > { %936 = vmatprep.subr.bf16.mxu1 %v1563_v43  ;;  %v1572_v26 = vld [vmem:[%s1937_s30 + $0x160] ss:$24 sps:$4 sm:$0xff]   ;;  %v1586_v29 = vld [vmem:[%s1937_s30 + $0x1c4] ss:$24 sps:$4 sm:$0xff]   ;;  %v1590_v32 = vld [vmem:[%s1937_s30 + $0x1f0] ss:$24 sps:$4 sm:$0xff]  }
  0x81   : > { %v1584_v30 = vld [vmem:[%s1937_s30 + $0x1c0] ss:$24 sps:$4 sm:$0xff]   ;;  %v1616_v39 = vld [vmem:[%s1937_s30 + $0x2b4] ss:$24 sps:$4 sm:$0xff]  }
  0x82   : > { %896 = vmatpush1.bf16.msra.mxu0 %v1502_v27  ;;  %v1580_v27 = vld [vmem:[%s1937_s30 + $0x194] ss:$24 sps:$4 sm:$0xff]   ;;  %v1596_v34 = vld [vmem:[%s1937_s30 + $0x220] ss:$24 sps:$4 sm:$0xff]  }
  0x83   : > { %897 = vmatprep.subr.bf16.mxu0 %v1503_v28  ;;  %937 = vmatpush1.bf16.msra.mxu1 %v1565_v46  ;;  %v1578_v28 = vld [vmem:[%s1937_s30 + $0x190] ss:$24 sps:$4 sm:$0xff]   ;;  %v1608_v38 = vld [vmem:[%s1937_s30 + $0x280] ss:$24 sps:$4 sm:$0xff]  }
  0x84   : > { %938 = vmatprep.subr.bf16.mxu1 %v1569_v47  ;;  %v1620_v42 = vld [vmem:[%s1937_s30 + $0x2e0] ss:$24 sps:$4 sm:$0xff]   ;;  %v293_v46 = vld [vmem:[#allocation2 + $0x30] sm:$0xff]  ;;  %v296_v61 = vld [vmem:[#allocation2 + $0x48] sm:$0xff] }
  0x85   : > { %v287_v43 = vld [vmem:[#allocation2] sm:$0xff] }
  0x86   : > { %898 = vmatpush1.bf16.msra.mxu0 %v1505_v31  ;;  %v1592_v31 = vld [vmem:[%s1937_s30 + $0x1f4] ss:$24 sps:$4 sm:$0xff]  }
  0x87   : > { %899 = vmatprep.subr.bf16.mxu0 %v1506_v33  ;;  %939 = vmatpush1.bf16.msra.mxu1 %v1571_v50  ;;  %v1598_v33 = vld [vmem:[%s1937_s30 + $0x224] ss:$24 sps:$4 sm:$0xff]  }
  0x88   : > { %940 = vmatprep.subr.bf16.mxu1 %v1575_v51 }
  0x8a   : > { %900 = vmatpush1.bf16.msra.mxu0 %v1508_v36  ;;  %v1602_v36 = vld [vmem:[%s1937_s30 + $0x250] ss:$24 sps:$4 sm:$0xff]  }
  0x8b   : > { %901 = vmatprep.subr.bf16.mxu0 %v1509_v37  ;;  %941 = vmatpush1.bf16.msra.mxu1 %v1577_v54  ;;  %v1610_v37 = vld [vmem:[%s1937_s30 + $0x284] ss:$24 sps:$4 sm:$0xff]  }
  0x8c   : > { %942 = vmatprep.subr.bf16.mxu1 %v1581_v55  ;;  %v289_v55 = vld [vmem:[#allocation2 + $0x10] sm:$0xff] }
  0x8e   : > { %902 = vmatpush1.bf16.msra.mxu0 %v1511_v40  ;;  %v1614_v40 = vld [vmem:[%s1937_s30 + $0x2b0] ss:$24 sps:$4 sm:$0xff]  }
  0x8f   : > { %903 = vmatprep.subr.bf16.mxu0 %v1512_v41  ;;  %943 = vmatpush1.bf16.msra.mxu1 %v1583_v58  ;;  %v1622_v41 = vld [vmem:[%s1937_s30 + $0x2e4] ss:$24 sps:$4 sm:$0xff]  }
  0x90   : > { %944 = vmatprep.subr.bf16.mxu1 %v1587_v60  ;;  %v295_v58 = vld [vmem:[#allocation2 + $0x40] sm:$0xff] }
  0x92   : > { %904 = vmatpush1.bf16.msra.mxu0 %v1514_v44  ;;  %v288_v44 = vld [vmem:[#allocation2 + $0x8] sm:$0xff] }
  0x93   : > { %905 = vmatprep.subr.bf16.mxu0 %v1515_v45  ;;  %945 = vmatpush1.bf16.msra.mxu1 %v1589_v0 }
  0x94   : > { %946 = vmatprep.subr.bf16.mxu1 %v1593_v2 }
  0x96   : > { %906 = vmatpush1.bf16.msra.mxu0 %v1517_v48 }
  0x97   : > { %907 = vmatprep.subr.bf16.mxu0 %v1518_v49  ;;  %947 = vmatpush1.bf16.msra.mxu1 %v1595_v5  ;;  %v294_v49 = vld [vmem:[#allocation2 + $0x38] sm:$0xff] }
  0x98   : > { %948 = vmatprep.subr.bf16.mxu1 %v1599_v6  ;;  %v297_v6 = vld [vmem:[#allocation2 + $0x50] sm:$0xff] }
  0x9a   : > { %908 = vmatpush1.bf16.msra.mxu0 %v1520_v52 }
  0x9b   : > { %909 = vmatprep.subr.bf16.mxu0 %v1521_v53  ;;  %949 = vmatpush1.bf16.msra.mxu1 %v1601_v9  ;;  %v298_v9 = vld [vmem:[#allocation2 + $0x58] sm:$0xff] }
  0x9c   : > { %950 = vmatprep.subr.bf16.mxu1 %v1605_v10 }
  0x9e   : > { %910 = vmatpush1.bf16.msra.mxu0 %v1523_v56  ;;  %v290_v56 = vld [vmem:[#allocation2 + $0x18] sm:$0xff] }
  0x9f   : > { %911 = vmatprep.subr.bf16.mxu0 %v1524_v57  ;;  %951 = vmatpush1.bf16.msra.mxu1 %v1607_v13 }
  0xa0   : > { %952 = vmatprep.subr.bf16.mxu1 %v1611_v14 }
  0xa2   : > { %912 = vmatpush1.bf16.msra.mxu0 %v1526_v59 }
  0xa3   : > { %967 = vmatprep.subr.bf16.mxu0 %v1532_v63  ;;  %953 = vmatpush1.bf16.msra.mxu1 %v1613_v17 }
  0xa4   : > { %954 = vmatprep.subr.bf16.mxu1 %v1617_v18  ;;  %v1050_v18 = vld [vmem:[%s268_s22] sm:$0x3f] (!%p1367_p12) }
  0xa5   : > { %914 = vmatmul.mubr.bf16.vlgmr.msra.gmra.mrb[0].mxu0 %v2017_v1 }
  0xa6   : > { %968 = vmatpush1.bf16.msra.mxu0 %v1530_v3  ;;  %999 = vmatprep.mubr.bf16.mxu0 %v1973_v24  ;;  %v1566_v24 = vld [vmem:[%s1937_s30 + $0x130] ss:$24 sps:$4 sm:$0xff]   ;;  %v291_v3 = vld [vmem:[#allocation2 + $0x20] sm:$0xff] }
  0xa7   : > { %969 = vmatprep.subr.bf16.mxu0 %v1538_v4  ;;  %955 = vmatpush1.bf16.msra.mxu1 %v1619_v21  ;;  %v292_v4 = vld [vmem:[#allocation2 + $0x28] sm:$0xff] }
  0xaa   : > { %970 = vmatpush1.bf16.msra.mxu0 %v1536_v7  ;;  %957 = vmatmul.mubr.bf16.vlgmr.msra.gmra.mrb[0].mxu1 %v2017_v1 }
  0xab   : > { %971 = vmatprep.subr.bf16.mxu0 %v1544_v8 }
  0xae   : > { %972 = vmatpush1.bf16.msra.mxu0 %v1542_v11 }
  0xaf   : > { %973 = vmatprep.subr.bf16.mxu0 %v1550_v12 }
  0xb2   : > { %974 = vmatpush1.bf16.msra.mxu0 %v1548_v15  ;;  %v1052_v15 = vlaneseq (!%p1367_p12) }
  0xb3   : > { %975 = vmatprep.subr.bf16.mxu0 %v1556_v16 }
  0xb4   : > { %v1053_v16 = vshrl.u32 (!%p1367_p12), %v1052_v15, 7 }
  0xb6   : > { %976 = vmatpush1.bf16.msra.mxu0 %v1554_v19  ;;  %v1054_v19 = vsub.s32 (!%p1367_p12), 0, %v1053_v16  ;;  %v1058_v21 = vsub.s32 (!%p1367_p12), 1, %v1053_v16 }
  0xb7   : > { %977 = vmatprep.subr.bf16.mxu0 %v1562_v20 }
  0xba   : > { %978 = vmatpush1.bf16.msra.mxu0 %v1560_v22 }
  0xbb   : > { %979 = vmatprep.subr.bf16.mxu0 %v1568_v23  ;;  %v1062_v23 = vsub.s32 (!%p1367_p12), 2, %v1053_v16 }
  0xbe   : > { %980 = vmatpush1.bf16.msra.mxu0 %v1566_v24  ;;  %v1066_v24 = vsub.s32 (!%p1367_p12), 3, %v1053_v16 }
  0xbf   : > { %981 = vmatprep.subr.bf16.mxu0 %v1574_v25 }
  0xc2   : > { %982 = vmatpush1.bf16.msra.mxu0 %v1572_v26 }
  0xc3   : > { %983 = vmatprep.subr.bf16.mxu0 %v1580_v27  ;;  %v1070_v27 = vsub.s32 (!%p1367_p12), 4, %v1053_v16 }
  0xc6   : > { %984 = vmatpush1.bf16.msra.mxu0 %v1578_v28 }
  0xc7   : > { %985 = vmatprep.subr.bf16.mxu0 %v1586_v29  ;;  %v1074_v29 = vsub.s32 (!%p1367_p12), 5, %v1053_v16 }
  0xca   : > { %986 = vmatpush1.bf16.msra.mxu0 %v1584_v30  ;;  %v1055_v30 = vrot.slane (!%p1367_p12), %v1050_v18, %v1054_v19 }
  0xcb   : > { %987 = vmatprep.subr.bf16.mxu0 %v1592_v31  ;;  %v1059_v31 = vrot.slane (!%p1367_p12), %v1050_v18, %v1058_v21 }
  0xce   : > { %988 = vmatpush1.bf16.msra.mxu0 %v1590_v32  ;;  %v1063_v32 = vrot.slane (!%p1367_p12), %v1050_v18, %v1062_v23 }
  0xcf   : > { %989 = vmatprep.subr.bf16.mxu0 %v1598_v33  ;;  %v1067_v33 = vrot.slane (!%p1367_p12), %v1050_v18, %v1066_v24 }
  0xd2   : > { %990 = vmatpush1.bf16.msra.mxu0 %v1596_v34 }
  0xd3   : > { %991 = vmatprep.subr.bf16.mxu0 %v1604_v35 }
  0xd6   : > { %992 = vmatpush1.bf16.msra.mxu0 %v1602_v36 }
  0xd7   : > { %993 = vmatprep.subr.bf16.mxu0 %v1610_v37  ;;  %v1071_v37 = vrot.slane (!%p1367_p12), %v1050_v18, %v1070_v27 }
  0xda   : > { %994 = vmatpush1.bf16.msra.mxu0 %v1608_v38  ;;  %v1075_v38 = vrot.slane (!%p1367_p12), %v1050_v18, %v1074_v29 }
  0xdb   : > { %995 = vmatprep.subr.bf16.mxu0 %v1616_v39 }
  0xde   : > { %996 = vmatpush1.bf16.msra.mxu0 %v1614_v40 }
  0xdf   : > { %997 = vmatprep.subr.bf16.mxu0 %v1622_v41 }
  0xe2   : > { %998 = vmatpush1.bf16.msra.mxu0 %v1620_v42 }
  0xe5   : > { %1000 = vmatmul.mubr.bf16.vlgmr.msra.gmra.mrb[4].mxu0 %v2017_v1 }
 0x178   : > { %v915_v45 = vpop.f32.mrb[0].mxu0 }
 0x179   : > { %v1010_v47 = vadd.f32 %v915_v45, %v287_v43  ;;  %v917_v48 = vpop.f32.mrb[1].mxu0 }
 0x17a   : > { %v1011_v50 = vadd.f32 %v917_v48, %v288_v44  ;;  %v919_v51 = vpop.f32.mrb[2].mxu0 }
 0x17b   : > { %1022 = vst [vmem:[#allocation2] sm:$0xff] %v1010_v47  ;;  %v1016_v52 = vadd.f32 %v919_v51, %v293_v46  ;;  %v921_v53 = vpop.f32.mrb[3].mxu0 }
 0x17c   : > { %1023 = vst [vmem:[#allocation2 + $0x8] sm:$0xff] %v1011_v50  ;;  %v1017_v54 = vadd.f32 %v921_v53, %v294_v49 }
 0x17d   : > { %1028 = vst [vmem:[#allocation2 + $0x30] sm:$0xff] %v1016_v52  ;;  %v958_v57 = vpop.f32.mrb[0].mxu1 }
 0x17e   : > { %1029 = vst [vmem:[#allocation2 + $0x38] sm:$0xff] %v1017_v54  ;;  %v1012_v59 = vadd.f32 %v958_v57, %v289_v55  ;;  %v960_v60 = vpop.f32.mrb[1].mxu1 }
 0x17f   : > { %v1013_v62 = vadd.f32 %v960_v60, %v290_v56  ;;  %v962_v63 = vpop.f32.mrb[2].mxu1 }
 0x180   : > { %1024 = vst [vmem:[#allocation2 + $0x10] sm:$0xff] %v1012_v59  ;;  %v1018_v0 = vadd.f32 %v962_v63, %v295_v58  ;;  %v964_v1 = vpop.f32.mrb[3].mxu1 }
 0x181   : > { %1025 = vst [vmem:[#allocation2 + $0x18] sm:$0xff] %v1013_v62  ;;  %v1019_v2 = vadd.f32 %v964_v1, %v296_v61 }
 0x182   : > { %1030 = vst [vmem:[#allocation2 + $0x40] sm:$0xff] %v1018_v0  ;;  %v1038_v17 = vld [vmem:[#allocation2] sm:$0xff] (!%p1367_p12) }
 0x183   : > { %1031 = vst [vmem:[#allocation2 + $0x48] sm:$0xff] %v1019_v2  ;;  %v1039_v20 = vld [vmem:[#allocation2 + $0x8] sm:$0xff] (!%p1367_p12)  ;;  %v1082_v42 = vadd.f32 (!%p1367_p12), %v1055_v30, %v1038_v17 }
 0x184   : > { %v1044_v34 = vld [vmem:[#allocation2 + $0x30] sm:$0xff] (!%p1367_p12)  ;;  %v1083_v43 = vadd.f32 (!%p1367_p12), %v1059_v31, %v1039_v20 }
 0x185   : > { %v1045_v35 = vld [vmem:[#allocation2 + $0x38] sm:$0xff] (!%p1367_p12)  ;;  %v1088_v48 = vadd.f32 (!%p1367_p12), %v1055_v30, %v1044_v34  ;;  %1094 = vst [vmem:[%s1951_s25] sm:$0xff] (!%p1367_p12), %v1082_v42 }
 0x186   : > { %v1089_v49 = vadd.f32 (!%p1367_p12), %v1059_v31, %v1045_v35  ;;  %1095 = vst [vmem:[%s1951_s25 + $0x8] sm:$0xff] (!%p1367_p12), %v1083_v43 }
 0x187   : > { %v1040_v22 = vld [vmem:[#allocation2 + $0x10] sm:$0xff] (!%p1367_p12)  ;;  %1100 = vst [vmem:[%s1951_s25 + $0x30] sm:$0xff] (!%p1367_p12), %v1088_v48 }
 0x188   : > { %v1041_v25 = vld [vmem:[#allocation2 + $0x18] sm:$0xff] (!%p1367_p12)  ;;  %v1084_v44 = vadd.f32 (!%p1367_p12), %v1063_v32, %v1040_v22  ;;  %1101 = vst [vmem:[%s1951_s25 + $0x38] sm:$0xff] (!%p1367_p12), %v1089_v49 }
 0x189   : > { %v1046_v36 = vld [vmem:[#allocation2 + $0x40] sm:$0xff] (!%p1367_p12)  ;;  %v1085_v45 = vadd.f32 (!%p1367_p12), %v1067_v33, %v1041_v25 }
 0x18a   : > { %v1047_v39 = vld [vmem:[#allocation2 + $0x48] sm:$0xff] (!%p1367_p12)  ;;  %1096 = vst [vmem:[%s1951_s25 + $0x10] sm:$0xff] (!%p1367_p12), %v1084_v44  ;;  %v1090_v50 = vadd.f32 (!%p1367_p12), %v1063_v32, %v1046_v36 }
 0x18b   : > { %1097 = vst [vmem:[%s1951_s25 + $0x18] sm:$0xff] (!%p1367_p12), %v1085_v45  ;;  %v1091_v51 = vadd.f32 (!%p1367_p12), %v1067_v33, %v1047_v39 }
 0x18c   : > { %1102 = vst [vmem:[%s1951_s25 + $0x40] sm:$0xff] (!%p1367_p12), %v1090_v50 }
 0x18d   : > { %1103 = vst [vmem:[%s1951_s25 + $0x48] sm:$0xff] (!%p1367_p12), %v1091_v51 }
 0x1b8   : > { %v1001_v5 = vpop.f32.mrb[4].mxu0  ;;  %1037 = sbr.rel (%p1367_p12) target bundleno = 457 (0x1c9), region = 67 }
 0x1b9   : > { %v1014_v7 = vadd.f32 %v1001_v5, %v291_v3  ;;  %v1003_v8 = vpop.f32.mrb[5].mxu0 }
 0x1ba   : > { %v1015_v10 = vadd.f32 %v1003_v8, %v292_v4  ;;  %v1005_v11 = vpop.f32.mrb[6].mxu0 }
 0x1bb   : > { %1026 = vst [vmem:[#allocation2 + $0x20] sm:$0xff] %v1014_v7  ;;  %v1020_v12 = vadd.f32 %v1005_v11, %v297_v6  ;;  %v1007_v13 = vpop.f32.mrb[7].mxu0 }
 0x1bc   : > { %1027 = vst [vmem:[#allocation2 + $0x28] sm:$0xff] %v1015_v10  ;;  %v1021_v14 = vadd.f32 %v1007_v13, %v298_v9 }
 0x1bd   : > { %1032 = vst [vmem:[#allocation2 + $0x50] sm:$0xff] %v1020_v12 }
 0x1be   : > { %1033 = vst [vmem:[#allocation2 + $0x58] sm:$0xff] %v1021_v14 }
 0x1c2   : > { %v1042_v26 = vld [vmem:[#allocation2 + $0x20] sm:$0xff] }
 0x1c3   : > { %v1043_v28 = vld [vmem:[#allocation2 + $0x28] sm:$0xff]  ;;  %v1086_v46 = vadd.f32 %v1071_v37, %v1042_v26 }
 0x1c4   : > { %v1048_v40 = vld [vmem:[#allocation2 + $0x50] sm:$0xff]  ;;  %v1087_v47 = vadd.f32 %v1075_v38, %v1043_v28 }
 0x1c5   : > { %v1049_v41 = vld [vmem:[#allocation2 + $0x58] sm:$0xff]  ;;  %v1092_v52 = vadd.f32 %v1071_v37, %v1048_v40  ;;  %1098 = vst [vmem:[%s1951_s25 + $0x20] sm:$0xff] %v1086_v46 }
 0x1c6   : > { %v1093_v53 = vadd.f32 %v1075_v38, %v1049_v41  ;;  %1099 = vst [vmem:[%s1951_s25 + $0x28] sm:$0xff] %v1087_v47 }
 0x1c7   : > { %1104 = vst [vmem:[%s1951_s25 + $0x50] sm:$0xff] %v1092_v52 }
 0x1c8   : > { %1105 = vst [vmem:[%s1951_s25 + $0x58] sm:$0xff] %v1093_v53 }
 0x1c9 PF: > { %p2153_p11 = scmp.ne.s32.totalorder %s2151_s14, 0 }
 0x1ca   : > { %s1372_s19 = smul.u32 (%p2153_p11), 48, %s1737_s20  ;;  %v1128_v54 = vld [vmem:[%s1951_s25] sm:$0xff] (%p2153_p11)  ;;  %v1130_v55 = vld [vmem:[%s1951_s25 + $0x8] sm:$0xff] (%p2153_p11)  ;;  %v1132_v56 = vld [vmem:[%s1951_s25 + $0x10] sm:$0xff] (%p2153_p11) }
 0x1cb   : > { %1112 = sbr.rel (!%p2153_p11) target bundleno = 467 (0x1d3), region = 71  ;;  %v1134_v57 = vld [vmem:[%s1951_s25 + $0x18] sm:$0xff] (%p2153_p11)  ;;  %v1140_v60 = vld [vmem:[%s1951_s25 + $0x30] sm:$0xff] (%p2153_p11)  ;;  %v1144_v62 = vld [vmem:[%s1951_s25 + $0x40] sm:$0xff] (%p2153_p11) }
 0x1cc   : > { %v1136_v58 = vld [vmem:[%s1951_s25 + $0x20] sm:$0xff] (%p2153_p11)  ;;  %s1115_s27 = scalar_lea.vmem (%p2153_p11), %s2139_s3, %s1372_s19  ;;  %v1142_v61 = vld [vmem:[%s1951_s25 + $0x38] sm:$0xff] (%p2153_p11)  ;;  %v1146_v63 = vld [vmem:[%s1951_s25 + $0x48] sm:$0xff] (%p2153_p11) }
 0x1cd   : > { %v1138_v59 = vld [vmem:[%s1951_s25 + $0x28] sm:$0xff] (%p2153_p11)  ;;  %1129 = vst [vmem:[%s1115_s27] sm:$0xff] (%p2153_p11), %v1128_v54  ;;  %1131 = vst [vmem:[%s1115_s27 + $0x8] sm:$0xff] (%p2153_p11), %v1130_v55 }
 0x1ce   : > { %1133 = vst [vmem:[%s1115_s27 + $0x10] sm:$0xff] (%p2153_p11), %v1132_v56  ;;  %1135 = vst [vmem:[%s1115_s27 + $0x18] sm:$0xff] (%p2153_p11), %v1134_v57  ;;  %v1148_v0 = vld [vmem:[%s1951_s25 + $0x50] sm:$0xff] (%p2153_p11) }
 0x1cf   : > { %1137 = vst [vmem:[%s1115_s27 + $0x20] sm:$0xff] (%p2153_p11), %v1136_v58  ;;  %1139 = vst [vmem:[%s1115_s27 + $0x28] sm:$0xff] (%p2153_p11), %v1138_v59  ;;  %v1150_v1 = vld [vmem:[%s1951_s25 + $0x58] sm:$0xff] (%p2153_p11) }
 0x1d0   : > { %1141 = vst [vmem:[%s1115_s27 + $0x90] sm:$0xff] (%p2153_p11), %v1140_v60  ;;  %1143 = vst [vmem:[%s1115_s27 + $0x98] sm:$0xff] (%p2153_p11), %v1142_v61 }
 0x1d1   : > { %1145 = vst [vmem:[%s1115_s27 + $0xa0] sm:$0xff] (%p2153_p11), %v1144_v62  ;;  %1147 = vst [vmem:[%s1115_s27 + $0xa8] sm:$0xff] (%p2153_p11), %v1146_v63 }
 0x1d2   : > { %1149 = vst [vmem:[%s1115_s27 + $0xb0] sm:$0xff] %v1148_v0  ;;  %1151 = vst [vmem:[%s1115_s27 + $0xb8] sm:$0xff] %v1150_v1 }
 0x1d3 PF: > { %s16_s23 = sadd.s32 1, %s1749_s23   ;;  %s2154_s20 = sld [smem:[#allocation11_spill]] }
 0x1d4   : > { %p13_p13 = scmp.ge.s32.totalorder %s16_s23, 11   ;;  %s2155_s5 = sld [smem:[#allocation8_spill]] }
 0x1d5   : > { %s2156_s28 = sld [smem:[#allocation9_spill]]  ;;  %s2157_s22 = sld [smem:[#allocation10_spill]] }
 0x1d6   : > { %s2158_s12 = smov %s1709_s13  ;;  %s2159_s13 = smov %s1879_s11 }
 0x1d7   : > { %s2160_s14 = smov %s1717_s15  ;;  %s2161_s15 = smov %s1721_s16 }
 0x1d8   : > { %s2162_s16 = smov %s1871_s8  ;;  %s2163_s17 = smov %s1729_s18 }
 0x1d9   : > { %s2164_s18 = smov %s2154_s20  ;;  %s2165_s19 = smov %s1741_s21 }
 0x1da   : > { %s2166_s20 = smov %s2155_s5  ;;  %15 = sbr.rel (!%p13_p13) target bundleno = 9 (0x9), region = 137 }
 0x1db   : > { %s2167_s21 = smov %s2156_s28 }
 0x1e1   :  { %1167 = vsyncpa [#allocation5], 1 }
 0x1e2   :  { %1169 = vsyncpa [#allocation5 + $0x1], 1 }

// kernel: custom_bert_forward.12
= control target key start
LH: loop header
LB: loop body
LE: loop exit
PB: predicated region body
PF: predicated region fallthrough
CT: control target
= control target key end

     0   :  { %s1700_s21 = smov 0   ;;  %s1702_s22 = smov 0   ;;  %s2010_s0 = inlined_call_operand.vmem [shape: f32[16,768], index: 0, kind: input, shape index: {}]   ;;  %s2011_s1 = inlined_call_operand.vmem [shape: bf16[768,768], index: 1, kind: input, shape index: {}]   ;;  %s2012_s2 = inlined_call_operand.vmem [shape: f32[1,768], index: 2, kind: input, shape index: {}]   ;;  %s2013_s3 = inlined_call_operand.vmem [shape: f32[16,768], index: 3, kind: input, shape index: {}]   ;;  %s2014_s4 = inlined_call_operand.vmem [shape: f32[1,768], index: 4, kind: input, shape index: {}]   ;;  %s2015_s5 = inlined_call_operand.vmem [shape: f32[1,768], index: 5, kind: input, shape index: {}]   ;;  %s2016_s6 = inlined_call_operand.vmem [shape: f32[16,768], index: 6, kind: output, shape index: {}]  }
   0x1   :  { %s1704_s23 = smov 0  }
   0x2 LB: > { %s1716_s24 = sadd.s32 4294967295, %s1662_s23   ;;  %s1719_s25 = sadd.s32 1, %s1662_s23   ;;  %s1662_s23 = sphi %s1704_s23, %s2019_s23   ;;  %s1658_s22 = sphi %s1702_s22, %s2018_s22   ;;  %s1654_s21 = sphi %s1700_s21, %s2017_s21  }
   0x3   : > { %s20_s26 = ssub.s32 %s1662_s23, %s1719_s25  ;;  %s23_s27 = sadd.s32 1, %s1658_s22 }
   0x4   : > { %p21_p0 = scmp.eq.s32.totalorder %s20_s26, 0  ;;  %p30_p1 = scmp.ne.s32.totalorder %s1658_s22, %s1654_s21 }
   0x5   : > { %p31_p2 = scmp.eq.s32.totalorder %s1662_s23, 0  ;;  %p1357_p4 = scmp.ge.s32.totalorder %s1662_s23, 3 }
   0x6   : > { %s1728_s28 = scalar_select %p21_p0, %s1658_s22, %s23_s27  }
   0x7   : > { %p32_p3 = por %p31_p2, %p30_p1  ;;  %199 = sbr.rel (%p1357_p4) target bundleno = 21 (0x15), region = 32 }
   0xe   : > { %202 = sbr.rel (!%p32_p3) target bundleno = 21 (0x15), region = 36  ;;  %s204_s29 = sand.u32 (%p32_p3), 1, %s1658_s22  }
   0xf   : > { %s1465_s30 = sshll.u32 (%p32_p3), %s1662_s23, 4  ;;  %s1358_s7 = sshll.u32 (%p32_p3), %s204_s29, 5 }
  0x10   : > { %s209_s10 = scalar_lea.vmem (%p32_p3), %s2010_s0, %s1465_s30  ;;  %s206_s11 = scalar_lea.vmem (%p32_p3), [#allocation3], %s1358_s7 }
  0x11   : > { %v222_v0 = vld [vmem:[%s209_s10] sm:$0xff] (%p32_p3)  ;;  %v224_v1 = vld [vmem:[%s209_s10 + $0x8] sm:$0xff] (%p32_p3)  ;;  %v226_v2 = vld [vmem:[%s209_s10 + $0x30] sm:$0xff] (%p32_p3) }
  0x12   : > { %223 = vst [vmem:[%s206_s11] sm:$0xff] (%p32_p3), %v222_v0  ;;  %225 = vst [vmem:[%s206_s11 + $0x8] sm:$0xff] (%p32_p3), %v224_v1  ;;  %v228_v3 = vld [vmem:[%s209_s10 + $0x38] sm:$0xff] (%p32_p3) }
  0x13   : > { %227 = vst [vmem:[%s206_s11 + $0x10] sm:$0xff] (%p32_p3), %v226_v2  ;;  %229 = vst [vmem:[%s206_s11 + $0x18] sm:$0xff] (%p32_p3), %v228_v3 }
  0x15 PF: > { %p1361_p5 = scmp.ge.s32.totalorder %s1662_s23, 1  ;;  %p244_p6 = scmp.lt.s32.totalorder %s1662_s23, 4 }
  0x17   : > { %p245_p7 = pnand %p1361_p5, %p244_p6 }
  0x18   : > { %s251_s12 = sand.u32 (!%p245_p7), 1, %s1654_s21   ;;  %s1363_s13 = sshll.u32 (!%p245_p7), %s1716_s24, 5 }
  0x19   : > { %248 = sbr.rel (%p245_p7) target bundleno = 728 (0x2d8), region = 63  ;;  %s1362_s14 = sshll.u32 (!%p245_p7), %s251_s12, 5 }
  0x1a   : > { %p283_p8 = scmp.lt.s32.totalorder (!%p245_p7), %s1363_s13, 95  ;;  %s1745_s19 = scalar_lea.vmem (!%p245_p7), [#allocation3], %s1362_s14 }
  0x1b   : > { %p1365_p9 = scmp.ne.s32.totalorder (!%p245_p7), %s1716_s24, 0 }
  0x20   : > { %s2021_s13 = smov (!%p283_p8, %s1363_s13), 95  ;;  %292 = sbr.rel (%p1365_p9) target bundleno = 40 (0x28), region = 71 }
  0x21   : > { %s1466_s15 = smul.u32 24, %s2021_s13  ;;  %v1664_v4 = vmov (!%p1365_p9), 0.0  }
  0x22   : > { %293 = vst [vmem:[#allocation2] sm:$0xff] (!%p1365_p9), %v1664_v4  ;;  %294 = vst [vmem:[#allocation2 + $0x8] sm:$0xff] (!%p1365_p9), %v1664_v4 }
  0x23   : > { %s1743_s18 = scalar_lea.vmem %s2011_s1, %s1466_s15  ;;  %295 = vst [vmem:[#allocation2 + $0x10] sm:$0xff] (!%p1365_p9), %v1664_v4  ;;  %296 = vst [vmem:[#allocation2 + $0x18] sm:$0xff] (!%p1365_p9), %v1664_v4 }
  0x24   : > { %297 = vst [vmem:[#allocation2 + $0x20] sm:$0xff] (!%p1365_p9), %v1664_v4  ;;  %298 = vst [vmem:[#allocation2 + $0x28] sm:$0xff] (!%p1365_p9), %v1664_v4 }
  0x25   : > { %299 = vst [vmem:[#allocation2 + $0x30] sm:$0xff] (!%p1365_p9), %v1664_v4  ;;  %300 = vst [vmem:[#allocation2 + $0x38] sm:$0xff] (!%p1365_p9), %v1664_v4 }
  0x26   : > { %301 = vst [vmem:[#allocation2 + $0x40] sm:$0xff] (!%p1365_p9), %v1664_v4  ;;  %302 = vst [vmem:[#allocation2 + $0x48] sm:$0xff] (!%p1365_p9), %v1664_v4 }
  0x27   : > { %303 = vst [vmem:[#allocation2 + $0x50] sm:$0xff] %v1664_v4  ;;  %304 = vst [vmem:[#allocation2 + $0x58] sm:$0xff] %v1664_v4 }
  0x28 PF: > { %v1492_v5 = vld [vmem:[%s1743_s18 + $0x4] ss:$24 sps:$4 sm:$0xff]   ;;  %v1494_v6 = vld [vmem:[%s1743_s18] ss:$24 sps:$4 sm:$0xff]   ;;  %v1495_v7 = vld [vmem:[%s1743_s18 + $0x34] ss:$24 sps:$4 sm:$0xff]  }
  0x29   : > { %899 = vmatprep.subr.bf16.mxu0 %v1492_v5  ;;  %v1497_v8 = vld [vmem:[%s1743_s18 + $0x30] ss:$24 sps:$4 sm:$0xff]   ;;  %v1498_v9 = vld [vmem:[%s1743_s18 + $0x64] ss:$24 sps:$4 sm:$0xff]   ;;  %v1500_v10 = vld [vmem:[%s1743_s18 + $0x60] ss:$24 sps:$4 sm:$0xff]  }
  0x2a   : > { %900 = vmatpush1.bf16.msra.mxu0 %v1494_v6  ;;  %v1501_v11 = vld [vmem:[%s1743_s18 + $0x94] ss:$24 sps:$4 sm:$0xff]   ;;  %v1503_v12 = vld [vmem:[%s1743_s18 + $0x90] ss:$24 sps:$4 sm:$0xff]   ;;  %v1504_v13 = vld [vmem:[%s1743_s18 + $0xc4] ss:$24 sps:$4 sm:$0xff]  }
  0x2b   : > { %901 = vmatprep.subr.bf16.mxu0 %v1495_v7  ;;  %v1506_v14 = vld [vmem:[%s1743_s18 + $0xc0] ss:$24 sps:$4 sm:$0xff]   ;;  %v1507_v15 = vld [vmem:[%s1743_s18 + $0xf4] ss:$24 sps:$4 sm:$0xff]   ;;  %v1509_v16 = vld [vmem:[%s1743_s18 + $0xf0] ss:$24 sps:$4 sm:$0xff]  }
  0x2c   : > { %v1510_v17 = vld [vmem:[%s1743_s18 + $0x124] ss:$24 sps:$4 sm:$0xff]   ;;  %v1542_v19 = vld [vmem:[%s1743_s18 + $0x8] ss:$24 sps:$4 sm:$0xff]   ;;  %v1513_v23 = vld [vmem:[%s1743_s18 + $0x154] ss:$24 sps:$4 sm:$0xff]  }
  0x2d   : > { %v1540_v18 = vld [vmem:[%s1743_s18 + $0xc] ss:$24 sps:$4 sm:$0xff]   ;;  %v1512_v21 = vld [vmem:[%s1743_s18 + $0x120] ss:$24 sps:$4 sm:$0xff]   ;;  %v1546_v25 = vld [vmem:[%s1743_s18 + $0x3c] ss:$24 sps:$4 sm:$0xff]  }
  0x2e   : > { %902 = vmatpush1.bf16.msra.mxu0 %v1497_v8  ;;  %v318_v20 = vld [vmem:[%s1745_s19 + $0x8] sm:$0xff]  ;;  %v320_v22 = vld [vmem:[%s1745_s19 + $0x18] sm:$0xff]  ;;  %942 = vmatprep.subr.bf16.mxu1 %v1540_v18  ;;  %v317_v61 = vld [vmem:[%s1745_s19] sm:$0xff]  ;;  %p1462_p10 = scmp.ne.s32.totalorder %s1716_s24, 2 }
  0x2f   : > { %903 = vmatprep.subr.bf16.mxu0 %v1498_v9  ;;  %v1767_v24 = vpack.c.bf16 %v320_v22, %v318_v20  ;;  %943 = vmatpush1.bf16.msra.mxu1 %v1542_v19  ;;  %v1548_v26 = vld [vmem:[%s1743_s18 + $0x38] ss:$24 sps:$4 sm:$0xff]   ;;  %v1516_v28 = vld [vmem:[%s1743_s18 + $0x184] ss:$24 sps:$4 sm:$0xff]   ;;  %v1554_v30 = vld [vmem:[%s1743_s18 + $0x68] ss:$24 sps:$4 sm:$0xff]  }
  0x30   : > { %v1515_v27 = vld [vmem:[%s1743_s18 + $0x150] ss:$24 sps:$4 sm:$0xff]   ;;  %944 = vmatprep.subr.bf16.mxu1 %v1546_v25  ;;  %v1552_v29 = vld [vmem:[%s1743_s18 + $0x6c] ss:$24 sps:$4 sm:$0xff]   ;;  %v1518_v31 = vld [vmem:[%s1743_s18 + $0x180] ss:$24 sps:$4 sm:$0xff]  }
  0x31   : > { %931 = vmatprep.mubr.bf16.mxu0 %v1767_v24  ;;  %974 = vmatprep.mubr.bf16.mxu1 %v1767_v24  ;;  %v1558_v32 = vld [vmem:[%s1743_s18 + $0x9c] ss:$24 sps:$4 sm:$0xff]   ;;  %v1560_v34 = vld [vmem:[%s1743_s18 + $0x98] ss:$24 sps:$4 sm:$0xff]   ;;  %v1564_v35 = vld [vmem:[%s1743_s18 + $0xcc] ss:$24 sps:$4 sm:$0xff]  }
  0x32   : > { %904 = vmatpush1.bf16.msra.mxu0 %v1500_v10  ;;  %v1519_v33 = vld [vmem:[%s1743_s18 + $0x1b4] ss:$24 sps:$4 sm:$0xff]   ;;  %v1521_v36 = vld [vmem:[%s1743_s18 + $0x1b0] ss:$24 sps:$4 sm:$0xff]   ;;  %v1522_v37 = vld [vmem:[%s1743_s18 + $0x1e4] ss:$24 sps:$4 sm:$0xff]  }
  0x33   : > { %905 = vmatprep.subr.bf16.mxu0 %v1501_v11  ;;  %945 = vmatpush1.bf16.msra.mxu1 %v1548_v26  ;;  %v1566_v38 = vld [vmem:[%s1743_s18 + $0xc8] ss:$24 sps:$4 sm:$0xff]   ;;  %v1570_v39 = vld [vmem:[%s1743_s18 + $0xfc] ss:$24 sps:$4 sm:$0xff]   ;;  %v1572_v42 = vld [vmem:[%s1743_s18 + $0xf8] ss:$24 sps:$4 sm:$0xff]  }
  0x34   : > { %946 = vmatprep.subr.bf16.mxu1 %v1552_v29  ;;  %v1524_v40 = vld [vmem:[%s1743_s18 + $0x1e0] ss:$24 sps:$4 sm:$0xff]   ;;  %v1525_v41 = vld [vmem:[%s1743_s18 + $0x214] ss:$24 sps:$4 sm:$0xff]   ;;  %v1527_v44 = vld [vmem:[%s1743_s18 + $0x210] ss:$24 sps:$4 sm:$0xff]  }
  0x35   : > { %v1576_v43 = vld [vmem:[%s1743_s18 + $0x12c] ss:$24 sps:$4 sm:$0xff]   ;;  %v1578_v46 = vld [vmem:[%s1743_s18 + $0x128] ss:$24 sps:$4 sm:$0xff]   ;;  %v1582_v47 = vld [vmem:[%s1743_s18 + $0x15c] ss:$24 sps:$4 sm:$0xff]  }
  0x36   : > { %906 = vmatpush1.bf16.msra.mxu0 %v1503_v12  ;;  %v1528_v45 = vld [vmem:[%s1743_s18 + $0x244] ss:$24 sps:$4 sm:$0xff]   ;;  %v1530_v48 = vld [vmem:[%s1743_s18 + $0x240] ss:$24 sps:$4 sm:$0xff]   ;;  %v1531_v49 = vld [vmem:[%s1743_s18 + $0x274] ss:$24 sps:$4 sm:$0xff]  }
  0x37   : > { %907 = vmatprep.subr.bf16.mxu0 %v1504_v13  ;;  %947 = vmatpush1.bf16.msra.mxu1 %v1554_v30  ;;  %v1584_v50 = vld [vmem:[%s1743_s18 + $0x158] ss:$24 sps:$4 sm:$0xff]   ;;  %v1588_v51 = vld [vmem:[%s1743_s18 + $0x18c] ss:$24 sps:$4 sm:$0xff]   ;;  %v1590_v54 = vld [vmem:[%s1743_s18 + $0x188] ss:$24 sps:$4 sm:$0xff]  }
  0x38   : > { %948 = vmatprep.subr.bf16.mxu1 %v1558_v32  ;;  %v1533_v52 = vld [vmem:[%s1743_s18 + $0x270] ss:$24 sps:$4 sm:$0xff]   ;;  %v1534_v53 = vld [vmem:[%s1743_s18 + $0x2a4] ss:$24 sps:$4 sm:$0xff]   ;;  %v1536_v56 = vld [vmem:[%s1743_s18 + $0x2a0] ss:$24 sps:$4 sm:$0xff]  }
  0x39   : > { %v1594_v55 = vld [vmem:[%s1743_s18 + $0x1bc] ss:$24 sps:$4 sm:$0xff]   ;;  %v1596_v58 = vld [vmem:[%s1743_s18 + $0x1b8] ss:$24 sps:$4 sm:$0xff]   ;;  %v1600_v60 = vld [vmem:[%s1743_s18 + $0x1ec] ss:$24 sps:$4 sm:$0xff]  }
  0x3a   : > { %908 = vmatpush1.bf16.msra.mxu0 %v1506_v14  ;;  %v1537_v57 = vld [vmem:[%s1743_s18 + $0x2d4] ss:$24 sps:$4 sm:$0xff]   ;;  %v1539_v59 = vld [vmem:[%s1743_s18 + $0x2d0] ss:$24 sps:$4 sm:$0xff]   ;;  %v1551_v4 = vld [vmem:[%s1743_s18 + $0x44] ss:$24 sps:$4 sm:$0xff]  }
  0x3b   : > { %909 = vmatprep.subr.bf16.mxu0 %v1507_v15  ;;  %949 = vmatpush1.bf16.msra.mxu1 %v1560_v34  ;;  %v319_v62 = vld [vmem:[%s1745_s19 + $0x10] sm:$0xff]  ;;  %v1602_v0 = vld [vmem:[%s1743_s18 + $0x1e8] ss:$24 sps:$4 sm:$0xff]   ;;  %v1612_v6 = vld [vmem:[%s1743_s18 + $0x24c] ss:$24 sps:$4 sm:$0xff]  }
  0x3c   : > { %950 = vmatprep.subr.bf16.mxu1 %v1564_v35  ;;  %v1545_v63 = vld [vmem:[%s1743_s18 + $0x14] ss:$24 sps:$4 sm:$0xff]   ;;  %v1811_v1 = vpack.c.bf16 %v319_v62, %v317_v61  ;;  %v1543_v3 = vld [vmem:[%s1743_s18 + $0x10] ss:$24 sps:$4 sm:$0xff]   ;;  %v1549_v7 = vld [vmem:[%s1743_s18 + $0x40] ss:$24 sps:$4 sm:$0xff]  }
  0x3d   : > { %v1606_v2 = vld [vmem:[%s1743_s18 + $0x21c] ss:$24 sps:$4 sm:$0xff]   ;;  %v1608_v5 = vld [vmem:[%s1743_s18 + $0x218] ss:$24 sps:$4 sm:$0xff]   ;;  %v1614_v9 = vld [vmem:[%s1743_s18 + $0x248] ss:$24 sps:$4 sm:$0xff]  }
  0x3e   : > { %910 = vmatpush1.bf16.msra.mxu0 %v1509_v16  ;;  %v1557_v8 = vld [vmem:[%s1743_s18 + $0x74] ss:$24 sps:$4 sm:$0xff]   ;;  %v1555_v11 = vld [vmem:[%s1743_s18 + $0x70] ss:$24 sps:$4 sm:$0xff]   ;;  %v1563_v12 = vld [vmem:[%s1743_s18 + $0xa4] ss:$24 sps:$4 sm:$0xff]  }
  0x3f   : > { %911 = vmatprep.subr.bf16.mxu0 %v1510_v17  ;;  %951 = vmatpush1.bf16.msra.mxu1 %v1566_v38  ;;  %v1618_v10 = vld [vmem:[%s1743_s18 + $0x27c] ss:$24 sps:$4 sm:$0xff]   ;;  %v1620_v13 = vld [vmem:[%s1743_s18 + $0x278] ss:$24 sps:$4 sm:$0xff]   ;;  %v1624_v14 = vld [vmem:[%s1743_s18 + $0x2ac] ss:$24 sps:$4 sm:$0xff]  }
  0x40   : > { %952 = vmatprep.subr.bf16.mxu1 %v1570_v39  ;;  %v1561_v15 = vld [vmem:[%s1743_s18 + $0xa0] ss:$24 sps:$4 sm:$0xff]   ;;  %v1569_v16 = vld [vmem:[%s1743_s18 + $0xd4] ss:$24 sps:$4 sm:$0xff]   ;;  %v1567_v19 = vld [vmem:[%s1743_s18 + $0xd0] ss:$24 sps:$4 sm:$0xff]  }
  0x41   : > { %v1626_v17 = vld [vmem:[%s1743_s18 + $0x2a8] ss:$24 sps:$4 sm:$0xff]   ;;  %v1630_v18 = vld [vmem:[%s1743_s18 + $0x2dc] ss:$24 sps:$4 sm:$0xff]  }
  0x42   : > { %912 = vmatpush1.bf16.msra.mxu0 %v1512_v21  ;;  %v1575_v20 = vld [vmem:[%s1743_s18 + $0x104] ss:$24 sps:$4 sm:$0xff]   ;;  %v1632_v21 = vld [vmem:[%s1743_s18 + $0x2d8] ss:$24 sps:$4 sm:$0xff]   ;;  %v1617_v35 = vld [vmem:[%s1743_s18 + $0x254] ss:$24 sps:$4 sm:$0xff]  }
  0x43   : > { %913 = vmatprep.subr.bf16.mxu0 %v1513_v23  ;;  %953 = vmatpush1.bf16.msra.mxu1 %v1572_v42  ;;  %v1573_v22 = vld [vmem:[%s1743_s18 + $0x100] ss:$24 sps:$4 sm:$0xff]   ;;  %v1581_v23 = vld [vmem:[%s1743_s18 + $0x134] ss:$24 sps:$4 sm:$0xff]   ;;  %v1587_v25 = vld [vmem:[%s1743_s18 + $0x164] ss:$24 sps:$4 sm:$0xff]  }
  0x44   : > { %954 = vmatprep.subr.bf16.mxu1 %v1576_v43  ;;  %v1585_v26 = vld [vmem:[%s1743_s18 + $0x160] ss:$24 sps:$4 sm:$0xff]   ;;  %v1599_v29 = vld [vmem:[%s1743_s18 + $0x1c4] ss:$24 sps:$4 sm:$0xff]   ;;  %v1603_v32 = vld [vmem:[%s1743_s18 + $0x1f0] ss:$24 sps:$4 sm:$0xff]  }
  0x45   : > { %v1597_v30 = vld [vmem:[%s1743_s18 + $0x1c0] ss:$24 sps:$4 sm:$0xff]   ;;  %v1629_v39 = vld [vmem:[%s1743_s18 + $0x2b4] ss:$24 sps:$4 sm:$0xff]  }
  0x46   : > { %914 = vmatpush1.bf16.msra.mxu0 %v1515_v27  ;;  %v1593_v27 = vld [vmem:[%s1743_s18 + $0x194] ss:$24 sps:$4 sm:$0xff]   ;;  %v1609_v34 = vld [vmem:[%s1743_s18 + $0x220] ss:$24 sps:$4 sm:$0xff]  }
  0x47   : > { %915 = vmatprep.subr.bf16.mxu0 %v1516_v28  ;;  %955 = vmatpush1.bf16.msra.mxu1 %v1578_v46  ;;  %v1591_v28 = vld [vmem:[%s1743_s18 + $0x190] ss:$24 sps:$4 sm:$0xff]   ;;  %v1621_v38 = vld [vmem:[%s1743_s18 + $0x280] ss:$24 sps:$4 sm:$0xff]  }
  0x48   : > { %956 = vmatprep.subr.bf16.mxu1 %v1582_v47  ;;  %v1633_v42 = vld [vmem:[%s1743_s18 + $0x2e0] ss:$24 sps:$4 sm:$0xff]   ;;  %v311_v46 = vld [vmem:[#allocation2 + $0x30] sm:$0xff]  ;;  %v314_v61 = vld [vmem:[#allocation2 + $0x48] sm:$0xff] }
  0x49   : > { %v305_v43 = vld [vmem:[#allocation2] sm:$0xff] }
  0x4a   : > { %916 = vmatpush1.bf16.msra.mxu0 %v1518_v31  ;;  %v1605_v31 = vld [vmem:[%s1743_s18 + $0x1f4] ss:$24 sps:$4 sm:$0xff]  }
  0x4b   : > { %917 = vmatprep.subr.bf16.mxu0 %v1519_v33  ;;  %957 = vmatpush1.bf16.msra.mxu1 %v1584_v50  ;;  %v1611_v33 = vld [vmem:[%s1743_s18 + $0x224] ss:$24 sps:$4 sm:$0xff]  }
  0x4c   : > { %958 = vmatprep.subr.bf16.mxu1 %v1588_v51 }
  0x4e   : > { %918 = vmatpush1.bf16.msra.mxu0 %v1521_v36  ;;  %v1615_v36 = vld [vmem:[%s1743_s18 + $0x250] ss:$24 sps:$4 sm:$0xff]  }
  0x4f   : > { %919 = vmatprep.subr.bf16.mxu0 %v1522_v37  ;;  %959 = vmatpush1.bf16.msra.mxu1 %v1590_v54  ;;  %v1623_v37 = vld [vmem:[%s1743_s18 + $0x284] ss:$24 sps:$4 sm:$0xff]  }
  0x50   : > { %960 = vmatprep.subr.bf16.mxu1 %v1594_v55  ;;  %v307_v55 = vld [vmem:[#allocation2 + $0x10] sm:$0xff] }
  0x52   : > { %920 = vmatpush1.bf16.msra.mxu0 %v1524_v40  ;;  %v1627_v40 = vld [vmem:[%s1743_s18 + $0x2b0] ss:$24 sps:$4 sm:$0xff]  }
  0x53   : > { %921 = vmatprep.subr.bf16.mxu0 %v1525_v41  ;;  %961 = vmatpush1.bf16.msra.mxu1 %v1596_v58  ;;  %v1635_v41 = vld [vmem:[%s1743_s18 + $0x2e4] ss:$24 sps:$4 sm:$0xff]  }
  0x54   : > { %962 = vmatprep.subr.bf16.mxu1 %v1600_v60  ;;  %v313_v58 = vld [vmem:[#allocation2 + $0x40] sm:$0xff] }
  0x56   : > { %922 = vmatpush1.bf16.msra.mxu0 %v1527_v44  ;;  %v306_v44 = vld [vmem:[#allocation2 + $0x8] sm:$0xff] }
  0x57   : > { %923 = vmatprep.subr.bf16.mxu0 %v1528_v45  ;;  %963 = vmatpush1.bf16.msra.mxu1 %v1602_v0 }
  0x58   : > { %964 = vmatprep.subr.bf16.mxu1 %v1606_v2 }
  0x5a   : > { %924 = vmatpush1.bf16.msra.mxu0 %v1530_v48 }
  0x5b   : > { %925 = vmatprep.subr.bf16.mxu0 %v1531_v49  ;;  %965 = vmatpush1.bf16.msra.mxu1 %v1608_v5  ;;  %v312_v49 = vld [vmem:[#allocation2 + $0x38] sm:$0xff] }
  0x5c   : > { %966 = vmatprep.subr.bf16.mxu1 %v1612_v6  ;;  %v315_v6 = vld [vmem:[#allocation2 + $0x50] sm:$0xff] }
  0x5e   : > { %926 = vmatpush1.bf16.msra.mxu0 %v1533_v52 }
  0x5f   : > { %927 = vmatprep.subr.bf16.mxu0 %v1534_v53  ;;  %967 = vmatpush1.bf16.msra.mxu1 %v1614_v9  ;;  %v316_v9 = vld [vmem:[#allocation2 + $0x58] sm:$0xff] }
  0x60   : > { %968 = vmatprep.subr.bf16.mxu1 %v1618_v10 }
  0x62   : > { %928 = vmatpush1.bf16.msra.mxu0 %v1536_v56  ;;  %v308_v56 = vld [vmem:[#allocation2 + $0x18] sm:$0xff] }
  0x63   : > { %929 = vmatprep.subr.bf16.mxu0 %v1537_v57  ;;  %969 = vmatpush1.bf16.msra.mxu1 %v1620_v13 }
  0x64   : > { %970 = vmatprep.subr.bf16.mxu1 %v1624_v14 }
  0x66   : > { %930 = vmatpush1.bf16.msra.mxu0 %v1539_v59 }
  0x67   : > { %985 = vmatprep.subr.bf16.mxu0 %v1545_v63  ;;  %971 = vmatpush1.bf16.msra.mxu1 %v1626_v17  ;;  %v1068_v17 = vld [vmem:[%s2012_s2] sm:$0x3f] (!%p1462_p10) }
  0x68   : > { %972 = vmatprep.subr.bf16.mxu1 %v1630_v18 }
  0x69   : > { %932 = vmatmul.mubr.bf16.vlgmr.msra.gmra.mrb[0].mxu0 %v1811_v1 }
  0x6a   : > { %986 = vmatpush1.bf16.msra.mxu0 %v1543_v3  ;;  %1017 = vmatprep.mubr.bf16.mxu0 %v1767_v24  ;;  %v1579_v24 = vld [vmem:[%s1743_s18 + $0x130] ss:$24 sps:$4 sm:$0xff]   ;;  %v309_v3 = vld [vmem:[#allocation2 + $0x20] sm:$0xff] }
  0x6b   : > { %987 = vmatprep.subr.bf16.mxu0 %v1551_v4  ;;  %973 = vmatpush1.bf16.msra.mxu1 %v1632_v21  ;;  %v310_v4 = vld [vmem:[#allocation2 + $0x28] sm:$0xff] }
  0x6e   : > { %988 = vmatpush1.bf16.msra.mxu0 %v1549_v7  ;;  %975 = vmatmul.mubr.bf16.vlgmr.msra.gmra.mrb[0].mxu1 %v1811_v1 }
  0x6f   : > { %989 = vmatprep.subr.bf16.mxu0 %v1557_v8 }
  0x72   : > { %990 = vmatpush1.bf16.msra.mxu0 %v1555_v11 }
  0x73   : > { %991 = vmatprep.subr.bf16.mxu0 %v1563_v12 }
  0x76   : > { %992 = vmatpush1.bf16.msra.mxu0 %v1561_v15  ;;  %v1070_v15 = vlaneseq (!%p1462_p10) }
  0x77   : > { %993 = vmatprep.subr.bf16.mxu0 %v1569_v16 }
  0x78   : > { %v1071_v16 = vshrl.u32 (!%p1462_p10), %v1070_v15, 7 }
  0x7a   : > { %994 = vmatpush1.bf16.msra.mxu0 %v1567_v19  ;;  %v1862_v19 = vsub.s32 (!%p1462_p10), 0, %v1071_v16  ;;  %v1866_v21 = vsub.s32 (!%p1462_p10), 2, %v1071_v16 }
  0x7b   : > { %995 = vmatprep.subr.bf16.mxu0 %v1575_v20  ;;  %v1864_v20 = vsub.s32 (!%p1462_p10), 1, %v1071_v16 }
  0x7e   : > { %996 = vmatpush1.bf16.msra.mxu0 %v1573_v22  ;;  %v1868_v22 = vsub.s32 (!%p1462_p10), 3, %v1071_v16 }
  0x7f   : > { %997 = vmatprep.subr.bf16.mxu0 %v1581_v23 }
  0x82   : > { %998 = vmatpush1.bf16.msra.mxu0 %v1579_v24 }
  0x83   : > { %999 = vmatprep.subr.bf16.mxu0 %v1587_v25 }
  0x86   : > { %1000 = vmatpush1.bf16.msra.mxu0 %v1585_v26  ;;  %v1870_v26 = vsub.s32 (!%p1462_p10), 4, %v1071_v16 }
  0x87   : > { %1001 = vmatprep.subr.bf16.mxu0 %v1593_v27  ;;  %v1872_v27 = vsub.s32 (!%p1462_p10), 5, %v1071_v16  ;;  %v1123_v16 = vld [vmem:[%s2013_s3 + $0x58] sm:$0xff] (!%p1462_p10) }
  0x8a   : > { %1002 = vmatpush1.bf16.msra.mxu0 %v1591_v28 }
  0x8b   : > { %1003 = vmatprep.subr.bf16.mxu0 %v1599_v29  ;;  %v1073_v29 = vrot.slane (!%p1462_p10), %v1068_v17, %v1862_v19 }
  0x8e   : > { %1004 = vmatpush1.bf16.msra.mxu0 %v1597_v30  ;;  %v1077_v30 = vrot.slane (!%p1462_p10), %v1068_v17, %v1864_v20 }
  0x8f   : > { %1005 = vmatprep.subr.bf16.mxu0 %v1605_v31  ;;  %v1081_v31 = vrot.slane (!%p1462_p10), %v1068_v17, %v1866_v21 }
  0x92   : > { %1006 = vmatpush1.bf16.msra.mxu0 %v1603_v32  ;;  %v1085_v32 = vrot.slane (!%p1462_p10), %v1068_v17, %v1868_v22 }
  0x93   : > { %1007 = vmatprep.subr.bf16.mxu0 %v1611_v33  ;;  %v1089_v33 = vrot.slane (!%p1462_p10), %v1068_v17, %v1870_v26 }
  0x96   : > { %1008 = vmatpush1.bf16.msra.mxu0 %v1609_v34  ;;  %v1093_v34 = vrot.slane (!%p1462_p10), %v1068_v17, %v1872_v27 }
  0x97   : > { %1009 = vmatprep.subr.bf16.mxu0 %v1617_v35  ;;  %v1112_v35 = vld [vmem:[%s2013_s3] sm:$0xff] (!%p1462_p10) }
  0x9a   : > { %1010 = vmatpush1.bf16.msra.mxu0 %v1615_v36  ;;  %v1113_v36 = vld [vmem:[%s2013_s3 + $0x8] sm:$0xff] (!%p1462_p10) }
  0x9b   : > { %1011 = vmatprep.subr.bf16.mxu0 %v1623_v37  ;;  %v1114_v37 = vld [vmem:[%s2013_s3 + $0x10] sm:$0xff] (!%p1462_p10) }
  0x9e   : > { %1012 = vmatpush1.bf16.msra.mxu0 %v1621_v38 }
  0x9f   : > { %1013 = vmatprep.subr.bf16.mxu0 %v1629_v39 }
  0xa2   : > { %1014 = vmatpush1.bf16.msra.mxu0 %v1627_v40 }
  0xa3   : > { %1015 = vmatprep.subr.bf16.mxu0 %v1635_v41 }
  0xa6   : > { %1016 = vmatpush1.bf16.msra.mxu0 %v1633_v42 }
  0xa9   : > { %1018 = vmatmul.mubr.bf16.vlgmr.msra.gmra.mrb[4].mxu0 %v1811_v1 }
 0x13c   : > { %v933_v45 = vpop.f32.mrb[0].mxu0 }
 0x13d   : > { %v1028_v47 = vadd.f32 %v933_v45, %v305_v43  ;;  %v935_v48 = vpop.f32.mrb[1].mxu0  ;;  %v1116_v45 = vld [vmem:[%s2013_s3 + $0x20] sm:$0xff] (!%p1462_p10) }
 0x13e   : > { %v1029_v50 = vadd.f32 %v935_v48, %v306_v44  ;;  %v937_v51 = vpop.f32.mrb[2].mxu0  ;;  %v1115_v44 = vld [vmem:[%s2013_s3 + $0x18] sm:$0xff] (!%p1462_p10) }
 0x13f   : > { %1040 = vst [vmem:[#allocation2] sm:$0xff] %v1028_v47  ;;  %v1034_v52 = vadd.f32 %v937_v51, %v311_v46  ;;  %v939_v53 = vpop.f32.mrb[3].mxu0 }
 0x140   : > { %1041 = vst [vmem:[#allocation2 + $0x8] sm:$0xff] %v1029_v50  ;;  %v1035_v54 = vadd.f32 %v939_v53, %v312_v49 }
 0x141   : > { %1046 = vst [vmem:[#allocation2 + $0x30] sm:$0xff] %v1034_v52  ;;  %v976_v57 = vpop.f32.mrb[0].mxu1 }
 0x142   : > { %1047 = vst [vmem:[#allocation2 + $0x38] sm:$0xff] %v1035_v54  ;;  %v1030_v59 = vadd.f32 %v976_v57, %v307_v55  ;;  %v978_v60 = vpop.f32.mrb[1].mxu1  ;;  %v1117_v54 = vld [vmem:[%s2013_s3 + $0x28] sm:$0xff] (!%p1462_p10)  ;;  %v1118_v57 = vld [vmem:[%s2013_s3 + $0x30] sm:$0xff] (!%p1462_p10) }
 0x143   : > { %v1031_v62 = vadd.f32 %v978_v60, %v308_v56  ;;  %v980_v63 = vpop.f32.mrb[2].mxu1 }
 0x144   : > { %1042 = vst [vmem:[#allocation2 + $0x10] sm:$0xff] %v1030_v59  ;;  %v1036_v0 = vadd.f32 %v980_v63, %v313_v58  ;;  %v982_v1 = vpop.f32.mrb[3].mxu1 }
 0x145   : > { %1043 = vst [vmem:[#allocation2 + $0x18] sm:$0xff] %v1031_v62  ;;  %v1037_v2 = vadd.f32 %v982_v1, %v314_v61  ;;  %v1119_v61 = vld [vmem:[%s2013_s3 + $0x38] sm:$0xff] (!%p1462_p10)  ;;  %v1120_v62 = vld [vmem:[%s2013_s3 + $0x40] sm:$0xff] (!%p1462_p10) }
 0x146   : > { %1048 = vst [vmem:[#allocation2 + $0x40] sm:$0xff] %v1036_v0  ;;  %v1056_v18 = vld [vmem:[#allocation2] sm:$0xff] (!%p1462_p10) }
 0x147   : > { %1049 = vst [vmem:[#allocation2 + $0x48] sm:$0xff] %v1037_v2  ;;  %v1057_v23 = vld [vmem:[#allocation2 + $0x8] sm:$0xff] (!%p1462_p10)  ;;  %v1100_v39 = vadd.f32 (!%p1462_p10), %v1073_v29, %v1056_v18 }
 0x148   : > { %v1101_v40 = vadd.f32 (!%p1462_p10), %v1077_v30, %v1057_v23  ;;  %v1062_v49 = vld [vmem:[#allocation2 + $0x30] sm:$0xff] (!%p1462_p10) }
 0x149   : > { %v1124_v46 = vadd.f32 (!%p1462_p10), %v1112_v35, %v1100_v39  ;;  %v1063_v51 = vld [vmem:[#allocation2 + $0x38] sm:$0xff] (!%p1462_p10)  ;;  %v1106_v60 = vadd.f32 (!%p1462_p10), %v1073_v29, %v1062_v49 }
 0x14a   : > { %v1125_v47 = vadd.f32 (!%p1462_p10), %v1113_v36, %v1101_v40  ;;  %v1107_v0 = vadd.f32 (!%p1462_p10), %v1077_v30, %v1063_v51 }
 0x14b   : > { %v1058_v24 = vld [vmem:[#allocation2 + $0x10] sm:$0xff] (!%p1462_p10) }
 0x14c   : > { %v1059_v25 = vld [vmem:[#allocation2 + $0x18] sm:$0xff] (!%p1462_p10)  ;;  %v1102_v41 = vadd.f32 (!%p1462_p10), %v1081_v31, %v1058_v24  ;;  %v1138_v56 = vadd.f32 (!%p1462_p10), %v1125_v47, %v1124_v46 }
 0x14d   : > { %v1103_v42 = vadd.f32 (!%p1462_p10), %v1085_v32, %v1059_v25  ;;  %v1064_v52 = vld [vmem:[#allocation2 + $0x40] sm:$0xff] (!%p1462_p10) }
 0x14e   : > { %v1126_v48 = vadd.f32 (!%p1462_p10), %v1114_v37, %v1102_v41  ;;  %v1065_v53 = vld [vmem:[#allocation2 + $0x48] sm:$0xff] (!%p1462_p10)  ;;  %v1108_v1 = vadd.f32 (!%p1462_p10), %v1081_v31, %v1064_v52 }
 0x14f   : > { %v1127_v55 = vadd.f32 (!%p1462_p10), %v1115_v44, %v1103_v42  ;;  %v1109_v2 = vadd.f32 (!%p1462_p10), %v1085_v32, %v1065_v53 }
 0x150   : > { %v1139_v63 = vadd.f32 (!%p1462_p10), %v1138_v56, %v1126_v48 }
 0x17c   : > { %v1019_v5 = vpop.f32.mrb[4].mxu0  ;;  %1055 = sbr.rel (%p1462_p10) target bundleno = 728 (0x2d8), region = 75 }
 0x17d   : > { %v1032_v7 = vadd.f32 %v1019_v5, %v309_v3  ;;  %v1021_v8 = vpop.f32.mrb[5].mxu0  ;;  %v1121_v5 = vld [vmem:[%s2013_s3 + $0x48] sm:$0xff] (!%p1462_p10) }
 0x17e   : > { %v1033_v10 = vadd.f32 %v1021_v8, %v310_v4  ;;  %v1023_v11 = vpop.f32.mrb[6].mxu0 }
 0x17f   : > { %1044 = vst [vmem:[#allocation2 + $0x20] sm:$0xff] %v1032_v7  ;;  %v1038_v12 = vadd.f32 %v1023_v11, %v315_v6  ;;  %v1025_v13 = vpop.f32.mrb[7].mxu0  ;;  %v1130_v6 = vadd.f32 (!%p1462_p10), %v1118_v57, %v1106_v60  ;;  %v1140_v7 = vadd.f32 (!%p1462_p10), %v1139_v63, %v1127_v55  ;;  %v1122_v11 = vld [vmem:[%s2013_s3 + $0x50] sm:$0xff] (!%p1462_p10) }
 0x180   : > { %1045 = vst [vmem:[#allocation2 + $0x28] sm:$0xff] %v1033_v10  ;;  %v1039_v14 = vadd.f32 %v1025_v13, %v316_v9  ;;  %v1131_v9 = vadd.f32 (!%p1462_p10), %v1119_v61, %v1107_v0  ;;  %v1132_v10 = vadd.f32 (!%p1462_p10), %v1120_v62, %v1108_v1 }
 0x181   : > { %1050 = vst [vmem:[#allocation2 + $0x50] sm:$0xff] %v1038_v12 }
 0x182   : > { %1051 = vst [vmem:[#allocation2 + $0x58] sm:$0xff] %v1039_v14  ;;  %v1133_v14 = vadd.f32 (!%p1462_p10), %v1121_v5, %v1109_v2  ;;  %v1145_v15 = vadd.f32 (!%p1462_p10), %v1131_v9, %v1130_v6 }
 0x184   : > { %v1146_v23 = vadd.f32 %v1145_v15, %v1132_v10 }
 0x186   : > { %v1060_v28 = vld [vmem:[#allocation2 + $0x20] sm:$0xff]  ;;  %v1147_v25 = vadd.f32 %v1146_v23, %v1133_v14 }
 0x187   : > { %v1061_v38 = vld [vmem:[#allocation2 + $0x28] sm:$0xff]  ;;  %v1104_v43 = vadd.f32 %v1089_v33, %v1060_v28 }
 0x188   : > { %v1105_v50 = vadd.f32 %v1093_v34, %v1061_v38  ;;  %v1066_v59 = vld [vmem:[#allocation2 + $0x50] sm:$0xff] }
 0x189   : > { %v1128_v58 = vadd.f32 %v1116_v45, %v1104_v43  ;;  %v1067_v4 = vld [vmem:[#allocation2 + $0x58] sm:$0xff]  ;;  %v1110_v8 = vadd.f32 %v1089_v33, %v1066_v59 }
 0x18a   : > { %v1129_v3 = vadd.f32 %v1117_v54, %v1105_v50  ;;  %v1111_v13 = vadd.f32 %v1093_v34, %v1067_v4 }
 0x18b   : > { %v1141_v12 = vadd.f32 %v1140_v7, %v1128_v58  ;;  %v1134_v18 = vadd.f32 %v1122_v11, %v1110_v8  ;;  %v1137_v11 = vld [vmem:[%s2015_s5] sm:$0x3f] }
 0x18c   : > { %v1135_v24 = vadd.f32 %v1123_v16, %v1111_v13  ;;  %v1258_v23 = vrot.slane %v1137_v11, %v1862_v19 }
 0x18d   : > { %v1142_v17 = vadd.f32 %v1141_v12, %v1129_v3  ;;  %v1148_v28 = vadd.f32 %v1147_v25, %v1134_v18  ;;  %v1266_v25 = vrot.slane %v1137_v11, %v1866_v21 }
 0x18f   : > { %1143 = vadd.xlane.f32.xlu0 %v1142_v17  ;;  %v1149_v29 = vadd.f32 %v1148_v28, %v1135_v24  ;;  %v1270_v28 = vrot.slane %v1137_v11, %v1868_v22 }
 0x193   : > { %1150 = vadd.xlane.f32.xlu0 %v1149_v29 }
 0x21c   : > { %v1144_v30 = vpop.xlane.xlu0 %1143 }
 0x21d   : > { %v1153_v31 = vmul.f32 0.0013020834, %v1144_v30 }
 0x21f   : > { %v1155_v32 = vsub.f32 %v1124_v46, %v1153_v31  ;;  %v1156_v33 = vsub.f32 %v1125_v47, %v1153_v31  ;;  %v1157_v34 = vsub.f32 %v1126_v48, %v1153_v31  ;;  %v1158_v35 = vsub.f32 %v1127_v55, %v1153_v31 }
 0x220   : > { %v1151_v38 = vpop.xlane.xlu0 %1150  ;;  %v1159_v39 = vsub.f32 %v1128_v58, %v1153_v31  ;;  %v1160_v43 = vsub.f32 %v1129_v3, %v1153_v31 }
 0x221   : > { %v1167_v36 = vmul.f32 %v1155_v32, %v1155_v32  ;;  %v1168_v37 = vmul.f32 %v1156_v33, %v1156_v33  ;;  %v1154_v40 = vmul.f32 0.0013020834, %v1151_v38  ;;  %v1169_v41 = vmul.f32 %v1157_v34, %v1157_v34 }
 0x222   : > { %v1170_v44 = vmul.f32 %v1158_v35, %v1158_v35  ;;  %v1171_v46 = vmul.f32 %v1159_v39, %v1159_v39  ;;  %v1172_v54 = vmul.f32 %v1160_v43, %v1160_v43  ;;  %v1278_v38 = vrot.slane %v1137_v11, %v1872_v27 }
 0x223   : > { %v1179_v42 = vadd.f32 %v1168_v37, %v1167_v36  ;;  %v1916_v49 = vsub.f32 %v1130_v6, %v1154_v40  ;;  %v1918_v50 = vsub.f32 %v1131_v9, %v1154_v40  ;;  %v1920_v51 = vsub.f32 %v1132_v10, %v1154_v40  ;;  %v1136_v10 = vld [vmem:[%s2014_s4] sm:$0x3f] }
 0x224   : > { %v1922_v48 = vsub.f32 %v1133_v14, %v1154_v40  ;;  %v1928_v56 = vsub.f32 %v1134_v18, %v1154_v40  ;;  %v1932_v60 = vsub.f32 %v1135_v24, %v1154_v40  ;;  %v1215_v12 = vrot.slane %v1136_v10, %v1862_v19 }
 0x225   : > { %v1180_v45 = vadd.f32 %v1179_v42, %v1169_v41  ;;  %v1173_v52 = vmul.f32 %v1916_v49, %v1916_v49  ;;  %v1174_v53 = vmul.f32 %v1918_v50, %v1918_v50  ;;  %v1175_v57 = vmul.f32 %v1920_v51, %v1920_v51 }
 0x226   : > { %v1176_v61 = vmul.f32 %v1922_v48, %v1922_v48  ;;  %v1177_v63 = vmul.f32 %v1928_v56, %v1928_v56  ;;  %v1178_v1 = vmul.f32 %v1932_v60, %v1932_v60  ;;  %v1219_v13 = vrot.slane %v1136_v10, %v1864_v20 }
 0x227   : > { %v1181_v47 = vadd.f32 %v1180_v45, %v1170_v44  ;;  %v1186_v58 = vadd.f32 %v1174_v53, %v1173_v52  ;;  %v1223_v14 = vrot.slane %v1136_v10, %v1866_v21  ;;  %v1227_v15 = vrot.slane %v1136_v10, %v1868_v22 }
 0x228   : > { %v1231_v16 = vrot.slane %v1136_v10, %v1870_v26  ;;  %v1235_v17 = vrot.slane %v1136_v10, %v1872_v27  ;;  %v1262_v24 = vrot.slane %v1137_v11, %v1864_v20  ;;  %v1274_v37 = vrot.slane %v1137_v11, %v1870_v26 }
 0x229   : > { %v1182_v55 = vadd.f32 %v1181_v47, %v1171_v46  ;;  %v1187_v62 = vadd.f32 %v1186_v58, %v1175_v57 }
 0x22b   : > { %v1183_v59 = vadd.f32 %v1182_v55, %v1172_v54  ;;  %v1188_v0 = vadd.f32 %v1187_v62, %v1176_v61 }
 0x22d   : > { %1184 = vadd.xlane.f32.xlu1 %v1183_v59  ;;  %v1189_v2 = vadd.f32 %v1188_v0, %v1177_v63 }
 0x22f   : > { %v1190_v3 = vadd.f32 %v1189_v2, %v1178_v1 }
 0x231   : > { %1191 = vadd.xlane.f32.xlu1 %v1190_v3 }
 0x2ba   : > { %v1185_v4 = vpop.xlane.xlu1 %1184 }
 0x2bb   : > { %v1193_v5 = vmul.f32 0.0013020834, %v1185_v4 }
 0x2bd   : > { %v1195_v6 = vadd.f32 1e-12, %v1193_v5 }
 0x2be   : > { %v1192_v7 = vpop.xlane.xlu1 %1191 }
 0x2bf   : > { %1636 = vrsqrt.f32 %v1195_v6  ;;  %v1194_v8 = vmul.f32 0.0013020834, %v1192_v7 }
 0x2c1   : > { %v1196_v9 = vadd.f32 1e-12, %v1194_v8 }
 0x2c3   : > { %1638 = vrsqrt.f32 %v1196_v9 }
 0x2c9   : > { %v1637_v18 = vpop.eup %1636 }
 0x2ca   : > { %v1199_v29 = vmul.f32 %v1637_v18, %v1155_v32  ;;  %v1200_v30 = vmul.f32 %v1637_v18, %v1156_v33  ;;  %v1201_v31 = vmul.f32 %v1637_v18, %v1157_v34  ;;  %v1202_v36 = vmul.f32 %v1637_v18, %v1158_v35 }
 0x2cb   : > { %v1203_v40 = vmul.f32 %v1637_v18, %v1159_v39  ;;  %v1204_v41 = vmul.f32 %v1637_v18, %v1160_v43 }
 0x2cc   : > { %v1242_v42 = vmul.f32 %v1215_v12, %v1199_v29  ;;  %v1243_v44 = vmul.f32 %v1219_v13, %v1200_v30  ;;  %v1244_v45 = vmul.f32 %v1223_v14, %v1201_v31  ;;  %v1245_v19 = vmul.f32 %v1227_v15, %v1202_v36 }
 0x2cd   : > { %v1246_v46 = vmul.f32 %v1231_v16, %v1203_v40  ;;  %v1247_v20 = vmul.f32 %v1235_v17, %v1204_v41  ;;  %v1639_v32 = vpop.eup %1638 }
 0x2ce   : > { %v1285_v47 = vadd.f32 %v1258_v23, %v1242_v42  ;;  %v1286_v21 = vadd.f32 %v1262_v24, %v1243_v44  ;;  %v1287_v52 = vadd.f32 %v1266_v25, %v1244_v45  ;;  %v1288_v22 = vadd.f32 %v1270_v28, %v1245_v19 }
 0x2cf   : > { %v1289_v33 = vadd.f32 %v1274_v37, %v1246_v46  ;;  %v1290_v34 = vadd.f32 %v1278_v38, %v1247_v20  ;;  %v1205_v26 = vmul.f32 %v1639_v32, %v1916_v49  ;;  %v1206_v27 = vmul.f32 %v1639_v32, %v1918_v50 }
 0x2d0   : > { %1297 = vst [vmem:[%s2016_s6] sm:$0xff] %v1285_v47  ;;  %1298 = vst [vmem:[%s2016_s6 + $0x8] sm:$0xff] %v1286_v21  ;;  %v1207_v35 = vmul.f32 %v1639_v32, %v1920_v51  ;;  %v1208_v39 = vmul.f32 %v1639_v32, %v1922_v48  ;;  %v1209_v43 = vmul.f32 %v1639_v32, %v1928_v56 }
 0x2d1   : > { %1299 = vst [vmem:[%s2016_s6 + $0x10] sm:$0xff] %v1287_v52  ;;  %1300 = vst [vmem:[%s2016_s6 + $0x18] sm:$0xff] %v1288_v22  ;;  %v1210_v53 = vmul.f32 %v1639_v32, %v1932_v60  ;;  %v1248_v54 = vmul.f32 %v1215_v12, %v1205_v26  ;;  %v1249_v49 = vmul.f32 %v1219_v13, %v1206_v27 }
 0x2d2   : > { %1301 = vst [vmem:[%s2016_s6 + $0x20] sm:$0xff] %v1289_v33  ;;  %1302 = vst [vmem:[%s2016_s6 + $0x28] sm:$0xff] %v1290_v34  ;;  %v1250_v55 = vmul.f32 %v1223_v14, %v1207_v35  ;;  %v1251_v50 = vmul.f32 %v1227_v15, %v1208_v39  ;;  %v1252_v57 = vmul.f32 %v1231_v16, %v1209_v43 }
 0x2d3   : > { %v1253_v51 = vmul.f32 %v1235_v17, %v1210_v53  ;;  %v1291_v58 = vadd.f32 %v1258_v23, %v1248_v54  ;;  %v1292_v48 = vadd.f32 %v1262_v24, %v1249_v49 }
 0x2d4   : > { %v1293_v59 = vadd.f32 %v1266_v25, %v1250_v55  ;;  %v1294_v61 = vadd.f32 %v1270_v28, %v1251_v50  ;;  %v1295_v62 = vadd.f32 %v1274_v37, %v1252_v57 }
 0x2d5   : > { %v1296_v63 = vadd.f32 %v1278_v38, %v1253_v51  ;;  %1303 = vst [vmem:[%s2016_s6 + $0x30] sm:$0xff] %v1291_v58  ;;  %1304 = vst [vmem:[%s2016_s6 + $0x38] sm:$0xff] %v1292_v48 }
 0x2d6   : > { %1305 = vst [vmem:[%s2016_s6 + $0x40] sm:$0xff] %v1293_v59  ;;  %1306 = vst [vmem:[%s2016_s6 + $0x48] sm:$0xff] %v1294_v61 }
 0x2d7   : > { %1307 = vst [vmem:[%s2016_s6 + $0x50] sm:$0xff] %v1295_v62  ;;  %1308 = vst [vmem:[%s2016_s6 + $0x58] sm:$0xff] %v1296_v63 }
 0x2d8 PF: > { %p13_p11 = scmp.ge.s32.totalorder %s1719_s25, 5   ;;  %s2017_s21 = smov %s1658_s22 }
 0x2d9   : > { %s2018_s22 = smov %s1728_s28  ;;  %s2019_s23 = smov %s1719_s25 }
 0x2da   :  { %15 = sbr.rel (!%p13_p11) target bundleno = 2 (0x2), region = 109 }

// kernel: custom_bert_forward.11
= control target key start
LH: loop header
LB: loop body
LE: loop exit
PB: predicated region body
PF: predicated region fallthrough
CT: control target
= control target key end

     0   :  { %s2566_s9 = smov 0   ;;  %s2898_s0 = inlined_call_operand.vmem [shape: f32[16,2304], index: 0, kind: input, shape index: {}]   ;;  %s2899_s1 = inlined_call_operand.vmem [shape: f32[2,1,8], index: 1, kind: input, shape index: {}]   ;;  %s2900_s2 = inlined_call_operand.vmem [shape: f32[16,768], index: 2, kind: output, shape index: {}]  }
   0x1 LB: > { %s2265_s10 = sadd.s32 4294967295, %s2546_s9   ;;  %p2269_p0 = scmp.ge.s32.totalorder %s2546_s9, 1  ;;  %s2546_s9 = sphi %s2566_s9, %s12_s9  }
   0x2   : > { %p120_p1 = scmp.lt.s32.totalorder %s2546_s9, 3 }
   0x4   : > { %p121_p2 = pnand %p2269_p0, %p120_p1 }
   0x5   : > { %p145_p3 = scmp.lt.s32.totalorder (!%p121_p2), %s2265_s10, 1  ;;  %v2548_v0 = vmov (!%p121_p2), 0.0   ;;  %vm2549_vm0 = vmmov (!%p121_p2), 0   ;;  %vm177_vm1 = vcmask (!%p121_p2), 523264   ;;  %vm262_vm2 = vcmask (!%p121_p2), 64512   ;;  %s2550_s18 = smov (!%p121_p2), 64  }
   0x6   : > { %124 = sbr.rel (%p121_p2) target bundleno = 1491 (0x5d3), region = 28  ;;  %2359 = vmatprep.subr.mxu0 (!%p121_p2), %v2548_v0  ;;  %2361 = vmatprep.mubr.msk.f32.mxu0 (!%p121_p2), %vm2549_vm0, %v2548_v0 }
   0x7   : > { %2364 = vmatprep.subr.mxu1 (!%p121_p2), %v2548_v0  ;;  %2366 = vmatprep.mubr.msk.f32.mxu1 (!%p121_p2), %vm2549_vm0, %v2548_v0 }
   0xd   : > { %s2902_s10 = smov (!%p145_p3, %s2265_s10), 1 }
   0xe   : > { %s2479_s11 = smul.u32 144, %s2902_s10  ;;  %s152_s17 = scalar_lea.vmem %s2899_s1, %s2902_s10 }
   0xf   : > { %v2599_v4 = vld [vmem:[%s152_s17] ss:$0 sm:$0xff]  ;;  %s2480_s19 = smul.u32 48, %s2902_s10 }
  0x10   : > { %s2586_s14 = scalar_lea.vmem %s2898_s0, %s2479_s11 }
  0x11   : > { %v164_v1 = vld [vmem:[%s2586_s14 + $0x30] sm:$0xff]  ;;  %v158_v2 = vld [vmem:[%s2586_s14] sm:$0xff]  ;;  %v159_v9 = vld [vmem:[%s2586_s14 + $0x8] sm:$0xff]  ;;  %s157_s22 = scalar_lea.vmem %s2900_s2, %s2480_s19 }
  0x12   : > { %2360 = vmatpush3.xpose.msk.msra.mxu0 %vm177_vm1, %v164_v1  ;;  %349 = vrot.lane.b32.xlu1 %v164_v1, %s2550_s18  ;;  %v166_v10 = vld [vmem:[%s2586_s14 + $0x40] sm:$0xff]  ;;  %v160_v11 = vld [vmem:[%s2586_s14 + $0x10] sm:$0xff]  ;;  %v167_v12 = vld [vmem:[%s2586_s14 + $0x48] sm:$0xff] }
  0x13   : > { %2374 = vmatprep.subr.mxu0 %v2548_v0  ;;  %v161_v13 = vld [vmem:[%s2586_s14 + $0x18] sm:$0xff]  ;;  %v168_v14 = vld [vmem:[%s2586_s14 + $0x50] sm:$0xff]  ;;  %v2624_v21 = vld [vmem:[%s2586_s14 + $0x60] sm:$0xff] }
  0x14   : > { %v2618_v15 = vld [vmem:[%s2586_s14 + $0x58] sm:$0xff]  ;;  %2365 = vmatpush3.msra.mxu1 %v2624_v21  ;;  %v162_v23 = vld [vmem:[%s2586_s14 + $0x20] sm:$0xff]  ;;  %v163_v24 = vld [vmem:[%s2586_s14 + $0x28] sm:$0xff] }
  0x15   : > { %2362 = vmatmul.mubr.msk.f32.vlgmr.msra.gmra.mrb[0].mxu0 %vm177_vm1, %v158_v2  ;;  %2369 = vmatprep.subr.mxu1 %v2548_v0  ;;  %v165_v22 = vld [vmem:[%s2586_s14 + $0x38] sm:$0xff] }
  0x16   : > { %2376 = vmatprep.mubr.msk.f32.mxu0 %vm2549_vm0, %v2548_v0  ;;  %347 = vrot.lane.b32.xlu1 %v158_v2, %s2550_s18 }
  0x1a   : > { %677 = vrot.lane.b32.xlu1 %v159_v9, %s2550_s18 }
  0x1e   : > { %1009 = vrot.lane.b32.xlu1 %v166_v10, %s2550_s18 }
  0x22   : > { %1007 = vrot.lane.b32.xlu1 %v160_v11, %s2550_s18 }
  0x26   : > { %1339 = vrot.lane.b32.xlu1 %v167_v12, %s2550_s18 }
  0x2a   : > { %1337 = vrot.lane.b32.xlu1 %v161_v13, %s2550_s18 }
  0x2e   : > { %1669 = vrot.lane.b32.xlu1 %v168_v14, %s2550_s18 }
  0x32   : > { %1999 = vrot.lane.b32.xlu1 %v2618_v15, %s2550_s18 }
  0x84   : > { %v350_v26 = vpop.permute.xlu1 %349 }
  0x88   : > { %v348_v27 = vpop.permute.xlu1 %347 }
  0x8c   : > { %v678_v30 = vpop.permute.xlu1 %677 }
  0x90   : > { %v1010_v32 = vpop.permute.xlu1 %1009 }
  0x94   : > { %v1008_v33 = vpop.permute.xlu1 %1007 }
  0x98   : > { %v1340_v34 = vpop.permute.xlu1 %1339 }
  0x9c   : > { %v1338_v35 = vpop.permute.xlu1 %1337 }
  0xa0   : > { %v1670_v36 = vpop.permute.xlu1 %1669 }
  0xa4   : > { %v2000_v38 = vpop.permute.xlu1 %1999 }
  0xe8   : > { %v250_v3 = vpop.f32.mrb[0].mxu0 }
  0xe9   : > { %v254_v5 = vmul.f32 0.125, %v250_v3  ;;  %v2363_v6 = vpop.f32.mrb[1].mxu0 }
  0xeb   : > { %v261_v7 = vadd.f32 %v2599_v4, %v254_v5 }
  0xed   : > { %v263_v8 = vsel %vm262_vm2, %v261_v7, -inf }
  0xee   : > { %264 = vmax.xlane.f32.xlu0 %v263_v8 }
 0x17b   : > { %v265_v16 = vpop.xlane.xlu0 %264 }
 0x17c   : > { %v266_v17 = vsub.f32 %v261_v7, %v265_v16 }
 0x17e   : > { %v267_v18 = vmul.f32 1.442695, %v266_v17 }
 0x180   : > { %2492 = vpow2.f32 %v267_v18 }
 0x18a   : > { %v2493_v19 = vpop.eup %2492 }
 0x18b   : > { %v269_v20 = vsel %vm262_vm2, %v2493_v19, 0.0 }
 0x18c   : > { %270 = vadd.xlane.f32.xlu0 %v269_v20 }
 0x1a2   : > { %679 = vrot.lane.b32.xlu0 %v165_v22, %s2550_s18 }
 0x1a6   : > { %1667 = vrot.lane.b32.xlu0 %v162_v23, %s2550_s18 }
 0x1aa   : > { %1997 = vrot.lane.b32.xlu0 %v163_v24, %s2550_s18 }
 0x219   : > { %v271_v25 = vpop.xlane.xlu0 %270 }
 0x21a   : > { %2494 = vrcp.f32 %v271_v25 }
 0x21d   : > { %v680_v31 = vpop.permute.xlu0 %679 }
 0x221   : > { %v1668_v37 = vpop.permute.xlu0 %1667 }
 0x224   : > { %v2495_v28 = vpop.eup %2494 }
 0x225   : > { %v273_v29 = vmul.f32 %v2495_v28, %v2493_v19  ;;  %v1998_v39 = vpop.permute.xlu0 %1997 }
 0x227   : > { %2367 = vmatmul.mubr.msk.f32.vlgmr.msra.gmra.mrb[0].mxu1 %vm262_vm2, %v273_v29 }
 0x228   : > { %2370 = vmatpush3.xpose.msk.msra.mxu1 %vm177_vm1, %v350_v26  ;;  %2371 = vmatprep.mubr.msk.f32.mxu1 %vm2549_vm0, %v2548_v0 }
 0x229   : > { %2379 = vmatprep.subr.mxu1 %v2548_v0 }
 0x22b   : > { %2372 = vmatmul.mubr.msk.f32.vlgmr.msra.gmra.mrb[2].mxu1 %vm177_vm1, %v348_v27 }
 0x22c   : > { %2380 = vmatpush3.xpose.msk.msra.mxu1 %vm177_vm1, %v165_v22  ;;  %2381 = vmatprep.mubr.msk.f32.mxu1 %vm2549_vm0, %v2548_v0 }
 0x22d   : > { %2389 = vmatprep.subr.mxu1 %v2548_v0 }
 0x22f   : > { %2382 = vmatmul.mubr.msk.f32.vlgmr.msra.gmra.mrb[4].mxu1 %vm177_vm1, %v159_v9 }
 0x230   : > { %2390 = vmatpush3.xpose.msk.msra.mxu1 %vm177_vm1, %v680_v31  ;;  %2391 = vmatprep.mubr.msk.f32.mxu1 %vm2549_vm0, %v2548_v0 }
 0x231   : > { %2399 = vmatprep.subr.mxu1 %v2548_v0 }
 0x233   : > { %2392 = vmatmul.mubr.msk.f32.vlgmr.msra.gmra.mrb[6].mxu1 %vm177_vm1, %v678_v30 }
 0x234   : > { %2400 = vmatpush3.xpose.msk.msra.mxu1 %vm177_vm1, %v166_v10  ;;  %2401 = vmatprep.mubr.msk.f32.mxu1 %vm2549_vm0, %v2548_v0 }
 0x235   : > { %2409 = vmatprep.subr.mxu1 %v2548_v0 }
 0x237   : > { %2402 = vmatmul.mubr.msk.f32.vlgmr.msra.gmra.mrb[8].mxu1 %vm177_vm1, %v160_v11 }
 0x238   : > { %2410 = vmatpush3.xpose.msk.msra.mxu1 %vm177_vm1, %v1010_v32  ;;  %2411 = vmatprep.mubr.msk.f32.mxu1 %vm2549_vm0, %v2548_v0 }
 0x239   : > { %2419 = vmatprep.subr.mxu1 %v2548_v0 }
 0x23b   : > { %2412 = vmatmul.mubr.msk.f32.vlgmr.msra.gmra.mrb[10].mxu1 %vm177_vm1, %v1008_v33 }
 0x23c   : > { %2420 = vmatpush3.xpose.msk.msra.mxu1 %vm177_vm1, %v167_v12  ;;  %2421 = vmatprep.mubr.msk.f32.mxu1 %vm2549_vm0, %v2548_v0 }
 0x23d   : > { %2429 = vmatprep.subr.mxu1 %v2548_v0 }
 0x23f   : > { %2422 = vmatmul.mubr.msk.f32.vlgmr.msra.gmra.mrb[12].mxu1 %vm177_vm1, %v161_v13 }
 0x240   : > { %2430 = vmatpush3.xpose.msk.msra.mxu1 %vm177_vm1, %v1340_v34  ;;  %2431 = vmatprep.mubr.msk.f32.mxu1 %vm2549_vm0, %v2548_v0 }
 0x241   : > { %2439 = vmatprep.subr.mxu1 %v2548_v0 }
 0x243   : > { %2432 = vmatmul.mubr.msk.f32.vlgmr.msra.gmra.mrb[14].mxu1 %vm177_vm1, %v1338_v35 }
 0x244   : > { %2440 = vmatpush3.xpose.msk.msra.mxu1 %vm177_vm1, %v168_v14  ;;  %2441 = vmatprep.mubr.msk.f32.mxu1 %vm2549_vm0, %v2548_v0 }
 0x245   : > { %2449 = vmatprep.subr.mxu1 %v2548_v0 }
 0x247   : > { %2442 = vmatmul.mubr.msk.f32.vlgmr.msra.gmra.mrb[16].mxu1 %vm177_vm1, %v162_v23 }
 0x248   : > { %2450 = vmatpush3.xpose.msk.msra.mxu1 %vm177_vm1, %v1670_v36  ;;  %2451 = vmatprep.mubr.msk.f32.mxu1 %vm2549_vm0, %v2548_v0  ;;  %v2748_v36 = vld [vmem:[%s2586_s14 + $0x68] sm:$0xff] }
 0x249   : > { %2459 = vmatprep.subr.mxu1 %v2548_v0 }
 0x24b   : > { %2452 = vmatmul.mubr.msk.f32.vlgmr.msra.gmra.mrb[18].mxu1 %vm177_vm1, %v1668_v37 }
 0x24c   : > { %2460 = vmatpush3.xpose.msk.msra.mxu1 %vm177_vm1, %v2618_v15  ;;  %2461 = vmatprep.mubr.msk.f32.mxu1 %vm2549_vm0, %v2548_v0 }
 0x24d   : > { %2469 = vmatprep.subr.mxu1 %v2548_v0 }
 0x24f   : > { %2462 = vmatmul.mubr.msk.f32.vlgmr.msra.gmra.mrb[20].mxu1 %vm177_vm1, %v163_v24 }
 0x250   : > { %2470 = vmatpush3.xpose.msk.msra.mxu1 %vm177_vm1, %v2000_v38  ;;  %2471 = vmatprep.mubr.msk.f32.mxu1 %vm2549_vm0, %v2548_v0 }
 0x253   : > { %2472 = vmatmul.mubr.msk.f32.vlgmr.msra.gmra.mrb[22].mxu1 %vm177_vm1, %v1998_v39 }
 0x2fa   : > { %v2690_v40 = vpop.f32.mrb[0].mxu1 }
 0x2fb   : > { %v2368_v41 = vpop.f32.mrb[1].mxu1 }
 0x2fe   : > { %v421_v42 = vpop.f32.mrb[2].mxu1 }
 0x2ff   : > { %v425_v43 = vmul.f32 0.125, %v421_v42  ;;  %v2373_v44 = vpop.f32.mrb[3].mxu1 }
 0x301   : > { %v2693_v45 = vadd.f32 %v2599_v4, %v425_v43 }
 0x302   : > { %v587_v46 = vpop.f32.mrb[4].mxu1 }
 0x303   : > { %v591_v47 = vmul.f32 0.125, %v587_v46  ;;  %v2383_v48 = vpop.f32.mrb[5].mxu1  ;;  %v427_v49 = vsel %vm262_vm2, %v2693_v45, -inf }
 0x304   : > { %428 = vmax.xlane.f32.xlu1 %v427_v49 }
 0x305   : > { %v2698_v50 = vadd.f32 %v2599_v4, %v591_v47 }
 0x306   : > { %v751_v51 = vpop.f32.mrb[6].mxu1 }
 0x307   : > { %v755_v52 = vmul.f32 0.125, %v751_v51  ;;  %v2393_v53 = vpop.f32.mrb[7].mxu1  ;;  %v593_v54 = vsel %vm262_vm2, %v2698_v50, -inf }
 0x308   : > { %594 = vmax.xlane.f32.xlu0 %v593_v54 }
 0x309   : > { %v2703_v55 = vadd.f32 %v2599_v4, %v755_v52 }
 0x30a   : > { %v917_v56 = vpop.f32.mrb[8].mxu1 }
 0x30b   : > { %v921_v57 = vmul.f32 0.125, %v917_v56  ;;  %v2403_v58 = vpop.f32.mrb[9].mxu1  ;;  %v757_v59 = vsel %vm262_vm2, %v2703_v55, -inf }
 0x30c   : > { %758 = vmax.xlane.f32.xlu0 %v757_v59 }
 0x30d   : > { %v2708_v60 = vadd.f32 %v2599_v4, %v921_v57 }
 0x30e   : > { %v1081_v61 = vpop.f32.mrb[10].mxu1 }
 0x30f   : > { %v1085_v62 = vmul.f32 0.125, %v1081_v61  ;;  %v2413_v63 = vpop.f32.mrb[11].mxu1  ;;  %v923_v1 = vsel %vm262_vm2, %v2708_v60, -inf }
 0x310   : > { %924 = vmax.xlane.f32.xlu1 %v923_v1 }
 0x311   : > { %v2713_v2 = vadd.f32 %v2599_v4, %v1085_v62 }
 0x312   : > { %v1247_v3 = vpop.f32.mrb[12].mxu1 }
 0x313   : > { %v1251_v5 = vmul.f32 0.125, %v1247_v3  ;;  %v2423_v6 = vpop.f32.mrb[13].mxu1  ;;  %v1087_v7 = vsel %vm262_vm2, %v2713_v2, -inf }
 0x314   : > { %1088 = vmax.xlane.f32.xlu0 %v1087_v7 }
 0x315   : > { %v2718_v8 = vadd.f32 %v2599_v4, %v1251_v5 }
 0x316   : > { %v1411_v9 = vpop.f32.mrb[14].mxu1 }
 0x317   : > { %v1415_v10 = vmul.f32 0.125, %v1411_v9  ;;  %v1253_v11 = vsel %vm262_vm2, %v2718_v8, -inf  ;;  %v2433_v12 = vpop.f32.mrb[15].mxu1 }
 0x318   : > { %1254 = vmax.xlane.f32.xlu1 %v1253_v11 }
 0x319   : > { %v2723_v13 = vadd.f32 %v2599_v4, %v1415_v10 }
 0x31a   : > { %v1577_v14 = vpop.f32.mrb[16].mxu1 }
 0x31b   : > { %v1581_v15 = vmul.f32 0.125, %v1577_v14  ;;  %v1417_v16 = vsel %vm262_vm2, %v2723_v13, -inf  ;;  %v2443_v17 = vpop.f32.mrb[17].mxu1 }
 0x31c   : > { %1418 = vmax.xlane.f32.xlu0 %v1417_v16 }
 0x31d   : > { %v2728_v18 = vadd.f32 %v2599_v4, %v1581_v15 }
 0x31e   : > { %v1741_v19 = vpop.f32.mrb[18].mxu1 }
 0x31f   : > { %v1745_v20 = vmul.f32 0.125, %v1741_v19  ;;  %v1583_v22 = vsel %vm262_vm2, %v2728_v18, -inf  ;;  %v2453_v23 = vpop.f32.mrb[19].mxu1 }
 0x320   : > { %1584 = vmax.xlane.f32.xlu1 %v1583_v22 }
 0x321   : > { %v2733_v24 = vadd.f32 %v2599_v4, %v1745_v20 }
 0x322   : > { %v1907_v25 = vpop.f32.mrb[20].mxu1 }
 0x323   : > { %v1911_v26 = vmul.f32 0.125, %v1907_v25  ;;  %v1747_v27 = vsel %vm262_vm2, %v2733_v24, -inf  ;;  %v2463_v28 = vpop.f32.mrb[21].mxu1 }
 0x324   : > { %1748 = vmax.xlane.f32.xlu0 %v1747_v27 }
 0x325   : > { %v2738_v29 = vadd.f32 %v2599_v4, %v1911_v26  ;;  %v172_v26 = vld [vmem:[%s2586_s14 + $0x70] sm:$0xff] }
 0x326   : > { %v2071_v30 = vpop.f32.mrb[22].mxu1 }
 0x327   : > { %v2075_v31 = vmul.f32 0.125, %v2071_v30  ;;  %v1913_v32 = vsel %vm262_vm2, %v2738_v29, -inf  ;;  %v2473_v33 = vpop.f32.mrb[23].mxu1  ;;  %v173_v30 = vld [vmem:[%s2586_s14 + $0x78] sm:$0xff] }
 0x328   : > { %1914 = vmax.xlane.f32.xlu1 %v1913_v32 }
 0x329   : > { %v2743_v34 = vadd.f32 %v2599_v4, %v2075_v31 }
 0x32b   : > { %v2077_v35 = vsel %vm262_vm2, %v2743_v34, -inf }
 0x32c   : > { %2078 = vmax.xlane.f32.xlu0 %v2077_v35  ;;  %v2820_v35 = vld [vmem:[%s2586_s14 + $0x88] sm:$0xff] }
 0x339   : > { %769 = vrot.lane.b32.xlu1 %v2748_v36, %s2550_s18 }
 0x342   : > { %439 = vrot.lane.b32.xlu0 %v2624_v21, %s2550_s18 }
 0x391   : > { %v429_v37 = vpop.xlane.xlu1 %428 }
 0x392   : > { %v430_v38 = vsub.f32 %v2693_v45, %v429_v37 }
 0x394   : > { %v431_v39 = vmul.f32 1.442695, %v430_v38 }
 0x395   : > { %v595_v41 = vpop.xlane.xlu0 %594 }
 0x396   : > { %2496 = vpow2.f32 %v431_v39  ;;  %v596_v4 = vsub.f32 %v2698_v50, %v595_v41 }
 0x398   : > { %v597_v42 = vmul.f32 1.442695, %v596_v4 }
 0x399   : > { %v759_v43 = vpop.xlane.xlu0 %758 }
 0x39a   : > { %2498 = vpow2.f32 %v597_v42  ;;  %v760_v44 = vsub.f32 %v2703_v55, %v759_v43 }
 0x39c   : > { %v761_v46 = vmul.f32 1.442695, %v760_v44 }
 0x39d   : > { %v925_v47 = vpop.xlane.xlu1 %924 }
 0x39e   : > { %2500 = vpow2.f32 %v761_v46  ;;  %v926_v48 = vsub.f32 %v2708_v60, %v925_v47 }
 0x3a0   : > { %v2758_v49 = vpop.eup %2496  ;;  %v927_v21 = vmul.f32 1.442695, %v926_v48 }
 0x3a1   : > { %v1089_v51 = vpop.xlane.xlu0 %1088  ;;  %v433_v45 = vsel %vm262_vm2, %v2758_v49, 0.0 }
 0x3a2   : > { %2502 = vpow2.f32 %v927_v21  ;;  %v1090_v50 = vsub.f32 %v2713_v2, %v1089_v51  ;;  %434 = vadd.xlane.f32.xlu1 %v433_v45 }
 0x3a4   : > { %v2763_v52 = vpop.eup %2498  ;;  %v1091_v53 = vmul.f32 1.442695, %v1090_v50 }
 0x3a5   : > { %v1255_v54 = vpop.xlane.xlu1 %1254  ;;  %v599_v55 = vsel %vm262_vm2, %v2763_v52, 0.0 }
 0x3a6   : > { %2504 = vpow2.f32 %v1091_v53  ;;  %v1256_v56 = vsub.f32 %v2718_v8, %v1255_v54  ;;  %600 = vadd.xlane.f32.xlu0 %v599_v55 }
 0x3a8   : > { %v2768_v57 = vpop.eup %2500  ;;  %v1257_v58 = vmul.f32 1.442695, %v1256_v56 }
 0x3a9   : > { %v1419_v59 = vpop.xlane.xlu0 %1418  ;;  %v763_v60 = vsel %vm262_vm2, %v2768_v57, 0.0 }
 0x3aa   : > { %2506 = vpow2.f32 %v1257_v58  ;;  %v1420_v61 = vsub.f32 %v2723_v13, %v1419_v59  ;;  %764 = vadd.xlane.f32.xlu1 %v763_v60 }
 0x3ac   : > { %v2773_v62 = vpop.eup %2502  ;;  %v1421_v63 = vmul.f32 1.442695, %v1420_v61 }
 0x3ad   : > { %v1585_v1 = vpop.xlane.xlu1 %1584  ;;  %v929_v2 = vsel %vm262_vm2, %v2773_v62, 0.0 }
 0x3ae   : > { %2508 = vpow2.f32 %v1421_v63  ;;  %v1586_v3 = vsub.f32 %v2728_v18, %v1585_v1  ;;  %930 = vadd.xlane.f32.xlu0 %v929_v2 }
 0x3b0   : > { %v2778_v5 = vpop.eup %2504  ;;  %v1587_v6 = vmul.f32 1.442695, %v1586_v3 }
 0x3b1   : > { %v1749_v7 = vpop.xlane.xlu0 %1748  ;;  %v1093_v8 = vsel %vm262_vm2, %v2778_v5, 0.0 }
 0x3b2   : > { %2510 = vpow2.f32 %v1587_v6  ;;  %v1750_v9 = vsub.f32 %v2733_v24, %v1749_v7  ;;  %1094 = vadd.xlane.f32.xlu1 %v1093_v8 }
 0x3b4   : > { %v2783_v10 = vpop.eup %2506  ;;  %v1751_v11 = vmul.f32 1.442695, %v1750_v9 }
 0x3b5   : > { %v1259_v12 = vsel %vm262_vm2, %v2783_v10, 0.0  ;;  %v1915_v27 = vpop.xlane.xlu1 %1914 }
 0x3b6   : > { %2512 = vpow2.f32 %v1751_v11  ;;  %1260 = vadd.xlane.f32.xlu0 %v1259_v12  ;;  %v1916_v28 = vsub.f32 %v2738_v29, %v1915_v27 }
 0x3b8   : > { %v2787_v13 = vpop.eup %2508  ;;  %v1917_v31 = vmul.f32 1.442695, %v1916_v28 }
 0x3b9   : > { %v2079_v14 = vpop.xlane.xlu0 %2078  ;;  %v1423_v15 = vsel %vm262_vm2, %v2787_v13, 0.0  ;;  %v770_v29 = vpop.permute.xlu1 %769 }
 0x3ba   : > { %v2080_v16 = vsub.f32 %v2743_v34, %v2079_v14  ;;  %1424 = vadd.xlane.f32.xlu1 %v1423_v15  ;;  %v2815_v34 = vld [vmem:[%s2586_s14 + $0x80] sm:$0xff] }
 0x3bc   : > { %v2792_v17 = vpop.eup %2510  ;;  %v2081_v18 = vmul.f32 1.442695, %v2080_v16 }
 0x3bd   : > { %v1589_v19 = vsel %vm262_vm2, %v2792_v17, 0.0  ;;  %v440_v20 = vpop.permute.xlu0 %439 }
 0x3be   : > { %2514 = vpow2.f32 %v2081_v18  ;;  %1590 = vadd.xlane.f32.xlu1 %v1589_v19  ;;  %2375 = vmatpush3.msra.mxu0 %v440_v20 }
 0x3bf   : > { %2384 = vmatprep.subr.mxu0 %v2548_v0  ;;  %2516 = vpow2.f32 %v1917_v31 }
 0x3c0   : > { %v2797_v22 = vpop.eup %2512 }
 0x3c1   : > { %v1753_v23 = vsel %vm262_vm2, %v2797_v22, 0.0 }
 0x3c2   : > { %1754 = vadd.xlane.f32.xlu1 %v1753_v23 }
 0x3c8   : > { %v2801_v24 = vpop.eup %2514 }
 0x3c9   : > { %v2083_v25 = vsel %vm262_vm2, %v2801_v24, 0.0  ;;  %v2810_v32 = vpop.eup %2516 }
 0x3ca   : > { %2084 = vadd.xlane.f32.xlu1 %v2083_v25  ;;  %v1919_v33 = vsel %vm262_vm2, %v2810_v32, 0.0 }
 0x3cc   : > { %1099 = vrot.lane.b32.xlu0 %v172_v26, %s2550_s18 }
 0x3db   : > { %1429 = vrot.lane.b32.xlu1 %v173_v30, %s2550_s18 }
 0x3eb   : > { %1920 = vadd.xlane.f32.xlu0 %v1919_v33 }
 0x401   : > { %1759 = vrot.lane.b32.xlu0 %v2815_v34, %s2550_s18 }
 0x405   : > { %2089 = vrot.lane.b32.xlu0 %v2820_v35, %s2550_s18 }
 0x42f   : > { %v435_v37 = vpop.xlane.xlu1 %434 }
 0x430   : > { %2518 = vrcp.f32 %v435_v37 }
 0x433   : > { %v601_v38 = vpop.xlane.xlu0 %600 }
 0x434   : > { %2520 = vrcp.f32 %v601_v38 }
 0x437   : > { %v765_v39 = vpop.xlane.xlu1 %764 }
 0x438   : > { %2522 = vrcp.f32 %v765_v39 }
 0x43a   : > { %v2519_v41 = vpop.eup %2518 }
 0x43b   : > { %v437_v4 = vmul.f32 %v2519_v41, %v2758_v49  ;;  %v931_v42 = vpop.xlane.xlu0 %930 }
 0x43c   : > { %2524 = vrcp.f32 %v931_v42 }
 0x43d   : > { %2377 = vmatmul.mubr.msk.f32.vlgmr.msra.gmra.mrb[2].mxu0 %vm262_vm2, %v437_v4 }
 0x43e   : > { %v2521_v43 = vpop.eup %2520  ;;  %2385 = vmatpush3.msra.mxu0 %v2748_v36  ;;  %2386 = vmatprep.mubr.msk.f32.mxu0 %vm2549_vm0, %v2548_v0 }
 0x43f   : > { %v603_v44 = vmul.f32 %v2521_v43, %v2763_v52  ;;  %v1095_v46 = vpop.xlane.xlu1 %1094  ;;  %2394 = vmatprep.subr.mxu0 %v2548_v0 }
 0x440   : > { %2526 = vrcp.f32 %v1095_v46 }
 0x441   : > { %2387 = vmatmul.mubr.msk.f32.vlgmr.msra.gmra.mrb[4].mxu0 %vm262_vm2, %v603_v44 }
 0x442   : > { %v2523_v47 = vpop.eup %2522  ;;  %2395 = vmatpush3.msra.mxu0 %v770_v29  ;;  %2396 = vmatprep.mubr.msk.f32.mxu0 %vm2549_vm0, %v2548_v0 }
 0x443   : > { %v767_v48 = vmul.f32 %v2523_v47, %v2768_v57  ;;  %v1261_v49 = vpop.xlane.xlu0 %1260  ;;  %2404 = vmatprep.subr.mxu0 %v2548_v0 }
 0x444   : > { %2528 = vrcp.f32 %v1261_v49 }
 0x445   : > { %2397 = vmatmul.mubr.msk.f32.vlgmr.msra.gmra.mrb[6].mxu0 %vm262_vm2, %v767_v48 }
 0x446   : > { %v2525_v36 = vpop.eup %2524  ;;  %2405 = vmatpush3.msra.mxu0 %v172_v26  ;;  %2406 = vmatprep.mubr.msk.f32.mxu0 %vm2549_vm0, %v2548_v0 }
 0x447   : > { %v933_v21 = vmul.f32 %v2525_v36, %v2773_v62  ;;  %v1425_v51 = vpop.xlane.xlu1 %1424  ;;  %v1100_v45 = vpop.permute.xlu0 %1099  ;;  %2414 = vmatprep.subr.mxu0 %v2548_v0 }
 0x448   : > { %2530 = vrcp.f32 %v1425_v51 }
 0x449   : > { %2407 = vmatmul.mubr.msk.f32.vlgmr.msra.gmra.mrb[8].mxu0 %vm262_vm2, %v933_v21 }
 0x44a   : > { %v2527_v50 = vpop.eup %2526  ;;  %2415 = vmatpush3.msra.mxu0 %v1100_v45  ;;  %2416 = vmatprep.mubr.msk.f32.mxu0 %vm2549_vm0, %v2548_v0 }
 0x44b   : > { %v1097_v52 = vmul.f32 %v2527_v50, %v2778_v5  ;;  %2424 = vmatprep.subr.mxu0 %v2548_v0  ;;  %v1591_v53 = vpop.xlane.xlu1 %1590 }
 0x44c   : > { %2532 = vrcp.f32 %v1591_v53 }
 0x44d   : > { %2417 = vmatmul.mubr.msk.f32.vlgmr.msra.gmra.mrb[10].mxu0 %vm262_vm2, %v1097_v52 }
 0x44e   : > { %v2529_v54 = vpop.eup %2528  ;;  %2425 = vmatpush3.msra.mxu0 %v173_v30  ;;  %2426 = vmatprep.mubr.msk.f32.mxu0 %vm2549_vm0, %v2548_v0 }
 0x44f   : > { %v1263_v55 = vmul.f32 %v2529_v54, %v2783_v10  ;;  %2434 = vmatprep.subr.mxu0 %v2548_v0  ;;  %v1755_v56 = vpop.xlane.xlu1 %1754 }
 0x450   : > { %2534 = vrcp.f32 %v1755_v56 }
 0x451   : > { %2427 = vmatmul.mubr.msk.f32.vlgmr.msra.gmra.mrb[12].mxu0 %vm262_vm2, %v1263_v55 }
 0x452   : > { %2436 = vmatprep.mubr.msk.f32.mxu0 %vm2549_vm0, %v2548_v0  ;;  %v2531_v58 = vpop.eup %2530 }
 0x453   : > { %v1427_v59 = vmul.f32 %v2531_v58, %v2787_v13 }
 0x456   : > { %v2533_v61 = vpop.eup %2532 }
 0x457   : > { %v2085_v57 = vpop.xlane.xlu1 %2084  ;;  %v1593_v62 = vmul.f32 %v2533_v61, %v2792_v17 }
 0x45a   : > { %v2535_v1 = vpop.eup %2534 }
 0x45b   : > { %v1430_v60 = vpop.permute.xlu1 %1429  ;;  %v1757_v2 = vmul.f32 %v2535_v1, %v2797_v22 }
 0x45c   : > { %2435 = vmatpush3.msra.mxu0 %v1430_v60 }
 0x45d   : > { %2437 = vmatmul.mubr.msk.f32.vlgmr.msra.gmra.mrb[14].mxu0 %vm262_vm2, %v1427_v59  ;;  %2444 = vmatprep.subr.mxu0 %v2548_v0 }
 0x45e   : > { %2445 = vmatpush3.msra.mxu0 %v2815_v34  ;;  %2446 = vmatprep.mubr.msk.f32.mxu0 %vm2549_vm0, %v2548_v0 }
 0x45f   : > { %2454 = vmatprep.subr.mxu0 %v2548_v0 }
 0x461   : > { %2447 = vmatmul.mubr.msk.f32.vlgmr.msra.gmra.mrb[16].mxu0 %vm262_vm2, %v1593_v62 }
 0x462   : > { %2456 = vmatprep.mubr.msk.f32.mxu0 %vm2549_vm0, %v2548_v0 }
 0x478   : > { %v1921_v63 = vpop.xlane.xlu0 %1920 }
 0x479   : > { %2536 = vrcp.f32 %v1921_v63 }
 0x47a   : > { %2538 = vrcp.f32 %v2085_v57 }
 0x47c   : > { %v1760_v3 = vpop.permute.xlu0 %1759 }
 0x47d   : > { %2455 = vmatpush3.msra.mxu0 %v1760_v3 }
 0x47e   : > { %2457 = vmatmul.mubr.msk.f32.vlgmr.msra.gmra.mrb[18].mxu0 %vm262_vm2, %v1757_v2  ;;  %2464 = vmatprep.subr.mxu0 %v2548_v0 }
 0x47f   : > { %2465 = vmatpush3.msra.mxu0 %v2820_v35  ;;  %2466 = vmatprep.mubr.msk.f32.mxu0 %vm2549_vm0, %v2548_v0 }
 0x480   : > { %2474 = vmatprep.subr.mxu0 %v2548_v0  ;;  %v2090_v7 = vpop.permute.xlu0 %2089 }
 0x483   : > { %v2537_v5 = vpop.eup %2536 }
 0x484   : > { %v1923_v6 = vmul.f32 %v2537_v5, %v2810_v32  ;;  %v2539_v8 = vpop.eup %2538 }
 0x485   : > { %v2087_v9 = vmul.f32 %v2539_v8, %v2801_v24 }
 0x486   : > { %2467 = vmatmul.mubr.msk.f32.vlgmr.msra.gmra.mrb[20].mxu0 %vm262_vm2, %v1923_v6 }
 0x487   : > { %2475 = vmatpush3.msra.mxu0 %v2090_v7  ;;  %2476 = vmatprep.mubr.msk.f32.mxu0 %vm2549_vm0, %v2548_v0 }
 0x48a   : > { %2477 = vmatmul.mubr.msk.f32.vlgmr.msra.gmra.mrb[22].mxu0 %vm262_vm2, %v2087_v9 }
 0x510   : > { %v511_v10 = vpop.f32.mrb[2].mxu0 }
 0x511   : > { %2166 = vrot.lane.b32.xlu1 %v511_v10, %s2550_s18  ;;  %v2378_v11 = vpop.f32.mrb[3].mxu0 }
 0x514   : > { %v673_v12 = vpop.f32.mrb[4].mxu0 }
 0x515   : > { %v2388_v13 = vpop.f32.mrb[5].mxu0 }
 0x518   : > { %v841_v14 = vpop.f32.mrb[6].mxu0 }
 0x519   : > { %2170 = vrot.lane.b32.xlu0 %v841_v14, %s2550_s18  ;;  %v2398_v15 = vpop.f32.mrb[7].mxu0 }
 0x51c   : > { %v1003_v16 = vpop.f32.mrb[8].mxu0 }
 0x51d   : > { %v2408_v17 = vpop.f32.mrb[9].mxu0 }
 0x520   : > { %v1171_v18 = vpop.f32.mrb[10].mxu0 }
 0x521   : > { %2174 = vrot.lane.b32.xlu1 %v1171_v18, %s2550_s18  ;;  %v2418_v0 = vpop.f32.mrb[11].mxu0 }
 0x524   : > { %v1333_v19 = vpop.f32.mrb[12].mxu0 }
 0x525   : > { %v2428_v20 = vpop.f32.mrb[13].mxu0 }
 0x530   : > { %v1501_v22 = vpop.f32.mrb[14].mxu0 }
 0x531   : > { %2178 = vrot.lane.b32.xlu0 %v1501_v22, %s2550_s18  ;;  %v2438_v23 = vpop.f32.mrb[15].mxu0 }
 0x534   : > { %v1663_v24 = vpop.f32.mrb[16].mxu0 }
 0x535   : > { %v2448_v25 = vpop.f32.mrb[17].mxu0 }
 0x551   : > { %v1831_v26 = vpop.f32.mrb[18].mxu0 }
 0x552   : > { %2182 = vrot.lane.b32.xlu1 %v1831_v26, %s2550_s18  ;;  %v2458_v27 = vpop.f32.mrb[19].mxu0 }
 0x559   : > { %v1993_v28 = vpop.f32.mrb[20].mxu0 }
 0x55a   : > { %v2468_v30 = vpop.f32.mrb[21].mxu0 }
 0x55d   : > { %v2161_v31 = vpop.f32.mrb[22].mxu0 }
 0x55e   : > { %2186 = vrot.lane.b32.xlu0 %v2161_v31, %s2550_s18  ;;  %v2478_v32 = vpop.f32.mrb[23].mxu0 }
 0x583   : > { %v2167_v33 = vpop.permute.xlu1 %2166 }
 0x584   : > { %v2189_v34 = vsel %vm177_vm1, %v2690_v40, %v2167_v33 }
 0x585   : > { %2195 = vst [vmem:[%s157_s22] sm:$0xff] %v2189_v34 }
 0x58b   : > { %v2171_v35 = vpop.permute.xlu0 %2170 }
 0x58c   : > { %v2190_v29 = vsel %vm177_vm1, %v673_v12, %v2171_v35 }
 0x58d   : > { %2196 = vst [vmem:[%s157_s22 + $0x8] sm:$0xff] %v2190_v29 }
 0x593   : > { %v2175_v37 = vpop.permute.xlu1 %2174 }
 0x594   : > { %v2191_v38 = vsel %vm177_vm1, %v1003_v16, %v2175_v37 }
 0x595   : > { %2197 = vst [vmem:[%s157_s22 + $0x10] sm:$0xff] %v2191_v38 }
 0x5a3   : > { %v2179_v39 = vpop.permute.xlu0 %2178 }
 0x5a4   : > { %v2192_v41 = vsel %vm177_vm1, %v1333_v19, %v2179_v39 }
 0x5a5   : > { %2198 = vst [vmem:[%s157_s22 + $0x18] sm:$0xff] %v2192_v41 }
 0x5c4   : > { %v2183_v4 = vpop.permute.xlu1 %2182 }
 0x5c5   : > { %v2193_v42 = vsel %vm177_vm1, %v1663_v24, %v2183_v4 }
 0x5c6   : > { %2199 = vst [vmem:[%s157_s22 + $0x20] sm:$0xff] %v2193_v42 }
 0x5d0   : > { %v2187_v43 = vpop.permute.xlu0 %2186 }
 0x5d1   : > { %v2194_v40 = vsel %vm177_vm1, %v1993_v28, %v2187_v43 }
 0x5d2   : > { %2200 = vst [vmem:[%s157_s22 + $0x28] sm:$0xff] %v2194_v40 }
 0x5d3 PF: > { %s12_s9 = sadd.s32 1, %s2546_s9  }
 0x5d4   : > { %p9_p4 = scmp.ge.s32.totalorder %s12_s9, 4  }
 0x5d6   :  { %11 = sbr.rel (!%p9_p4) target bundleno = 1 (0x1), region = 61 }

// kernel: custom_bert_forward.14
= control target key start
LH: loop header
LB: loop body
LE: loop exit
PB: predicated region body
PF: predicated region fallthrough
CT: control target
= control target key end

     0   :  { %s2412_s0 = inlined_call_operand.vmem [shape: f32[16,768], index: 0, kind: input, shape index: {}]   ;;  %s2413_s1 = inlined_call_operand.vmem [shape: bf16[768,2304], index: 1, kind: input, shape index: {}]   ;;  %s2414_s2 = inlined_call_operand.vmem [shape: f32[1,2304], index: 2, kind: input, shape index: {}]   ;;  %s2415_s3 = inlined_call_operand.vmem [shape: f32[16,2304], index: 3, kind: output, shape index: {}]  }
   0x1   :  { %2417 = sst [smem:[#allocation7_spill]] %s2412_s0 }
   0x2   :  { %2418 = sst [smem:[#allocation8_spill]] %s2413_s1 }
   0x3   :  { %s1904_s12 = smov 0   ;;  %s1906_s13 = smov 0  }
   0x4   :  { %s1908_s14 = smov 0   ;;  %s1910_s15 = smov 0  }
   0x5   :  { %s1912_s16 = smov 0   ;;  %s1914_s17 = smov 0  }
   0x6   :  { %s1916_s18 = smov 0   ;;  %s1918_s19 = smov 0  }
   0x7   :  { %s1920_s20 = smov 0   ;;  %s1922_s21 = smov 0  }
   0x8   :  { %s1924_s22 = smov 0  }
   0x9 LB: > { %s1443_s23 = sadd.s32 4294967295, %s1881_s22   ;;  %s22_s24 = sadd.s32 1, %s1873_s20  ;;  %s1881_s22 = sphi %s1924_s22, %s13_s22   ;;  %s1877_s21 = sphi %s1922_s21, %s2435_s21   ;;  %s1873_s20 = sphi %s1920_s20, %s2434_s20   ;;  %s1869_s19 = sphi %s1918_s19, %s2433_s19   ;;  %s1865_s18 = sphi %s1916_s18, %s2432_s18   ;;  %s1861_s17 = sphi %s1914_s17, %s2431_s17   ;;  %s1857_s16 = sphi %s1912_s16, %s2430_s16   ;;  %s1853_s15 = sphi %s1910_s15, %s2429_s15   ;;  %s1849_s14 = sphi %s1908_s14, %s2428_s14   ;;  %s1845_s13 = sphi %s1906_s13, %s2427_s13   ;;  %s1841_s12 = sphi %s1904_s12, %s2426_s12  }
   0xa   : > { %p23_p0 = scmp.ge.s32.totalorder %s22_s24, 3  ;;  %s25_s25 = sadd.s32 1, %s1877_s21 }
   0xb   : > { %s32_s26 = sadd.s32 1, %s1861_s17  ;;  %p39_p1 = scmp.ne.s32.totalorder %s1861_s17, %s1857_s16 }
   0xc   : > { %s2437_s24 = smov (%p23_p0, %s22_s24), 0  ;;  %s2439_s25 = smov (!%p23_p0, %s25_s25), %s1877_s21 }
   0xd   : > { %s29_s27 = ssub.s32 %s1873_s20, %s2437_s24  ;;  %p40_p2 = scmp.eq.s32.totalorder %s1881_s22, 0 }
   0xe   : > { %p27_p3 = scmp.ge.s32.totalorder %s2439_s25, 3  ;;  %p30_p4 = scmp.eq.s32.totalorder %s29_s27, 0 }
   0xf   : > { %p1971_p5 = por %p40_p2, %p39_p1  ;;  %s60_s29 = sadd.s32 1, %s1853_s15 }
  0x10   : > { %s2441_s25 = smov (%p27_p3, %s2439_s25), 0  ;;  %p67_p6 = scmp.ne.s32.totalorder %s1853_s15, %s1849_s14 }
  0x11   : > { %2420 = sst [smem:[#allocation6_spill]] %s2441_s25  ;;  %s56_s4 = ssub.s32 %s1877_s21, %s2441_s25 }
  0x12   : > { %s1979_s30 = scalar_select %p30_p4, %s1861_s17, %s32_s26  }
  0x13   : > { %s57_s5 = sor.u32 %s56_s4, %s29_s27  ;;  %p110_p7 = scmp.eq.s32.totalorder %s56_s4, 0 }
  0x14   : > { %p58_p8 = scmp.eq.s32.totalorder %s57_s5, 0  ;;  %p1985_p9 = por %p67_p6, %p40_p2 }
  0x15   : > { %s112_s7 = sadd.s32 1, %s1845_s13  ;;  %p122_p10 = scmp.ne.s32.totalorder %s1845_s13, %s1841_s12 }
  0x16   : > { %s1993_s8 = scalar_select %p58_p8, %s1853_s15, %s60_s29  }
  0x17   : > { %s1996_s9 = scalar_select %p110_p7, %s1845_s13, %s112_s7  }
  0x18   : > { %p123_p11 = scmp.eq.s32.totalorder %s1443_s23, 8  ;;  %p1446_p13 = scmp.ge.s32.totalorder %s1881_s22, 9 }
  0x1a   : > { %p1998_p12 = por %p123_p11, %p122_p10  ;;  %145 = sbr.rel (%p1446_p13) target bundleno = 102 (0x66), region = 16 }
  0x21   : > { %148 = sbr.rel (!%p1971_p5) target bundleno = 45 (0x2d), region = 20  ;;  %s150_s11 = sand.u32 (%p1971_p5), 1, %s1861_s17  }
  0x22   : > { %s1556_s26 = sshll.u32 (%p1971_p5), %s1873_s20, 4  ;;  %s1447_s27 = sshll.u32 (%p1971_p5), %s150_s11, 5 }
  0x23   : > { %s2423_s0 = sld [smem:[#allocation7_spill]] (%p1971_p5)  ;;  %s152_s23 = scalar_lea.vmem (%p1971_p5), [#allocation3], %s1447_s27 }
  0x29   : > { %s155_s5 = scalar_lea.vmem %s2423_s0, %s1556_s26 }
  0x2a   : > { %v168_v0 = vld [vmem:[%s155_s5] sm:$0xff]  ;;  %v170_v1 = vld [vmem:[%s155_s5 + $0x8] sm:$0xff]  ;;  %v172_v2 = vld [vmem:[%s155_s5 + $0x30] sm:$0xff] }
  0x2b   : > { %169 = vst [vmem:[%s152_s23] sm:$0xff] %v168_v0  ;;  %171 = vst [vmem:[%s152_s23 + $0x8] sm:$0xff] %v170_v1  ;;  %v174_v3 = vld [vmem:[%s155_s5 + $0x38] sm:$0xff] }
  0x2c   : > { %173 = vst [vmem:[%s152_s23 + $0x10] sm:$0xff] %v172_v2  ;;  %175 = vst [vmem:[%s152_s23 + $0x18] sm:$0xff] %v174_v3 }
  0x2d PF: > { %181 = sbr.rel (!%p1985_p9) target bundleno = 102 (0x66), region = 43  ;;  %s183_s28 = sand.u32 (%p1985_p9), 1, %s1853_s15  }
  0x2e   : > { %s187_s7 = smul.u32 (%p1985_p9), 6, %s1877_s21  ;;  %s2424_s1 = sld [smem:[#allocation8_spill]] (%p1985_p9) }
  0x2f   : > { %s1558_s11 = smul.u32 (%p1985_p9), 768, %s183_s28 }
  0x30   : > { %s1559_s26 = smul.u32 (%p1985_p9), 576, %s1873_s20 }
  0x31   : > { %s2023_s6 = scalar_lea.vmem (%p1985_p9), [#allocation4], %s1558_s11 }
  0x32   : > { %s189_s29 = sadd.s32 (%p1985_p9), %s1559_s26, %s187_s7 }
  0x33   : > { %s1452_s4 = sshll.u32 (%p1985_p9), %s189_s29, 2 }
  0x34   : > { %s2018_s25 = scalar_lea.vmem %s2424_s1, %s1452_s4 }
  0x35   : > { %v204_v4 = vld [vmem:[%s2018_s25] sm:$0xff]  ;;  %v206_v5 = vld [vmem:[%s2018_s25 + $0x8] sm:$0xff]  ;;  %v208_v6 = vld [vmem:[%s2018_s25 + $0x10] sm:$0xff] }
  0x36   : > { %205 = vst [vmem:[%s2023_s6] sm:$0xff] %v204_v4  ;;  %207 = vst [vmem:[%s2023_s6 + $0x8] sm:$0xff] %v206_v5  ;;  %v210_v7 = vld [vmem:[%s2018_s25 + $0x48] sm:$0xff]  ;;  %v212_v8 = vld [vmem:[%s2018_s25 + $0x50] sm:$0xff] }
  0x37   : > { %209 = vst [vmem:[%s2023_s6 + $0x10] sm:$0xff] %v208_v6  ;;  %v214_v9 = vld [vmem:[%s2018_s25 + $0x58] sm:$0xff]  ;;  %211 = vst [vmem:[%s2023_s6 + $0x18] sm:$0xff] %v210_v7  ;;  %v216_v10 = vld [vmem:[%s2018_s25 + $0x90] sm:$0xff] }
  0x38   : > { %213 = vst [vmem:[%s2023_s6 + $0x20] sm:$0xff] %v212_v8  ;;  %215 = vst [vmem:[%s2023_s6 + $0x28] sm:$0xff] %v214_v9  ;;  %v218_v11 = vld [vmem:[%s2018_s25 + $0x98] sm:$0xff]  ;;  %v220_v12 = vld [vmem:[%s2018_s25 + $0xa0] sm:$0xff] }
  0x39   : > { %217 = vst [vmem:[%s2023_s6 + $0x30] sm:$0xff] %v216_v10  ;;  %219 = vst [vmem:[%s2023_s6 + $0x38] sm:$0xff] %v218_v11  ;;  %v222_v13 = vld [vmem:[%s2018_s25 + $0xd8] sm:$0xff]  ;;  %v224_v14 = vld [vmem:[%s2018_s25 + $0xe0] sm:$0xff] }
  0x3a   : > { %221 = vst [vmem:[%s2023_s6 + $0x40] sm:$0xff] %v220_v12  ;;  %v226_v15 = vld [vmem:[%s2018_s25 + $0xe8] sm:$0xff]  ;;  %223 = vst [vmem:[%s2023_s6 + $0x48] sm:$0xff] %v222_v13  ;;  %v228_v16 = vld [vmem:[%s2018_s25 + $0x120] sm:$0xff] }
  0x3b   : > { %225 = vst [vmem:[%s2023_s6 + $0x50] sm:$0xff] %v224_v14  ;;  %227 = vst [vmem:[%s2023_s6 + $0x58] sm:$0xff] %v226_v15  ;;  %v230_v17 = vld [vmem:[%s2018_s25 + $0x128] sm:$0xff]  ;;  %v232_v18 = vld [vmem:[%s2018_s25 + $0x130] sm:$0xff] }
  0x3c   : > { %229 = vst [vmem:[%s2023_s6 + $0x60] sm:$0xff] %v228_v16  ;;  %231 = vst [vmem:[%s2023_s6 + $0x68] sm:$0xff] %v230_v17  ;;  %v234_v19 = vld [vmem:[%s2018_s25 + $0x168] sm:$0xff]  ;;  %v236_v20 = vld [vmem:[%s2018_s25 + $0x170] sm:$0xff] }
  0x3d   : > { %233 = vst [vmem:[%s2023_s6 + $0x70] sm:$0xff] %v232_v18  ;;  %v238_v21 = vld [vmem:[%s2018_s25 + $0x178] sm:$0xff]  ;;  %235 = vst [vmem:[%s2023_s6 + $0x78] sm:$0xff] %v234_v19  ;;  %v240_v22 = vld [vmem:[%s2018_s25 + $0x1b0] sm:$0xff] }
  0x3e   : > { %237 = vst [vmem:[%s2023_s6 + $0x80] sm:$0xff] %v236_v20  ;;  %239 = vst [vmem:[%s2023_s6 + $0x88] sm:$0xff] %v238_v21  ;;  %v242_v23 = vld [vmem:[%s2018_s25 + $0x1b8] sm:$0xff]  ;;  %v244_v24 = vld [vmem:[%s2018_s25 + $0x1c0] sm:$0xff] }
  0x3f   : > { %241 = vst [vmem:[%s2023_s6 + $0x90] sm:$0xff] %v240_v22  ;;  %243 = vst [vmem:[%s2023_s6 + $0x98] sm:$0xff] %v242_v23  ;;  %v246_v25 = vld [vmem:[%s2018_s25 + $0x1f8] sm:$0xff]  ;;  %v248_v26 = vld [vmem:[%s2018_s25 + $0x200] sm:$0xff] }
  0x40   : > { %245 = vst [vmem:[%s2023_s6 + $0xa0] sm:$0xff] %v244_v24  ;;  %v250_v27 = vld [vmem:[%s2018_s25 + $0x208] sm:$0xff]  ;;  %247 = vst [vmem:[%s2023_s6 + $0xa8] sm:$0xff] %v246_v25  ;;  %v252_v28 = vld [vmem:[%s2018_s25 + $0x240] sm:$0xff] }
  0x41   : > { %249 = vst [vmem:[%s2023_s6 + $0xb0] sm:$0xff] %v248_v26  ;;  %251 = vst [vmem:[%s2023_s6 + $0xb8] sm:$0xff] %v250_v27  ;;  %v254_v29 = vld [vmem:[%s2018_s25 + $0x248] sm:$0xff]  ;;  %v256_v30 = vld [vmem:[%s2018_s25 + $0x250] sm:$0xff] }
  0x42   : > { %253 = vst [vmem:[%s2023_s6 + $0xc0] sm:$0xff] %v252_v28  ;;  %255 = vst [vmem:[%s2023_s6 + $0xc8] sm:$0xff] %v254_v29  ;;  %v258_v31 = vld [vmem:[%s2018_s25 + $0x288] sm:$0xff]  ;;  %v260_v32 = vld [vmem:[%s2018_s25 + $0x290] sm:$0xff] }
  0x43   : > { %257 = vst [vmem:[%s2023_s6 + $0xd0] sm:$0xff] %v256_v30  ;;  %v262_v33 = vld [vmem:[%s2018_s25 + $0x298] sm:$0xff]  ;;  %259 = vst [vmem:[%s2023_s6 + $0xd8] sm:$0xff] %v258_v31  ;;  %v264_v34 = vld [vmem:[%s2018_s25 + $0x2d0] sm:$0xff] }
  0x44   : > { %261 = vst [vmem:[%s2023_s6 + $0xe0] sm:$0xff] %v260_v32  ;;  %263 = vst [vmem:[%s2023_s6 + $0xe8] sm:$0xff] %v262_v33  ;;  %v266_v35 = vld [vmem:[%s2018_s25 + $0x2d8] sm:$0xff]  ;;  %v268_v36 = vld [vmem:[%s2018_s25 + $0x2e0] sm:$0xff] }
  0x45   : > { %265 = vst [vmem:[%s2023_s6 + $0xf0] sm:$0xff] %v264_v34  ;;  %267 = vst [vmem:[%s2023_s6 + $0xf8] sm:$0xff] %v266_v35  ;;  %v270_v37 = vld [vmem:[%s2018_s25 + $0x318] sm:$0xff]  ;;  %v272_v38 = vld [vmem:[%s2018_s25 + $0x320] sm:$0xff] }
  0x46   : > { %269 = vst [vmem:[%s2023_s6 + $0x100] sm:$0xff] %v268_v36  ;;  %v274_v39 = vld [vmem:[%s2018_s25 + $0x328] sm:$0xff]  ;;  %271 = vst [vmem:[%s2023_s6 + $0x108] sm:$0xff] %v270_v37  ;;  %v276_v40 = vld [vmem:[%s2018_s25 + $0x360] sm:$0xff] }
  0x47   : > { %273 = vst [vmem:[%s2023_s6 + $0x110] sm:$0xff] %v272_v38  ;;  %275 = vst [vmem:[%s2023_s6 + $0x118] sm:$0xff] %v274_v39  ;;  %v278_v41 = vld [vmem:[%s2018_s25 + $0x368] sm:$0xff]  ;;  %v280_v42 = vld [vmem:[%s2018_s25 + $0x370] sm:$0xff] }
  0x48   : > { %277 = vst [vmem:[%s2023_s6 + $0x120] sm:$0xff] %v276_v40  ;;  %279 = vst [vmem:[%s2023_s6 + $0x128] sm:$0xff] %v278_v41  ;;  %v282_v43 = vld [vmem:[%s2018_s25 + $0x3a8] sm:$0xff]  ;;  %v284_v44 = vld [vmem:[%s2018_s25 + $0x3b0] sm:$0xff] }
  0x49   : > { %281 = vst [vmem:[%s2023_s6 + $0x130] sm:$0xff] %v280_v42  ;;  %v286_v45 = vld [vmem:[%s2018_s25 + $0x3b8] sm:$0xff]  ;;  %283 = vst [vmem:[%s2023_s6 + $0x138] sm:$0xff] %v282_v43  ;;  %v288_v46 = vld [vmem:[%s2018_s25 + $0x3f0] sm:$0xff] }
  0x4a   : > { %285 = vst [vmem:[%s2023_s6 + $0x140] sm:$0xff] %v284_v44  ;;  %287 = vst [vmem:[%s2023_s6 + $0x148] sm:$0xff] %v286_v45  ;;  %v290_v47 = vld [vmem:[%s2018_s25 + $0x3f8] sm:$0xff]  ;;  %v292_v48 = vld [vmem:[%s2018_s25 + $0x400] sm:$0xff] }
  0x4b   : > { %289 = vst [vmem:[%s2023_s6 + $0x150] sm:$0xff] %v288_v46  ;;  %291 = vst [vmem:[%s2023_s6 + $0x158] sm:$0xff] %v290_v47  ;;  %v294_v49 = vld [vmem:[%s2018_s25 + $0x438] sm:$0xff]  ;;  %v296_v50 = vld [vmem:[%s2018_s25 + $0x440] sm:$0xff] }
  0x4c   : > { %293 = vst [vmem:[%s2023_s6 + $0x160] sm:$0xff] %v292_v48  ;;  %v298_v51 = vld [vmem:[%s2018_s25 + $0x448] sm:$0xff]  ;;  %295 = vst [vmem:[%s2023_s6 + $0x168] sm:$0xff] %v294_v49  ;;  %v300_v52 = vld [vmem:[%s2018_s25 + $0x480] sm:$0xff] }
  0x4d   : > { %297 = vst [vmem:[%s2023_s6 + $0x170] sm:$0xff] %v296_v50  ;;  %299 = vst [vmem:[%s2023_s6 + $0x178] sm:$0xff] %v298_v51  ;;  %v302_v53 = vld [vmem:[%s2018_s25 + $0x488] sm:$0xff]  ;;  %v304_v54 = vld [vmem:[%s2018_s25 + $0x490] sm:$0xff] }
  0x4e   : > { %301 = vst [vmem:[%s2023_s6 + $0x180] sm:$0xff] %v300_v52  ;;  %303 = vst [vmem:[%s2023_s6 + $0x188] sm:$0xff] %v302_v53  ;;  %v306_v55 = vld [vmem:[%s2018_s25 + $0x4c8] sm:$0xff]  ;;  %v308_v56 = vld [vmem:[%s2018_s25 + $0x4d0] sm:$0xff] }
  0x4f   : > { %305 = vst [vmem:[%s2023_s6 + $0x190] sm:$0xff] %v304_v54  ;;  %v310_v57 = vld [vmem:[%s2018_s25 + $0x4d8] sm:$0xff]  ;;  %307 = vst [vmem:[%s2023_s6 + $0x198] sm:$0xff] %v306_v55  ;;  %v312_v58 = vld [vmem:[%s2018_s25 + $0x510] sm:$0xff] }
  0x50   : > { %309 = vst [vmem:[%s2023_s6 + $0x1a0] sm:$0xff] %v308_v56  ;;  %311 = vst [vmem:[%s2023_s6 + $0x1a8] sm:$0xff] %v310_v57  ;;  %v314_v59 = vld [vmem:[%s2018_s25 + $0x518] sm:$0xff]  ;;  %v316_v60 = vld [vmem:[%s2018_s25 + $0x520] sm:$0xff] }
  0x51   : > { %313 = vst [vmem:[%s2023_s6 + $0x1b0] sm:$0xff] %v312_v58  ;;  %315 = vst [vmem:[%s2023_s6 + $0x1b8] sm:$0xff] %v314_v59  ;;  %v318_v61 = vld [vmem:[%s2018_s25 + $0x558] sm:$0xff]  ;;  %v320_v62 = vld [vmem:[%s2018_s25 + $0x560] sm:$0xff] }
  0x52   : > { %317 = vst [vmem:[%s2023_s6 + $0x1c0] sm:$0xff] %v316_v60  ;;  %v322_v63 = vld [vmem:[%s2018_s25 + $0x568] sm:$0xff]  ;;  %319 = vst [vmem:[%s2023_s6 + $0x1c8] sm:$0xff] %v318_v61  ;;  %v324_v0 = vld [vmem:[%s2018_s25 + $0x5a0] sm:$0xff] }
  0x53   : > { %321 = vst [vmem:[%s2023_s6 + $0x1d0] sm:$0xff] %v320_v62  ;;  %323 = vst [vmem:[%s2023_s6 + $0x1d8] sm:$0xff] %v322_v63  ;;  %v326_v1 = vld [vmem:[%s2018_s25 + $0x5a8] sm:$0xff]  ;;  %v328_v2 = vld [vmem:[%s2018_s25 + $0x5b0] sm:$0xff] }
  0x54   : > { %325 = vst [vmem:[%s2023_s6 + $0x1e0] sm:$0xff] %v324_v0  ;;  %327 = vst [vmem:[%s2023_s6 + $0x1e8] sm:$0xff] %v326_v1  ;;  %v330_v3 = vld [vmem:[%s2018_s25 + $0x5e8] sm:$0xff]  ;;  %v332_v4 = vld [vmem:[%s2018_s25 + $0x5f0] sm:$0xff] }
  0x55   : > { %329 = vst [vmem:[%s2023_s6 + $0x1f0] sm:$0xff] %v328_v2  ;;  %v334_v5 = vld [vmem:[%s2018_s25 + $0x5f8] sm:$0xff]  ;;  %331 = vst [vmem:[%s2023_s6 + $0x1f8] sm:$0xff] %v330_v3  ;;  %v336_v6 = vld [vmem:[%s2018_s25 + $0x630] sm:$0xff] }
  0x56   : > { %333 = vst [vmem:[%s2023_s6 + $0x200] sm:$0xff] %v332_v4  ;;  %335 = vst [vmem:[%s2023_s6 + $0x208] sm:$0xff] %v334_v5  ;;  %v338_v7 = vld [vmem:[%s2018_s25 + $0x638] sm:$0xff]  ;;  %v340_v8 = vld [vmem:[%s2018_s25 + $0x640] sm:$0xff] }
  0x57   : > { %337 = vst [vmem:[%s2023_s6 + $0x210] sm:$0xff] %v336_v6  ;;  %339 = vst [vmem:[%s2023_s6 + $0x218] sm:$0xff] %v338_v7  ;;  %v342_v9 = vld [vmem:[%s2018_s25 + $0x678] sm:$0xff]  ;;  %v344_v10 = vld [vmem:[%s2018_s25 + $0x680] sm:$0xff] }
  0x58   : > { %341 = vst [vmem:[%s2023_s6 + $0x220] sm:$0xff] %v340_v8  ;;  %v346_v11 = vld [vmem:[%s2018_s25 + $0x688] sm:$0xff]  ;;  %343 = vst [vmem:[%s2023_s6 + $0x228] sm:$0xff] %v342_v9  ;;  %v348_v12 = vld [vmem:[%s2018_s25 + $0x6c0] sm:$0xff] }
  0x59   : > { %345 = vst [vmem:[%s2023_s6 + $0x230] sm:$0xff] %v344_v10  ;;  %347 = vst [vmem:[%s2023_s6 + $0x238] sm:$0xff] %v346_v11  ;;  %v350_v13 = vld [vmem:[%s2018_s25 + $0x6c8] sm:$0xff]  ;;  %v352_v14 = vld [vmem:[%s2018_s25 + $0x6d0] sm:$0xff] }
  0x5a   : > { %349 = vst [vmem:[%s2023_s6 + $0x240] sm:$0xff] %v348_v12  ;;  %351 = vst [vmem:[%s2023_s6 + $0x248] sm:$0xff] %v350_v13  ;;  %v354_v15 = vld [vmem:[%s2018_s25 + $0x708] sm:$0xff]  ;;  %v356_v16 = vld [vmem:[%s2018_s25 + $0x710] sm:$0xff] }
  0x5b   : > { %353 = vst [vmem:[%s2023_s6 + $0x250] sm:$0xff] %v352_v14  ;;  %v358_v17 = vld [vmem:[%s2018_s25 + $0x718] sm:$0xff]  ;;  %355 = vst [vmem:[%s2023_s6 + $0x258] sm:$0xff] %v354_v15  ;;  %v360_v18 = vld [vmem:[%s2018_s25 + $0x750] sm:$0xff] }
  0x5c   : > { %357 = vst [vmem:[%s2023_s6 + $0x260] sm:$0xff] %v356_v16  ;;  %359 = vst [vmem:[%s2023_s6 + $0x268] sm:$0xff] %v358_v17  ;;  %v362_v19 = vld [vmem:[%s2018_s25 + $0x758] sm:$0xff]  ;;  %v364_v20 = vld [vmem:[%s2018_s25 + $0x760] sm:$0xff] }
  0x5d   : > { %361 = vst [vmem:[%s2023_s6 + $0x270] sm:$0xff] %v360_v18  ;;  %363 = vst [vmem:[%s2023_s6 + $0x278] sm:$0xff] %v362_v19  ;;  %v366_v21 = vld [vmem:[%s2018_s25 + $0x798] sm:$0xff]  ;;  %v368_v22 = vld [vmem:[%s2018_s25 + $0x7a0] sm:$0xff] }
  0x5e   : > { %365 = vst [vmem:[%s2023_s6 + $0x280] sm:$0xff] %v364_v20  ;;  %v370_v23 = vld [vmem:[%s2018_s25 + $0x7a8] sm:$0xff]  ;;  %367 = vst [vmem:[%s2023_s6 + $0x288] sm:$0xff] %v366_v21  ;;  %v372_v24 = vld [vmem:[%s2018_s25 + $0x7e0] sm:$0xff] }
  0x5f   : > { %369 = vst [vmem:[%s2023_s6 + $0x290] sm:$0xff] %v368_v22  ;;  %371 = vst [vmem:[%s2023_s6 + $0x298] sm:$0xff] %v370_v23  ;;  %v374_v25 = vld [vmem:[%s2018_s25 + $0x7e8] sm:$0xff]  ;;  %v376_v26 = vld [vmem:[%s2018_s25 + $0x7f0] sm:$0xff] }
  0x60   : > { %373 = vst [vmem:[%s2023_s6 + $0x2a0] sm:$0xff] %v372_v24  ;;  %375 = vst [vmem:[%s2023_s6 + $0x2a8] sm:$0xff] %v374_v25  ;;  %v378_v27 = vld [vmem:[%s2018_s25 + $0x828] sm:$0xff]  ;;  %v380_v28 = vld [vmem:[%s2018_s25 + $0x830] sm:$0xff] }
  0x61   : > { %377 = vst [vmem:[%s2023_s6 + $0x2b0] sm:$0xff] %v376_v26  ;;  %v382_v29 = vld [vmem:[%s2018_s25 + $0x838] sm:$0xff]  ;;  %379 = vst [vmem:[%s2023_s6 + $0x2b8] sm:$0xff] %v378_v27  ;;  %v384_v30 = vld [vmem:[%s2018_s25 + $0x870] sm:$0xff] }
  0x62   : > { %381 = vst [vmem:[%s2023_s6 + $0x2c0] sm:$0xff] %v380_v28  ;;  %383 = vst [vmem:[%s2023_s6 + $0x2c8] sm:$0xff] %v382_v29  ;;  %v386_v31 = vld [vmem:[%s2018_s25 + $0x878] sm:$0xff]  ;;  %v388_v32 = vld [vmem:[%s2018_s25 + $0x880] sm:$0xff] }
  0x63   : > { %385 = vst [vmem:[%s2023_s6 + $0x2d0] sm:$0xff] %v384_v30  ;;  %387 = vst [vmem:[%s2023_s6 + $0x2d8] sm:$0xff] %v386_v31  ;;  %v390_v33 = vld [vmem:[%s2018_s25 + $0x8b8] sm:$0xff]  ;;  %v392_v34 = vld [vmem:[%s2018_s25 + $0x8c0] sm:$0xff] }
  0x64   : > { %389 = vst [vmem:[%s2023_s6 + $0x2e0] sm:$0xff] %v388_v32  ;;  %v394_v35 = vld [vmem:[%s2018_s25 + $0x8c8] sm:$0xff]  ;;  %391 = vst [vmem:[%s2023_s6 + $0x2e8] sm:$0xff] %v390_v33 }
  0x65   : > { %393 = vst [vmem:[%s2023_s6 + $0x2f0] sm:$0xff] %v392_v34  ;;  %395 = vst [vmem:[%s2023_s6 + $0x2f8] sm:$0xff] %v394_v35 }
  0x66 PF: > { %p1453_p0 = scmp.ge.s32.totalorder %s1881_s22, 1  ;;  %p408_p1 = scmp.lt.s32.totalorder %s1881_s22, 10 }
  0x68   : > { %p409_p2 = pnand %p1453_p0, %p408_p1 }
  0x69   : > { %s415_s0 = sand.u32 (!%p409_p2), 1, %s1857_s16   ;;  %s422_s5 = sand.u32 (!%p409_p2), 1, %s1849_s14  }
  0x6a   : > { %412 = sbr.rel (%p409_p2) target bundleno = 488 (0x1e8), region = 70  ;;  %s1454_s23 = sshll.u32 (!%p409_p2), %s415_s0, 5 }
  0x6b   : > { %s1560_s28 = smul.u32 (!%p409_p2), 768, %s422_s5  ;;  %s449_s25 = sand.u32 (!%p409_p2), 1, %s1841_s12  }
  0x6c   : > { %s1561_s7 = smul.u32 (!%p409_p2), 96, %s449_s25  ;;  %s2226_s27 = scalar_lea.vmem (!%p409_p2), [#allocation3], %s1454_s23 }
  0x6d   : > { %s455_s11 = smul.u32 (!%p409_p2), 6, %s1869_s19  ;;  %s2228_s6 = scalar_lea.vmem (!%p409_p2), [#allocation4], %s1560_s28 }
  0x6e   : > { %s2230_s1 = scalar_lea.vmem (!%p409_p2), [#allocation5], %s1561_s7  ;;  %p1455_p4 = scmp.ne.s32.totalorder (!%p409_p2), %s1865_s18, 0 }
  0x6f   : > { %p456_p3 = scmp.lt.s32.totalorder (!%p409_p2), %s455_s11, 17 }
  0x71   : > { %s2443_s11 = smov (!%p456_p3, %s455_s11), 17  ;;  %464 = sbr.rel (%p1455_p4) target bundleno = 121 (0x79), region = 82 }
  0x72   : > { %s458_s4 = scalar_lea.vmem %s2414_s2, %s2443_s11  ;;  %v1883_v36 = vmov (!%p1455_p4), 0.0  }
  0x73   : > { %465 = vst [vmem:[#allocation2] sm:$0xff] (!%p1455_p4), %v1883_v36  ;;  %466 = vst [vmem:[#allocation2 + $0x8] sm:$0xff] (!%p1455_p4), %v1883_v36 }
  0x74   : > { %467 = vst [vmem:[#allocation2 + $0x10] sm:$0xff] (!%p1455_p4), %v1883_v36  ;;  %468 = vst [vmem:[#allocation2 + $0x18] sm:$0xff] (!%p1455_p4), %v1883_v36 }
  0x75   : > { %469 = vst [vmem:[#allocation2 + $0x20] sm:$0xff] (!%p1455_p4), %v1883_v36  ;;  %470 = vst [vmem:[#allocation2 + $0x28] sm:$0xff] (!%p1455_p4), %v1883_v36 }
  0x76   : > { %471 = vst [vmem:[#allocation2 + $0x30] sm:$0xff] (!%p1455_p4), %v1883_v36  ;;  %472 = vst [vmem:[#allocation2 + $0x38] sm:$0xff] (!%p1455_p4), %v1883_v36 }
  0x77   : > { %473 = vst [vmem:[#allocation2 + $0x40] sm:$0xff] (!%p1455_p4), %v1883_v36  ;;  %474 = vst [vmem:[#allocation2 + $0x48] sm:$0xff] (!%p1455_p4), %v1883_v36 }
  0x78   : > { %475 = vst [vmem:[#allocation2 + $0x50] sm:$0xff] %v1883_v36  ;;  %476 = vst [vmem:[#allocation2 + $0x58] sm:$0xff] %v1883_v36 }
  0x79 PF: > { %v1651_v37 = vld [vmem:[%s2228_s6 + $0x4] ss:$24 sps:$4 sm:$0xff]   ;;  %v1653_v38 = vld [vmem:[%s2228_s6] ss:$24 sps:$4 sm:$0xff]   ;;  %v1654_v39 = vld [vmem:[%s2228_s6 + $0x34] ss:$24 sps:$4 sm:$0xff]  }
  0x7a   : > { %1071 = vmatprep.subr.bf16.mxu0 %v1651_v37  ;;  %v1656_v40 = vld [vmem:[%s2228_s6 + $0x30] ss:$24 sps:$4 sm:$0xff]   ;;  %v1657_v41 = vld [vmem:[%s2228_s6 + $0x64] ss:$24 sps:$4 sm:$0xff]   ;;  %v1659_v42 = vld [vmem:[%s2228_s6 + $0x60] ss:$24 sps:$4 sm:$0xff]  }
  0x7b   : > { %1072 = vmatpush1.bf16.msra.mxu0 %v1653_v38  ;;  %v1660_v43 = vld [vmem:[%s2228_s6 + $0x94] ss:$24 sps:$4 sm:$0xff]   ;;  %v1662_v44 = vld [vmem:[%s2228_s6 + $0x90] ss:$24 sps:$4 sm:$0xff]   ;;  %v1663_v45 = vld [vmem:[%s2228_s6 + $0xc4] ss:$24 sps:$4 sm:$0xff]  }
  0x7c   : > { %1073 = vmatprep.subr.bf16.mxu0 %v1654_v39  ;;  %v1665_v46 = vld [vmem:[%s2228_s6 + $0xc0] ss:$24 sps:$4 sm:$0xff]   ;;  %v1666_v47 = vld [vmem:[%s2228_s6 + $0xf4] ss:$24 sps:$4 sm:$0xff]   ;;  %v1668_v48 = vld [vmem:[%s2228_s6 + $0xf0] ss:$24 sps:$4 sm:$0xff]  }
  0x7d   : > { %v1669_v49 = vld [vmem:[%s2228_s6 + $0x124] ss:$24 sps:$4 sm:$0xff]   ;;  %v1701_v51 = vld [vmem:[%s2228_s6 + $0x8] ss:$24 sps:$4 sm:$0xff]   ;;  %v1672_v55 = vld [vmem:[%s2228_s6 + $0x154] ss:$24 sps:$4 sm:$0xff]  }
  0x7e   : > { %v1699_v50 = vld [vmem:[%s2228_s6 + $0xc] ss:$24 sps:$4 sm:$0xff]   ;;  %v1671_v53 = vld [vmem:[%s2228_s6 + $0x120] ss:$24 sps:$4 sm:$0xff]   ;;  %v1705_v57 = vld [vmem:[%s2228_s6 + $0x3c] ss:$24 sps:$4 sm:$0xff]  }
  0x7f   : > { %1074 = vmatpush1.bf16.msra.mxu0 %v1656_v40  ;;  %v490_v52 = vld [vmem:[%s2226_s27 + $0x8] sm:$0xff]  ;;  %v492_v54 = vld [vmem:[%s2226_s27 + $0x18] sm:$0xff]  ;;  %1114 = vmatprep.subr.bf16.mxu1 %v1699_v50  ;;  %v489_v29 = vld [vmem:[%s2226_s27] sm:$0xff]  ;;  %p1552_p5 = scmp.ne.s32.totalorder %s1865_s18, 2 }
  0x80   : > { %1075 = vmatprep.subr.bf16.mxu0 %v1657_v41  ;;  %v2252_v56 = vpack.c.bf16 %v492_v54, %v490_v52  ;;  %1115 = vmatpush1.bf16.msra.mxu1 %v1701_v51  ;;  %v1707_v58 = vld [vmem:[%s2228_s6 + $0x38] ss:$24 sps:$4 sm:$0xff]   ;;  %v1675_v60 = vld [vmem:[%s2228_s6 + $0x184] ss:$24 sps:$4 sm:$0xff]   ;;  %v1713_v62 = vld [vmem:[%s2228_s6 + $0x68] ss:$24 sps:$4 sm:$0xff]  }
  0x81   : > { %v1674_v59 = vld [vmem:[%s2228_s6 + $0x150] ss:$24 sps:$4 sm:$0xff]   ;;  %1116 = vmatprep.subr.bf16.mxu1 %v1705_v57  ;;  %v1711_v61 = vld [vmem:[%s2228_s6 + $0x6c] ss:$24 sps:$4 sm:$0xff]   ;;  %v1677_v63 = vld [vmem:[%s2228_s6 + $0x180] ss:$24 sps:$4 sm:$0xff]  }
  0x82   : > { %1103 = vmatprep.mubr.bf16.mxu0 %v2252_v56  ;;  %1146 = vmatprep.mubr.bf16.mxu1 %v2252_v56  ;;  %v1717_v0 = vld [vmem:[%s2228_s6 + $0x9c] ss:$24 sps:$4 sm:$0xff]   ;;  %v1719_v2 = vld [vmem:[%s2228_s6 + $0x98] ss:$24 sps:$4 sm:$0xff]   ;;  %v1723_v3 = vld [vmem:[%s2228_s6 + $0xcc] ss:$24 sps:$4 sm:$0xff]  }
  0x83   : > { %1076 = vmatpush1.bf16.msra.mxu0 %v1659_v42  ;;  %v1678_v1 = vld [vmem:[%s2228_s6 + $0x1b4] ss:$24 sps:$4 sm:$0xff]   ;;  %v1680_v4 = vld [vmem:[%s2228_s6 + $0x1b0] ss:$24 sps:$4 sm:$0xff]   ;;  %v1681_v5 = vld [vmem:[%s2228_s6 + $0x1e4] ss:$24 sps:$4 sm:$0xff]  }
  0x84   : > { %1077 = vmatprep.subr.bf16.mxu0 %v1660_v43  ;;  %1117 = vmatpush1.bf16.msra.mxu1 %v1707_v58  ;;  %v1725_v6 = vld [vmem:[%s2228_s6 + $0xc8] ss:$24 sps:$4 sm:$0xff]   ;;  %v1729_v7 = vld [vmem:[%s2228_s6 + $0xfc] ss:$24 sps:$4 sm:$0xff]   ;;  %v1731_v10 = vld [vmem:[%s2228_s6 + $0xf8] ss:$24 sps:$4 sm:$0xff]  }
  0x85   : > { %1118 = vmatprep.subr.bf16.mxu1 %v1711_v61  ;;  %v1683_v8 = vld [vmem:[%s2228_s6 + $0x1e0] ss:$24 sps:$4 sm:$0xff]   ;;  %v1684_v9 = vld [vmem:[%s2228_s6 + $0x214] ss:$24 sps:$4 sm:$0xff]   ;;  %v1686_v12 = vld [vmem:[%s2228_s6 + $0x210] ss:$24 sps:$4 sm:$0xff]  }
  0x86   : > { %v1735_v11 = vld [vmem:[%s2228_s6 + $0x12c] ss:$24 sps:$4 sm:$0xff]   ;;  %v1737_v14 = vld [vmem:[%s2228_s6 + $0x128] ss:$24 sps:$4 sm:$0xff]   ;;  %v1741_v15 = vld [vmem:[%s2228_s6 + $0x15c] ss:$24 sps:$4 sm:$0xff]  }
  0x87   : > { %1078 = vmatpush1.bf16.msra.mxu0 %v1662_v44  ;;  %v1687_v13 = vld [vmem:[%s2228_s6 + $0x244] ss:$24 sps:$4 sm:$0xff]   ;;  %v1689_v16 = vld [vmem:[%s2228_s6 + $0x240] ss:$24 sps:$4 sm:$0xff]   ;;  %v1690_v17 = vld [vmem:[%s2228_s6 + $0x274] ss:$24 sps:$4 sm:$0xff]  }
  0x88   : > { %1079 = vmatprep.subr.bf16.mxu0 %v1663_v45  ;;  %1119 = vmatpush1.bf16.msra.mxu1 %v1713_v62  ;;  %v1743_v18 = vld [vmem:[%s2228_s6 + $0x158] ss:$24 sps:$4 sm:$0xff]   ;;  %v1747_v19 = vld [vmem:[%s2228_s6 + $0x18c] ss:$24 sps:$4 sm:$0xff]   ;;  %v1749_v22 = vld [vmem:[%s2228_s6 + $0x188] ss:$24 sps:$4 sm:$0xff]  }
  0x89   : > { %1120 = vmatprep.subr.bf16.mxu1 %v1717_v0  ;;  %v1692_v20 = vld [vmem:[%s2228_s6 + $0x270] ss:$24 sps:$4 sm:$0xff]   ;;  %v1693_v21 = vld [vmem:[%s2228_s6 + $0x2a4] ss:$24 sps:$4 sm:$0xff]   ;;  %v1695_v24 = vld [vmem:[%s2228_s6 + $0x2a0] ss:$24 sps:$4 sm:$0xff]  }
  0x8a   : > { %v1753_v23 = vld [vmem:[%s2228_s6 + $0x1bc] ss:$24 sps:$4 sm:$0xff]   ;;  %v1755_v26 = vld [vmem:[%s2228_s6 + $0x1b8] ss:$24 sps:$4 sm:$0xff]   ;;  %v1759_v28 = vld [vmem:[%s2228_s6 + $0x1ec] ss:$24 sps:$4 sm:$0xff]  }
  0x8b   : > { %1080 = vmatpush1.bf16.msra.mxu0 %v1665_v46  ;;  %v1696_v25 = vld [vmem:[%s2228_s6 + $0x2d4] ss:$24 sps:$4 sm:$0xff]   ;;  %v1698_v27 = vld [vmem:[%s2228_s6 + $0x2d0] ss:$24 sps:$4 sm:$0xff]   ;;  %v1710_v36 = vld [vmem:[%s2228_s6 + $0x44] ss:$24 sps:$4 sm:$0xff]  }
  0x8c   : > { %1081 = vmatprep.subr.bf16.mxu0 %v1666_v47  ;;  %1121 = vmatpush1.bf16.msra.mxu1 %v1719_v2  ;;  %v491_v30 = vld [vmem:[%s2226_s27 + $0x10] sm:$0xff]  ;;  %v1761_v32 = vld [vmem:[%s2228_s6 + $0x1e8] ss:$24 sps:$4 sm:$0xff]   ;;  %v1771_v38 = vld [vmem:[%s2228_s6 + $0x24c] ss:$24 sps:$4 sm:$0xff]  }
  0x8d   : > { %1122 = vmatprep.subr.bf16.mxu1 %v1723_v3  ;;  %v1704_v31 = vld [vmem:[%s2228_s6 + $0x14] ss:$24 sps:$4 sm:$0xff]   ;;  %v2296_v33 = vpack.c.bf16 %v491_v30, %v489_v29  ;;  %v1702_v35 = vld [vmem:[%s2228_s6 + $0x10] ss:$24 sps:$4 sm:$0xff]   ;;  %v1708_v39 = vld [vmem:[%s2228_s6 + $0x40] ss:$24 sps:$4 sm:$0xff]  }
  0x8e   : > { %v1765_v34 = vld [vmem:[%s2228_s6 + $0x21c] ss:$24 sps:$4 sm:$0xff]   ;;  %v1767_v37 = vld [vmem:[%s2228_s6 + $0x218] ss:$24 sps:$4 sm:$0xff]   ;;  %v1773_v41 = vld [vmem:[%s2228_s6 + $0x248] ss:$24 sps:$4 sm:$0xff]  }
  0x8f   : > { %1082 = vmatpush1.bf16.msra.mxu0 %v1668_v48  ;;  %v1716_v40 = vld [vmem:[%s2228_s6 + $0x74] ss:$24 sps:$4 sm:$0xff]   ;;  %v1714_v43 = vld [vmem:[%s2228_s6 + $0x70] ss:$24 sps:$4 sm:$0xff]   ;;  %v1722_v44 = vld [vmem:[%s2228_s6 + $0xa4] ss:$24 sps:$4 sm:$0xff]  }
  0x90   : > { %1083 = vmatprep.subr.bf16.mxu0 %v1669_v49  ;;  %1123 = vmatpush1.bf16.msra.mxu1 %v1725_v6  ;;  %v1777_v42 = vld [vmem:[%s2228_s6 + $0x27c] ss:$24 sps:$4 sm:$0xff]   ;;  %v1779_v45 = vld [vmem:[%s2228_s6 + $0x278] ss:$24 sps:$4 sm:$0xff]   ;;  %v1783_v46 = vld [vmem:[%s2228_s6 + $0x2ac] ss:$24 sps:$4 sm:$0xff]  }
  0x91   : > { %1124 = vmatprep.subr.bf16.mxu1 %v1729_v7  ;;  %v1720_v47 = vld [vmem:[%s2228_s6 + $0xa0] ss:$24 sps:$4 sm:$0xff]   ;;  %v1728_v48 = vld [vmem:[%s2228_s6 + $0xd4] ss:$24 sps:$4 sm:$0xff]   ;;  %v1726_v51 = vld [vmem:[%s2228_s6 + $0xd0] ss:$24 sps:$4 sm:$0xff]  }
  0x92   : > { %v1785_v49 = vld [vmem:[%s2228_s6 + $0x2a8] ss:$24 sps:$4 sm:$0xff]   ;;  %v1789_v50 = vld [vmem:[%s2228_s6 + $0x2dc] ss:$24 sps:$4 sm:$0xff]  }
  0x93   : > { %1084 = vmatpush1.bf16.msra.mxu0 %v1671_v53  ;;  %v1734_v52 = vld [vmem:[%s2228_s6 + $0x104] ss:$24 sps:$4 sm:$0xff]   ;;  %v1791_v53 = vld [vmem:[%s2228_s6 + $0x2d8] ss:$24 sps:$4 sm:$0xff]   ;;  %v1776_v3 = vld [vmem:[%s2228_s6 + $0x254] ss:$24 sps:$4 sm:$0xff]  }
  0x94   : > { %1085 = vmatprep.subr.bf16.mxu0 %v1672_v55  ;;  %1125 = vmatpush1.bf16.msra.mxu1 %v1731_v10  ;;  %v1732_v54 = vld [vmem:[%s2228_s6 + $0x100] ss:$24 sps:$4 sm:$0xff]   ;;  %v1740_v55 = vld [vmem:[%s2228_s6 + $0x134] ss:$24 sps:$4 sm:$0xff]   ;;  %v1746_v57 = vld [vmem:[%s2228_s6 + $0x164] ss:$24 sps:$4 sm:$0xff]  }
  0x95   : > { %1126 = vmatprep.subr.bf16.mxu1 %v1735_v11  ;;  %v1744_v58 = vld [vmem:[%s2228_s6 + $0x160] ss:$24 sps:$4 sm:$0xff]   ;;  %v1758_v61 = vld [vmem:[%s2228_s6 + $0x1c4] ss:$24 sps:$4 sm:$0xff]   ;;  %v1762_v0 = vld [vmem:[%s2228_s6 + $0x1f0] ss:$24 sps:$4 sm:$0xff]  }
  0x96   : > { %v1756_v62 = vld [vmem:[%s2228_s6 + $0x1c0] ss:$24 sps:$4 sm:$0xff]   ;;  %v1788_v7 = vld [vmem:[%s2228_s6 + $0x2b4] ss:$24 sps:$4 sm:$0xff]  }
  0x97   : > { %1086 = vmatpush1.bf16.msra.mxu0 %v1674_v59  ;;  %v1752_v59 = vld [vmem:[%s2228_s6 + $0x194] ss:$24 sps:$4 sm:$0xff]   ;;  %v1768_v2 = vld [vmem:[%s2228_s6 + $0x220] ss:$24 sps:$4 sm:$0xff]  }
  0x98   : > { %1087 = vmatprep.subr.bf16.mxu0 %v1675_v60  ;;  %1127 = vmatpush1.bf16.msra.mxu1 %v1737_v14  ;;  %v1750_v60 = vld [vmem:[%s2228_s6 + $0x190] ss:$24 sps:$4 sm:$0xff]   ;;  %v1780_v6 = vld [vmem:[%s2228_s6 + $0x280] ss:$24 sps:$4 sm:$0xff]  }
  0x99   : > { %1128 = vmatprep.subr.bf16.mxu1 %v1741_v15  ;;  %v1792_v10 = vld [vmem:[%s2228_s6 + $0x2e0] ss:$24 sps:$4 sm:$0xff]   ;;  %v483_v14 = vld [vmem:[#allocation2 + $0x30] sm:$0xff]  ;;  %v486_v29 = vld [vmem:[#allocation2 + $0x48] sm:$0xff] }
  0x9a   : > { %v477_v11 = vld [vmem:[#allocation2] sm:$0xff] }
  0x9b   : > { %1088 = vmatpush1.bf16.msra.mxu0 %v1677_v63  ;;  %v1764_v63 = vld [vmem:[%s2228_s6 + $0x1f4] ss:$24 sps:$4 sm:$0xff]  }
  0x9c   : > { %1089 = vmatprep.subr.bf16.mxu0 %v1678_v1  ;;  %1129 = vmatpush1.bf16.msra.mxu1 %v1743_v18  ;;  %v1770_v1 = vld [vmem:[%s2228_s6 + $0x224] ss:$24 sps:$4 sm:$0xff]  }
  0x9d   : > { %1130 = vmatprep.subr.bf16.mxu1 %v1747_v19 }
  0x9f   : > { %1090 = vmatpush1.bf16.msra.mxu0 %v1680_v4  ;;  %v1774_v4 = vld [vmem:[%s2228_s6 + $0x250] ss:$24 sps:$4 sm:$0xff]  }
  0xa0   : > { %1091 = vmatprep.subr.bf16.mxu0 %v1681_v5  ;;  %1131 = vmatpush1.bf16.msra.mxu1 %v1749_v22  ;;  %v1782_v5 = vld [vmem:[%s2228_s6 + $0x284] ss:$24 sps:$4 sm:$0xff]  }
  0xa1   : > { %1132 = vmatprep.subr.bf16.mxu1 %v1753_v23  ;;  %v479_v23 = vld [vmem:[#allocation2 + $0x10] sm:$0xff] }
  0xa3   : > { %1092 = vmatpush1.bf16.msra.mxu0 %v1683_v8  ;;  %v1786_v8 = vld [vmem:[%s2228_s6 + $0x2b0] ss:$24 sps:$4 sm:$0xff]  }
  0xa4   : > { %1093 = vmatprep.subr.bf16.mxu0 %v1684_v9  ;;  %1133 = vmatpush1.bf16.msra.mxu1 %v1755_v26  ;;  %v1794_v9 = vld [vmem:[%s2228_s6 + $0x2e4] ss:$24 sps:$4 sm:$0xff]  }
  0xa5   : > { %1134 = vmatprep.subr.bf16.mxu1 %v1759_v28  ;;  %v485_v26 = vld [vmem:[#allocation2 + $0x40] sm:$0xff] }
  0xa7   : > { %1094 = vmatpush1.bf16.msra.mxu0 %v1686_v12  ;;  %v478_v12 = vld [vmem:[#allocation2 + $0x8] sm:$0xff] }
  0xa8   : > { %1095 = vmatprep.subr.bf16.mxu0 %v1687_v13  ;;  %1135 = vmatpush1.bf16.msra.mxu1 %v1761_v32 }
  0xa9   : > { %1136 = vmatprep.subr.bf16.mxu1 %v1765_v34 }
  0xab   : > { %1096 = vmatpush1.bf16.msra.mxu0 %v1689_v16 }
  0xac   : > { %1097 = vmatprep.subr.bf16.mxu0 %v1690_v17  ;;  %1137 = vmatpush1.bf16.msra.mxu1 %v1767_v37  ;;  %v484_v17 = vld [vmem:[#allocation2 + $0x38] sm:$0xff] }
  0xad   : > { %1138 = vmatprep.subr.bf16.mxu1 %v1771_v38  ;;  %v487_v38 = vld [vmem:[#allocation2 + $0x50] sm:$0xff] }
  0xaf   : > { %1098 = vmatpush1.bf16.msra.mxu0 %v1692_v20 }
  0xb0   : > { %1099 = vmatprep.subr.bf16.mxu0 %v1693_v21  ;;  %1139 = vmatpush1.bf16.msra.mxu1 %v1773_v41  ;;  %v488_v41 = vld [vmem:[#allocation2 + $0x58] sm:$0xff] }
  0xb1   : > { %1140 = vmatprep.subr.bf16.mxu1 %v1777_v42 }
  0xb3   : > { %1100 = vmatpush1.bf16.msra.mxu0 %v1695_v24  ;;  %v480_v24 = vld [vmem:[#allocation2 + $0x18] sm:$0xff] }
  0xb4   : > { %1101 = vmatprep.subr.bf16.mxu0 %v1696_v25  ;;  %1141 = vmatpush1.bf16.msra.mxu1 %v1779_v45 }
  0xb5   : > { %1142 = vmatprep.subr.bf16.mxu1 %v1783_v46 }
  0xb7   : > { %1102 = vmatpush1.bf16.msra.mxu0 %v1698_v27 }
  0xb8   : > { %1157 = vmatprep.subr.bf16.mxu0 %v1704_v31  ;;  %1143 = vmatpush1.bf16.msra.mxu1 %v1785_v49 }
  0xb9   : > { %1144 = vmatprep.subr.bf16.mxu1 %v1789_v50  ;;  %v1240_v50 = vld [vmem:[%s458_s4] sm:$0x3f] (!%p1552_p5) }
  0xba   : > { %1104 = vmatmul.mubr.bf16.vlgmr.msra.gmra.mrb[0].mxu0 %v2296_v33 }
  0xbb   : > { %1158 = vmatpush1.bf16.msra.mxu0 %v1702_v35  ;;  %1189 = vmatprep.mubr.bf16.mxu0 %v2252_v56  ;;  %v1738_v56 = vld [vmem:[%s2228_s6 + $0x130] ss:$24 sps:$4 sm:$0xff]   ;;  %v481_v35 = vld [vmem:[#allocation2 + $0x20] sm:$0xff] }
  0xbc   : > { %1159 = vmatprep.subr.bf16.mxu0 %v1710_v36  ;;  %1145 = vmatpush1.bf16.msra.mxu1 %v1791_v53  ;;  %v482_v36 = vld [vmem:[#allocation2 + $0x28] sm:$0xff] }
  0xbf   : > { %1160 = vmatpush1.bf16.msra.mxu0 %v1708_v39  ;;  %1147 = vmatmul.mubr.bf16.vlgmr.msra.gmra.mrb[0].mxu1 %v2296_v33 }
  0xc0   : > { %1161 = vmatprep.subr.bf16.mxu0 %v1716_v40 }
  0xc3   : > { %1162 = vmatpush1.bf16.msra.mxu0 %v1714_v43 }
  0xc4   : > { %1163 = vmatprep.subr.bf16.mxu0 %v1722_v44 }
  0xc7   : > { %1164 = vmatpush1.bf16.msra.mxu0 %v1720_v47  ;;  %v1242_v47 = vlaneseq (!%p1552_p5) }
  0xc8   : > { %1165 = vmatprep.subr.bf16.mxu0 %v1728_v48 }
  0xc9   : > { %v1243_v48 = vshrl.u32 (!%p1552_p5), %v1242_v47, 7 }
  0xcb   : > { %1166 = vmatpush1.bf16.msra.mxu0 %v1726_v51  ;;  %v1244_v51 = vsub.s32 (!%p1552_p5), 0, %v1243_v48  ;;  %v1248_v53 = vsub.s32 (!%p1552_p5), 1, %v1243_v48 }
  0xcc   : > { %1167 = vmatprep.subr.bf16.mxu0 %v1734_v52 }
  0xcf   : > { %1168 = vmatpush1.bf16.msra.mxu0 %v1732_v54 }
  0xd0   : > { %1169 = vmatprep.subr.bf16.mxu0 %v1740_v55  ;;  %v1252_v55 = vsub.s32 (!%p1552_p5), 2, %v1243_v48 }
  0xd3   : > { %1170 = vmatpush1.bf16.msra.mxu0 %v1738_v56  ;;  %v1256_v56 = vsub.s32 (!%p1552_p5), 3, %v1243_v48 }
  0xd4   : > { %1171 = vmatprep.subr.bf16.mxu0 %v1746_v57 }
  0xd7   : > { %1172 = vmatpush1.bf16.msra.mxu0 %v1744_v58 }
  0xd8   : > { %1173 = vmatprep.subr.bf16.mxu0 %v1752_v59  ;;  %v1260_v59 = vsub.s32 (!%p1552_p5), 4, %v1243_v48 }
  0xdb   : > { %1174 = vmatpush1.bf16.msra.mxu0 %v1750_v60 }
  0xdc   : > { %1175 = vmatprep.subr.bf16.mxu0 %v1758_v61  ;;  %v1264_v61 = vsub.s32 (!%p1552_p5), 5, %v1243_v48 }
  0xdf   : > { %1176 = vmatpush1.bf16.msra.mxu0 %v1756_v62  ;;  %v1245_v62 = vrot.slane (!%p1552_p5), %v1240_v50, %v1244_v51 }
  0xe0   : > { %1177 = vmatprep.subr.bf16.mxu0 %v1764_v63  ;;  %v1249_v63 = vrot.slane (!%p1552_p5), %v1240_v50, %v1248_v53 }
  0xe3   : > { %1178 = vmatpush1.bf16.msra.mxu0 %v1762_v0  ;;  %v1253_v0 = vrot.slane (!%p1552_p5), %v1240_v50, %v1252_v55 }
  0xe4   : > { %1179 = vmatprep.subr.bf16.mxu0 %v1770_v1  ;;  %v1257_v1 = vrot.slane (!%p1552_p5), %v1240_v50, %v1256_v56 }
  0xe7   : > { %1180 = vmatpush1.bf16.msra.mxu0 %v1768_v2 }
  0xe8   : > { %1181 = vmatprep.subr.bf16.mxu0 %v1776_v3 }
  0xeb   : > { %1182 = vmatpush1.bf16.msra.mxu0 %v1774_v4 }
  0xec   : > { %1183 = vmatprep.subr.bf16.mxu0 %v1782_v5  ;;  %v1261_v5 = vrot.slane (!%p1552_p5), %v1240_v50, %v1260_v59 }
  0xef   : > { %1184 = vmatpush1.bf16.msra.mxu0 %v1780_v6  ;;  %v1265_v6 = vrot.slane (!%p1552_p5), %v1240_v50, %v1264_v61 }
  0xf0   : > { %1185 = vmatprep.subr.bf16.mxu0 %v1788_v7 }
  0xf3   : > { %1186 = vmatpush1.bf16.msra.mxu0 %v1786_v8 }
  0xf4   : > { %1187 = vmatprep.subr.bf16.mxu0 %v1794_v9 }
  0xf7   : > { %1188 = vmatpush1.bf16.msra.mxu0 %v1792_v10 }
  0xfa   : > { %1190 = vmatmul.mubr.bf16.vlgmr.msra.gmra.mrb[4].mxu0 %v2296_v33 }
 0x18d   : > { %v1105_v13 = vpop.f32.mrb[0].mxu0 }
 0x18e   : > { %v1200_v15 = vadd.f32 %v1105_v13, %v477_v11  ;;  %v1107_v16 = vpop.f32.mrb[1].mxu0 }
 0x18f   : > { %v1201_v18 = vadd.f32 %v1107_v16, %v478_v12  ;;  %v1109_v19 = vpop.f32.mrb[2].mxu0 }
 0x190   : > { %1212 = vst [vmem:[#allocation2] sm:$0xff] %v1200_v15  ;;  %v1206_v20 = vadd.f32 %v1109_v19, %v483_v14  ;;  %v1111_v21 = vpop.f32.mrb[3].mxu0 }
 0x191   : > { %1213 = vst [vmem:[#allocation2 + $0x8] sm:$0xff] %v1201_v18  ;;  %v1207_v22 = vadd.f32 %v1111_v21, %v484_v17 }
 0x192   : > { %1218 = vst [vmem:[#allocation2 + $0x30] sm:$0xff] %v1206_v20  ;;  %v1148_v25 = vpop.f32.mrb[0].mxu1 }
 0x193   : > { %1219 = vst [vmem:[#allocation2 + $0x38] sm:$0xff] %v1207_v22  ;;  %v1202_v27 = vadd.f32 %v1148_v25, %v479_v23  ;;  %v1150_v28 = vpop.f32.mrb[1].mxu1 }
 0x194   : > { %v1203_v30 = vadd.f32 %v1150_v28, %v480_v24  ;;  %v1152_v31 = vpop.f32.mrb[2].mxu1 }
 0x195   : > { %1214 = vst [vmem:[#allocation2 + $0x10] sm:$0xff] %v1202_v27  ;;  %v1208_v32 = vadd.f32 %v1152_v31, %v485_v26  ;;  %v1154_v33 = vpop.f32.mrb[3].mxu1 }
 0x196   : > { %1215 = vst [vmem:[#allocation2 + $0x18] sm:$0xff] %v1203_v30  ;;  %v1209_v34 = vadd.f32 %v1154_v33, %v486_v29 }
 0x197   : > { %1220 = vst [vmem:[#allocation2 + $0x40] sm:$0xff] %v1208_v32  ;;  %v1228_v49 = vld [vmem:[#allocation2] sm:$0xff] (!%p1552_p5) }
 0x198   : > { %1221 = vst [vmem:[#allocation2 + $0x48] sm:$0xff] %v1209_v34  ;;  %v1229_v52 = vld [vmem:[#allocation2 + $0x8] sm:$0xff] (!%p1552_p5)  ;;  %v1272_v10 = vadd.f32 (!%p1552_p5), %v1245_v62, %v1228_v49 }
 0x199   : > { %v1234_v2 = vld [vmem:[#allocation2 + $0x30] sm:$0xff] (!%p1552_p5)  ;;  %v1273_v11 = vadd.f32 (!%p1552_p5), %v1249_v63, %v1229_v52 }
 0x19a   : > { %v1235_v3 = vld [vmem:[#allocation2 + $0x38] sm:$0xff] (!%p1552_p5)  ;;  %v1278_v16 = vadd.f32 (!%p1552_p5), %v1245_v62, %v1234_v2  ;;  %1284 = vst [vmem:[%s2230_s1] sm:$0xff] (!%p1552_p5), %v1272_v10 }
 0x19b   : > { %v1279_v17 = vadd.f32 (!%p1552_p5), %v1249_v63, %v1235_v3  ;;  %1285 = vst [vmem:[%s2230_s1 + $0x8] sm:$0xff] (!%p1552_p5), %v1273_v11 }
 0x19c   : > { %v1230_v54 = vld [vmem:[#allocation2 + $0x10] sm:$0xff] (!%p1552_p5)  ;;  %1290 = vst [vmem:[%s2230_s1 + $0x30] sm:$0xff] (!%p1552_p5), %v1278_v16 }
 0x19d   : > { %v1231_v57 = vld [vmem:[#allocation2 + $0x18] sm:$0xff] (!%p1552_p5)  ;;  %v1274_v12 = vadd.f32 (!%p1552_p5), %v1253_v0, %v1230_v54  ;;  %1291 = vst [vmem:[%s2230_s1 + $0x38] sm:$0xff] (!%p1552_p5), %v1279_v17 }
 0x19e   : > { %v1236_v4 = vld [vmem:[#allocation2 + $0x40] sm:$0xff] (!%p1552_p5)  ;;  %v1275_v13 = vadd.f32 (!%p1552_p5), %v1257_v1, %v1231_v57 }
 0x19f   : > { %v1237_v7 = vld [vmem:[#allocation2 + $0x48] sm:$0xff] (!%p1552_p5)  ;;  %1286 = vst [vmem:[%s2230_s1 + $0x10] sm:$0xff] (!%p1552_p5), %v1274_v12  ;;  %v1280_v18 = vadd.f32 (!%p1552_p5), %v1253_v0, %v1236_v4 }
 0x1a0   : > { %1287 = vst [vmem:[%s2230_s1 + $0x18] sm:$0xff] (!%p1552_p5), %v1275_v13  ;;  %v1281_v19 = vadd.f32 (!%p1552_p5), %v1257_v1, %v1237_v7 }
 0x1a1   : > { %1292 = vst [vmem:[%s2230_s1 + $0x40] sm:$0xff] (!%p1552_p5), %v1280_v18 }
 0x1a2   : > { %1293 = vst [vmem:[%s2230_s1 + $0x48] sm:$0xff] (!%p1552_p5), %v1281_v19 }
 0x1cd   : > { %v1191_v37 = vpop.f32.mrb[4].mxu0  ;;  %1227 = sbr.rel (%p1552_p5) target bundleno = 478 (0x1de), region = 86 }
 0x1ce   : > { %v1204_v39 = vadd.f32 %v1191_v37, %v481_v35  ;;  %v1193_v40 = vpop.f32.mrb[5].mxu0 }
 0x1cf   : > { %v1205_v42 = vadd.f32 %v1193_v40, %v482_v36  ;;  %v1195_v43 = vpop.f32.mrb[6].mxu0 }
 0x1d0   : > { %1216 = vst [vmem:[#allocation2 + $0x20] sm:$0xff] %v1204_v39  ;;  %v1210_v44 = vadd.f32 %v1195_v43, %v487_v38  ;;  %v1197_v45 = vpop.f32.mrb[7].mxu0 }
 0x1d1   : > { %1217 = vst [vmem:[#allocation2 + $0x28] sm:$0xff] %v1205_v42  ;;  %v1211_v46 = vadd.f32 %v1197_v45, %v488_v41 }
 0x1d2   : > { %1222 = vst [vmem:[#allocation2 + $0x50] sm:$0xff] %v1210_v44 }
 0x1d3   : > { %1223 = vst [vmem:[#allocation2 + $0x58] sm:$0xff] %v1211_v46 }
 0x1d7   : > { %v1232_v58 = vld [vmem:[#allocation2 + $0x20] sm:$0xff] }
 0x1d8   : > { %v1233_v60 = vld [vmem:[#allocation2 + $0x28] sm:$0xff]  ;;  %v1276_v14 = vadd.f32 %v1261_v5, %v1232_v58 }
 0x1d9   : > { %v1238_v8 = vld [vmem:[#allocation2 + $0x50] sm:$0xff]  ;;  %v1277_v15 = vadd.f32 %v1265_v6, %v1233_v60 }
 0x1da   : > { %v1239_v9 = vld [vmem:[#allocation2 + $0x58] sm:$0xff]  ;;  %v1282_v20 = vadd.f32 %v1261_v5, %v1238_v8  ;;  %1288 = vst [vmem:[%s2230_s1 + $0x20] sm:$0xff] %v1276_v14 }
 0x1db   : > { %v1283_v21 = vadd.f32 %v1265_v6, %v1239_v9  ;;  %1289 = vst [vmem:[%s2230_s1 + $0x28] sm:$0xff] %v1277_v15 }
 0x1dc   : > { %1294 = vst [vmem:[%s2230_s1 + $0x50] sm:$0xff] %v1282_v20 }
 0x1dd   : > { %1295 = vst [vmem:[%s2230_s1 + $0x58] sm:$0xff] %v1283_v21 }
 0x1de PF: > { %1302 = sbr.rel (!%p1998_p12) target bundleno = 488 (0x1e8), region = 90  ;;  %v1318_v22 = vld [vmem:[%s2230_s1] sm:$0xff] (%p1998_p12)  ;;  %v1320_v23 = vld [vmem:[%s2230_s1 + $0x8] sm:$0xff] (%p1998_p12)  ;;  %v1322_v24 = vld [vmem:[%s2230_s1 + $0x10] sm:$0xff] (%p1998_p12) }
 0x1df   : > { %s1557_s16 = smul.u32 (%p1998_p12), 48, %s1869_s19  ;;  %v1324_v25 = vld [vmem:[%s2230_s1 + $0x18] sm:$0xff] (%p1998_p12)  ;;  %v1330_v28 = vld [vmem:[%s2230_s1 + $0x30] sm:$0xff] (%p1998_p12)  ;;  %v1334_v30 = vld [vmem:[%s2230_s1 + $0x40] sm:$0xff] (%p1998_p12) }
 0x1e0   : > { %v1332_v29 = vld [vmem:[%s2230_s1 + $0x38] sm:$0xff] (%p1998_p12)  ;;  %v1336_v31 = vld [vmem:[%s2230_s1 + $0x48] sm:$0xff] (%p1998_p12) }
 0x1e1   : > { %v1326_v26 = vld [vmem:[%s2230_s1 + $0x20] sm:$0xff] (%p1998_p12)  ;;  %s1305_s0 = scalar_lea.vmem (%p1998_p12), %s2415_s3, %s1557_s16 }
 0x1e2   : > { %v1328_v27 = vld [vmem:[%s2230_s1 + $0x28] sm:$0xff] (%p1998_p12)  ;;  %1319 = vst [vmem:[%s1305_s0] sm:$0xff] (%p1998_p12), %v1318_v22  ;;  %1321 = vst [vmem:[%s1305_s0 + $0x8] sm:$0xff] (%p1998_p12), %v1320_v23 }
 0x1e3   : > { %1323 = vst [vmem:[%s1305_s0 + $0x10] sm:$0xff] (%p1998_p12), %v1322_v24  ;;  %1325 = vst [vmem:[%s1305_s0 + $0x18] sm:$0xff] (%p1998_p12), %v1324_v25  ;;  %v1338_v32 = vld [vmem:[%s2230_s1 + $0x50] sm:$0xff] (%p1998_p12) }
 0x1e4   : > { %1327 = vst [vmem:[%s1305_s0 + $0x20] sm:$0xff] (%p1998_p12), %v1326_v26  ;;  %1329 = vst [vmem:[%s1305_s0 + $0x28] sm:$0xff] (%p1998_p12), %v1328_v27  ;;  %v1340_v33 = vld [vmem:[%s2230_s1 + $0x58] sm:$0xff] (%p1998_p12) }
 0x1e5   : > { %1331 = vst [vmem:[%s1305_s0 + $0x90] sm:$0xff] %v1330_v28  ;;  %1333 = vst [vmem:[%s1305_s0 + $0x98] sm:$0xff] %v1332_v29 }
 0x1e6   : > { %1335 = vst [vmem:[%s1305_s0 + $0xa0] sm:$0xff] %v1334_v30  ;;  %1337 = vst [vmem:[%s1305_s0 + $0xa8] sm:$0xff] %v1336_v31 }
 0x1e7   : > { %1339 = vst [vmem:[%s1305_s0 + $0xb0] sm:$0xff] %v1338_v32  ;;  %1341 = vst [vmem:[%s1305_s0 + $0xb8] sm:$0xff] %v1340_v33 }
 0x1e8 PF: > { %s13_s22 = sadd.s32 1, %s1881_s22   ;;  %s2425_s5 = sld [smem:[#allocation6_spill]] }
 0x1e9   : > { %p10_p6 = scmp.ge.s32.totalorder %s13_s22, 11   ;;  %s2426_s12 = smov %s1845_s13 }
 0x1ea   : > { %s2427_s13 = smov %s1996_s9  ;;  %s2428_s14 = smov %s1853_s15 }
 0x1eb   : > { %s2429_s15 = smov %s1993_s8  ;;  %s2430_s16 = smov %s1861_s17 }
 0x1ec   : > { %s2431_s17 = smov %s1979_s30  ;;  %s2432_s18 = smov %s1873_s20 }
 0x1ed   : > { %s2433_s19 = smov %s1877_s21  ;;  %s2434_s20 = smov %s2437_s24 }
 0x1ee   : > { %s2435_s21 = smov %s2425_s5  ;;  %12 = sbr.rel (!%p10_p6) target bundleno = 9 (0x9), region = 155 }

// kernel: custom_bert_forward.13
= control target key start
LH: loop header
LB: loop body
LE: loop exit
PB: predicated region body
PF: predicated region fallthrough
CT: control target
= control target key end

     0   :  { %12 = vsyncpa [#allocation5], 0  ;;  %s6352_s0 = inlined_call_operand.vmem [shape: f32[16,768], index: 0, kind: input, shape index: {}]   ;;  %s6353_s1 = inlined_call_operand.vmem [shape: bf16[768,3072], index: 1, kind: input, shape index: {}]   ;;  %s6354_s2 = inlined_call_operand.vmem [shape: f32[1,3072], index: 2, kind: input, shape index: {}]   ;;  %s6355_s3 = inlined_call_operand.hbm [shape: bf16[3072,768], index: 3, kind: input, shape index: {}]   ;;  %s6356_s4 = inlined_call_operand.vmem [shape: f32[1,768], index: 4, kind: input, shape index: {}]   ;;  %s6357_s5 = inlined_call_operand.vmem [shape: f32[1,768], index: 5, kind: input, shape index: {}]   ;;  %s6358_s6 = inlined_call_operand.vmem [shape: f32[1,768], index: 6, kind: input, shape index: {}]   ;;  %s6359_s7 = inlined_call_operand.vmem [shape: f32[16,768], index: 7, kind: output, shape index: {}]  }
   0x1   :  { %14 = vsyncpa [#allocation5 + $0x1], 0  ;;  %s5219_s24 = smov 0   ;;  %s5221_s25 = smov 0  }
   0x2   :  { %s5223_s26 = smov 0   ;;  %s5225_s27 = smov 0  }
   0x3 LB: > { %s5238_s28 = sadd.s32 4294967295, %s5173_s27   ;;  %s5241_s29 = sadd.s32 1, %s5173_s27   ;;  %s5173_s27 = sphi %s5225_s27, %s6365_s27   ;;  %s5169_s26 = sphi %s5223_s26, %s6364_s26   ;;  %s5165_s25 = sphi %s5221_s25, %s6363_s25   ;;  %s5161_s24 = sphi %s5219_s24, %s6362_s24  }
   0x4   : > { %s45_s30 = ssub.s32 %s5173_s27, %s5241_s29  ;;  %s48_s8 = sadd.s32 1, %s5169_s26 }
   0x5   : > { %p46_p0 = scmp.eq.s32.totalorder %s45_s30, 0  ;;  %p55_p1 = scmp.ne.s32.totalorder %s5169_s26, %s5165_s25 }
   0x6   : > { %p56_p2 = scmp.eq.s32.totalorder %s5173_s27, 0  ;;  %p113_p3 = scmp.ne.s32.totalorder %s5165_s25, %s5161_s24 }
   0x7   : > { %s5251_s9 = scalar_select %p46_p0, %s5169_s26, %s48_s8  }
   0x8   : > { %p5253_p4 = por %p56_p2, %p55_p1  ;;  %p114_p5 = scmp.eq.s32.totalorder %s5238_s28, 0 }
   0x9   : > { %p4041_p7 = scmp.ge.s32.totalorder %s5173_s27, 6 }
   0xa   : > { %p5258_p6 = por %p114_p5, %p113_p3 }
   0xb   : > { %229 = sbr.rel (%p4041_p7) target bundleno = 144 (0x90), region = 32 }
  0x12   : > { %232 = sbr.rel (!%p5253_p4) target bundleno = 118 (0x76), region = 36  ;;  %s234_s12 = sand.u32 (%p5253_p4), 1, %s5169_s26  }
  0x13   : > { %s4437_s13 = sshll.u32 (%p5253_p4), %s5173_s27, 4  ;;  %s4474_s14 = smul.u32 (%p5253_p4), 1536, %s234_s12 }
  0x14   : > { %s5270_s17 = scalar_lea.vmem (%p5253_p4), %s6353_s1, %s4437_s13 }
  0x15   : > { %v252_v0 = vld [vmem:[%s5270_s17] sm:$0xff] (%p5253_p4)  ;;  %v254_v1 = vld [vmem:[%s5270_s17 + $0x8] sm:$0xff] (%p5253_p4)  ;;  %s5278_s18 = scalar_lea.vmem (%p5253_p4), [#allocation3], %s4474_s14 }
  0x16   : > { %v256_v2 = vld [vmem:[%s5270_s17 + $0x60] sm:$0xff] (%p5253_p4)  ;;  %v258_v3 = vld [vmem:[%s5270_s17 + $0x68] sm:$0xff] (%p5253_p4)  ;;  %253 = vst [vmem:[%s5278_s18] sm:$0xff] (%p5253_p4), %v252_v0  ;;  %255 = vst [vmem:[%s5278_s18 + $0x8] sm:$0xff] (%p5253_p4), %v254_v1 }
  0x17   : > { %v260_v4 = vld [vmem:[%s5270_s17 + $0xc0] sm:$0xff] (%p5253_p4)  ;;  %v262_v5 = vld [vmem:[%s5270_s17 + $0xc8] sm:$0xff] (%p5253_p4)  ;;  %257 = vst [vmem:[%s5278_s18 + $0x10] sm:$0xff] (%p5253_p4), %v256_v2  ;;  %259 = vst [vmem:[%s5278_s18 + $0x18] sm:$0xff] (%p5253_p4), %v258_v3 }
  0x18   : > { %261 = vst [vmem:[%s5278_s18 + $0x20] sm:$0xff] (%p5253_p4), %v260_v4  ;;  %263 = vst [vmem:[%s5278_s18 + $0x28] sm:$0xff] (%p5253_p4), %v262_v5  ;;  %v264_v6 = vld [vmem:[%s5270_s17 + $0x120] sm:$0xff] (%p5253_p4)  ;;  %v266_v7 = vld [vmem:[%s5270_s17 + $0x128] sm:$0xff] (%p5253_p4) }
  0x19   : > { %v268_v8 = vld [vmem:[%s5270_s17 + $0x180] sm:$0xff]  ;;  %265 = vst [vmem:[%s5278_s18 + $0x30] sm:$0xff] %v264_v6  ;;  %267 = vst [vmem:[%s5278_s18 + $0x38] sm:$0xff] %v266_v7  ;;  %v270_v9 = vld [vmem:[%s5270_s17 + $0x188] sm:$0xff] }
  0x1a   : > { %269 = vst [vmem:[%s5278_s18 + $0x40] sm:$0xff] %v268_v8  ;;  %v272_v10 = vld [vmem:[%s5270_s17 + $0x1e0] sm:$0xff]  ;;  %v274_v11 = vld [vmem:[%s5270_s17 + $0x1e8] sm:$0xff]  ;;  %271 = vst [vmem:[%s5278_s18 + $0x48] sm:$0xff] %v270_v9 }
  0x1b   : > { %273 = vst [vmem:[%s5278_s18 + $0x50] sm:$0xff] %v272_v10  ;;  %275 = vst [vmem:[%s5278_s18 + $0x58] sm:$0xff] %v274_v11  ;;  %v276_v12 = vld [vmem:[%s5270_s17 + $0x240] sm:$0xff]  ;;  %v278_v13 = vld [vmem:[%s5270_s17 + $0x248] sm:$0xff] }
  0x1c   : > { %v280_v14 = vld [vmem:[%s5270_s17 + $0x2a0] sm:$0xff]  ;;  %277 = vst [vmem:[%s5278_s18 + $0x60] sm:$0xff] %v276_v12  ;;  %279 = vst [vmem:[%s5278_s18 + $0x68] sm:$0xff] %v278_v13  ;;  %v282_v15 = vld [vmem:[%s5270_s17 + $0x2a8] sm:$0xff] }
  0x1d   : > { %281 = vst [vmem:[%s5278_s18 + $0x70] sm:$0xff] %v280_v14  ;;  %v284_v16 = vld [vmem:[%s5270_s17 + $0x300] sm:$0xff]  ;;  %v286_v17 = vld [vmem:[%s5270_s17 + $0x308] sm:$0xff]  ;;  %283 = vst [vmem:[%s5278_s18 + $0x78] sm:$0xff] %v282_v15 }
  0x1e   : > { %285 = vst [vmem:[%s5278_s18 + $0x80] sm:$0xff] %v284_v16  ;;  %287 = vst [vmem:[%s5278_s18 + $0x88] sm:$0xff] %v286_v17  ;;  %v288_v18 = vld [vmem:[%s5270_s17 + $0x360] sm:$0xff]  ;;  %v290_v19 = vld [vmem:[%s5270_s17 + $0x368] sm:$0xff] }
  0x1f   : > { %v292_v20 = vld [vmem:[%s5270_s17 + $0x3c0] sm:$0xff]  ;;  %289 = vst [vmem:[%s5278_s18 + $0x90] sm:$0xff] %v288_v18  ;;  %291 = vst [vmem:[%s5278_s18 + $0x98] sm:$0xff] %v290_v19  ;;  %v294_v21 = vld [vmem:[%s5270_s17 + $0x3c8] sm:$0xff] }
  0x20   : > { %293 = vst [vmem:[%s5278_s18 + $0xa0] sm:$0xff] %v292_v20  ;;  %v296_v22 = vld [vmem:[%s5270_s17 + $0x420] sm:$0xff]  ;;  %v298_v23 = vld [vmem:[%s5270_s17 + $0x428] sm:$0xff]  ;;  %295 = vst [vmem:[%s5278_s18 + $0xa8] sm:$0xff] %v294_v21 }
  0x21   : > { %297 = vst [vmem:[%s5278_s18 + $0xb0] sm:$0xff] %v296_v22  ;;  %299 = vst [vmem:[%s5278_s18 + $0xb8] sm:$0xff] %v298_v23  ;;  %v300_v24 = vld [vmem:[%s5270_s17 + $0x480] sm:$0xff]  ;;  %v302_v25 = vld [vmem:[%s5270_s17 + $0x488] sm:$0xff] }
  0x22   : > { %v304_v26 = vld [vmem:[%s5270_s17 + $0x4e0] sm:$0xff]  ;;  %301 = vst [vmem:[%s5278_s18 + $0xc0] sm:$0xff] %v300_v24  ;;  %303 = vst [vmem:[%s5278_s18 + $0xc8] sm:$0xff] %v302_v25  ;;  %v306_v27 = vld [vmem:[%s5270_s17 + $0x4e8] sm:$0xff] }
  0x23   : > { %305 = vst [vmem:[%s5278_s18 + $0xd0] sm:$0xff] %v304_v26  ;;  %v308_v28 = vld [vmem:[%s5270_s17 + $0x540] sm:$0xff]  ;;  %v310_v29 = vld [vmem:[%s5270_s17 + $0x548] sm:$0xff]  ;;  %307 = vst [vmem:[%s5278_s18 + $0xd8] sm:$0xff] %v306_v27 }
  0x24   : > { %309 = vst [vmem:[%s5278_s18 + $0xe0] sm:$0xff] %v308_v28  ;;  %311 = vst [vmem:[%s5278_s18 + $0xe8] sm:$0xff] %v310_v29  ;;  %v312_v30 = vld [vmem:[%s5270_s17 + $0x5a0] sm:$0xff]  ;;  %v314_v31 = vld [vmem:[%s5270_s17 + $0x5a8] sm:$0xff] }
  0x25   : > { %v316_v32 = vld [vmem:[%s5270_s17 + $0x600] sm:$0xff]  ;;  %313 = vst [vmem:[%s5278_s18 + $0xf0] sm:$0xff] %v312_v30  ;;  %315 = vst [vmem:[%s5278_s18 + $0xf8] sm:$0xff] %v314_v31  ;;  %v318_v33 = vld [vmem:[%s5270_s17 + $0x608] sm:$0xff] }
  0x26   : > { %317 = vst [vmem:[%s5278_s18 + $0x100] sm:$0xff] %v316_v32  ;;  %v320_v34 = vld [vmem:[%s5270_s17 + $0x660] sm:$0xff]  ;;  %v322_v35 = vld [vmem:[%s5270_s17 + $0x668] sm:$0xff]  ;;  %319 = vst [vmem:[%s5278_s18 + $0x108] sm:$0xff] %v318_v33 }
  0x27   : > { %321 = vst [vmem:[%s5278_s18 + $0x110] sm:$0xff] %v320_v34  ;;  %323 = vst [vmem:[%s5278_s18 + $0x118] sm:$0xff] %v322_v35  ;;  %v324_v36 = vld [vmem:[%s5270_s17 + $0x6c0] sm:$0xff]  ;;  %v326_v37 = vld [vmem:[%s5270_s17 + $0x6c8] sm:$0xff] }
  0x28   : > { %v328_v38 = vld [vmem:[%s5270_s17 + $0x720] sm:$0xff]  ;;  %325 = vst [vmem:[%s5278_s18 + $0x120] sm:$0xff] %v324_v36  ;;  %327 = vst [vmem:[%s5278_s18 + $0x128] sm:$0xff] %v326_v37  ;;  %v330_v39 = vld [vmem:[%s5270_s17 + $0x728] sm:$0xff] }
  0x29   : > { %329 = vst [vmem:[%s5278_s18 + $0x130] sm:$0xff] %v328_v38  ;;  %v332_v40 = vld [vmem:[%s5270_s17 + $0x780] sm:$0xff]  ;;  %v334_v41 = vld [vmem:[%s5270_s17 + $0x788] sm:$0xff]  ;;  %331 = vst [vmem:[%s5278_s18 + $0x138] sm:$0xff] %v330_v39 }
  0x2a   : > { %333 = vst [vmem:[%s5278_s18 + $0x140] sm:$0xff] %v332_v40  ;;  %335 = vst [vmem:[%s5278_s18 + $0x148] sm:$0xff] %v334_v41  ;;  %v336_v42 = vld [vmem:[%s5270_s17 + $0x7e0] sm:$0xff]  ;;  %v338_v43 = vld [vmem:[%s5270_s17 + $0x7e8] sm:$0xff] }
  0x2b   : > { %v340_v44 = vld [vmem:[%s5270_s17 + $0x840] sm:$0xff]  ;;  %337 = vst [vmem:[%s5278_s18 + $0x150] sm:$0xff] %v336_v42  ;;  %339 = vst [vmem:[%s5278_s18 + $0x158] sm:$0xff] %v338_v43  ;;  %v342_v45 = vld [vmem:[%s5270_s17 + $0x848] sm:$0xff] }
  0x2c   : > { %341 = vst [vmem:[%s5278_s18 + $0x160] sm:$0xff] %v340_v44  ;;  %v344_v46 = vld [vmem:[%s5270_s17 + $0x8a0] sm:$0xff]  ;;  %v346_v47 = vld [vmem:[%s5270_s17 + $0x8a8] sm:$0xff]  ;;  %343 = vst [vmem:[%s5278_s18 + $0x168] sm:$0xff] %v342_v45 }
  0x2d   : > { %345 = vst [vmem:[%s5278_s18 + $0x170] sm:$0xff] %v344_v46  ;;  %347 = vst [vmem:[%s5278_s18 + $0x178] sm:$0xff] %v346_v47  ;;  %v348_v48 = vld [vmem:[%s5270_s17 + $0x900] sm:$0xff]  ;;  %v350_v49 = vld [vmem:[%s5270_s17 + $0x908] sm:$0xff] }
  0x2e   : > { %v352_v50 = vld [vmem:[%s5270_s17 + $0x960] sm:$0xff]  ;;  %349 = vst [vmem:[%s5278_s18 + $0x180] sm:$0xff] %v348_v48  ;;  %351 = vst [vmem:[%s5278_s18 + $0x188] sm:$0xff] %v350_v49  ;;  %v354_v51 = vld [vmem:[%s5270_s17 + $0x968] sm:$0xff] }
  0x2f   : > { %353 = vst [vmem:[%s5278_s18 + $0x190] sm:$0xff] %v352_v50  ;;  %v356_v52 = vld [vmem:[%s5270_s17 + $0x9c0] sm:$0xff]  ;;  %v358_v53 = vld [vmem:[%s5270_s17 + $0x9c8] sm:$0xff]  ;;  %355 = vst [vmem:[%s5278_s18 + $0x198] sm:$0xff] %v354_v51 }
  0x30   : > { %357 = vst [vmem:[%s5278_s18 + $0x1a0] sm:$0xff] %v356_v52  ;;  %359 = vst [vmem:[%s5278_s18 + $0x1a8] sm:$0xff] %v358_v53  ;;  %v360_v54 = vld [vmem:[%s5270_s17 + $0xa20] sm:$0xff]  ;;  %v362_v55 = vld [vmem:[%s5270_s17 + $0xa28] sm:$0xff] }
  0x31   : > { %v364_v56 = vld [vmem:[%s5270_s17 + $0xa80] sm:$0xff]  ;;  %361 = vst [vmem:[%s5278_s18 + $0x1b0] sm:$0xff] %v360_v54  ;;  %363 = vst [vmem:[%s5278_s18 + $0x1b8] sm:$0xff] %v362_v55  ;;  %v366_v57 = vld [vmem:[%s5270_s17 + $0xa88] sm:$0xff] }
  0x32   : > { %365 = vst [vmem:[%s5278_s18 + $0x1c0] sm:$0xff] %v364_v56  ;;  %v368_v58 = vld [vmem:[%s5270_s17 + $0xae0] sm:$0xff]  ;;  %v370_v59 = vld [vmem:[%s5270_s17 + $0xae8] sm:$0xff]  ;;  %367 = vst [vmem:[%s5278_s18 + $0x1c8] sm:$0xff] %v366_v57 }
  0x33   : > { %369 = vst [vmem:[%s5278_s18 + $0x1d0] sm:$0xff] %v368_v58  ;;  %371 = vst [vmem:[%s5278_s18 + $0x1d8] sm:$0xff] %v370_v59  ;;  %v372_v60 = vld [vmem:[%s5270_s17 + $0xb40] sm:$0xff]  ;;  %v374_v61 = vld [vmem:[%s5270_s17 + $0xb48] sm:$0xff] }
  0x34   : > { %v376_v62 = vld [vmem:[%s5270_s17 + $0xba0] sm:$0xff]  ;;  %373 = vst [vmem:[%s5278_s18 + $0x1e0] sm:$0xff] %v372_v60  ;;  %375 = vst [vmem:[%s5278_s18 + $0x1e8] sm:$0xff] %v374_v61  ;;  %v378_v63 = vld [vmem:[%s5270_s17 + $0xba8] sm:$0xff] }
  0x35   : > { %377 = vst [vmem:[%s5278_s18 + $0x1f0] sm:$0xff] %v376_v62  ;;  %v380_v0 = vld [vmem:[%s5270_s17 + $0xc00] sm:$0xff]  ;;  %v382_v1 = vld [vmem:[%s5270_s17 + $0xc08] sm:$0xff]  ;;  %379 = vst [vmem:[%s5278_s18 + $0x1f8] sm:$0xff] %v378_v63 }
  0x36   : > { %381 = vst [vmem:[%s5278_s18 + $0x200] sm:$0xff] %v380_v0  ;;  %383 = vst [vmem:[%s5278_s18 + $0x208] sm:$0xff] %v382_v1  ;;  %v384_v2 = vld [vmem:[%s5270_s17 + $0xc60] sm:$0xff]  ;;  %v386_v3 = vld [vmem:[%s5270_s17 + $0xc68] sm:$0xff] }
  0x37   : > { %v388_v4 = vld [vmem:[%s5270_s17 + $0xcc0] sm:$0xff]  ;;  %385 = vst [vmem:[%s5278_s18 + $0x210] sm:$0xff] %v384_v2  ;;  %387 = vst [vmem:[%s5278_s18 + $0x218] sm:$0xff] %v386_v3  ;;  %v390_v5 = vld [vmem:[%s5270_s17 + $0xcc8] sm:$0xff] }
  0x38   : > { %389 = vst [vmem:[%s5278_s18 + $0x220] sm:$0xff] %v388_v4  ;;  %v392_v6 = vld [vmem:[%s5270_s17 + $0xd20] sm:$0xff]  ;;  %v394_v7 = vld [vmem:[%s5270_s17 + $0xd28] sm:$0xff]  ;;  %391 = vst [vmem:[%s5278_s18 + $0x228] sm:$0xff] %v390_v5 }
  0x39   : > { %393 = vst [vmem:[%s5278_s18 + $0x230] sm:$0xff] %v392_v6  ;;  %395 = vst [vmem:[%s5278_s18 + $0x238] sm:$0xff] %v394_v7  ;;  %v396_v8 = vld [vmem:[%s5270_s17 + $0xd80] sm:$0xff]  ;;  %v398_v9 = vld [vmem:[%s5270_s17 + $0xd88] sm:$0xff] }
  0x3a   : > { %v400_v10 = vld [vmem:[%s5270_s17 + $0xde0] sm:$0xff]  ;;  %397 = vst [vmem:[%s5278_s18 + $0x240] sm:$0xff] %v396_v8  ;;  %399 = vst [vmem:[%s5278_s18 + $0x248] sm:$0xff] %v398_v9  ;;  %v402_v11 = vld [vmem:[%s5270_s17 + $0xde8] sm:$0xff] }
  0x3b   : > { %401 = vst [vmem:[%s5278_s18 + $0x250] sm:$0xff] %v400_v10  ;;  %v404_v12 = vld [vmem:[%s5270_s17 + $0xe40] sm:$0xff]  ;;  %v406_v13 = vld [vmem:[%s5270_s17 + $0xe48] sm:$0xff]  ;;  %403 = vst [vmem:[%s5278_s18 + $0x258] sm:$0xff] %v402_v11 }
  0x3c   : > { %405 = vst [vmem:[%s5278_s18 + $0x260] sm:$0xff] %v404_v12  ;;  %407 = vst [vmem:[%s5278_s18 + $0x268] sm:$0xff] %v406_v13  ;;  %v408_v14 = vld [vmem:[%s5270_s17 + $0xea0] sm:$0xff]  ;;  %v410_v15 = vld [vmem:[%s5270_s17 + $0xea8] sm:$0xff] }
  0x3d   : > { %v412_v16 = vld [vmem:[%s5270_s17 + $0xf00] sm:$0xff]  ;;  %409 = vst [vmem:[%s5278_s18 + $0x270] sm:$0xff] %v408_v14  ;;  %411 = vst [vmem:[%s5278_s18 + $0x278] sm:$0xff] %v410_v15  ;;  %v414_v17 = vld [vmem:[%s5270_s17 + $0xf08] sm:$0xff] }
  0x3e   : > { %413 = vst [vmem:[%s5278_s18 + $0x280] sm:$0xff] %v412_v16  ;;  %v416_v18 = vld [vmem:[%s5270_s17 + $0xf60] sm:$0xff]  ;;  %v418_v19 = vld [vmem:[%s5270_s17 + $0xf68] sm:$0xff]  ;;  %415 = vst [vmem:[%s5278_s18 + $0x288] sm:$0xff] %v414_v17 }
  0x3f   : > { %417 = vst [vmem:[%s5278_s18 + $0x290] sm:$0xff] %v416_v18  ;;  %419 = vst [vmem:[%s5278_s18 + $0x298] sm:$0xff] %v418_v19  ;;  %v420_v20 = vld [vmem:[%s5270_s17 + $0xfc0] sm:$0xff]  ;;  %v422_v21 = vld [vmem:[%s5270_s17 + $0xfc8] sm:$0xff] }
  0x40   : > { %v424_v22 = vld [vmem:[%s5270_s17 + $0x1020] sm:$0xff]  ;;  %421 = vst [vmem:[%s5278_s18 + $0x2a0] sm:$0xff] %v420_v20  ;;  %423 = vst [vmem:[%s5278_s18 + $0x2a8] sm:$0xff] %v422_v21  ;;  %v426_v23 = vld [vmem:[%s5270_s17 + $0x1028] sm:$0xff] }
  0x41   : > { %425 = vst [vmem:[%s5278_s18 + $0x2b0] sm:$0xff] %v424_v22  ;;  %v428_v24 = vld [vmem:[%s5270_s17 + $0x1080] sm:$0xff]  ;;  %v430_v25 = vld [vmem:[%s5270_s17 + $0x1088] sm:$0xff]  ;;  %427 = vst [vmem:[%s5278_s18 + $0x2b8] sm:$0xff] %v426_v23 }
  0x42   : > { %429 = vst [vmem:[%s5278_s18 + $0x2c0] sm:$0xff] %v428_v24  ;;  %431 = vst [vmem:[%s5278_s18 + $0x2c8] sm:$0xff] %v430_v25  ;;  %v432_v26 = vld [vmem:[%s5270_s17 + $0x10e0] sm:$0xff]  ;;  %v434_v27 = vld [vmem:[%s5270_s17 + $0x10e8] sm:$0xff] }
  0x43   : > { %v436_v28 = vld [vmem:[%s5270_s17 + $0x1140] sm:$0xff]  ;;  %433 = vst [vmem:[%s5278_s18 + $0x2d0] sm:$0xff] %v432_v26  ;;  %435 = vst [vmem:[%s5278_s18 + $0x2d8] sm:$0xff] %v434_v27  ;;  %v438_v29 = vld [vmem:[%s5270_s17 + $0x1148] sm:$0xff] }
  0x44   : > { %437 = vst [vmem:[%s5278_s18 + $0x2e0] sm:$0xff] %v436_v28  ;;  %v440_v30 = vld [vmem:[%s5270_s17 + $0x11a0] sm:$0xff]  ;;  %v442_v31 = vld [vmem:[%s5270_s17 + $0x11a8] sm:$0xff]  ;;  %439 = vst [vmem:[%s5278_s18 + $0x2e8] sm:$0xff] %v438_v29 }
  0x45   : > { %441 = vst [vmem:[%s5278_s18 + $0x2f0] sm:$0xff] %v440_v30  ;;  %443 = vst [vmem:[%s5278_s18 + $0x2f8] sm:$0xff] %v442_v31  ;;  %v444_v32 = vld [vmem:[%s5270_s17 + $0x1200] sm:$0xff]  ;;  %v446_v33 = vld [vmem:[%s5270_s17 + $0x1208] sm:$0xff] }
  0x46   : > { %v448_v34 = vld [vmem:[%s5270_s17 + $0x1260] sm:$0xff]  ;;  %445 = vst [vmem:[%s5278_s18 + $0x300] sm:$0xff] %v444_v32  ;;  %447 = vst [vmem:[%s5278_s18 + $0x308] sm:$0xff] %v446_v33  ;;  %v450_v35 = vld [vmem:[%s5270_s17 + $0x1268] sm:$0xff] }
  0x47   : > { %449 = vst [vmem:[%s5278_s18 + $0x310] sm:$0xff] %v448_v34  ;;  %v452_v36 = vld [vmem:[%s5270_s17 + $0x12c0] sm:$0xff]  ;;  %v454_v37 = vld [vmem:[%s5270_s17 + $0x12c8] sm:$0xff]  ;;  %451 = vst [vmem:[%s5278_s18 + $0x318] sm:$0xff] %v450_v35 }
  0x48   : > { %453 = vst [vmem:[%s5278_s18 + $0x320] sm:$0xff] %v452_v36  ;;  %455 = vst [vmem:[%s5278_s18 + $0x328] sm:$0xff] %v454_v37  ;;  %v456_v38 = vld [vmem:[%s5270_s17 + $0x1320] sm:$0xff]  ;;  %v458_v39 = vld [vmem:[%s5270_s17 + $0x1328] sm:$0xff] }
  0x49   : > { %v460_v40 = vld [vmem:[%s5270_s17 + $0x1380] sm:$0xff]  ;;  %457 = vst [vmem:[%s5278_s18 + $0x330] sm:$0xff] %v456_v38  ;;  %459 = vst [vmem:[%s5278_s18 + $0x338] sm:$0xff] %v458_v39  ;;  %v462_v41 = vld [vmem:[%s5270_s17 + $0x1388] sm:$0xff] }
  0x4a   : > { %461 = vst [vmem:[%s5278_s18 + $0x340] sm:$0xff] %v460_v40  ;;  %v464_v42 = vld [vmem:[%s5270_s17 + $0x13e0] sm:$0xff]  ;;  %v466_v43 = vld [vmem:[%s5270_s17 + $0x13e8] sm:$0xff]  ;;  %463 = vst [vmem:[%s5278_s18 + $0x348] sm:$0xff] %v462_v41 }
  0x4b   : > { %465 = vst [vmem:[%s5278_s18 + $0x350] sm:$0xff] %v464_v42  ;;  %467 = vst [vmem:[%s5278_s18 + $0x358] sm:$0xff] %v466_v43  ;;  %v468_v44 = vld [vmem:[%s5270_s17 + $0x1440] sm:$0xff]  ;;  %v470_v45 = vld [vmem:[%s5270_s17 + $0x1448] sm:$0xff] }
  0x4c   : > { %v472_v46 = vld [vmem:[%s5270_s17 + $0x14a0] sm:$0xff]  ;;  %469 = vst [vmem:[%s5278_s18 + $0x360] sm:$0xff] %v468_v44  ;;  %471 = vst [vmem:[%s5278_s18 + $0x368] sm:$0xff] %v470_v45  ;;  %v474_v47 = vld [vmem:[%s5270_s17 + $0x14a8] sm:$0xff] }
  0x4d   : > { %473 = vst [vmem:[%s5278_s18 + $0x370] sm:$0xff] %v472_v46  ;;  %v476_v48 = vld [vmem:[%s5270_s17 + $0x1500] sm:$0xff]  ;;  %v478_v49 = vld [vmem:[%s5270_s17 + $0x1508] sm:$0xff]  ;;  %475 = vst [vmem:[%s5278_s18 + $0x378] sm:$0xff] %v474_v47 }
  0x4e   : > { %477 = vst [vmem:[%s5278_s18 + $0x380] sm:$0xff] %v476_v48  ;;  %479 = vst [vmem:[%s5278_s18 + $0x388] sm:$0xff] %v478_v49  ;;  %v480_v50 = vld [vmem:[%s5270_s17 + $0x1560] sm:$0xff]  ;;  %v482_v51 = vld [vmem:[%s5270_s17 + $0x1568] sm:$0xff] }
  0x4f   : > { %v484_v52 = vld [vmem:[%s5270_s17 + $0x15c0] sm:$0xff]  ;;  %481 = vst [vmem:[%s5278_s18 + $0x390] sm:$0xff] %v480_v50  ;;  %483 = vst [vmem:[%s5278_s18 + $0x398] sm:$0xff] %v482_v51  ;;  %v486_v53 = vld [vmem:[%s5270_s17 + $0x15c8] sm:$0xff] }
  0x50   : > { %485 = vst [vmem:[%s5278_s18 + $0x3a0] sm:$0xff] %v484_v52  ;;  %v488_v54 = vld [vmem:[%s5270_s17 + $0x1620] sm:$0xff]  ;;  %v490_v55 = vld [vmem:[%s5270_s17 + $0x1628] sm:$0xff]  ;;  %487 = vst [vmem:[%s5278_s18 + $0x3a8] sm:$0xff] %v486_v53 }
  0x51   : > { %489 = vst [vmem:[%s5278_s18 + $0x3b0] sm:$0xff] %v488_v54  ;;  %491 = vst [vmem:[%s5278_s18 + $0x3b8] sm:$0xff] %v490_v55  ;;  %v492_v56 = vld [vmem:[%s5270_s17 + $0x1680] sm:$0xff]  ;;  %v494_v57 = vld [vmem:[%s5270_s17 + $0x1688] sm:$0xff] }
  0x52   : > { %v496_v58 = vld [vmem:[%s5270_s17 + $0x16e0] sm:$0xff]  ;;  %493 = vst [vmem:[%s5278_s18 + $0x3c0] sm:$0xff] %v492_v56  ;;  %495 = vst [vmem:[%s5278_s18 + $0x3c8] sm:$0xff] %v494_v57  ;;  %v498_v59 = vld [vmem:[%s5270_s17 + $0x16e8] sm:$0xff] }
  0x53   : > { %497 = vst [vmem:[%s5278_s18 + $0x3d0] sm:$0xff] %v496_v58  ;;  %v500_v60 = vld [vmem:[%s5270_s17 + $0x1740] sm:$0xff]  ;;  %v502_v61 = vld [vmem:[%s5270_s17 + $0x1748] sm:$0xff]  ;;  %499 = vst [vmem:[%s5278_s18 + $0x3d8] sm:$0xff] %v498_v59 }
  0x54   : > { %501 = vst [vmem:[%s5278_s18 + $0x3e0] sm:$0xff] %v500_v60  ;;  %503 = vst [vmem:[%s5278_s18 + $0x3e8] sm:$0xff] %v502_v61  ;;  %v504_v62 = vld [vmem:[%s5270_s17 + $0x17a0] sm:$0xff]  ;;  %v506_v63 = vld [vmem:[%s5270_s17 + $0x17a8] sm:$0xff] }
  0x55   : > { %v508_v0 = vld [vmem:[%s5270_s17 + $0x1800] sm:$0xff]  ;;  %505 = vst [vmem:[%s5278_s18 + $0x3f0] sm:$0xff] %v504_v62  ;;  %507 = vst [vmem:[%s5278_s18 + $0x3f8] sm:$0xff] %v506_v63  ;;  %v510_v1 = vld [vmem:[%s5270_s17 + $0x1808] sm:$0xff] }
  0x56   : > { %509 = vst [vmem:[%s5278_s18 + $0x400] sm:$0xff] %v508_v0  ;;  %v512_v2 = vld [vmem:[%s5270_s17 + $0x1860] sm:$0xff]  ;;  %v514_v3 = vld [vmem:[%s5270_s17 + $0x1868] sm:$0xff]  ;;  %511 = vst [vmem:[%s5278_s18 + $0x408] sm:$0xff] %v510_v1 }
  0x57   : > { %513 = vst [vmem:[%s5278_s18 + $0x410] sm:$0xff] %v512_v2  ;;  %515 = vst [vmem:[%s5278_s18 + $0x418] sm:$0xff] %v514_v3  ;;  %v516_v4 = vld [vmem:[%s5270_s17 + $0x18c0] sm:$0xff]  ;;  %v518_v5 = vld [vmem:[%s5270_s17 + $0x18c8] sm:$0xff] }
  0x58   : > { %v520_v6 = vld [vmem:[%s5270_s17 + $0x1920] sm:$0xff]  ;;  %517 = vst [vmem:[%s5278_s18 + $0x420] sm:$0xff] %v516_v4  ;;  %519 = vst [vmem:[%s5278_s18 + $0x428] sm:$0xff] %v518_v5  ;;  %v522_v7 = vld [vmem:[%s5270_s17 + $0x1928] sm:$0xff] }
  0x59   : > { %521 = vst [vmem:[%s5278_s18 + $0x430] sm:$0xff] %v520_v6  ;;  %v524_v8 = vld [vmem:[%s5270_s17 + $0x1980] sm:$0xff]  ;;  %v526_v9 = vld [vmem:[%s5270_s17 + $0x1988] sm:$0xff]  ;;  %523 = vst [vmem:[%s5278_s18 + $0x438] sm:$0xff] %v522_v7 }
  0x5a   : > { %525 = vst [vmem:[%s5278_s18 + $0x440] sm:$0xff] %v524_v8  ;;  %527 = vst [vmem:[%s5278_s18 + $0x448] sm:$0xff] %v526_v9  ;;  %v528_v10 = vld [vmem:[%s5270_s17 + $0x19e0] sm:$0xff]  ;;  %v530_v11 = vld [vmem:[%s5270_s17 + $0x19e8] sm:$0xff] }
  0x5b   : > { %v532_v12 = vld [vmem:[%s5270_s17 + $0x1a40] sm:$0xff]  ;;  %529 = vst [vmem:[%s5278_s18 + $0x450] sm:$0xff] %v528_v10  ;;  %531 = vst [vmem:[%s5278_s18 + $0x458] sm:$0xff] %v530_v11  ;;  %v534_v13 = vld [vmem:[%s5270_s17 + $0x1a48] sm:$0xff] }
  0x5c   : > { %533 = vst [vmem:[%s5278_s18 + $0x460] sm:$0xff] %v532_v12  ;;  %v536_v14 = vld [vmem:[%s5270_s17 + $0x1aa0] sm:$0xff]  ;;  %v538_v15 = vld [vmem:[%s5270_s17 + $0x1aa8] sm:$0xff]  ;;  %535 = vst [vmem:[%s5278_s18 + $0x468] sm:$0xff] %v534_v13 }
  0x5d   : > { %537 = vst [vmem:[%s5278_s18 + $0x470] sm:$0xff] %v536_v14  ;;  %539 = vst [vmem:[%s5278_s18 + $0x478] sm:$0xff] %v538_v15  ;;  %v540_v16 = vld [vmem:[%s5270_s17 + $0x1b00] sm:$0xff]  ;;  %v542_v17 = vld [vmem:[%s5270_s17 + $0x1b08] sm:$0xff] }
  0x5e   : > { %v544_v18 = vld [vmem:[%s5270_s17 + $0x1b60] sm:$0xff]  ;;  %541 = vst [vmem:[%s5278_s18 + $0x480] sm:$0xff] %v540_v16  ;;  %543 = vst [vmem:[%s5278_s18 + $0x488] sm:$0xff] %v542_v17  ;;  %v546_v19 = vld [vmem:[%s5270_s17 + $0x1b68] sm:$0xff] }
  0x5f   : > { %545 = vst [vmem:[%s5278_s18 + $0x490] sm:$0xff] %v544_v18  ;;  %v548_v20 = vld [vmem:[%s5270_s17 + $0x1bc0] sm:$0xff]  ;;  %v550_v21 = vld [vmem:[%s5270_s17 + $0x1bc8] sm:$0xff]  ;;  %547 = vst [vmem:[%s5278_s18 + $0x498] sm:$0xff] %v546_v19 }
  0x60   : > { %549 = vst [vmem:[%s5278_s18 + $0x4a0] sm:$0xff] %v548_v20  ;;  %551 = vst [vmem:[%s5278_s18 + $0x4a8] sm:$0xff] %v550_v21  ;;  %v552_v22 = vld [vmem:[%s5270_s17 + $0x1c20] sm:$0xff]  ;;  %v554_v23 = vld [vmem:[%s5270_s17 + $0x1c28] sm:$0xff] }
  0x61   : > { %v556_v24 = vld [vmem:[%s5270_s17 + $0x1c80] sm:$0xff]  ;;  %553 = vst [vmem:[%s5278_s18 + $0x4b0] sm:$0xff] %v552_v22  ;;  %555 = vst [vmem:[%s5278_s18 + $0x4b8] sm:$0xff] %v554_v23  ;;  %v558_v25 = vld [vmem:[%s5270_s17 + $0x1c88] sm:$0xff] }
  0x62   : > { %557 = vst [vmem:[%s5278_s18 + $0x4c0] sm:$0xff] %v556_v24  ;;  %v560_v26 = vld [vmem:[%s5270_s17 + $0x1ce0] sm:$0xff]  ;;  %v562_v27 = vld [vmem:[%s5270_s17 + $0x1ce8] sm:$0xff]  ;;  %559 = vst [vmem:[%s5278_s18 + $0x4c8] sm:$0xff] %v558_v25 }
  0x63   : > { %561 = vst [vmem:[%s5278_s18 + $0x4d0] sm:$0xff] %v560_v26  ;;  %563 = vst [vmem:[%s5278_s18 + $0x4d8] sm:$0xff] %v562_v27  ;;  %v564_v28 = vld [vmem:[%s5270_s17 + $0x1d40] sm:$0xff]  ;;  %v566_v29 = vld [vmem:[%s5270_s17 + $0x1d48] sm:$0xff] }
  0x64   : > { %v568_v30 = vld [vmem:[%s5270_s17 + $0x1da0] sm:$0xff]  ;;  %565 = vst [vmem:[%s5278_s18 + $0x4e0] sm:$0xff] %v564_v28  ;;  %567 = vst [vmem:[%s5278_s18 + $0x4e8] sm:$0xff] %v566_v29  ;;  %v570_v31 = vld [vmem:[%s5270_s17 + $0x1da8] sm:$0xff] }
  0x65   : > { %569 = vst [vmem:[%s5278_s18 + $0x4f0] sm:$0xff] %v568_v30  ;;  %v572_v32 = vld [vmem:[%s5270_s17 + $0x1e00] sm:$0xff]  ;;  %v574_v33 = vld [vmem:[%s5270_s17 + $0x1e08] sm:$0xff]  ;;  %571 = vst [vmem:[%s5278_s18 + $0x4f8] sm:$0xff] %v570_v31 }
  0x66   : > { %573 = vst [vmem:[%s5278_s18 + $0x500] sm:$0xff] %v572_v32  ;;  %575 = vst [vmem:[%s5278_s18 + $0x508] sm:$0xff] %v574_v33  ;;  %v576_v34 = vld [vmem:[%s5270_s17 + $0x1e60] sm:$0xff]  ;;  %v578_v35 = vld [vmem:[%s5270_s17 + $0x1e68] sm:$0xff] }
  0x67   : > { %v580_v36 = vld [vmem:[%s5270_s17 + $0x1ec0] sm:$0xff]  ;;  %577 = vst [vmem:[%s5278_s18 + $0x510] sm:$0xff] %v576_v34  ;;  %579 = vst [vmem:[%s5278_s18 + $0x518] sm:$0xff] %v578_v35  ;;  %v582_v37 = vld [vmem:[%s5270_s17 + $0x1ec8] sm:$0xff] }
  0x68   : > { %581 = vst [vmem:[%s5278_s18 + $0x520] sm:$0xff] %v580_v36  ;;  %v584_v38 = vld [vmem:[%s5270_s17 + $0x1f20] sm:$0xff]  ;;  %v586_v39 = vld [vmem:[%s5270_s17 + $0x1f28] sm:$0xff]  ;;  %583 = vst [vmem:[%s5278_s18 + $0x528] sm:$0xff] %v582_v37 }
  0x69   : > { %585 = vst [vmem:[%s5278_s18 + $0x530] sm:$0xff] %v584_v38  ;;  %587 = vst [vmem:[%s5278_s18 + $0x538] sm:$0xff] %v586_v39  ;;  %v588_v40 = vld [vmem:[%s5270_s17 + $0x1f80] sm:$0xff]  ;;  %v590_v41 = vld [vmem:[%s5270_s17 + $0x1f88] sm:$0xff] }
  0x6a   : > { %v592_v42 = vld [vmem:[%s5270_s17 + $0x1fe0] sm:$0xff]  ;;  %589 = vst [vmem:[%s5278_s18 + $0x540] sm:$0xff] %v588_v40  ;;  %591 = vst [vmem:[%s5278_s18 + $0x548] sm:$0xff] %v590_v41  ;;  %v594_v43 = vld [vmem:[%s5270_s17 + $0x1fe8] sm:$0xff] }
  0x6b   : > { %593 = vst [vmem:[%s5278_s18 + $0x550] sm:$0xff] %v592_v42  ;;  %v596_v44 = vld [vmem:[%s5270_s17 + $0x2040] sm:$0xff]  ;;  %v598_v45 = vld [vmem:[%s5270_s17 + $0x2048] sm:$0xff]  ;;  %595 = vst [vmem:[%s5278_s18 + $0x558] sm:$0xff] %v594_v43 }
  0x6c   : > { %597 = vst [vmem:[%s5278_s18 + $0x560] sm:$0xff] %v596_v44  ;;  %599 = vst [vmem:[%s5278_s18 + $0x568] sm:$0xff] %v598_v45  ;;  %v600_v46 = vld [vmem:[%s5270_s17 + $0x20a0] sm:$0xff]  ;;  %v602_v47 = vld [vmem:[%s5270_s17 + $0x20a8] sm:$0xff] }
  0x6d   : > { %v604_v48 = vld [vmem:[%s5270_s17 + $0x2100] sm:$0xff]  ;;  %601 = vst [vmem:[%s5278_s18 + $0x570] sm:$0xff] %v600_v46  ;;  %603 = vst [vmem:[%s5278_s18 + $0x578] sm:$0xff] %v602_v47  ;;  %v606_v49 = vld [vmem:[%s5270_s17 + $0x2108] sm:$0xff] }
  0x6e   : > { %605 = vst [vmem:[%s5278_s18 + $0x580] sm:$0xff] %v604_v48  ;;  %v608_v50 = vld [vmem:[%s5270_s17 + $0x2160] sm:$0xff]  ;;  %v610_v51 = vld [vmem:[%s5270_s17 + $0x2168] sm:$0xff]  ;;  %607 = vst [vmem:[%s5278_s18 + $0x588] sm:$0xff] %v606_v49 }
  0x6f   : > { %609 = vst [vmem:[%s5278_s18 + $0x590] sm:$0xff] %v608_v50  ;;  %611 = vst [vmem:[%s5278_s18 + $0x598] sm:$0xff] %v610_v51  ;;  %v612_v52 = vld [vmem:[%s5270_s17 + $0x21c0] sm:$0xff]  ;;  %v614_v53 = vld [vmem:[%s5270_s17 + $0x21c8] sm:$0xff] }
  0x70   : > { %v616_v54 = vld [vmem:[%s5270_s17 + $0x2220] sm:$0xff]  ;;  %613 = vst [vmem:[%s5278_s18 + $0x5a0] sm:$0xff] %v612_v52  ;;  %615 = vst [vmem:[%s5278_s18 + $0x5a8] sm:$0xff] %v614_v53  ;;  %v618_v55 = vld [vmem:[%s5270_s17 + $0x2228] sm:$0xff] }
  0x71   : > { %617 = vst [vmem:[%s5278_s18 + $0x5b0] sm:$0xff] %v616_v54  ;;  %v620_v56 = vld [vmem:[%s5270_s17 + $0x2280] sm:$0xff]  ;;  %v622_v57 = vld [vmem:[%s5270_s17 + $0x2288] sm:$0xff]  ;;  %619 = vst [vmem:[%s5278_s18 + $0x5b8] sm:$0xff] %v618_v55 }
  0x72   : > { %621 = vst [vmem:[%s5278_s18 + $0x5c0] sm:$0xff] %v620_v56  ;;  %623 = vst [vmem:[%s5278_s18 + $0x5c8] sm:$0xff] %v622_v57  ;;  %v624_v58 = vld [vmem:[%s5270_s17 + $0x22e0] sm:$0xff]  ;;  %v626_v59 = vld [vmem:[%s5270_s17 + $0x22e8] sm:$0xff] }
  0x73   : > { %v628_v60 = vld [vmem:[%s5270_s17 + $0x2340] sm:$0xff]  ;;  %625 = vst [vmem:[%s5278_s18 + $0x5d0] sm:$0xff] %v624_v58  ;;  %627 = vst [vmem:[%s5278_s18 + $0x5d8] sm:$0xff] %v626_v59  ;;  %v630_v61 = vld [vmem:[%s5270_s17 + $0x2348] sm:$0xff] }
  0x74   : > { %629 = vst [vmem:[%s5278_s18 + $0x5e0] sm:$0xff] %v628_v60  ;;  %v632_v62 = vld [vmem:[%s5270_s17 + $0x23a0] sm:$0xff]  ;;  %v634_v63 = vld [vmem:[%s5270_s17 + $0x23a8] sm:$0xff]  ;;  %631 = vst [vmem:[%s5278_s18 + $0x5e8] sm:$0xff] %v630_v61 }
  0x75   : > { %633 = vst [vmem:[%s5278_s18 + $0x5f0] sm:$0xff] %v632_v62  ;;  %635 = vst [vmem:[%s5278_s18 + $0x5f8] sm:$0xff] %v634_v63 }
  0x76 PF: > { %s650_s19 = sand.u32 1, %s5169_s26   ;;  %s4476_s20 = smul.u32 24576, %s5173_s27 }
  0x77   : > { %s4475_s21 = smul.u32 1536, %s650_s19  ;;  %s5667_s12 = scalar_lea.sflag [#allocation5], %s650_s19 }
  0x78   : > { %s5663_s24 = scalar_lea.hbm %s6355_s3, %s4476_s20  ;;  %s5115_s16 = scalar_lea.hbm %s6355_s3, 147456 }
  0x79   : > { %s654_s30 = scalar_lea.vmem [#allocation4], %s4475_s21  ;;  %s5111_s13 = scalar_lea.hbm %s5663_s24, 24576 }
  0x7a   : > { %s662_s8 = sshll.u32 %s654_s30, 4  ;;  %p5112_p8 = scmp.ne.s32.totalorder %s5663_s24, %s5111_s13  ;;  %s5665_s8 = int_to_ptr.vmem [resolvable:$true] %s662_s8 }
  0x7b   : > { %p5116_p11 = scmp.lt.u32.totalorder %s5663_s24, %s6355_s3  ;;  %p5117_p12 = scmp.lt.u32.totalorder %s5115_s16, %s5111_s13 }
  0x7c   : > { %p5113_p9 = pnand %p5112_p8, %p5253_p4  ;;  %p5119_p0 = scmp.lt.u32.totalorder %s5111_s13, %s5663_s24 }
  0x7d   : > { %p5118_p13 = por %p5117_p12, %p5116_p11 }
  0x7e   : > { %p5114_p10 = pneg %p5113_p9 }
  0x7f   : > { %p5120_p1 = por %p5119_p0, %p5118_p13 }
  0x81   : > { %p5121_p2 = pnand %p5120_p1, %p5114_p10 }
  0x83   : > { %5124 = shalt.err (!%p5121_p2)
}
  0x84   : > { %s5125_s19 = scalar_lea.vmem %s5665_s8, 24576  ;;  %s5175_s20 = smov [#allocation4]  }
  0x85   : > { %p5126_p3 = scmp.ne.s32.totalorder %s5665_s8, %s5125_s19  ;;  %s5129_s21 = sshll.u32 %s5175_s20, 4  ;;  %s5130_s21 = int_to_ptr.vmem [resolvable:$false] %s5129_s21 }
  0x86   : > { %s5131_s22 = scalar_lea.vmem %s5130_s21, 49152  ;;  %p5132_p8 = scmp.lt.s32.totalorder %s5665_s8, %s5130_s21 }
  0x87   : > { %p5127_p5 = pnand %p5126_p3, %p5253_p4  ;;  %p5133_p9 = scmp.lt.s32.totalorder %s5131_s22, %s5125_s19 }
  0x89   : > { %p5128_p7 = pneg %p5127_p5  ;;  %p5134_p11 = por %p5133_p9, %p5132_p8 }
  0x8b   : > { %p5135_p12 = pnand %p5134_p11, %p5128_p7 }
  0x8d   : > { %5138 = shalt.err (!%p5135_p12)
}
  0x8e   : > { %s5176_s23 = smov 384   ;;  %s5177_s30 = smov 24  }
  0x8f   : > { %4478 = dma.hbm_to_vmem [thread:$0]  (%p5253_p4), %s5663_s24, 24576, %s5665_s8, %s5667_s12, %s5176_s23, %s5176_s23, %s5177_s30  }
  0x90 PF: > { %p4047_p10 = scmp.ge.s32.totalorder %s5173_s27, 1  ;;  %p670_p13 = scmp.lt.s32.totalorder %s5173_s27, 7 }
  0x92   : > { %p671_p0 = pnand %p4047_p10, %p670_p13 }
  0x93   : > { %s677_s13 = sand.u32 (!%p671_p0), 1, %s5165_s25  }
  0x94   : > { %674 = sbr.rel (%p671_p0) target bundleno = 1354 (0x54a), region = 67  ;;  %s684_s16 = scalar_lea.sflag (!%p671_p0), [#allocation5], %s677_s13 }
  0x95   : > { %s4477_s14 = smul.u32 (!%p671_p0), 1536, %s677_s13 }
  0x97   : > { %s5694_s15 = scalar_lea.vmem (!%p671_p0), [#allocation3], %s4477_s14  ;;  %s5696_s17 = scalar_lea.vmem (!%p671_p0), [#allocation4], %s4477_s14 }
  0x9b   : > { %5156 = dma.done.wait (%p5258_p6), %s684_s16, 24576  }
  0x9c   : > { %5158 = vsyncadd (%p5258_p6), %s684_s16, 4294942720  ;;  %s4048_s10 = sshll.u32 %s5238_s28, 2  ;;  %p4049_p1 = scmp.ne.s32.totalorder %s5238_s28, 0 }
  0x9d   : > { %p723_p4 = scmp.lt.s32.totalorder %s4048_s10, 23  ;;  %v5178_v0 = vmov (!%p4049_p1), 0.0  }
  0x9e   : > { %731 = sbr.rel (%p4049_p1) target bundleno = 165 (0xa5), region = 79  ;;  %732 = vst [vmem:[#allocation2] sm:$0xff] (!%p4049_p1), %v5178_v0  ;;  %733 = vst [vmem:[#allocation2 + $0x8] sm:$0xff] (!%p4049_p1), %v5178_v0 }
  0x9f   : > { %s6367_s10 = smov (!%p723_p4, %s4048_s10), 23  ;;  %734 = vst [vmem:[#allocation2 + $0x10] sm:$0xff] (!%p4049_p1), %v5178_v0  ;;  %735 = vst [vmem:[#allocation2 + $0x18] sm:$0xff] (!%p4049_p1), %v5178_v0 }
  0xa0   : > { %s725_s8 = scalar_lea.vmem %s6354_s2, %s6367_s10  ;;  %736 = vst [vmem:[#allocation2 + $0x20] sm:$0xff] (!%p4049_p1), %v5178_v0  ;;  %737 = vst [vmem:[#allocation2 + $0x28] sm:$0xff] (!%p4049_p1), %v5178_v0 }
  0xa1   : > { %738 = vst [vmem:[#allocation2 + $0x30] sm:$0xff] (!%p4049_p1), %v5178_v0  ;;  %739 = vst [vmem:[#allocation2 + $0x38] sm:$0xff] (!%p4049_p1), %v5178_v0 }
  0xa2   : > { %740 = vst [vmem:[#allocation2 + $0x40] sm:$0xff] (!%p4049_p1), %v5178_v0  ;;  %741 = vst [vmem:[#allocation2 + $0x48] sm:$0xff] (!%p4049_p1), %v5178_v0 }
  0xa3   : > { %742 = vst [vmem:[#allocation2 + $0x50] sm:$0xff] (!%p4049_p1), %v5178_v0  ;;  %743 = vst [vmem:[#allocation2 + $0x58] sm:$0xff] (!%p4049_p1), %v5178_v0 }
  0xa5 PF: > { %v4515_v1 = vld [vmem:[%s5694_s15 + $0x4] ss:$16 sps:$4 sm:$0xff]   ;;  %v4519_v3 = vld [vmem:[%s5694_s15] ss:$16 sps:$4 sm:$0xff]   ;;  %v745_v47 = vld [vmem:[%s6352_s0 + $0x8] sm:$0xff]  ;;  %p4434_p6 = scmp.ne.s32.totalorder %s5238_s28, 5 }
  0xa6   : > { %v4517_v2 = vld [vmem:[%s5694_s15 + $0x204] ss:$16 sps:$4 sm:$0xff]   ;;  %1936 = vmatprep.subr.bf16.mxu1 %v4515_v1  ;;  %v4520_v4 = vld [vmem:[%s5694_s15 + $0x200] ss:$16 sps:$4 sm:$0xff]   ;;  %v751_v50 = vld [vmem:[%s6352_s0 + $0x38] sm:$0xff] }
  0xa7   : > { %1979 = vmatprep.subr.bf16.mxu0 %v4517_v2  ;;  %v4521_v5 = vld [vmem:[%s5694_s15 + $0x24] ss:$16 sps:$4 sm:$0xff]   ;;  %1937 = vmatpush1.bf16.msra.mxu1 %v4519_v3  ;;  %v4525_v7 = vld [vmem:[%s5694_s15 + $0x20] ss:$16 sps:$4 sm:$0xff]   ;;  %v5764_v51 = vpack.c.bf16 %v751_v50, %v745_v47  ;;  %v747_v52 = vld [vmem:[%s6352_s0 + $0x18] sm:$0xff] }
  0xa8   : > { %1980 = vmatpush1.bf16.msra.mxu0 %v4520_v4  ;;  %v4523_v6 = vld [vmem:[%s5694_s15 + $0x224] ss:$16 sps:$4 sm:$0xff]   ;;  %1938 = vmatprep.subr.bf16.mxu1 %v4521_v5  ;;  %v4526_v8 = vld [vmem:[%s5694_s15 + $0x220] ss:$16 sps:$4 sm:$0xff]   ;;  %v753_v53 = vld [vmem:[%s6352_s0 + $0x48] sm:$0xff] }
  0xa9   : > { %1981 = vmatprep.subr.bf16.mxu0 %v4523_v6  ;;  %v4527_v9 = vld [vmem:[%s5694_s15 + $0x44] ss:$16 sps:$4 sm:$0xff]   ;;  %v4531_v11 = vld [vmem:[%s5694_s15 + $0x40] ss:$16 sps:$4 sm:$0xff]   ;;  %v5774_v56 = vpack.c.bf16 %v753_v53, %v747_v52  ;;  %1968 = vmatprep.mubr.bf16.mxu1 %v5764_v51  ;;  %v4656_v47 = vld [vmem:[%s5694_s15 + $0xe8] ss:$16 sps:$4 sm:$0xff]  }
  0xaa   : > { %v4529_v10 = vld [vmem:[%s5694_s15 + $0x244] ss:$16 sps:$4 sm:$0xff]   ;;  %v4532_v12 = vld [vmem:[%s5694_s15 + $0x240] ss:$16 sps:$4 sm:$0xff]   ;;  %v4670_v53 = vld [vmem:[%s5694_s15 + $0x12c] ss:$16 sps:$4 sm:$0xff]  }
  0xab   : > { %1939 = vmatpush1.bf16.msra.mxu1 %v4525_v7  ;;  %v4533_v13 = vld [vmem:[%s5694_s15 + $0x64] ss:$16 sps:$4 sm:$0xff]   ;;  %v4537_v15 = vld [vmem:[%s5694_s15 + $0x60] ss:$16 sps:$4 sm:$0xff]   ;;  %2011 = vmatprep.mubr.bf16.mxu0 %v5774_v56 }
  0xac   : > { %1982 = vmatpush1.bf16.msra.mxu0 %v4526_v8  ;;  %1940 = vmatprep.subr.bf16.mxu1 %v4527_v9  ;;  %v4535_v14 = vld [vmem:[%s5694_s15 + $0x264] ss:$16 sps:$4 sm:$0xff]   ;;  %v4538_v16 = vld [vmem:[%s5694_s15 + $0x260] ss:$16 sps:$4 sm:$0xff]  }
  0xad   : > { %1983 = vmatprep.subr.bf16.mxu0 %v4529_v10  ;;  %v4539_v17 = vld [vmem:[%s5694_s15 + $0x84] ss:$16 sps:$4 sm:$0xff]   ;;  %v4543_v19 = vld [vmem:[%s5694_s15 + $0x80] ss:$16 sps:$4 sm:$0xff]  }
  0xae   : > { %v4541_v18 = vld [vmem:[%s5694_s15 + $0x284] ss:$16 sps:$4 sm:$0xff]   ;;  %v4544_v20 = vld [vmem:[%s5694_s15 + $0x280] ss:$16 sps:$4 sm:$0xff]  }
  0xaf   : > { %1941 = vmatpush1.bf16.msra.mxu1 %v4531_v11  ;;  %v4545_v21 = vld [vmem:[%s5694_s15 + $0xa4] ss:$16 sps:$4 sm:$0xff]   ;;  %v4549_v23 = vld [vmem:[%s5694_s15 + $0xa0] ss:$16 sps:$4 sm:$0xff]  }
  0xb0   : > { %1984 = vmatpush1.bf16.msra.mxu0 %v4532_v12  ;;  %1942 = vmatprep.subr.bf16.mxu1 %v4533_v13  ;;  %v4547_v22 = vld [vmem:[%s5694_s15 + $0x2a4] ss:$16 sps:$4 sm:$0xff]   ;;  %v4550_v24 = vld [vmem:[%s5694_s15 + $0x2a0] ss:$16 sps:$4 sm:$0xff]   ;;  %v4616_v12 = vld [vmem:[%s5694_s15 + $0xc] ss:$16 sps:$4 sm:$0xff]  }
  0xb1   : > { %1985 = vmatprep.subr.bf16.mxu0 %v4535_v14  ;;  %v4551_v25 = vld [vmem:[%s5694_s15 + $0xc4] ss:$16 sps:$4 sm:$0xff]   ;;  %v4555_v27 = vld [vmem:[%s5694_s15 + $0xc0] ss:$16 sps:$4 sm:$0xff]  }
  0xb2   : > { %v4553_v26 = vld [vmem:[%s5694_s15 + $0x2c4] ss:$16 sps:$4 sm:$0xff]   ;;  %v4556_v28 = vld [vmem:[%s5694_s15 + $0x2c0] ss:$16 sps:$4 sm:$0xff]  }
  0xb3   : > { %1943 = vmatpush1.bf16.msra.mxu1 %v4537_v15  ;;  %v4557_v29 = vld [vmem:[%s5694_s15 + $0xe4] ss:$16 sps:$4 sm:$0xff]   ;;  %v4561_v31 = vld [vmem:[%s5694_s15 + $0xe0] ss:$16 sps:$4 sm:$0xff]   ;;  %v4614_v15 = vld [vmem:[%s5694_s15 + $0x8] ss:$16 sps:$4 sm:$0xff]  }
  0xb4   : > { %1986 = vmatpush1.bf16.msra.mxu0 %v4538_v16  ;;  %1944 = vmatprep.subr.bf16.mxu1 %v4539_v17  ;;  %v4559_v30 = vld [vmem:[%s5694_s15 + $0x2e4] ss:$16 sps:$4 sm:$0xff]   ;;  %v4562_v32 = vld [vmem:[%s5694_s15 + $0x2e0] ss:$16 sps:$4 sm:$0xff]  }
  0xb5   : > { %1987 = vmatprep.subr.bf16.mxu0 %v4541_v18  ;;  %v4563_v33 = vld [vmem:[%s5694_s15 + $0x104] ss:$16 sps:$4 sm:$0xff]   ;;  %v4567_v35 = vld [vmem:[%s5694_s15 + $0x100] ss:$16 sps:$4 sm:$0xff]   ;;  %v4622_v18 = vld [vmem:[%s5694_s15 + $0x2c] ss:$16 sps:$4 sm:$0xff]  }
  0xb6   : > { %v4565_v34 = vld [vmem:[%s5694_s15 + $0x304] ss:$16 sps:$4 sm:$0xff]   ;;  %v4568_v36 = vld [vmem:[%s5694_s15 + $0x300] ss:$16 sps:$4 sm:$0xff]  }
  0xb7   : > { %1945 = vmatpush1.bf16.msra.mxu1 %v4543_v19  ;;  %v4569_v37 = vld [vmem:[%s5694_s15 + $0x124] ss:$16 sps:$4 sm:$0xff]   ;;  %v4573_v39 = vld [vmem:[%s5694_s15 + $0x120] ss:$16 sps:$4 sm:$0xff]  }
  0xb8   : > { %1988 = vmatpush1.bf16.msra.mxu0 %v4544_v20  ;;  %1946 = vmatprep.subr.bf16.mxu1 %v4545_v21  ;;  %v4571_v38 = vld [vmem:[%s5694_s15 + $0x324] ss:$16 sps:$4 sm:$0xff]   ;;  %v4574_v40 = vld [vmem:[%s5694_s15 + $0x320] ss:$16 sps:$4 sm:$0xff]   ;;  %v4620_v20 = vld [vmem:[%s5694_s15 + $0x28] ss:$16 sps:$4 sm:$0xff]  }
  0xb9   : > { %1989 = vmatprep.subr.bf16.mxu0 %v4547_v22  ;;  %v4575_v41 = vld [vmem:[%s5694_s15 + $0x144] ss:$16 sps:$4 sm:$0xff]   ;;  %v4579_v43 = vld [vmem:[%s5694_s15 + $0x140] ss:$16 sps:$4 sm:$0xff]   ;;  %v4628_v22 = vld [vmem:[%s5694_s15 + $0x4c] ss:$16 sps:$4 sm:$0xff]  }
  0xba   : > { %v4577_v42 = vld [vmem:[%s5694_s15 + $0x344] ss:$16 sps:$4 sm:$0xff]   ;;  %v4580_v44 = vld [vmem:[%s5694_s15 + $0x340] ss:$16 sps:$4 sm:$0xff]  }
  0xbb   : > { %1947 = vmatpush1.bf16.msra.mxu1 %v4549_v23  ;;  %v4581_v45 = vld [vmem:[%s5694_s15 + $0x164] ss:$16 sps:$4 sm:$0xff]   ;;  %v4585_v48 = vld [vmem:[%s5694_s15 + $0x160] ss:$16 sps:$4 sm:$0xff]  }
  0xbc   : > { %1990 = vmatpush1.bf16.msra.mxu0 %v4550_v24  ;;  %1948 = vmatprep.subr.bf16.mxu1 %v4551_v25  ;;  %v4583_v46 = vld [vmem:[%s5694_s15 + $0x364] ss:$16 sps:$4 sm:$0xff]   ;;  %v4586_v49 = vld [vmem:[%s5694_s15 + $0x360] ss:$16 sps:$4 sm:$0xff]   ;;  %v4626_v24 = vld [vmem:[%s5694_s15 + $0x48] ss:$16 sps:$4 sm:$0xff]  }
  0xbd   : > { %1991 = vmatprep.subr.bf16.mxu0 %v4553_v26  ;;  %v4587_v54 = vld [vmem:[%s5694_s15 + $0x184] ss:$16 sps:$4 sm:$0xff]   ;;  %v4591_v57 = vld [vmem:[%s5694_s15 + $0x180] ss:$16 sps:$4 sm:$0xff]   ;;  %v4634_v26 = vld [vmem:[%s5694_s15 + $0x6c] ss:$16 sps:$4 sm:$0xff]  }
  0xbe   : > { %v4589_v55 = vld [vmem:[%s5694_s15 + $0x384] ss:$16 sps:$4 sm:$0xff]   ;;  %v4592_v58 = vld [vmem:[%s5694_s15 + $0x380] ss:$16 sps:$4 sm:$0xff]  }
  0xbf   : > { %1949 = vmatpush1.bf16.msra.mxu1 %v4555_v27  ;;  %v4593_v59 = vld [vmem:[%s5694_s15 + $0x1a4] ss:$16 sps:$4 sm:$0xff]   ;;  %v4597_v61 = vld [vmem:[%s5694_s15 + $0x1a0] ss:$16 sps:$4 sm:$0xff]  }
  0xc0   : > { %1992 = vmatpush1.bf16.msra.mxu0 %v4556_v28  ;;  %1950 = vmatprep.subr.bf16.mxu1 %v4557_v29  ;;  %v4595_v60 = vld [vmem:[%s5694_s15 + $0x3a4] ss:$16 sps:$4 sm:$0xff]   ;;  %v4598_v62 = vld [vmem:[%s5694_s15 + $0x3a0] ss:$16 sps:$4 sm:$0xff]   ;;  %v4632_v28 = vld [vmem:[%s5694_s15 + $0x68] ss:$16 sps:$4 sm:$0xff]  }
  0xc1   : > { %1993 = vmatprep.subr.bf16.mxu0 %v4559_v30  ;;  %v4599_v63 = vld [vmem:[%s5694_s15 + $0x1c4] ss:$16 sps:$4 sm:$0xff]   ;;  %v4603_v1 = vld [vmem:[%s5694_s15 + $0x1c0] ss:$16 sps:$4 sm:$0xff]   ;;  %v4640_v30 = vld [vmem:[%s5694_s15 + $0x8c] ss:$16 sps:$4 sm:$0xff]  }
  0xc2   : > { %v4601_v0 = vld [vmem:[%s5694_s15 + $0x3c4] ss:$16 sps:$4 sm:$0xff]   ;;  %v4604_v2 = vld [vmem:[%s5694_s15 + $0x3c0] ss:$16 sps:$4 sm:$0xff]  }
  0xc3   : > { %1951 = vmatpush1.bf16.msra.mxu1 %v4561_v31  ;;  %v4605_v3 = vld [vmem:[%s5694_s15 + $0x1e4] ss:$16 sps:$4 sm:$0xff]   ;;  %v4609_v5 = vld [vmem:[%s5694_s15 + $0x1e0] ss:$16 sps:$4 sm:$0xff]  }
  0xc4   : > { %1994 = vmatpush1.bf16.msra.mxu0 %v4562_v32  ;;  %1952 = vmatprep.subr.bf16.mxu1 %v4563_v33  ;;  %v4607_v4 = vld [vmem:[%s5694_s15 + $0x3e4] ss:$16 sps:$4 sm:$0xff]   ;;  %v4610_v6 = vld [vmem:[%s5694_s15 + $0x3e0] ss:$16 sps:$4 sm:$0xff]   ;;  %v4638_v32 = vld [vmem:[%s5694_s15 + $0x88] ss:$16 sps:$4 sm:$0xff]  }
  0xc5   : > { %1995 = vmatprep.subr.bf16.mxu0 %v4565_v34  ;;  %v744_v7 = vld [vmem:[%s6352_s0] sm:$0xff]  ;;  %v750_v8 = vld [vmem:[%s6352_s0 + $0x30] sm:$0xff]  ;;  %v4646_v34 = vld [vmem:[%s5694_s15 + $0xac] ss:$16 sps:$4 sm:$0xff]  }
  0xc6   : > { %v4613_v9 = vld [vmem:[%s5694_s15 + $0x404] ss:$16 sps:$4 sm:$0xff]   ;;  %v5806_v13 = vpack.c.bf16 %v750_v8, %v744_v7  ;;  %v4611_v14 = vld [vmem:[%s5694_s15 + $0x400] ss:$16 sps:$4 sm:$0xff]   ;;  %v4692_v8 = vld [vmem:[%s5694_s15 + $0x1a8] ss:$16 sps:$4 sm:$0xff]  }
  0xc7   : > { %1953 = vmatpush1.bf16.msra.mxu1 %v4567_v35  ;;  %v746_v10 = vld [vmem:[%s6352_s0 + $0x10] sm:$0xff]  ;;  %v752_v11 = vld [vmem:[%s6352_s0 + $0x40] sm:$0xff] }
  0xc8   : > { %1996 = vmatpush1.bf16.msra.mxu0 %v4568_v36  ;;  %1954 = vmatprep.subr.bf16.mxu1 %v4569_v37  ;;  %v5810_v16 = vpack.c.bf16 %v752_v11, %v746_v10  ;;  %v4619_v17 = vld [vmem:[%s5694_s15 + $0x424] ss:$16 sps:$4 sm:$0xff]   ;;  %v4617_v19 = vld [vmem:[%s5694_s15 + $0x420] ss:$16 sps:$4 sm:$0xff]   ;;  %v4644_v36 = vld [vmem:[%s5694_s15 + $0xa8] ss:$16 sps:$4 sm:$0xff]  }
  0xc9   : > { %1997 = vmatprep.subr.bf16.mxu0 %v4571_v38  ;;  %v4625_v21 = vld [vmem:[%s5694_s15 + $0x444] ss:$16 sps:$4 sm:$0xff]   ;;  %v4623_v23 = vld [vmem:[%s5694_s15 + $0x440] ss:$16 sps:$4 sm:$0xff]   ;;  %v4652_v38 = vld [vmem:[%s5694_s15 + $0xcc] ss:$16 sps:$4 sm:$0xff]  }
  0xca   : > { %v4631_v25 = vld [vmem:[%s5694_s15 + $0x464] ss:$16 sps:$4 sm:$0xff]   ;;  %v4629_v27 = vld [vmem:[%s5694_s15 + $0x460] ss:$16 sps:$4 sm:$0xff]   ;;  %v4700_v10 = vld [vmem:[%s5694_s15 + $0x1cc] ss:$16 sps:$4 sm:$0xff]  }
  0xcb   : > { %1955 = vmatpush1.bf16.msra.mxu1 %v4573_v39  ;;  %v4637_v29 = vld [vmem:[%s5694_s15 + $0x484] ss:$16 sps:$4 sm:$0xff]   ;;  %v4635_v31 = vld [vmem:[%s5694_s15 + $0x480] ss:$16 sps:$4 sm:$0xff]  }
  0xcc   : > { %1998 = vmatpush1.bf16.msra.mxu0 %v4574_v40  ;;  %1956 = vmatprep.subr.bf16.mxu1 %v4575_v41  ;;  %v4643_v33 = vld [vmem:[%s5694_s15 + $0x4a4] ss:$16 sps:$4 sm:$0xff]   ;;  %v4641_v35 = vld [vmem:[%s5694_s15 + $0x4a0] ss:$16 sps:$4 sm:$0xff]   ;;  %v4650_v40 = vld [vmem:[%s5694_s15 + $0xc8] ss:$16 sps:$4 sm:$0xff]  }
  0xcd   : > { %1999 = vmatprep.subr.bf16.mxu0 %v4577_v42  ;;  %v4649_v37 = vld [vmem:[%s5694_s15 + $0x4c4] ss:$16 sps:$4 sm:$0xff]   ;;  %v4647_v39 = vld [vmem:[%s5694_s15 + $0x4c0] ss:$16 sps:$4 sm:$0xff]   ;;  %v749_v42 = vld [vmem:[%s6352_s0 + $0x28] sm:$0xff] }
  0xce   : > { %v4655_v41 = vld [vmem:[%s5694_s15 + $0x4e4] ss:$16 sps:$4 sm:$0xff]   ;;  %v4659_v50 = vld [vmem:[%s5694_s15 + $0x500] ss:$16 sps:$4 sm:$0xff]  }
  0xcf   : > { %1957 = vmatpush1.bf16.msra.mxu1 %v4579_v43  ;;  %v755_v43 = vld [vmem:[%s6352_s0 + $0x58] sm:$0xff]  ;;  %v4667_v52 = vld [vmem:[%s5694_s15 + $0x524] ss:$16 sps:$4 sm:$0xff]   ;;  %v4689_v7 = vld [vmem:[%s5694_s15 + $0x5a0] ss:$16 sps:$4 sm:$0xff]  }
  0xd0   : > { %2000 = vmatpush1.bf16.msra.mxu0 %v4580_v44  ;;  %1958 = vmatprep.subr.bf16.mxu1 %v4581_v45  ;;  %v4658_v44 = vld [vmem:[%s5694_s15 + $0xec] ss:$16 sps:$4 sm:$0xff]   ;;  %v5847_v45 = vpack.c.bf16 %v755_v43, %v749_v42  ;;  %v4695_v11 = vld [vmem:[%s5694_s15 + $0x5c0] ss:$16 sps:$4 sm:$0xff]   ;;  %v4731_v42 = vld [vmem:[%s5694_s15 + $0x308] ss:$16 sps:$4 sm:$0xff]  }
  0xd1   : > { %2001 = vmatprep.subr.bf16.mxu0 %v4583_v46  ;;  %v4653_v46 = vld [vmem:[%s5694_s15 + $0x4e0] ss:$16 sps:$4 sm:$0xff]   ;;  %v4736_v43 = vld [vmem:[%s5694_s15 + $0x32c] ss:$16 sps:$4 sm:$0xff]  }
  0xd3   : > { %1959 = vmatpush1.bf16.msra.mxu1 %v4585_v48  ;;  %v4661_v48 = vld [vmem:[%s5694_s15 + $0x504] ss:$16 sps:$4 sm:$0xff]  }
  0xd4   : > { %2002 = vmatpush1.bf16.msra.mxu0 %v4586_v49  ;;  %1960 = vmatprep.subr.bf16.mxu1 %v4587_v54  ;;  %v4664_v49 = vld [vmem:[%s5694_s15 + $0x10c] ss:$16 sps:$4 sm:$0xff]   ;;  %v4665_v54 = vld [vmem:[%s5694_s15 + $0x520] ss:$16 sps:$4 sm:$0xff]  }
  0xd5   : > { %2003 = vmatprep.subr.bf16.mxu0 %v4589_v55  ;;  %v4668_v55 = vld [vmem:[%s5694_s15 + $0x128] ss:$16 sps:$4 sm:$0xff]  }
  0xd7   : > { %1961 = vmatpush1.bf16.msra.mxu1 %v4591_v57  ;;  %v4673_v57 = vld [vmem:[%s5694_s15 + $0x544] ss:$16 sps:$4 sm:$0xff]  }
  0xd8   : > { %2004 = vmatpush1.bf16.msra.mxu0 %v4592_v58  ;;  %1962 = vmatprep.subr.bf16.mxu1 %v4593_v59  ;;  %v4676_v58 = vld [vmem:[%s5694_s15 + $0x14c] ss:$16 sps:$4 sm:$0xff]   ;;  %v4671_v59 = vld [vmem:[%s5694_s15 + $0x540] ss:$16 sps:$4 sm:$0xff]  }
  0xd9   : > { %2005 = vmatprep.subr.bf16.mxu0 %v4595_v60  ;;  %v4674_v60 = vld [vmem:[%s5694_s15 + $0x148] ss:$16 sps:$4 sm:$0xff]  }
  0xdb   : > { %1963 = vmatpush1.bf16.msra.mxu1 %v4597_v61  ;;  %v4679_v61 = vld [vmem:[%s5694_s15 + $0x564] ss:$16 sps:$4 sm:$0xff]  }
  0xdc   : > { %2006 = vmatpush1.bf16.msra.mxu0 %v4598_v62  ;;  %1964 = vmatprep.subr.bf16.mxu1 %v4599_v63  ;;  %v4682_v62 = vld [vmem:[%s5694_s15 + $0x16c] ss:$16 sps:$4 sm:$0xff]   ;;  %v4677_v63 = vld [vmem:[%s5694_s15 + $0x560] ss:$16 sps:$4 sm:$0xff]  }
  0xdd   : > { %2007 = vmatprep.subr.bf16.mxu0 %v4601_v0  ;;  %v4680_v0 = vld [vmem:[%s5694_s15 + $0x168] ss:$16 sps:$4 sm:$0xff]  }
  0xdf   : > { %1965 = vmatpush1.bf16.msra.mxu1 %v4603_v1  ;;  %v4685_v1 = vld [vmem:[%s5694_s15 + $0x584] ss:$16 sps:$4 sm:$0xff]  }
  0xe0   : > { %2008 = vmatpush1.bf16.msra.mxu0 %v4604_v2  ;;  %1966 = vmatprep.subr.bf16.mxu1 %v4605_v3  ;;  %v4688_v2 = vld [vmem:[%s5694_s15 + $0x18c] ss:$16 sps:$4 sm:$0xff]   ;;  %v4683_v3 = vld [vmem:[%s5694_s15 + $0x580] ss:$16 sps:$4 sm:$0xff]  }
  0xe1   : > { %2009 = vmatprep.subr.bf16.mxu0 %v4607_v4  ;;  %v4686_v4 = vld [vmem:[%s5694_s15 + $0x188] ss:$16 sps:$4 sm:$0xff]  }
  0xe3   : > { %1967 = vmatpush1.bf16.msra.mxu1 %v4609_v5  ;;  %v4691_v5 = vld [vmem:[%s5694_s15 + $0x5a4] ss:$16 sps:$4 sm:$0xff]  }
  0xe4   : > { %2010 = vmatpush1.bf16.msra.mxu0 %v4610_v6  ;;  %2065 = vmatprep.subr.bf16.mxu1 %v4616_v12  ;;  %v4694_v6 = vld [vmem:[%s5694_s15 + $0x1ac] ss:$16 sps:$4 sm:$0xff]   ;;  %v4698_v12 = vld [vmem:[%s5694_s15 + $0x1c8] ss:$16 sps:$4 sm:$0xff]  }
  0xe5   : > { %2022 = vmatprep.subr.bf16.mxu0 %v4613_v9  ;;  %v4697_v9 = vld [vmem:[%s5694_s15 + $0x5c4] ss:$16 sps:$4 sm:$0xff]  }
  0xe6   : > { %1969 = vmatmul.mubr.bf16.vlgmr.msra.gmra.mrb[0].mxu1 %v5806_v13 }
  0xe7   : > { %2012 = vmatmul.mubr.bf16.vlgmr.msra.gmra.mrb[0].mxu0 %v5810_v16  ;;  %2066 = vmatpush1.bf16.msra.mxu1 %v4614_v15  ;;  %v4706_v15 = vld [vmem:[%s5694_s15 + $0x1ec] ss:$16 sps:$4 sm:$0xff]  }
  0xe8   : > { %2023 = vmatpush1.bf16.msra.mxu0 %v4611_v14  ;;  %2067 = vmatprep.subr.bf16.mxu1 %v4622_v18  ;;  %v4703_v14 = vld [vmem:[%s5694_s15 + $0x5e4] ss:$16 sps:$4 sm:$0xff]   ;;  %v4704_v18 = vld [vmem:[%s5694_s15 + $0x1e8] ss:$16 sps:$4 sm:$0xff]  }
  0xe9   : > { %2024 = vmatprep.subr.bf16.mxu0 %v4619_v17  ;;  %2097 = vmatprep.mubr.bf16.mxu1 %v5764_v51  ;;  %v4662_v51 = vld [vmem:[%s5694_s15 + $0x108] ss:$16 sps:$4 sm:$0xff]   ;;  %v4701_v17 = vld [vmem:[%s5694_s15 + $0x5e0] ss:$16 sps:$4 sm:$0xff]  }
  0xea   : > { %2054 = vmatprep.mubr.bf16.mxu0 %v5847_v45 }
  0xeb   : > { %2068 = vmatpush1.bf16.msra.mxu1 %v4620_v20  ;;  %v754_v20 = vld [vmem:[%s6352_s0 + $0x50] sm:$0xff] }
  0xec   : > { %2025 = vmatpush1.bf16.msra.mxu0 %v4617_v19  ;;  %2069 = vmatprep.subr.bf16.mxu1 %v4628_v22  ;;  %v748_v19 = vld [vmem:[%s6352_s0 + $0x20] sm:$0xff] }
  0xed   : > { %2026 = vmatprep.subr.bf16.mxu0 %v4625_v21  ;;  %v4709_v21 = vld [vmem:[%s5694_s15 + $0x20c] ss:$16 sps:$4 sm:$0xff]   ;;  %v5891_v22 = vpack.c.bf16 %v754_v20, %v748_v19  ;;  %v4851_v20 = vld [vmem:[%s5696_s17 + $0x180] ss:$24 sps:$4 sm:$0xff]  }
  0xee   : > { %v4853_v19 = vld [vmem:[%s5696_s17 + $0x184] ss:$24 sps:$4 sm:$0xff]  }
  0xef   : > { %2070 = vmatpush1.bf16.msra.mxu1 %v4626_v24  ;;  %v4712_v24 = vld [vmem:[%s5694_s15 + $0x22c] ss:$16 sps:$4 sm:$0xff]  }
  0xf0   : > { %2027 = vmatpush1.bf16.msra.mxu0 %v4623_v23  ;;  %2071 = vmatprep.subr.bf16.mxu1 %v4634_v26  ;;  %v4707_v23 = vld [vmem:[%s5694_s15 + $0x208] ss:$16 sps:$4 sm:$0xff]   ;;  %v4715_v26 = vld [vmem:[%s5694_s15 + $0x24c] ss:$16 sps:$4 sm:$0xff]  }
  0xf1   : > { %2028 = vmatprep.subr.bf16.mxu0 %v4631_v25  ;;  %v4710_v25 = vld [vmem:[%s5694_s15 + $0x228] ss:$16 sps:$4 sm:$0xff]  }
  0xf3   : > { %2072 = vmatpush1.bf16.msra.mxu1 %v4632_v28  ;;  %v4718_v28 = vld [vmem:[%s5694_s15 + $0x26c] ss:$16 sps:$4 sm:$0xff]  }
  0xf4   : > { %2029 = vmatpush1.bf16.msra.mxu0 %v4629_v27  ;;  %2073 = vmatprep.subr.bf16.mxu1 %v4640_v30  ;;  %v4713_v27 = vld [vmem:[%s5694_s15 + $0x248] ss:$16 sps:$4 sm:$0xff]   ;;  %v4721_v30 = vld [vmem:[%s5694_s15 + $0x28c] ss:$16 sps:$4 sm:$0xff]  }
  0xf5   : > { %2030 = vmatprep.subr.bf16.mxu0 %v4637_v29  ;;  %v4716_v29 = vld [vmem:[%s5694_s15 + $0x268] ss:$16 sps:$4 sm:$0xff]  }
  0xf7   : > { %2074 = vmatpush1.bf16.msra.mxu1 %v4638_v32  ;;  %v4727_v32 = vld [vmem:[%s5694_s15 + $0x2cc] ss:$16 sps:$4 sm:$0xff]  }
  0xf8   : > { %2031 = vmatpush1.bf16.msra.mxu0 %v4635_v31  ;;  %2075 = vmatprep.subr.bf16.mxu1 %v4646_v34  ;;  %v4724_v31 = vld [vmem:[%s5694_s15 + $0x2ac] ss:$16 sps:$4 sm:$0xff]  }
  0xf9   : > { %2032 = vmatprep.subr.bf16.mxu0 %v4643_v33  ;;  %v4725_v33 = vld [vmem:[%s5694_s15 + $0x2c8] ss:$16 sps:$4 sm:$0xff]   ;;  %v4730_v34 = vld [vmem:[%s5694_s15 + $0x2ec] ss:$16 sps:$4 sm:$0xff]  }
  0xfb   : > { %2076 = vmatpush1.bf16.msra.mxu1 %v4644_v36  ;;  %v4805_v36 = vld [vmem:[%s5696_s17 + $0x4] ss:$24 sps:$4 sm:$0xff]  }
  0xfc   : > { %2033 = vmatpush1.bf16.msra.mxu0 %v4641_v35  ;;  %2077 = vmatprep.subr.bf16.mxu1 %v4652_v38  ;;  %v4803_v35 = vld [vmem:[%s5696_s17] ss:$24 sps:$4 sm:$0xff]  }
  0xfd   : > { %2034 = vmatprep.subr.bf16.mxu0 %v4649_v37  ;;  %v4811_v37 = vld [vmem:[%s5696_s17 + $0x34] ss:$24 sps:$4 sm:$0xff]   ;;  %v4728_v38 = vld [vmem:[%s5694_s15 + $0x2e8] ss:$16 sps:$4 sm:$0xff]  }
  0xff   : > { %2078 = vmatpush1.bf16.msra.mxu1 %v4650_v40  ;;  %v4809_v40 = vld [vmem:[%s5696_s17 + $0x30] ss:$24 sps:$4 sm:$0xff]  }
 0x100   : > { %2035 = vmatpush1.bf16.msra.mxu0 %v4647_v39  ;;  %2079 = vmatprep.subr.bf16.mxu1 %v4658_v44  ;;  %v4733_v39 = vld [vmem:[%s5694_s15 + $0x30c] ss:$16 sps:$4 sm:$0xff]   ;;  %v4815_v44 = vld [vmem:[%s5696_s17 + $0x60] ss:$24 sps:$4 sm:$0xff]  }
 0x101   : > { %2036 = vmatprep.subr.bf16.mxu0 %v4655_v41  ;;  %v4817_v41 = vld [vmem:[%s5696_s17 + $0x64] ss:$24 sps:$4 sm:$0xff]  }
 0x103   : > { %2080 = vmatpush1.bf16.msra.mxu1 %v4656_v47  ;;  %v4734_v47 = vld [vmem:[%s5694_s15 + $0x328] ss:$16 sps:$4 sm:$0xff]  }
 0x104   : > { %2037 = vmatpush1.bf16.msra.mxu0 %v4653_v46  ;;  %2081 = vmatprep.subr.bf16.mxu1 %v4664_v49  ;;  %v4823_v46 = vld [vmem:[%s5696_s17 + $0x94] ss:$24 sps:$4 sm:$0xff]   ;;  %v4821_v49 = vld [vmem:[%s5696_s17 + $0x90] ss:$24 sps:$4 sm:$0xff]  }
 0x105   : > { %2038 = vmatprep.subr.bf16.mxu0 %v4661_v48  ;;  %v4739_v48 = vld [vmem:[%s5694_s15 + $0x34c] ss:$16 sps:$4 sm:$0xff]  }
 0x107   : > { %2082 = vmatpush1.bf16.msra.mxu1 %v4662_v51  ;;  %v4737_v51 = vld [vmem:[%s5694_s15 + $0x348] ss:$16 sps:$4 sm:$0xff]  }
 0x108   : > { %2039 = vmatpush1.bf16.msra.mxu0 %v4659_v50  ;;  %2083 = vmatprep.subr.bf16.mxu1 %v4670_v53  ;;  %v4829_v50 = vld [vmem:[%s5696_s17 + $0xc4] ss:$24 sps:$4 sm:$0xff]   ;;  %v4827_v53 = vld [vmem:[%s5696_s17 + $0xc0] ss:$24 sps:$4 sm:$0xff]  }
 0x109   : > { %2040 = vmatprep.subr.bf16.mxu0 %v4667_v52  ;;  %v4742_v52 = vld [vmem:[%s5694_s15 + $0x36c] ss:$16 sps:$4 sm:$0xff]  }
 0x10b   : > { %2084 = vmatpush1.bf16.msra.mxu1 %v4668_v55  ;;  %v4740_v55 = vld [vmem:[%s5694_s15 + $0x368] ss:$16 sps:$4 sm:$0xff]  }
 0x10c   : > { %2041 = vmatpush1.bf16.msra.mxu0 %v4665_v54  ;;  %2085 = vmatprep.subr.bf16.mxu1 %v4676_v58  ;;  %v4835_v54 = vld [vmem:[%s5696_s17 + $0xf4] ss:$24 sps:$4 sm:$0xff]   ;;  %v4833_v58 = vld [vmem:[%s5696_s17 + $0xf0] ss:$24 sps:$4 sm:$0xff]  }
 0x10d   : > { %2042 = vmatprep.subr.bf16.mxu0 %v4673_v57  ;;  %v4745_v57 = vld [vmem:[%s5694_s15 + $0x38c] ss:$16 sps:$4 sm:$0xff]  }
 0x10f   : > { %2086 = vmatpush1.bf16.msra.mxu1 %v4674_v60  ;;  %v4743_v60 = vld [vmem:[%s5694_s15 + $0x388] ss:$16 sps:$4 sm:$0xff]  }
 0x110   : > { %2043 = vmatpush1.bf16.msra.mxu0 %v4671_v59  ;;  %2087 = vmatprep.subr.bf16.mxu1 %v4682_v62  ;;  %v4841_v59 = vld [vmem:[%s5696_s17 + $0x124] ss:$24 sps:$4 sm:$0xff]   ;;  %v4839_v62 = vld [vmem:[%s5696_s17 + $0x120] ss:$24 sps:$4 sm:$0xff]  }
 0x111   : > { %2044 = vmatprep.subr.bf16.mxu0 %v4679_v61  ;;  %v4748_v61 = vld [vmem:[%s5694_s15 + $0x3ac] ss:$16 sps:$4 sm:$0xff]  }
 0x113   : > { %2088 = vmatpush1.bf16.msra.mxu1 %v4680_v0  ;;  %v4746_v0 = vld [vmem:[%s5694_s15 + $0x3a8] ss:$16 sps:$4 sm:$0xff]  }
 0x114   : > { %2045 = vmatpush1.bf16.msra.mxu0 %v4677_v63  ;;  %2089 = vmatprep.subr.bf16.mxu1 %v4688_v2  ;;  %v4847_v63 = vld [vmem:[%s5696_s17 + $0x154] ss:$24 sps:$4 sm:$0xff]   ;;  %v4845_v2 = vld [vmem:[%s5696_s17 + $0x150] ss:$24 sps:$4 sm:$0xff]  }
 0x115   : > { %2046 = vmatprep.subr.bf16.mxu0 %v4685_v1  ;;  %v4751_v1 = vld [vmem:[%s5694_s15 + $0x3cc] ss:$16 sps:$4 sm:$0xff]  }
 0x117   : > { %2090 = vmatpush1.bf16.msra.mxu1 %v4686_v4  ;;  %v4754_v4 = vld [vmem:[%s5694_s15 + $0x3ec] ss:$16 sps:$4 sm:$0xff]  }
 0x118   : > { %2047 = vmatpush1.bf16.msra.mxu0 %v4683_v3  ;;  %2091 = vmatprep.subr.bf16.mxu1 %v4694_v6  ;;  %v4749_v3 = vld [vmem:[%s5694_s15 + $0x3c8] ss:$16 sps:$4 sm:$0xff]   ;;  %v4757_v6 = vld [vmem:[%s5694_s15 + $0x40c] ss:$16 sps:$4 sm:$0xff]  }
 0x119   : > { %2048 = vmatprep.subr.bf16.mxu0 %v4691_v5  ;;  %v4752_v5 = vld [vmem:[%s5694_s15 + $0x3e8] ss:$16 sps:$4 sm:$0xff]  }
 0x11b   : > { %2092 = vmatpush1.bf16.msra.mxu1 %v4692_v8  ;;  %v4760_v8 = vld [vmem:[%s5694_s15 + $0x42c] ss:$16 sps:$4 sm:$0xff]  }
 0x11c   : > { %2049 = vmatpush1.bf16.msra.mxu0 %v4689_v7  ;;  %2093 = vmatprep.subr.bf16.mxu1 %v4700_v10  ;;  %v4755_v7 = vld [vmem:[%s5694_s15 + $0x408] ss:$16 sps:$4 sm:$0xff]   ;;  %v4763_v10 = vld [vmem:[%s5694_s15 + $0x44c] ss:$16 sps:$4 sm:$0xff]  }
 0x11d   : > { %2050 = vmatprep.subr.bf16.mxu0 %v4697_v9  ;;  %v4758_v9 = vld [vmem:[%s5694_s15 + $0x428] ss:$16 sps:$4 sm:$0xff]  }
 0x11f   : > { %2094 = vmatpush1.bf16.msra.mxu1 %v4698_v12  ;;  %v4766_v12 = vld [vmem:[%s5694_s15 + $0x46c] ss:$16 sps:$4 sm:$0xff]  }
 0x120   : > { %2051 = vmatpush1.bf16.msra.mxu0 %v4695_v11  ;;  %2095 = vmatprep.subr.bf16.mxu1 %v4706_v15  ;;  %v4761_v11 = vld [vmem:[%s5694_s15 + $0x448] ss:$16 sps:$4 sm:$0xff]   ;;  %v4769_v15 = vld [vmem:[%s5694_s15 + $0x48c] ss:$16 sps:$4 sm:$0xff]  }
 0x121   : > { %2052 = vmatprep.subr.bf16.mxu0 %v4703_v14  ;;  %v4764_v14 = vld [vmem:[%s5694_s15 + $0x468] ss:$16 sps:$4 sm:$0xff]  }
 0x123   : > { %2096 = vmatpush1.bf16.msra.mxu1 %v4704_v18  ;;  %v4775_v18 = vld [vmem:[%s5694_s15 + $0x4cc] ss:$16 sps:$4 sm:$0xff]  }
 0x124   : > { %2053 = vmatpush1.bf16.msra.mxu0 %v4701_v17  ;;  %2108 = vmatprep.subr.bf16.mxu1 %v4709_v21  ;;  %v4770_v17 = vld [vmem:[%s5694_s15 + $0x4a8] ss:$16 sps:$4 sm:$0xff]  }
 0x125   : > { %3434 = vmatprep.subr.bf16.mxu0 %v4805_v36  ;;  %v4773_v21 = vld [vmem:[%s5694_s15 + $0x4c8] ss:$16 sps:$4 sm:$0xff]   ;;  %v4883_v36 = vld [vmem:[%s5696_s17 + $0x274] ss:$24 sps:$4 sm:$0xff]  }
 0x126   : > { %2098 = vmatmul.mubr.bf16.vlgmr.msra.gmra.mrb[4].mxu1 %v5806_v13  ;;  %v4719_v13 = vld [vmem:[%s5694_s15 + $0x288] ss:$16 sps:$4 sm:$0xff]  }
 0x127   : > { %2055 = vmatmul.mubr.bf16.vlgmr.msra.gmra.mrb[0].mxu0 %v5891_v22  ;;  %2109 = vmatpush1.bf16.msra.mxu1 %v4707_v23  ;;  %v4778_v23 = vld [vmem:[%s5694_s15 + $0x4ec] ss:$16 sps:$4 sm:$0xff]  }
 0x128   : > { %2140 = vmatprep.mubr.bf16.mxu1 %v5774_v56  ;;  %2110 = vmatprep.subr.bf16.mxu1 %v4712_v24  ;;  %v4722_v56 = vld [vmem:[%s5694_s15 + $0x2a8] ss:$16 sps:$4 sm:$0xff]   ;;  %v4859_v24 = vld [vmem:[%s5696_s17 + $0x1b4] ss:$24 sps:$4 sm:$0xff]  }
 0x129   : > { %3435 = vmatpush1.bf16.msra.mxu0 %v4803_v35  ;;  %v4877_v35 = vld [vmem:[%s5696_s17 + $0x244] ss:$24 sps:$4 sm:$0xff]  }
 0x12a   : > { %3436 = vmatprep.subr.bf16.mxu0 %v4811_v37  ;;  %v4785_v37 = vld [vmem:[%s5694_s15 + $0x548] ss:$16 sps:$4 sm:$0xff]  }
 0x12b   : > { %2111 = vmatpush1.bf16.msra.mxu1 %v4710_v25  ;;  %v4857_v25 = vld [vmem:[%s5696_s17 + $0x1b0] ss:$24 sps:$4 sm:$0xff]  }
 0x12c   : > { %2112 = vmatprep.subr.bf16.mxu1 %v4715_v26  ;;  %v4776_v26 = vld [vmem:[%s5694_s15 + $0x4e8] ss:$16 sps:$4 sm:$0xff]  }
 0x12d   : > { %3437 = vmatpush1.bf16.msra.mxu0 %v4809_v40  ;;  %v4889_v40 = vld [vmem:[%s5696_s17 + $0x2a4] ss:$24 sps:$4 sm:$0xff]  }
 0x12e   : > { %3438 = vmatprep.subr.bf16.mxu0 %v4817_v41  ;;  %v4788_v41 = vld [vmem:[%s5694_s15 + $0x568] ss:$16 sps:$4 sm:$0xff]  }
 0x12f   : > { %2113 = vmatpush1.bf16.msra.mxu1 %v4713_v27  ;;  %v4781_v27 = vld [vmem:[%s5694_s15 + $0x50c] ss:$16 sps:$4 sm:$0xff]  }
 0x130   : > { %2114 = vmatprep.subr.bf16.mxu1 %v4718_v28  ;;  %v4865_v28 = vld [vmem:[%s5696_s17 + $0x1e4] ss:$24 sps:$4 sm:$0xff]  }
 0x131   : > { %3439 = vmatpush1.bf16.msra.mxu0 %v4815_v44  ;;  %v4895_v44 = vld [vmem:[%s5696_s17 + $0x2d4] ss:$24 sps:$4 sm:$0xff]  }
 0x132   : > { %3440 = vmatprep.subr.bf16.mxu0 %v4823_v46  ;;  %v4791_v46 = vld [vmem:[%s5694_s15 + $0x588] ss:$16 sps:$4 sm:$0xff]  }
 0x133   : > { %2115 = vmatpush1.bf16.msra.mxu1 %v4716_v29  ;;  %v4863_v29 = vld [vmem:[%s5696_s17 + $0x1e0] ss:$24 sps:$4 sm:$0xff]  }
 0x134   : > { %2116 = vmatprep.subr.bf16.mxu1 %v4721_v30  ;;  %v4779_v30 = vld [vmem:[%s5694_s15 + $0x508] ss:$16 sps:$4 sm:$0xff]  }
 0x135   : > { %3441 = vmatpush1.bf16.msra.mxu0 %v4821_v49  ;;  %v4794_v49 = vld [vmem:[%s5694_s15 + $0x5a8] ss:$16 sps:$4 sm:$0xff]  }
 0x136   : > { %3442 = vmatprep.subr.bf16.mxu0 %v4829_v50  ;;  %v4799_v50 = vld [vmem:[%s5694_s15 + $0x5cc] ss:$16 sps:$4 sm:$0xff]  }
 0x137   : > { %2117 = vmatpush1.bf16.msra.mxu1 %v4719_v13  ;;  %v4784_v13 = vld [vmem:[%s5694_s15 + $0x52c] ss:$16 sps:$4 sm:$0xff]  }
 0x138   : > { %2118 = vmatprep.subr.bf16.mxu1 %v4724_v31  ;;  %v4871_v31 = vld [vmem:[%s5696_s17 + $0x214] ss:$24 sps:$4 sm:$0xff]  }
 0x139   : > { %3443 = vmatpush1.bf16.msra.mxu0 %v4827_v53  ;;  %v4802_v53 = vld [vmem:[%s5694_s15 + $0x5ec] ss:$16 sps:$4 sm:$0xff]  }
 0x13a   : > { %3444 = vmatprep.subr.bf16.mxu0 %v4835_v54  ;;  %v4800_v54 = vld [vmem:[%s5694_s15 + $0x5e8] ss:$16 sps:$4 sm:$0xff]  }
 0x13b   : > { %2119 = vmatpush1.bf16.msra.mxu1 %v4722_v56  ;;  %v4869_v56 = vld [vmem:[%s5696_s17 + $0x210] ss:$24 sps:$4 sm:$0xff]  }
 0x13c   : > { %2120 = vmatprep.subr.bf16.mxu1 %v4727_v32  ;;  %v4782_v32 = vld [vmem:[%s5694_s15 + $0x528] ss:$16 sps:$4 sm:$0xff]  }
 0x13d   : > { %3445 = vmatpush1.bf16.msra.mxu0 %v4833_v58  ;;  %v4814_v58 = vld [vmem:[%s5696_s17 + $0x3c] ss:$24 sps:$4 sm:$0xff]  }
 0x13e   : > { %3446 = vmatprep.subr.bf16.mxu0 %v4841_v59  ;;  %v4812_v59 = vld [vmem:[%s5696_s17 + $0x38] ss:$24 sps:$4 sm:$0xff]  }
 0x13f   : > { %2121 = vmatpush1.bf16.msra.mxu1 %v4725_v33  ;;  %v4787_v33 = vld [vmem:[%s5694_s15 + $0x54c] ss:$16 sps:$4 sm:$0xff]  }
 0x140   : > { %2122 = vmatprep.subr.bf16.mxu1 %v4730_v34  ;;  %v4875_v34 = vld [vmem:[%s5696_s17 + $0x240] ss:$24 sps:$4 sm:$0xff]  }
 0x141   : > { %3447 = vmatpush1.bf16.msra.mxu0 %v4839_v62  ;;  %v4826_v62 = vld [vmem:[%s5696_s17 + $0x9c] ss:$24 sps:$4 sm:$0xff]  }
 0x142   : > { %3448 = vmatprep.subr.bf16.mxu0 %v4847_v63  ;;  %v4824_v63 = vld [vmem:[%s5696_s17 + $0x98] ss:$24 sps:$4 sm:$0xff]  }
 0x143   : > { %2123 = vmatpush1.bf16.msra.mxu1 %v4728_v38  ;;  %v4790_v38 = vld [vmem:[%s5694_s15 + $0x56c] ss:$16 sps:$4 sm:$0xff]  }
 0x144   : > { %2124 = vmatprep.subr.bf16.mxu1 %v4733_v39  ;;  %v4881_v39 = vld [vmem:[%s5696_s17 + $0x270] ss:$24 sps:$4 sm:$0xff]  }
 0x145   : > { %3449 = vmatpush1.bf16.msra.mxu0 %v4845_v2  ;;  %v4836_v2 = vld [vmem:[%s5696_s17 + $0xf8] ss:$24 sps:$4 sm:$0xff]  }
 0x146   : > { %3450 = vmatprep.subr.bf16.mxu0 %v4853_v19  ;;  %v4880_v19 = vld [vmem:[%s5696_s17 + $0x24c] ss:$24 sps:$4 sm:$0xff]  }
 0x147   : > { %2125 = vmatpush1.bf16.msra.mxu1 %v4731_v42  ;;  %v4793_v42 = vld [vmem:[%s5694_s15 + $0x58c] ss:$16 sps:$4 sm:$0xff]  }
 0x148   : > { %2126 = vmatprep.subr.bf16.mxu1 %v4736_v43  ;;  %v4887_v43 = vld [vmem:[%s5696_s17 + $0x2a0] ss:$24 sps:$4 sm:$0xff]  }
 0x149   : > { %3451 = vmatpush1.bf16.msra.mxu0 %v4851_v20  ;;  %v4878_v20 = vld [vmem:[%s5696_s17 + $0x248] ss:$24 sps:$4 sm:$0xff]  }
 0x14a   : > { %3452 = vmatprep.subr.bf16.mxu0 %v4859_v24  ;;  %v4892_v24 = vld [vmem:[%s5696_s17 + $0x2ac] ss:$24 sps:$4 sm:$0xff]  }
 0x14b   : > { %2127 = vmatpush1.bf16.msra.mxu1 %v4734_v47  ;;  %v4796_v47 = vld [vmem:[%s5694_s15 + $0x5ac] ss:$16 sps:$4 sm:$0xff]  }
 0x14c   : > { %2128 = vmatprep.subr.bf16.mxu1 %v4739_v48  ;;  %v4893_v48 = vld [vmem:[%s5696_s17 + $0x2d0] ss:$24 sps:$4 sm:$0xff]  }
 0x14d   : > { %3453 = vmatpush1.bf16.msra.mxu0 %v4857_v25  ;;  %v4890_v25 = vld [vmem:[%s5696_s17 + $0x2a8] ss:$24 sps:$4 sm:$0xff]  }
 0x14e   : > { %3454 = vmatprep.subr.bf16.mxu0 %v4865_v28  ;;  %v4904_v28 = vld [vmem:[%s5696_s17 + $0x30c] ss:$24 sps:$4 sm:$0xff]  }
 0x14f   : > { %2129 = vmatpush1.bf16.msra.mxu1 %v4737_v51  ;;  %v4797_v51 = vld [vmem:[%s5694_s15 + $0x5c8] ss:$16 sps:$4 sm:$0xff]  }
 0x150   : > { %2130 = vmatprep.subr.bf16.mxu1 %v4742_v52  ;;  %v4901_v52 = vld [vmem:[%s5696_s17 + $0x304] ss:$24 sps:$4 sm:$0xff]  }
 0x151   : > { %3455 = vmatpush1.bf16.msra.mxu0 %v4863_v29  ;;  %v956_v29 = vlaneseq }
 0x152   : > { %3456 = vmatprep.subr.bf16.mxu0 %v4871_v31  ;;  %v6038_v31 = vld [vmem:[%s725_s8] sm:$0xf] }
 0x153   : > { %2131 = vmatpush1.bf16.msra.mxu1 %v4740_v55  ;;  %v4808_v55 = vld [vmem:[%s5696_s17 + $0xc] ss:$24 sps:$4 sm:$0xff]  }
 0x154   : > { %2132 = vmatprep.subr.bf16.mxu1 %v4745_v57  ;;  %v4806_v57 = vld [vmem:[%s5696_s17 + $0x8] ss:$24 sps:$4 sm:$0xff]  }
 0x155   : > { %3457 = vmatpush1.bf16.msra.mxu0 %v4869_v56 }
 0x156   : > { %3458 = vmatprep.subr.bf16.mxu0 %v4877_v35 }
 0x157   : > { %2133 = vmatpush1.bf16.msra.mxu1 %v4743_v60  ;;  %v4820_v60 = vld [vmem:[%s5696_s17 + $0x6c] ss:$24 sps:$4 sm:$0xff]  }
 0x158   : > { %2134 = vmatprep.subr.bf16.mxu1 %v4748_v61  ;;  %v4818_v61 = vld [vmem:[%s5696_s17 + $0x68] ss:$24 sps:$4 sm:$0xff]  }
 0x159   : > { %3459 = vmatpush1.bf16.msra.mxu0 %v4875_v34 }
 0x15a   : > { %3460 = vmatprep.subr.bf16.mxu0 %v4883_v36 }
 0x15b   : > { %2135 = vmatpush1.bf16.msra.mxu1 %v4746_v0  ;;  %v4832_v0 = vld [vmem:[%s5696_s17 + $0xcc] ss:$24 sps:$4 sm:$0xff]  }
 0x15c   : > { %2136 = vmatprep.subr.bf16.mxu1 %v4751_v1  ;;  %v4830_v1 = vld [vmem:[%s5696_s17 + $0xc8] ss:$24 sps:$4 sm:$0xff]  }
 0x15d   : > { %3461 = vmatpush1.bf16.msra.mxu0 %v4881_v39 }
 0x15e   : > { %3462 = vmatprep.subr.bf16.mxu0 %v4889_v40 }
 0x15f   : > { %2137 = vmatpush1.bf16.msra.mxu1 %v4749_v3  ;;  %v4844_v3 = vld [vmem:[%s5696_s17 + $0x12c] ss:$24 sps:$4 sm:$0xff]  }
 0x160   : > { %2138 = vmatprep.subr.bf16.mxu1 %v4754_v4 }
 0x161   : > { %3463 = vmatpush1.bf16.msra.mxu0 %v4887_v43 }
 0x162   : > { %3464 = vmatprep.subr.bf16.mxu0 %v4895_v44 }
 0x163   : > { %2139 = vmatpush1.bf16.msra.mxu1 %v4752_v5 }
 0x164   : > { %2151 = vmatprep.subr.bf16.mxu1 %v4757_v6 }
 0x165   : > { %3465 = vmatpush1.bf16.msra.mxu0 %v4893_v48 }
 0x166   : > { %2141 = vmatmul.mubr.bf16.vlgmr.msra.gmra.mrb[4].mxu1 %v5810_v16  ;;  %v4767_v16 = vld [vmem:[%s5694_s15 + $0x488] ss:$16 sps:$4 sm:$0xff]   ;;  %3477 = vmatprep.subr.bf16.mxu0 %v4901_v52 }
 0x167   : > { %2152 = vmatpush1.bf16.msra.mxu1 %v4755_v7  ;;  %2183 = vmatprep.mubr.bf16.mxu1 %v5847_v45  ;;  %v4772_v45 = vld [vmem:[%s5694_s15 + $0x4ac] ss:$16 sps:$4 sm:$0xff]   ;;  %v4842_v7 = vld [vmem:[%s5696_s17 + $0x128] ss:$24 sps:$4 sm:$0xff]  }
 0x168   : > { %2153 = vmatprep.subr.bf16.mxu1 %v4760_v8 }
 0x16b   : > { %2154 = vmatpush1.bf16.msra.mxu1 %v4758_v9  ;;  %v4850_v9 = vld [vmem:[%s5696_s17 + $0x15c] ss:$24 sps:$4 sm:$0xff]  }
 0x16c   : > { %2155 = vmatprep.subr.bf16.mxu1 %v4763_v10  ;;  %v4848_v10 = vld [vmem:[%s5696_s17 + $0x158] ss:$24 sps:$4 sm:$0xff]  }
 0x16f   : > { %2156 = vmatpush1.bf16.msra.mxu1 %v4761_v11  ;;  %v4856_v11 = vld [vmem:[%s5696_s17 + $0x18c] ss:$24 sps:$4 sm:$0xff]  }
 0x170   : > { %2157 = vmatprep.subr.bf16.mxu1 %v4766_v12  ;;  %v4854_v12 = vld [vmem:[%s5696_s17 + $0x188] ss:$24 sps:$4 sm:$0xff]  }
 0x173   : > { %2158 = vmatpush1.bf16.msra.mxu1 %v4764_v14  ;;  %v4862_v14 = vld [vmem:[%s5696_s17 + $0x1bc] ss:$24 sps:$4 sm:$0xff]  }
 0x174   : > { %2159 = vmatprep.subr.bf16.mxu1 %v4769_v15  ;;  %v4860_v15 = vld [vmem:[%s5696_s17 + $0x1b8] ss:$24 sps:$4 sm:$0xff]  }
 0x177   : > { %2160 = vmatpush1.bf16.msra.mxu1 %v4767_v16  ;;  %v4868_v16 = vld [vmem:[%s5696_s17 + $0x1ec] ss:$24 sps:$4 sm:$0xff]  }
 0x178   : > { %2161 = vmatprep.subr.bf16.mxu1 %v4772_v45  ;;  %v4866_v45 = vld [vmem:[%s5696_s17 + $0x1e8] ss:$24 sps:$4 sm:$0xff]  }
 0x17b   : > { %2162 = vmatpush1.bf16.msra.mxu1 %v4770_v17  ;;  %v4874_v17 = vld [vmem:[%s5696_s17 + $0x21c] ss:$24 sps:$4 sm:$0xff]  }
 0x17c   : > { %2163 = vmatprep.subr.bf16.mxu1 %v4775_v18  ;;  %v4872_v18 = vld [vmem:[%s5696_s17 + $0x218] ss:$24 sps:$4 sm:$0xff]  }
 0x17f   : > { %2164 = vmatpush1.bf16.msra.mxu1 %v4773_v21  ;;  %v4886_v21 = vld [vmem:[%s5696_s17 + $0x27c] ss:$24 sps:$4 sm:$0xff]  }
 0x180   : > { %2165 = vmatprep.subr.bf16.mxu1 %v4778_v23  ;;  %v4884_v23 = vld [vmem:[%s5696_s17 + $0x278] ss:$24 sps:$4 sm:$0xff]  }
 0x183   : > { %2166 = vmatpush1.bf16.msra.mxu1 %v4776_v26  ;;  %v4898_v26 = vld [vmem:[%s5696_s17 + $0x2dc] ss:$24 sps:$4 sm:$0xff]  }
 0x184   : > { %2167 = vmatprep.subr.bf16.mxu1 %v4781_v27  ;;  %v4896_v27 = vld [vmem:[%s5696_s17 + $0x2d8] ss:$24 sps:$4 sm:$0xff]  }
 0x187   : > { %2168 = vmatpush1.bf16.msra.mxu1 %v4779_v30  ;;  %v6028_v30 = vshrl.u32 %v956_v29, 7  ;;  %v4916_v29 = vld [vmem:[%s5696_s17 + $0x36c] ss:$24 sps:$4 sm:$0xff]  }
 0x188   : > { %2169 = vmatprep.subr.bf16.mxu1 %v4784_v13 }
 0x189   : > { %v6031_v13 = vsub.s32 0, %v6028_v30  ;;  %v6041_v56 = vsub.s32 1, %v6028_v30 }
 0x18b   : > { %2170 = vmatpush1.bf16.msra.mxu1 %v4782_v32  ;;  %v959_v32 = vrot.slane %v6038_v31, %v6031_v13 }
 0x18c   : > { %2171 = vmatprep.subr.bf16.mxu1 %v4787_v33  ;;  %v963_v33 = vrot.slane %v6038_v31, %v6041_v56 }
 0x18f   : > { %2172 = vmatpush1.bf16.msra.mxu1 %v4785_v37 }
 0x190   : > { %2173 = vmatprep.subr.bf16.mxu1 %v4790_v38 }
 0x193   : > { %2174 = vmatpush1.bf16.msra.mxu1 %v4788_v41 }
 0x194   : > { %2175 = vmatprep.subr.bf16.mxu1 %v4793_v42 }
 0x197   : > { %2176 = vmatpush1.bf16.msra.mxu1 %v4791_v46 }
 0x198   : > { %2177 = vmatprep.subr.bf16.mxu1 %v4796_v47 }
 0x19b   : > { %2178 = vmatpush1.bf16.msra.mxu1 %v4794_v49 }
 0x19c   : > { %2179 = vmatprep.subr.bf16.mxu1 %v4799_v50 }
 0x19f   : > { %2180 = vmatpush1.bf16.msra.mxu1 %v4797_v51 }
 0x1a0   : > { %2181 = vmatprep.subr.bf16.mxu1 %v4802_v53 }
 0x1a3   : > { %2182 = vmatpush1.bf16.msra.mxu1 %v4800_v54 }
 0x1a4   : > { %3520 = vmatprep.subr.bf16.mxu1 %v4808_v55 }
 0x1a6   : > { %2184 = vmatmul.mubr.bf16.vlgmr.msra.gmra.mrb[4].mxu1 %v5891_v22  ;;  %v4838_v22 = vld [vmem:[%s5696_s17 + $0xfc] ss:$24 sps:$4 sm:$0xff]  }
 0x1a7   : > { %3521 = vmatpush1.bf16.msra.mxu1 %v4806_v57 }
 0x1a8   : > { %3522 = vmatprep.subr.bf16.mxu1 %v4814_v58 }
 0x1ab   : > { %3523 = vmatpush1.bf16.msra.mxu1 %v4812_v59 }
 0x1ac   : > { %3524 = vmatprep.subr.bf16.mxu1 %v4820_v60 }
 0x1af   : > { %3525 = vmatpush1.bf16.msra.mxu1 %v4818_v61 }
 0x1b0   : > { %3526 = vmatprep.subr.bf16.mxu1 %v4826_v62 }
 0x1b3   : > { %3527 = vmatpush1.bf16.msra.mxu1 %v4824_v63 }
 0x1b4   : > { %3528 = vmatprep.subr.bf16.mxu1 %v4832_v0 }
 0x1b7   : > { %3529 = vmatpush1.bf16.msra.mxu1 %v4830_v1 }
 0x1b8   : > { %3530 = vmatprep.subr.bf16.mxu1 %v4838_v22 }
 0x1b9   : > { %v1970_v4 = vpop.f32.mrb[0].mxu1 }
 0x1ba   : > { %v1972_v5 = vpop.f32.mrb[1].mxu1  ;;  %v1971_v34 = vadd.f32 %v1970_v4, %v959_v32 }
 0x1bb   : > { %v1974_v6 = vpop.f32.mrb[2].mxu1  ;;  %3531 = vmatpush1.bf16.msra.mxu1 %v4836_v2  ;;  %v1973_v35 = vadd.f32 %v1972_v5, %v963_v33 }
 0x1bc   : > { %v1976_v8 = vpop.f32.mrb[3].mxu1  ;;  %3532 = vmatprep.subr.bf16.mxu1 %v4844_v3  ;;  %v1975_v37 = vadd.f32 %v1974_v6, %v959_v32  ;;  %v4911_v32 = vld [vmem:[%s5696_s17 + $0x360] ss:$24 sps:$4 sm:$0xff]  }
 0x1bd   : > { %v1977_v40 = vadd.f32 %v1976_v8, %v963_v33  ;;  %v4914_v33 = vld [vmem:[%s5696_s17 + $0x368] ss:$24 sps:$4 sm:$0xff]  }
 0x1bf   : > { %3533 = vmatpush1.bf16.msra.mxu1 %v4842_v7 }
 0x1c0   : > { %3534 = vmatprep.subr.bf16.mxu1 %v4850_v9 }
 0x1c3   : > { %3535 = vmatpush1.bf16.msra.mxu1 %v4848_v10 }
 0x1c4   : > { %3536 = vmatprep.subr.bf16.mxu1 %v4856_v11 }
 0x1c7   : > { %3537 = vmatpush1.bf16.msra.mxu1 %v4854_v12 }
 0x1c8   : > { %3538 = vmatprep.subr.bf16.mxu1 %v4862_v14 }
 0x1cb   : > { %3539 = vmatpush1.bf16.msra.mxu1 %v4860_v15 }
 0x1cc   : > { %3540 = vmatprep.subr.bf16.mxu1 %v4868_v16 }
 0x1cf   : > { %3541 = vmatpush1.bf16.msra.mxu1 %v4866_v45 }
 0x1d0   : > { %3542 = vmatprep.subr.bf16.mxu1 %v4874_v17 }
 0x1d3   : > { %3543 = vmatpush1.bf16.msra.mxu1 %v4872_v18 }
 0x1d4   : > { %3544 = vmatprep.subr.bf16.mxu1 %v4880_v19 }
 0x1d7   : > { %3545 = vmatpush1.bf16.msra.mxu1 %v4878_v20 }
 0x1d8   : > { %3546 = vmatprep.subr.bf16.mxu1 %v4886_v21  ;;  %v4899_v21 = vld [vmem:[%s5696_s17 + $0x300] ss:$24 sps:$4 sm:$0xff]  }
 0x1db   : > { %3547 = vmatpush1.bf16.msra.mxu1 %v4884_v23  ;;  %v4902_v23 = vld [vmem:[%s5696_s17 + $0x308] ss:$24 sps:$4 sm:$0xff]  }
 0x1dc   : > { %3548 = vmatprep.subr.bf16.mxu1 %v4892_v24  ;;  %v4907_v24 = vld [vmem:[%s5696_s17 + $0x334] ss:$24 sps:$4 sm:$0xff]  }
 0x1df   : > { %3549 = vmatpush1.bf16.msra.mxu1 %v4890_v25  ;;  %v4910_v25 = vld [vmem:[%s5696_s17 + $0x33c] ss:$24 sps:$4 sm:$0xff]  }
 0x1e0   : > { %3550 = vmatprep.subr.bf16.mxu1 %v4898_v26  ;;  %v4905_v26 = vld [vmem:[%s5696_s17 + $0x330] ss:$24 sps:$4 sm:$0xff]  }
 0x1e3   : > { %3551 = vmatpush1.bf16.msra.mxu1 %v4896_v27  ;;  %v4908_v27 = vld [vmem:[%s5696_s17 + $0x338] ss:$24 sps:$4 sm:$0xff]  }
 0x1e4   : > { %3563 = vmatprep.subr.bf16.mxu1 %v4904_v28  ;;  %v4913_v28 = vld [vmem:[%s5696_s17 + $0x364] ss:$24 sps:$4 sm:$0xff]  }
 0x1fa   : > { %v2056_v36 = vpop.f32.mrb[0].mxu0 }
 0x1fb   : > { %v4439_v38 = vadd.f32 %v2056_v36, %v1971_v34  ;;  %v2058_v39 = vpop.f32.mrb[1].mxu0  ;;  %v4919_v34 = vld [vmem:[%s5696_s17 + $0x394] ss:$24 sps:$4 sm:$0xff]   ;;  %v4917_v36 = vld [vmem:[%s5696_s17 + $0x390] ss:$24 sps:$4 sm:$0xff]  }
 0x1fc   : > { %v4441_v41 = vadd.f32 %v2058_v39, %v1973_v35  ;;  %v2060_v42 = vpop.f32.mrb[2].mxu0  ;;  %v4922_v35 = vld [vmem:[%s5696_s17 + $0x39c] ss:$24 sps:$4 sm:$0xff]   ;;  %v4928_v39 = vld [vmem:[%s5696_s17 + $0x3cc] ss:$24 sps:$4 sm:$0xff]  }
 0x1fd   : > { %v2202_v43 = vmul.f32 0.044715, %v4439_v38  ;;  %v4443_v44 = vadd.f32 %v2060_v42, %v1975_v37  ;;  %v2062_v46 = vpop.f32.mrb[3].mxu0  ;;  %v2194_v9 = vmul.f32 0.5, %v4439_v38  ;;  %v4920_v37 = vld [vmem:[%s5696_s17 + $0x398] ss:$24 sps:$4 sm:$0xff]  }
 0x1fe   : > { %v2203_v47 = vmul.f32 0.044715, %v4441_v41  ;;  %v4445_v48 = vadd.f32 %v2062_v46, %v1977_v40  ;;  %v2195_v12 = vmul.f32 0.5, %v4441_v41  ;;  %v4923_v40 = vld [vmem:[%s5696_s17 + $0x3c0] ss:$24 sps:$4 sm:$0xff]  }
 0x1ff   : > { %v2210_v49 = vmul.f32 %v4439_v38, %v2202_v43  ;;  %v2206_v50 = vmul.f32 0.044715, %v4443_v44  ;;  %v2198_v10 = vmul.f32 0.5, %v4443_v44  ;;  %v4931_v42 = vld [vmem:[%s5696_s17 + $0x3f4] ss:$24 sps:$4 sm:$0xff]  }
 0x200   : > { %v2211_v51 = vmul.f32 %v4441_v41, %v2203_v47  ;;  %v2207_v52 = vmul.f32 0.044715, %v4445_v48  ;;  %v2199_v14 = vmul.f32 0.5, %v4445_v48  ;;  %v4934_v43 = vld [vmem:[%s5696_s17 + $0x3fc] ss:$24 sps:$4 sm:$0xff]  }
 0x201   : > { %v2218_v53 = vmul.f32 %v4439_v38, %v2210_v49  ;;  %v2214_v54 = vmul.f32 %v4443_v44, %v2206_v50  ;;  %v4932_v46 = vld [vmem:[%s5696_s17 + $0x3f8] ss:$24 sps:$4 sm:$0xff]   ;;  %v4937_v47 = vld [vmem:[%s5696_s17 + $0x424] ss:$24 sps:$4 sm:$0xff]   ;;  %v4938_v50 = vld [vmem:[%s5696_s17 + $0x428] ss:$24 sps:$4 sm:$0xff]  }
 0x202   : > { %v2219_v55 = vmul.f32 %v4441_v41, %v2211_v51  ;;  %v2215_v57 = vmul.f32 %v4445_v48, %v2207_v52  ;;  %v4935_v49 = vld [vmem:[%s5696_s17 + $0x420] ss:$24 sps:$4 sm:$0xff]   ;;  %v4943_v51 = vld [vmem:[%s5696_s17 + $0x454] ss:$24 sps:$4 sm:$0xff]  }
 0x203   : > { %v2226_v58 = vadd.f32 %v4439_v38, %v2218_v53  ;;  %v2222_v59 = vmul.f32 %v4443_v44, %v2214_v54  ;;  %v4925_v38 = vld [vmem:[%s5696_s17 + $0x3c4] ss:$24 sps:$4 sm:$0xff]   ;;  %v4941_v53 = vld [vmem:[%s5696_s17 + $0x450] ss:$24 sps:$4 sm:$0xff]  }
 0x204   : > { %v2223_v60 = vmul.f32 %v4445_v48, %v2215_v57  ;;  %v2227_v61 = vadd.f32 %v4441_v41, %v2219_v55  ;;  %v4926_v41 = vld [vmem:[%s5696_s17 + $0x3c8] ss:$24 sps:$4 sm:$0xff]   ;;  %v4946_v52 = vld [vmem:[%s5696_s17 + $0x45c] ss:$24 sps:$4 sm:$0xff]   ;;  %v4944_v54 = vld [vmem:[%s5696_s17 + $0x458] ss:$24 sps:$4 sm:$0xff]  }
 0x205   : > { %v2234_v62 = vmul.f32 0.7978846, %v2226_v58  ;;  %v2230_v63 = vadd.f32 %v4443_v44, %v2222_v59  ;;  %v4929_v44 = vld [vmem:[%s5696_s17 + $0x3f0] ss:$24 sps:$4 sm:$0xff]   ;;  %v4949_v55 = vld [vmem:[%s5696_s17 + $0x484] ss:$24 sps:$4 sm:$0xff]  }
 0x206   : > { %v2231_v0 = vadd.f32 %v4445_v48, %v2223_v60  ;;  %v2235_v1 = vmul.f32 0.7978846, %v2227_v61  ;;  %v4940_v48 = vld [vmem:[%s5696_s17 + $0x42c] ss:$24 sps:$4 sm:$0xff]   ;;  %v4947_v58 = vld [vmem:[%s5696_s17 + $0x480] ss:$24 sps:$4 sm:$0xff]  }
 0x207   : > { %5091 = vtanh.f32 %v2234_v62  ;;  %v2238_v22 = vmul.f32 0.7978846, %v2230_v63  ;;  %v4952_v57 = vld [vmem:[%s5696_s17 + $0x48c] ss:$24 sps:$4 sm:$0xff]   ;;  %v4950_v59 = vld [vmem:[%s5696_s17 + $0x488] ss:$24 sps:$4 sm:$0xff]  }
 0x208   : > { %v2239_v2 = vmul.f32 0.7978846, %v2231_v0  ;;  %5093 = vtanh.f32 %v2235_v1  ;;  %v4955_v60 = vld [vmem:[%s5696_s17 + $0x4b4] ss:$24 sps:$4 sm:$0xff]   ;;  %v4953_v62 = vld [vmem:[%s5696_s17 + $0x4b0] ss:$24 sps:$4 sm:$0xff]  }
 0x209   : > { %5095 = vtanh.f32 %v2238_v22  ;;  %v4958_v61 = vld [vmem:[%s5696_s17 + $0x4bc] ss:$24 sps:$4 sm:$0xff]   ;;  %v4956_v63 = vld [vmem:[%s5696_s17 + $0x4b8] ss:$24 sps:$4 sm:$0xff]   ;;  %v4964_v1 = vld [vmem:[%s5696_s17 + $0x4ec] ss:$24 sps:$4 sm:$0xff]  }
 0x20a   : > { %5097 = vtanh.f32 %v2239_v2  ;;  %v4961_v0 = vld [vmem:[%s5696_s17 + $0x4e4] ss:$24 sps:$4 sm:$0xff]   ;;  %v4959_v22 = vld [vmem:[%s5696_s17 + $0x4e0] ss:$24 sps:$4 sm:$0xff]  }
 0x20b   : > { %v4962_v2 = vld [vmem:[%s5696_s17 + $0x4e8] ss:$24 sps:$4 sm:$0xff]  }
 0x211   : > { %v5092_v3 = vpop.eup %5091 }
 0x212   : > { %v5094_v4 = vpop.eup %5093  ;;  %v2250_v5 = vadd.f32 1.0, %v5092_v3  ;;  %v4967_v3 = vld [vmem:[%s5696_s17 + $0x514] ss:$24 sps:$4 sm:$0xff]  }
 0x213   : > { %v5096_v6 = vpop.eup %5095  ;;  %v2251_v7 = vadd.f32 1.0, %v5094_v4  ;;  %v4970_v4 = vld [vmem:[%s5696_s17 + $0x51c] ss:$24 sps:$4 sm:$0xff]  }
 0x214   : > { %v5098_v8 = vpop.eup %5097  ;;  %v2254_v11 = vadd.f32 1.0, %v5096_v6  ;;  %v2258_v16 = vmul.f32 %v2250_v5, %v2194_v9  ;;  %v4965_v5 = vld [vmem:[%s5696_s17 + $0x510] ss:$24 sps:$4 sm:$0xff]   ;;  %v4971_v9 = vld [vmem:[%s5696_s17 + $0x540] ss:$24 sps:$4 sm:$0xff]  }
 0x215   : > { %v2255_v15 = vadd.f32 1.0, %v5098_v8  ;;  %v2259_v17 = vmul.f32 %v2251_v7, %v2195_v12  ;;  %v4968_v6 = vld [vmem:[%s5696_s17 + $0x518] ss:$24 sps:$4 sm:$0xff]   ;;  %v4973_v7 = vld [vmem:[%s5696_s17 + $0x544] ss:$24 sps:$4 sm:$0xff]  }
 0x216   : > { %v2262_v45 = vmul.f32 %v2254_v11, %v2198_v10  ;;  %v4976_v8 = vld [vmem:[%s5696_s17 + $0x54c] ss:$24 sps:$4 sm:$0xff]   ;;  %v4974_v10 = vld [vmem:[%s5696_s17 + $0x548] ss:$24 sps:$4 sm:$0xff]   ;;  %v4982_v12 = vld [vmem:[%s5696_s17 + $0x57c] ss:$24 sps:$4 sm:$0xff]  }
 0x217   : > { %v2263_v18 = vmul.f32 %v2255_v15, %v2199_v14  ;;  %v4979_v11 = vld [vmem:[%s5696_s17 + $0x574] ss:$24 sps:$4 sm:$0xff]   ;;  %v4977_v14 = vld [vmem:[%s5696_s17 + $0x570] ss:$24 sps:$4 sm:$0xff]  }
 0x218   : > { %v6047_v19 = vpack.c.bf16 %v2262_v45, %v2258_v16  ;;  %v4980_v15 = vld [vmem:[%s5696_s17 + $0x578] ss:$24 sps:$4 sm:$0xff]   ;;  %v4985_v16 = vld [vmem:[%s5696_s17 + $0x5a4] ss:$24 sps:$4 sm:$0xff]  }
 0x219   : > { %v6049_v20 = vpack.c.bf16 %v2263_v18, %v2259_v17  ;;  %v4988_v45 = vld [vmem:[%s5696_s17 + $0x5ac] ss:$24 sps:$4 sm:$0xff]   ;;  %v4983_v17 = vld [vmem:[%s5696_s17 + $0x5a0] ss:$24 sps:$4 sm:$0xff]  }
 0x21a   : > { %v4986_v18 = vld [vmem:[%s5696_s17 + $0x5a8] ss:$24 sps:$4 sm:$0xff]  }
 0x21b   : > { %3466 = vmatprep.mubr.bf16.mxu0 %v6049_v20  ;;  %3552 = vmatprep.mubr.bf16.mxu1 %v6049_v20 }
 0x21c   : > { %3467 = vmatmul.mubr.bf16.vlgmr.msra.gmra.mrb[4].mxu0 %v6047_v19  ;;  %3553 = vmatmul.mubr.bf16.vlgmr.msra.gmra.mrb[8].mxu1 %v6047_v19 }
 0x21d   : > { %3478 = vmatpush1.bf16.msra.mxu0 %v4899_v21  ;;  %3564 = vmatpush1.bf16.msra.mxu1 %v4902_v23  ;;  %v4991_v21 = vld [vmem:[%s5696_s17 + $0x5d4] ss:$24 sps:$4 sm:$0xff]  }
 0x21e   : > { %3479 = vmatprep.subr.bf16.mxu0 %v4907_v24  ;;  %3565 = vmatprep.subr.bf16.mxu1 %v4910_v25  ;;  %v4994_v23 = vld [vmem:[%s5696_s17 + $0x5dc] ss:$24 sps:$4 sm:$0xff]   ;;  %v4989_v24 = vld [vmem:[%s5696_s17 + $0x5d0] ss:$24 sps:$4 sm:$0xff]  }
 0x21f   : > { %v4992_v25 = vld [vmem:[%s5696_s17 + $0x5d8] ss:$24 sps:$4 sm:$0xff]  }
 0x221   : > { %3480 = vmatpush1.bf16.msra.mxu0 %v4905_v26  ;;  %3566 = vmatpush1.bf16.msra.mxu1 %v4908_v27  ;;  %v4997_v26 = vld [vmem:[%s5696_s17 + $0x14] ss:$24 sps:$4 sm:$0xff]   ;;  %v6119_v27 = vsub.s32 2, %v6028_v30 }
 0x222   : > { %3481 = vmatprep.subr.bf16.mxu0 %v4913_v28  ;;  %3567 = vmatprep.subr.bf16.mxu1 %v4916_v29  ;;  %v6122_v28 = vsub.s32 3, %v6028_v30 }
 0x223   : > { %v967_v29 = vrot.slane %v6038_v31, %v6119_v27 }
 0x225   : > { %3482 = vmatpush1.bf16.msra.mxu0 %v4911_v32  ;;  %3568 = vmatpush1.bf16.msra.mxu1 %v4914_v33  ;;  %v971_v32 = vrot.slane %v6038_v31, %v6122_v28 }
 0x226   : > { %3483 = vmatprep.subr.bf16.mxu0 %v4919_v34  ;;  %3569 = vmatprep.subr.bf16.mxu1 %v4922_v35 }
 0x229   : > { %3484 = vmatpush1.bf16.msra.mxu0 %v4917_v36  ;;  %3570 = vmatpush1.bf16.msra.mxu1 %v4920_v37 }
 0x22a   : > { %3485 = vmatprep.subr.bf16.mxu0 %v4925_v38  ;;  %3571 = vmatprep.subr.bf16.mxu1 %v4928_v39 }
 0x22d   : > { %3486 = vmatpush1.bf16.msra.mxu0 %v4923_v40  ;;  %3572 = vmatpush1.bf16.msra.mxu1 %v4926_v41 }
 0x22e   : > { %3487 = vmatprep.subr.bf16.mxu0 %v4931_v42  ;;  %3573 = vmatprep.subr.bf16.mxu1 %v4934_v43 }
 0x231   : > { %3488 = vmatpush1.bf16.msra.mxu0 %v4929_v44  ;;  %3574 = vmatpush1.bf16.msra.mxu1 %v4932_v46 }
 0x232   : > { %3489 = vmatprep.subr.bf16.mxu0 %v4937_v47  ;;  %3575 = vmatprep.subr.bf16.mxu1 %v4940_v48 }
 0x235   : > { %3490 = vmatpush1.bf16.msra.mxu0 %v4935_v49  ;;  %3576 = vmatpush1.bf16.msra.mxu1 %v4938_v50 }
 0x236   : > { %3491 = vmatprep.subr.bf16.mxu0 %v4943_v51  ;;  %3577 = vmatprep.subr.bf16.mxu1 %v4946_v52 }
 0x239   : > { %3492 = vmatpush1.bf16.msra.mxu0 %v4941_v53  ;;  %3578 = vmatpush1.bf16.msra.mxu1 %v4944_v54 }
 0x23a   : > { %3493 = vmatprep.subr.bf16.mxu0 %v4949_v55  ;;  %3579 = vmatprep.subr.bf16.mxu1 %v4952_v57 }
 0x23d   : > { %3494 = vmatpush1.bf16.msra.mxu0 %v4947_v58  ;;  %3580 = vmatpush1.bf16.msra.mxu1 %v4950_v59 }
 0x23e   : > { %3495 = vmatprep.subr.bf16.mxu0 %v4955_v60  ;;  %3581 = vmatprep.subr.bf16.mxu1 %v4958_v61 }
 0x241   : > { %3496 = vmatpush1.bf16.msra.mxu0 %v4953_v62  ;;  %3582 = vmatpush1.bf16.msra.mxu1 %v4956_v63 }
 0x242   : > { %3497 = vmatprep.subr.bf16.mxu0 %v4961_v0  ;;  %3583 = vmatprep.subr.bf16.mxu1 %v4964_v1 }
 0x245   : > { %3498 = vmatpush1.bf16.msra.mxu0 %v4959_v22  ;;  %3584 = vmatpush1.bf16.msra.mxu1 %v4962_v2 }
 0x246   : > { %3499 = vmatprep.subr.bf16.mxu0 %v4967_v3  ;;  %3585 = vmatprep.subr.bf16.mxu1 %v4970_v4 }
 0x249   : > { %3500 = vmatpush1.bf16.msra.mxu0 %v4965_v5  ;;  %3586 = vmatpush1.bf16.msra.mxu1 %v4968_v6 }
 0x24a   : > { %3501 = vmatprep.subr.bf16.mxu0 %v4973_v7  ;;  %3587 = vmatprep.subr.bf16.mxu1 %v4976_v8 }
 0x24d   : > { %3502 = vmatpush1.bf16.msra.mxu0 %v4971_v9  ;;  %3588 = vmatpush1.bf16.msra.mxu1 %v4974_v10 }
 0x24e   : > { %3503 = vmatprep.subr.bf16.mxu0 %v4979_v11  ;;  %3589 = vmatprep.subr.bf16.mxu1 %v4982_v12 }
 0x251   : > { %3504 = vmatpush1.bf16.msra.mxu0 %v4977_v14  ;;  %3590 = vmatpush1.bf16.msra.mxu1 %v4980_v15 }
 0x252   : > { %3505 = vmatprep.subr.bf16.mxu0 %v4985_v16  ;;  %3591 = vmatprep.subr.bf16.mxu1 %v4988_v45  ;;  %v4995_v16 = vld [vmem:[%s5696_s17 + $0x10] ss:$24 sps:$4 sm:$0xff]   ;;  %v5000_v45 = vld [vmem:[%s5696_s17 + $0x44] ss:$24 sps:$4 sm:$0xff]  }
 0x255   : > { %3506 = vmatpush1.bf16.msra.mxu0 %v4983_v17  ;;  %3592 = vmatpush1.bf16.msra.mxu1 %v4986_v18  ;;  %v4998_v17 = vld [vmem:[%s5696_s17 + $0x40] ss:$24 sps:$4 sm:$0xff]   ;;  %v5003_v18 = vld [vmem:[%s5696_s17 + $0x74] ss:$24 sps:$4 sm:$0xff]  }
 0x256   : > { %3507 = vmatprep.subr.bf16.mxu0 %v4991_v21  ;;  %3593 = vmatprep.subr.bf16.mxu1 %v4994_v23  ;;  %v5001_v21 = vld [vmem:[%s5696_s17 + $0x70] ss:$24 sps:$4 sm:$0xff]   ;;  %v5006_v23 = vld [vmem:[%s5696_s17 + $0xa4] ss:$24 sps:$4 sm:$0xff]  }
 0x259   : > { %3508 = vmatpush1.bf16.msra.mxu0 %v4989_v24  ;;  %3594 = vmatpush1.bf16.msra.mxu1 %v4992_v25  ;;  %v5004_v24 = vld [vmem:[%s5696_s17 + $0xa0] ss:$24 sps:$4 sm:$0xff]   ;;  %v5009_v25 = vld [vmem:[%s5696_s17 + $0xd4] ss:$24 sps:$4 sm:$0xff]  }
 0x25a   : > { %3606 = vmatprep.subr.bf16.mxu0 %v4997_v26  ;;  %v5007_v26 = vld [vmem:[%s5696_s17 + $0xd0] ss:$24 sps:$4 sm:$0xff]  }
 0x279   : > { %v2185_v33 = vpop.f32.mrb[4].mxu1 }
 0x27a   : > { %v4446_v34 = vadd.f32 %v2185_v33, %v967_v29  ;;  %v2187_v35 = vpop.f32.mrb[5].mxu1  ;;  %v5013_v33 = vld [vmem:[%s5696_s17 + $0x130] ss:$24 sps:$4 sm:$0xff]  }
 0x27b   : > { %v4447_v36 = vadd.f32 %v2187_v35, %v971_v32  ;;  %v2189_v37 = vpop.f32.mrb[6].mxu1  ;;  %v5016_v35 = vld [vmem:[%s5696_s17 + $0x160] ss:$24 sps:$4 sm:$0xff]  }
 0x27c   : > { %v2204_v38 = vmul.f32 0.044715, %v4446_v34  ;;  %v4448_v39 = vadd.f32 %v2189_v37, %v967_v29  ;;  %v2191_v40 = vpop.f32.mrb[7].mxu1  ;;  %v2196_v3 = vmul.f32 0.5, %v4446_v34  ;;  %v5010_v29 = vld [vmem:[%s5696_s17 + $0x100] ss:$24 sps:$4 sm:$0xff]  }
 0x27d   : > { %v2205_v41 = vmul.f32 0.044715, %v4447_v36  ;;  %v4449_v42 = vadd.f32 %v2191_v40, %v971_v32  ;;  %v2197_v6 = vmul.f32 0.5, %v4447_v36  ;;  %v5015_v32 = vld [vmem:[%s5696_s17 + $0x134] ss:$24 sps:$4 sm:$0xff]  }
 0x27e   : > { %v2212_v43 = vmul.f32 %v4446_v34, %v2204_v38  ;;  %v2208_v44 = vmul.f32 0.044715, %v4448_v39  ;;  %v2200_v4 = vmul.f32 0.5, %v4448_v39  ;;  %v5019_v37 = vld [vmem:[%s5696_s17 + $0x190] ss:$24 sps:$4 sm:$0xff]  }
 0x27f   : > { %v2213_v46 = vmul.f32 %v4447_v36, %v2205_v41  ;;  %v2209_v47 = vmul.f32 0.044715, %v4449_v42  ;;  %v2201_v7 = vmul.f32 0.5, %v4449_v42  ;;  %v5024_v38 = vld [vmem:[%s5696_s17 + $0x1c4] ss:$24 sps:$4 sm:$0xff]  }
 0x280   : > { %v2220_v48 = vmul.f32 %v4446_v34, %v2212_v43  ;;  %v2216_v49 = vmul.f32 %v4448_v39, %v2208_v44  ;;  %v5027_v40 = vld [vmem:[%s5696_s17 + $0x1f4] ss:$24 sps:$4 sm:$0xff]   ;;  %v5025_v41 = vld [vmem:[%s5696_s17 + $0x1f0] ss:$24 sps:$4 sm:$0xff]   ;;  %v5028_v43 = vld [vmem:[%s5696_s17 + $0x220] ss:$24 sps:$4 sm:$0xff]  }
 0x281   : > { %v2221_v50 = vmul.f32 %v4447_v36, %v2213_v46  ;;  %v2217_v51 = vmul.f32 %v4449_v42, %v2209_v47  ;;  %v5033_v44 = vld [vmem:[%s5696_s17 + $0x254] ss:$24 sps:$4 sm:$0xff]   ;;  %v5031_v46 = vld [vmem:[%s5696_s17 + $0x250] ss:$24 sps:$4 sm:$0xff]   ;;  %v5036_v47 = vld [vmem:[%s5696_s17 + $0x284] ss:$24 sps:$4 sm:$0xff]  }
 0x282   : > { %v2228_v52 = vadd.f32 %v4446_v34, %v2220_v48  ;;  %v2224_v31 = vmul.f32 %v4448_v39, %v2216_v49  ;;  %v5018_v34 = vld [vmem:[%s5696_s17 + $0x164] ss:$24 sps:$4 sm:$0xff]   ;;  %v5034_v48 = vld [vmem:[%s5696_s17 + $0x280] ss:$24 sps:$4 sm:$0xff]   ;;  %v5039_v49 = vld [vmem:[%s5696_s17 + $0x2b4] ss:$24 sps:$4 sm:$0xff]  }
 0x283   : > { %v2225_v53 = vmul.f32 %v4449_v42, %v2217_v51  ;;  %v2229_v54 = vadd.f32 %v4447_v36, %v2221_v50  ;;  %v5021_v36 = vld [vmem:[%s5696_s17 + $0x194] ss:$24 sps:$4 sm:$0xff]   ;;  %v5037_v50 = vld [vmem:[%s5696_s17 + $0x2b0] ss:$24 sps:$4 sm:$0xff]   ;;  %v5042_v51 = vld [vmem:[%s5696_s17 + $0x2e4] ss:$24 sps:$4 sm:$0xff]  }
 0x284   : > { %v2236_v55 = vmul.f32 0.7978846, %v2228_v52  ;;  %v2232_v57 = vadd.f32 %v4448_v39, %v2224_v31  ;;  %v5022_v39 = vld [vmem:[%s5696_s17 + $0x1c0] ss:$24 sps:$4 sm:$0xff]   ;;  %v5045_v31 = vld [vmem:[%s5696_s17 + $0x314] ss:$24 sps:$4 sm:$0xff]  }
 0x285   : > { %v2233_v58 = vadd.f32 %v4449_v42, %v2225_v53  ;;  %v2237_v59 = vmul.f32 0.7978846, %v2229_v54  ;;  %v5030_v42 = vld [vmem:[%s5696_s17 + $0x224] ss:$24 sps:$4 sm:$0xff]   ;;  %v5040_v52 = vld [vmem:[%s5696_s17 + $0x2e0] ss:$24 sps:$4 sm:$0xff]  }
 0x286   : > { %5099 = vtanh.f32 %v2236_v55  ;;  %v2240_v60 = vmul.f32 0.7978846, %v2232_v57  ;;  %v5043_v53 = vld [vmem:[%s5696_s17 + $0x310] ss:$24 sps:$4 sm:$0xff]   ;;  %v5048_v54 = vld [vmem:[%s5696_s17 + $0x344] ss:$24 sps:$4 sm:$0xff]  }
 0x287   : > { %v2241_v61 = vmul.f32 0.7978846, %v2233_v58  ;;  %5101 = vtanh.f32 %v2237_v59  ;;  %v5046_v55 = vld [vmem:[%s5696_s17 + $0x340] ss:$24 sps:$4 sm:$0xff]   ;;  %v5051_v57 = vld [vmem:[%s5696_s17 + $0x374] ss:$24 sps:$4 sm:$0xff]  }
 0x288   : > { %5103 = vtanh.f32 %v2240_v60  ;;  %v5049_v58 = vld [vmem:[%s5696_s17 + $0x370] ss:$24 sps:$4 sm:$0xff]   ;;  %v5054_v59 = vld [vmem:[%s5696_s17 + $0x3a4] ss:$24 sps:$4 sm:$0xff]   ;;  %v5052_v60 = vld [vmem:[%s5696_s17 + $0x3a0] ss:$24 sps:$4 sm:$0xff]  }
 0x289   : > { %5105 = vtanh.f32 %v2241_v61  ;;  %v5055_v61 = vld [vmem:[%s5696_s17 + $0x3d0] ss:$24 sps:$4 sm:$0xff]  }
 0x290   : > { %v5100_v62 = vpop.eup %5099 }
 0x291   : > { %v5102_v63 = vpop.eup %5101  ;;  %v2252_v0 = vadd.f32 1.0, %v5100_v62  ;;  %v5060_v62 = vld [vmem:[%s5696_s17 + $0x404] ss:$24 sps:$4 sm:$0xff]  }
 0x292   : > { %v5104_v1 = vpop.eup %5103  ;;  %v2253_v22 = vadd.f32 1.0, %v5102_v63  ;;  %v5058_v63 = vld [vmem:[%s5696_s17 + $0x400] ss:$24 sps:$4 sm:$0xff]  }
 0x293   : > { %v5106_v2 = vpop.eup %5105  ;;  %v2256_v5 = vadd.f32 1.0, %v5104_v1  ;;  %v2260_v9 = vmul.f32 %v2252_v0, %v2196_v3  ;;  %v5063_v0 = vld [vmem:[%s5696_s17 + $0x434] ss:$24 sps:$4 sm:$0xff]   ;;  %v5061_v1 = vld [vmem:[%s5696_s17 + $0x430] ss:$24 sps:$4 sm:$0xff]  }
 0x294   : > { %v2257_v8 = vadd.f32 1.0, %v5106_v2  ;;  %v2261_v11 = vmul.f32 %v2253_v22, %v2197_v6  ;;  %v5066_v22 = vld [vmem:[%s5696_s17 + $0x464] ss:$24 sps:$4 sm:$0xff]   ;;  %v5064_v2 = vld [vmem:[%s5696_s17 + $0x460] ss:$24 sps:$4 sm:$0xff]  }
 0x295   : > { %v2264_v10 = vmul.f32 %v2256_v5, %v2200_v4  ;;  %v5069_v3 = vld [vmem:[%s5696_s17 + $0x494] ss:$24 sps:$4 sm:$0xff]   ;;  %v5067_v4 = vld [vmem:[%s5696_s17 + $0x490] ss:$24 sps:$4 sm:$0xff]   ;;  %v5072_v5 = vld [vmem:[%s5696_s17 + $0x4c4] ss:$24 sps:$4 sm:$0xff]  }
 0x296   : > { %v2265_v12 = vmul.f32 %v2257_v8, %v2201_v7  ;;  %v5070_v6 = vld [vmem:[%s5696_s17 + $0x4c0] ss:$24 sps:$4 sm:$0xff]   ;;  %v5075_v7 = vld [vmem:[%s5696_s17 + $0x4f4] ss:$24 sps:$4 sm:$0xff]   ;;  %v5073_v8 = vld [vmem:[%s5696_s17 + $0x4f0] ss:$24 sps:$4 sm:$0xff]  }
 0x297   : > { %v6128_v14 = vpack.c.bf16 %v2264_v10, %v2260_v9  ;;  %v5078_v9 = vld [vmem:[%s5696_s17 + $0x524] ss:$24 sps:$4 sm:$0xff]   ;;  %v5076_v10 = vld [vmem:[%s5696_s17 + $0x520] ss:$24 sps:$4 sm:$0xff]  }
 0x298   : > { %v6130_v15 = vpack.c.bf16 %v2265_v12, %v2261_v11  ;;  %v5081_v11 = vld [vmem:[%s5696_s17 + $0x554] ss:$24 sps:$4 sm:$0xff]   ;;  %v5079_v12 = vld [vmem:[%s5696_s17 + $0x550] ss:$24 sps:$4 sm:$0xff]  }
 0x29a   : > { %3509 = vmatprep.mubr.bf16.mxu0 %v6130_v15  ;;  %3595 = vmatprep.mubr.bf16.mxu1 %v6130_v15 }
 0x29b   : > { %3510 = vmatmul.mubr.bf16.vlgmr.msra.gmra.mrb[4].mxu0 %v6128_v14  ;;  %3596 = vmatmul.mubr.bf16.vlgmr.msra.gmra.mrb[8].mxu1 %v6128_v14 }
 0x29c   : > { %3607 = vmatpush1.bf16.msra.mxu0 %v4995_v16  ;;  %3638 = vmatprep.mubr.bf16.mxu0 %v6049_v20  ;;  %v5012_v20 = vld [vmem:[%s5696_s17 + $0x104] ss:$24 sps:$4 sm:$0xff]   ;;  %v5082_v16 = vld [vmem:[%s5696_s17 + $0x580] ss:$24 sps:$4 sm:$0xff]  }
 0x29d   : > { %3608 = vmatprep.subr.bf16.mxu0 %v5000_v45  ;;  %v5087_v45 = vld [vmem:[%s5696_s17 + $0x5b4] ss:$24 sps:$4 sm:$0xff]  }
 0x2a0   : > { %3609 = vmatpush1.bf16.msra.mxu0 %v4998_v17  ;;  %v5085_v17 = vld [vmem:[%s5696_s17 + $0x5b0] ss:$24 sps:$4 sm:$0xff]  }
 0x2a1   : > { %3610 = vmatprep.subr.bf16.mxu0 %v5003_v18  ;;  %v5090_v18 = vld [vmem:[%s5696_s17 + $0x5e4] ss:$24 sps:$4 sm:$0xff]  }
 0x2a4   : > { %3611 = vmatpush1.bf16.msra.mxu0 %v5001_v21  ;;  %v5088_v21 = vld [vmem:[%s5696_s17 + $0x5e0] ss:$24 sps:$4 sm:$0xff]  }
 0x2a5   : > { %3612 = vmatprep.subr.bf16.mxu0 %v5006_v23  ;;  %v2266_v23 = vld [vmem:[#allocation2] sm:$0xff] }
 0x2a8   : > { %3613 = vmatpush1.bf16.msra.mxu0 %v5004_v24  ;;  %v2268_v24 = vld [vmem:[#allocation2 + $0x10] sm:$0xff] }
 0x2a9   : > { %3614 = vmatprep.subr.bf16.mxu0 %v5009_v25  ;;  %v2267_v25 = vld [vmem:[#allocation2 + $0x8] sm:$0xff] }
 0x2ac   : > { %3615 = vmatpush1.bf16.msra.mxu0 %v5007_v26  ;;  %v2269_v26 = vld [vmem:[#allocation2 + $0x18] sm:$0xff] }
 0x2ad   : > { %3616 = vmatprep.subr.bf16.mxu0 %v5012_v20 }
 0x2b0   : > { %3617 = vmatpush1.bf16.msra.mxu0 %v5010_v29 }
 0x2b1   : > { %3618 = vmatprep.subr.bf16.mxu0 %v5015_v32  ;;  %v2272_v32 = vld [vmem:[#allocation2 + $0x30] sm:$0xff] }
 0x2b4   : > { %3619 = vmatpush1.bf16.msra.mxu0 %v5013_v33  ;;  %v2274_v33 = vld [vmem:[#allocation2 + $0x40] sm:$0xff] }
 0x2b5   : > { %3620 = vmatprep.subr.bf16.mxu0 %v5018_v34 }
 0x2b8   : > { %3621 = vmatpush1.bf16.msra.mxu0 %v5016_v35 }
 0x2b9   : > { %3622 = vmatprep.subr.bf16.mxu0 %v5021_v36 }
 0x2bc   : > { %3623 = vmatpush1.bf16.msra.mxu0 %v5019_v37 }
 0x2bd   : > { %3624 = vmatprep.subr.bf16.mxu0 %v5024_v38  ;;  %v2273_v38 = vld [vmem:[#allocation2 + $0x38] sm:$0xff] }
 0x2c0   : > { %3625 = vmatpush1.bf16.msra.mxu0 %v5022_v39  ;;  %v2275_v39 = vld [vmem:[#allocation2 + $0x48] sm:$0xff] }
 0x2c1   : > { %3626 = vmatprep.subr.bf16.mxu0 %v5027_v40 }
 0x2c4   : > { %3627 = vmatpush1.bf16.msra.mxu0 %v5025_v41 }
 0x2c5   : > { %3628 = vmatprep.subr.bf16.mxu0 %v5030_v42 }
 0x2c8   : > { %3629 = vmatpush1.bf16.msra.mxu0 %v5028_v43 }
 0x2c9   : > { %3630 = vmatprep.subr.bf16.mxu0 %v5033_v44 }
 0x2cc   : > { %3631 = vmatpush1.bf16.msra.mxu0 %v5031_v46 }
 0x2cd   : > { %3632 = vmatprep.subr.bf16.mxu0 %v5036_v47 }
 0x2d0   : > { %3633 = vmatpush1.bf16.msra.mxu0 %v5034_v48 }
 0x2d1   : > { %3634 = vmatprep.subr.bf16.mxu0 %v5039_v49 }
 0x2d4   : > { %3635 = vmatpush1.bf16.msra.mxu0 %v5037_v50  ;;  %v2270_v50 = vld [vmem:[#allocation2 + $0x20] sm:$0xff] }
 0x2d5   : > { %3636 = vmatprep.subr.bf16.mxu0 %v5042_v51  ;;  %v2271_v51 = vld [vmem:[#allocation2 + $0x28] sm:$0xff] }
 0x2d8   : > { %3637 = vmatpush1.bf16.msra.mxu0 %v5040_v52 }
 0x2d9   : > { %3649 = vmatprep.subr.bf16.mxu0 %v5045_v31  ;;  %v2276_v31 = vld [vmem:[#allocation2 + $0x50] sm:$0xff] }
 0x2db   : > { %3639 = vmatmul.mubr.bf16.vlgmr.msra.gmra.mrb[8].mxu0 %v6047_v19  ;;  %v5057_v19 = vld [vmem:[%s5696_s17 + $0x3d4] ss:$24 sps:$4 sm:$0xff]  }
 0x2dc   : > { %3650 = vmatpush1.bf16.msra.mxu0 %v5043_v53  ;;  %3681 = vmatprep.mubr.bf16.mxu0 %v6130_v15  ;;  %v5084_v15 = vld [vmem:[%s5696_s17 + $0x584] ss:$24 sps:$4 sm:$0xff]  }
 0x2dd   : > { %3651 = vmatprep.subr.bf16.mxu0 %v5048_v54 }
 0x2e0   : > { %3652 = vmatpush1.bf16.msra.mxu0 %v5046_v55  ;;  %v2277_v55 = vld [vmem:[#allocation2 + $0x58] sm:$0xff] }
 0x2e1   : > { %3653 = vmatprep.subr.bf16.mxu0 %v5051_v57 }
 0x2e4   : > { %3654 = vmatpush1.bf16.msra.mxu0 %v5049_v58 }
 0x2e5   : > { %3655 = vmatprep.subr.bf16.mxu0 %v5054_v59 }
 0x2e8   : > { %3656 = vmatpush1.bf16.msra.mxu0 %v5052_v60 }
 0x2e9   : > { %3657 = vmatprep.subr.bf16.mxu0 %v5057_v19 }
 0x2ec   : > { %3658 = vmatpush1.bf16.msra.mxu0 %v5055_v61  ;;  %v6205_v61 = vsub.s32 (!%p4434_p6), 4, %v6028_v30 }
 0x2ed   : > { %3659 = vmatprep.subr.bf16.mxu0 %v5060_v62  ;;  %v6208_v62 = vsub.s32 (!%p4434_p6), 5, %v6028_v30 }
 0x2f0   : > { %3660 = vmatpush1.bf16.msra.mxu0 %v5058_v63 }
 0x2f1   : > { %3661 = vmatprep.subr.bf16.mxu0 %v5063_v0 }
 0x2f4   : > { %3662 = vmatpush1.bf16.msra.mxu0 %v5061_v1 }
 0x2f5   : > { %3663 = vmatprep.subr.bf16.mxu0 %v5066_v22 }
 0x2f8   : > { %3664 = vmatpush1.bf16.msra.mxu0 %v5064_v2  ;;  %v3732_v2 = vld [vmem:[%s6356_s4] sm:$0x3f] (!%p4434_p6) }
 0x2f9   : > { %3665 = vmatprep.subr.bf16.mxu0 %v5069_v3  ;;  %v3753_v30 = vrot.slane (!%p4434_p6), %v3732_v2, %v6205_v61 }
 0x2fc   : > { %3666 = vmatpush1.bf16.msra.mxu0 %v5067_v4  ;;  %v3737_v4 = vrot.slane (!%p4434_p6), %v3732_v2, %v6031_v13 }
 0x2fd   : > { %3667 = vmatprep.subr.bf16.mxu0 %v5072_v5  ;;  %v3741_v5 = vrot.slane (!%p4434_p6), %v3732_v2, %v6041_v56 }
 0x300   : > { %3668 = vmatpush1.bf16.msra.mxu0 %v5070_v6  ;;  %v3745_v6 = vrot.slane (!%p4434_p6), %v3732_v2, %v6119_v27 }
 0x301   : > { %3669 = vmatprep.subr.bf16.mxu0 %v5075_v7  ;;  %v3749_v7 = vrot.slane (!%p4434_p6), %v3732_v2, %v6122_v28 }
 0x304   : > { %3670 = vmatpush1.bf16.msra.mxu0 %v5073_v8  ;;  %v3757_v8 = vrot.slane (!%p4434_p6), %v3732_v2, %v6208_v62 }
 0x305   : > { %3671 = vmatprep.subr.bf16.mxu0 %v5078_v9  ;;  %v3776_v9 = vld [vmem:[%s6352_s0] sm:$0xff] (!%p4434_p6) }
 0x308   : > { %3672 = vmatpush1.bf16.msra.mxu0 %v5076_v10  ;;  %v3777_v10 = vld [vmem:[%s6352_s0 + $0x8] sm:$0xff] (!%p4434_p6) }
 0x309   : > { %3673 = vmatprep.subr.bf16.mxu0 %v5081_v11  ;;  %v3778_v11 = vld [vmem:[%s6352_s0 + $0x10] sm:$0xff] (!%p4434_p6) }
 0x30c   : > { %3674 = vmatpush1.bf16.msra.mxu0 %v5079_v12 }
 0x30d   : > { %3675 = vmatprep.subr.bf16.mxu0 %v5084_v15 }
 0x310   : > { %3676 = vmatpush1.bf16.msra.mxu0 %v5082_v16 }
 0x311   : > { %3677 = vmatprep.subr.bf16.mxu0 %v5087_v45 }
 0x314   : > { %3678 = vmatpush1.bf16.msra.mxu0 %v5085_v17 }
 0x315   : > { %3679 = vmatprep.subr.bf16.mxu0 %v5090_v18  ;;  %v3779_v18 = vld [vmem:[%s6352_s0 + $0x18] sm:$0xff] (!%p4434_p6) }
 0x318   : > { %3680 = vmatpush1.bf16.msra.mxu0 %v5088_v21 }
 0x31b   : > { %3682 = vmatmul.mubr.bf16.vlgmr.msra.gmra.mrb[8].mxu0 %v6128_v14 }
 0x36e   : > { %v3511_v20 = vpop.f32.mrb[4].mxu0  ;;  %v3597_v29 = vpop.f32.mrb[8].mxu1 }
 0x36f   : > { %v3692_v34 = vadd.f32 %v3511_v20, %v2266_v23  ;;  %v3694_v35 = vadd.f32 %v3597_v29, %v2268_v24  ;;  %v3513_v36 = vpop.f32.mrb[5].mxu0  ;;  %v3599_v37 = vpop.f32.mrb[9].mxu1  ;;  %v3780_v20 = vld [vmem:[%s6352_s0 + $0x20] sm:$0xff] (!%p4434_p6) }
 0x370   : > { %v3693_v40 = vadd.f32 %v3513_v36, %v2267_v25  ;;  %v3695_v41 = vadd.f32 %v3599_v37, %v2269_v26  ;;  %v3515_v42 = vpop.f32.mrb[6].mxu0  ;;  %v3601_v43 = vpop.f32.mrb[10].mxu1 }
 0x371   : > { %3704 = vst [vmem:[#allocation2] sm:$0xff] %v3692_v34  ;;  %3706 = vst [vmem:[#allocation2 + $0x10] sm:$0xff] %v3694_v35  ;;  %v3698_v14 = vadd.f32 %v3515_v42, %v2272_v32  ;;  %v3700_v44 = vadd.f32 %v3601_v43, %v2274_v33  ;;  %v3517_v46 = vpop.f32.mrb[7].mxu0  ;;  %v3603_v47 = vpop.f32.mrb[11].mxu1  ;;  %v3781_v33 = vld [vmem:[%s6352_s0 + $0x28] sm:$0xff] (!%p4434_p6) }
 0x372   : > { %3705 = vst [vmem:[#allocation2 + $0x8] sm:$0xff] %v3693_v40  ;;  %3707 = vst [vmem:[#allocation2 + $0x18] sm:$0xff] %v3695_v41  ;;  %v3699_v48 = vadd.f32 %v3517_v46, %v2273_v38  ;;  %v3701_v49 = vadd.f32 %v3603_v47, %v2275_v39  ;;  %v3782_v39 = vld [vmem:[%s6352_s0 + $0x30] sm:$0xff] (!%p4434_p6)  ;;  %v3783_v40 = vld [vmem:[%s6352_s0 + $0x38] sm:$0xff] (!%p4434_p6) }
 0x373   : > { %3710 = vst [vmem:[#allocation2 + $0x30] sm:$0xff] %v3698_v14  ;;  %3712 = vst [vmem:[#allocation2 + $0x40] sm:$0xff] %v3700_v44  ;;  %v3784_v44 = vld [vmem:[%s6352_s0 + $0x40] sm:$0xff] (!%p4434_p6) }
 0x374   : > { %3711 = vst [vmem:[#allocation2 + $0x38] sm:$0xff] %v3699_v48  ;;  %3713 = vst [vmem:[#allocation2 + $0x48] sm:$0xff] %v3701_v49 }
 0x378   : > { %v3720_v63 = vld [vmem:[#allocation2] sm:$0xff] (!%p4434_p6)  ;;  %v3722_v1 = vld [vmem:[#allocation2 + $0x10] sm:$0xff] (!%p4434_p6) }
 0x379   : > { %v3721_v0 = vld [vmem:[#allocation2 + $0x8] sm:$0xff] (!%p4434_p6)  ;;  %v3723_v22 = vld [vmem:[#allocation2 + $0x18] sm:$0xff] (!%p4434_p6)  ;;  %v3764_v15 = vadd.f32 (!%p4434_p6), %v3737_v4, %v3720_v63  ;;  %v3766_v45 = vadd.f32 (!%p4434_p6), %v3745_v6, %v3722_v1 }
 0x37a   : > { %v3765_v16 = vadd.f32 (!%p4434_p6), %v3741_v5, %v3721_v0  ;;  %v3767_v17 = vadd.f32 (!%p4434_p6), %v3749_v7, %v3723_v22  ;;  %v3726_v29 = vld [vmem:[#allocation2 + $0x30] sm:$0xff] (!%p4434_p6)  ;;  %v3728_v36 = vld [vmem:[#allocation2 + $0x40] sm:$0xff] (!%p4434_p6) }
 0x37b   : > { %v3788_v23 = vadd.f32 (!%p4434_p6), %v3776_v9, %v3764_v15  ;;  %v3790_v25 = vadd.f32 (!%p4434_p6), %v3778_v11, %v3766_v45  ;;  %v3727_v32 = vld [vmem:[#allocation2 + $0x38] sm:$0xff] (!%p4434_p6)  ;;  %v3729_v37 = vld [vmem:[#allocation2 + $0x48] sm:$0xff] (!%p4434_p6)  ;;  %v3770_v43 = vadd.f32 (!%p4434_p6), %v3737_v4, %v3726_v29  ;;  %v3772_v48 = vadd.f32 (!%p4434_p6), %v3745_v6, %v3728_v36 }
 0x37c   : > { %v3789_v24 = vadd.f32 (!%p4434_p6), %v3777_v10, %v3765_v16  ;;  %v3791_v34 = vadd.f32 (!%p4434_p6), %v3779_v18, %v3767_v17  ;;  %v3771_v14 = vadd.f32 (!%p4434_p6), %v3741_v5, %v3727_v32  ;;  %v3773_v49 = vadd.f32 (!%p4434_p6), %v3749_v7, %v3729_v37 }
 0x37e   : > { %v3802_v35 = vadd.f32 (!%p4434_p6), %v3789_v24, %v3788_v23 }
 0x380   : > { %v3803_v42 = vadd.f32 (!%p4434_p6), %v3802_v35, %v3790_v25 }
 0x3ee   : > { %v3683_v52 = vpop.f32.mrb[8].mxu0  ;;  %3719 = sbr.rel (%p4434_p6) target bundleno = 1354 (0x54a), region = 83 }
 0x3ef   : > { %v3696_v53 = vadd.f32 %v3683_v52, %v2270_v50  ;;  %v3685_v54 = vpop.f32.mrb[9].mxu0  ;;  %v3785_v50 = vld [vmem:[%s6352_s0 + $0x48] sm:$0xff] (!%p4434_p6) }
 0x3f0   : > { %v3697_v57 = vadd.f32 %v3685_v54, %v2271_v51  ;;  %v3687_v58 = vpop.f32.mrb[10].mxu0  ;;  %v3804_v51 = vadd.f32 (!%p4434_p6), %v3803_v42, %v3791_v34  ;;  %v3786_v54 = vld [vmem:[%s6352_s0 + $0x50] sm:$0xff] (!%p4434_p6) }
 0x3f1   : > { %3708 = vst [vmem:[#allocation2 + $0x20] sm:$0xff] %v3696_v53  ;;  %v3702_v59 = vadd.f32 %v3687_v58, %v2276_v31  ;;  %v3689_v60 = vpop.f32.mrb[11].mxu0  ;;  %v3794_v31 = vadd.f32 (!%p4434_p6), %v3782_v39, %v3770_v43  ;;  %v3795_v53 = vadd.f32 (!%p4434_p6), %v3783_v40, %v3771_v14 }
 0x3f2   : > { %3709 = vst [vmem:[#allocation2 + $0x28] sm:$0xff] %v3697_v57  ;;  %v3703_v19 = vadd.f32 %v3689_v60, %v2277_v55  ;;  %v3796_v55 = vadd.f32 (!%p4434_p6), %v3784_v44, %v3772_v48 }
 0x3f3   : > { %3714 = vst [vmem:[#allocation2 + $0x50] sm:$0xff] %v3702_v59  ;;  %v3797_v59 = vadd.f32 (!%p4434_p6), %v3785_v50, %v3773_v49  ;;  %v3809_v60 = vadd.f32 (!%p4434_p6), %v3795_v53, %v3794_v31 }
 0x3f4   : > { %3715 = vst [vmem:[#allocation2 + $0x58] sm:$0xff] %v3703_v19  ;;  %v3787_v19 = vld [vmem:[%s6352_s0 + $0x58] sm:$0xff] (!%p4434_p6) }
 0x3f5   : > { %v3810_v1 = vadd.f32 %v3809_v60, %v3796_v55 }
 0x3f7   : > { %v3811_v2 = vadd.f32 %v3810_v1, %v3797_v59 }
 0x3f8   : > { %v3724_v3 = vld [vmem:[#allocation2 + $0x20] sm:$0xff] }
 0x3f9   : > { %v3725_v12 = vld [vmem:[#allocation2 + $0x28] sm:$0xff]  ;;  %v3768_v21 = vadd.f32 %v3753_v30, %v3724_v3 }
 0x3fa   : > { %v3769_v26 = vadd.f32 %v3757_v8, %v3725_v12  ;;  %v3730_v38 = vld [vmem:[#allocation2 + $0x50] sm:$0xff] }
 0x3fb   : > { %v3792_v41 = vadd.f32 %v3780_v20, %v3768_v21  ;;  %v3731_v47 = vld [vmem:[#allocation2 + $0x58] sm:$0xff]  ;;  %v3774_v52 = vadd.f32 %v3753_v30, %v3730_v38 }
 0x3fc   : > { %v3793_v46 = vadd.f32 %v3781_v33, %v3769_v26  ;;  %v3775_v58 = vadd.f32 %v3757_v8, %v3731_v47 }
 0x3fd   : > { %v3805_v57 = vadd.f32 %v3804_v51, %v3792_v41  ;;  %v3798_v0 = vadd.f32 %v3786_v54, %v3774_v52  ;;  %v3800_v54 = vld [vmem:[%s6357_s5] sm:$0x3f] }
 0x3fe   : > { %v3799_v22 = vadd.f32 %v3787_v19, %v3775_v58  ;;  %v3883_v58 = vrot.slane %v3800_v54, %v6041_v56  ;;  %v3891_v60 = vrot.slane %v3800_v54, %v6122_v28  ;;  %v3895_v19 = vrot.slane %v3800_v54, %v6205_v61 }
 0x3ff   : > { %v3806_v63 = vadd.f32 %v3805_v57, %v3793_v46  ;;  %v3812_v3 = vadd.f32 %v3811_v2, %v3798_v0  ;;  %v3879_v57 = vrot.slane %v3800_v54, %v6031_v13 }
 0x401   : > { %3807 = vadd.xlane.f32.xlu0 %v3806_v63  ;;  %v3813_v4 = vadd.f32 %v3812_v3, %v3799_v22  ;;  %v3899_v63 = vrot.slane %v3800_v54, %v6208_v62 }
 0x405   : > { %3814 = vadd.xlane.f32.xlu0 %v3813_v4 }
 0x48e   : > { %v3808_v5 = vpop.xlane.xlu0 %3807 }
 0x48f   : > { %v3817_v6 = vmul.f32 0.0013020834, %v3808_v5 }
 0x491   : > { %v3819_v7 = vsub.f32 %v3788_v23, %v3817_v6  ;;  %v3820_v30 = vsub.f32 %v3789_v24, %v3817_v6  ;;  %v3821_v8 = vsub.f32 %v3790_v25, %v3817_v6  ;;  %v3822_v9 = vsub.f32 %v3791_v34, %v3817_v6 }
 0x492   : > { %v3815_v12 = vpop.xlane.xlu0 %3814  ;;  %v3823_v15 = vsub.f32 %v3792_v41, %v3817_v6  ;;  %v3824_v18 = vsub.f32 %v3793_v46, %v3817_v6 }
 0x493   : > { %v3831_v10 = vmul.f32 %v3819_v7, %v3819_v7  ;;  %v3832_v11 = vmul.f32 %v3820_v30, %v3820_v30  ;;  %v3818_v16 = vmul.f32 0.0013020834, %v3815_v12  ;;  %v3833_v45 = vmul.f32 %v3821_v8, %v3821_v8 }
 0x494   : > { %v3834_v21 = vmul.f32 %v3822_v9, %v3822_v9  ;;  %v3835_v23 = vmul.f32 %v3823_v15, %v3823_v15  ;;  %v3836_v35 = vmul.f32 %v3824_v18, %v3824_v18 }
 0x495   : > { %v3843_v17 = vadd.f32 %v3832_v11, %v3831_v10  ;;  %v6255_v20 = vsub.f32 %v3794_v31, %v3818_v16  ;;  %v6257_v29 = vsub.f32 %v3795_v53, %v3818_v16  ;;  %v6259_v32 = vsub.f32 %v3796_v55, %v3818_v16  ;;  %v3801_v55 = vld [vmem:[%s6358_s6] sm:$0x3f] }
 0x496   : > { %v6261_v25 = vsub.f32 %v3797_v59, %v3818_v16  ;;  %v6267_v37 = vsub.f32 %v3798_v0, %v3818_v16  ;;  %v6271_v41 = vsub.f32 %v3799_v22, %v3818_v16  ;;  %v3887_v59 = vrot.slane %v3800_v54, %v6119_v27 }
 0x497   : > { %v3844_v26 = vadd.f32 %v3843_v17, %v3833_v45  ;;  %v3837_v33 = vmul.f32 %v6255_v20, %v6255_v20  ;;  %v3838_v34 = vmul.f32 %v6257_v29, %v6257_v29  ;;  %v3839_v38 = vmul.f32 %v6259_v32, %v6259_v32 }
 0x498   : > { %v3840_v42 = vmul.f32 %v6261_v25, %v6261_v25  ;;  %v3841_v14 = vmul.f32 %v6267_v37, %v6267_v37  ;;  %v3842_v46 = vmul.f32 %v6271_v41, %v6271_v41  ;;  %v3922_v1 = vrot.slane %v3801_v55, %v6031_v13 }
 0x499   : > { %v3845_v24 = vadd.f32 %v3844_v26, %v3834_v21  ;;  %v3850_v39 = vadd.f32 %v3838_v34, %v3837_v33  ;;  %v3926_v22 = vrot.slane %v3801_v55, %v6041_v56  ;;  %v3930_v2 = vrot.slane %v3801_v55, %v6119_v27 }
 0x49a   : > { %v3934_v3 = vrot.slane %v3801_v55, %v6122_v28  ;;  %v3938_v11 = vrot.slane %v3801_v55, %v6205_v61  ;;  %v3942_v12 = vrot.slane %v3801_v55, %v6208_v62 }
 0x49b   : > { %v3846_v36 = vadd.f32 %v3845_v24, %v3835_v23  ;;  %v3851_v43 = vadd.f32 %v3850_v39, %v3839_v38 }
 0x49d   : > { %v3847_v40 = vadd.f32 %v3846_v36, %v3836_v35  ;;  %v3852_v44 = vadd.f32 %v3851_v43, %v3840_v42 }
 0x49f   : > { %3848 = vadd.xlane.f32.xlu1 %v3847_v40  ;;  %v3853_v47 = vadd.f32 %v3852_v44, %v3841_v14 }
 0x4a1   : > { %v3854_v48 = vadd.f32 %v3853_v47, %v3842_v46 }
 0x4a3   : > { %3855 = vadd.xlane.f32.xlu1 %v3854_v48 }
 0x52c   : > { %v3849_v49 = vpop.xlane.xlu1 %3848 }
 0x52d   : > { %v3857_v50 = vmul.f32 0.0013020834, %v3849_v49 }
 0x52f   : > { %v3859_v51 = vadd.f32 1e-12, %v3857_v50 }
 0x530   : > { %v3856_v52 = vpop.xlane.xlu1 %3855 }
 0x531   : > { %5107 = vrsqrt.f32 %v3859_v51  ;;  %v3858_v31 = vmul.f32 0.0013020834, %v3856_v52 }
 0x533   : > { %v3860_v53 = vadd.f32 1e-12, %v3858_v31 }
 0x535   : > { %5109 = vrsqrt.f32 %v3860_v53 }
 0x53b   : > { %v5108_v0 = vpop.eup %5107 }
 0x53c   : > { %v3863_v4 = vmul.f32 %v5108_v0, %v3819_v7  ;;  %v3864_v5 = vmul.f32 %v5108_v0, %v3820_v30  ;;  %v3865_v6 = vmul.f32 %v5108_v0, %v3821_v8  ;;  %v3866_v10 = vmul.f32 %v5108_v0, %v3822_v9 }
 0x53d   : > { %v3867_v16 = vmul.f32 %v5108_v0, %v3823_v15  ;;  %v3868_v45 = vmul.f32 %v5108_v0, %v3824_v18 }
 0x53e   : > { %v3906_v17 = vmul.f32 %v3879_v57, %v3863_v4  ;;  %v3907_v21 = vmul.f32 %v3883_v58, %v3864_v5  ;;  %v3908_v26 = vmul.f32 %v3887_v59, %v3865_v6  ;;  %v3909_v13 = vmul.f32 %v3891_v60, %v3866_v10 }
 0x53f   : > { %v3910_v23 = vmul.f32 %v3895_v19, %v3867_v16  ;;  %v3911_v56 = vmul.f32 %v3899_v63, %v3868_v45  ;;  %v5110_v7 = vpop.eup %5109 }
 0x540   : > { %v3949_v24 = vadd.f32 %v3922_v1, %v3906_v17  ;;  %v3950_v27 = vadd.f32 %v3926_v22, %v3907_v21  ;;  %v3951_v33 = vadd.f32 %v3930_v2, %v3908_v26  ;;  %v3952_v28 = vadd.f32 %v3934_v3, %v3909_v13 }
 0x541   : > { %v3953_v30 = vadd.f32 %v3938_v11, %v3910_v23  ;;  %v3954_v8 = vadd.f32 %v3942_v12, %v3911_v56  ;;  %v3869_v61 = vmul.f32 %v5110_v7, %v6255_v20  ;;  %v3870_v62 = vmul.f32 %v5110_v7, %v6257_v29 }
 0x542   : > { %3961 = vst [vmem:[%s6359_s7] sm:$0xff] %v3949_v24  ;;  %3962 = vst [vmem:[%s6359_s7 + $0x8] sm:$0xff] %v3950_v27  ;;  %v3871_v9 = vmul.f32 %v5110_v7, %v6259_v32  ;;  %v3872_v15 = vmul.f32 %v5110_v7, %v6261_v25  ;;  %v3873_v18 = vmul.f32 %v5110_v7, %v6267_v37 }
 0x543   : > { %3963 = vst [vmem:[%s6359_s7 + $0x10] sm:$0xff] %v3951_v33  ;;  %3964 = vst [vmem:[%s6359_s7 + $0x18] sm:$0xff] %v3952_v28  ;;  %v3874_v34 = vmul.f32 %v5110_v7, %v6271_v41  ;;  %v3912_v35 = vmul.f32 %v3879_v57, %v3869_v61  ;;  %v3913_v20 = vmul.f32 %v3883_v58, %v3870_v62 }
 0x544   : > { %3965 = vst [vmem:[%s6359_s7 + $0x20] sm:$0xff] %v3953_v30  ;;  %3966 = vst [vmem:[%s6359_s7 + $0x28] sm:$0xff] %v3954_v8  ;;  %v3914_v36 = vmul.f32 %v3887_v59, %v3871_v9  ;;  %v3915_v29 = vmul.f32 %v3891_v60, %v3872_v15  ;;  %v3916_v38 = vmul.f32 %v3895_v19, %v3873_v18 }
 0x545   : > { %v3917_v32 = vmul.f32 %v3899_v63, %v3874_v34  ;;  %v3955_v39 = vadd.f32 %v3922_v1, %v3912_v35  ;;  %v3956_v25 = vadd.f32 %v3926_v22, %v3913_v20 }
 0x546   : > { %v3957_v40 = vadd.f32 %v3930_v2, %v3914_v36  ;;  %v3958_v42 = vadd.f32 %v3934_v3, %v3915_v29  ;;  %v3959_v43 = vadd.f32 %v3938_v11, %v3916_v38 }
 0x547   : > { %v3960_v14 = vadd.f32 %v3942_v12, %v3917_v32  ;;  %3967 = vst [vmem:[%s6359_s7 + $0x30] sm:$0xff] %v3955_v39  ;;  %3968 = vst [vmem:[%s6359_s7 + $0x38] sm:$0xff] %v3956_v25 }
 0x548   : > { %3969 = vst [vmem:[%s6359_s7 + $0x40] sm:$0xff] %v3957_v40  ;;  %3970 = vst [vmem:[%s6359_s7 + $0x48] sm:$0xff] %v3958_v42 }
 0x549   : > { %3971 = vst [vmem:[%s6359_s7 + $0x50] sm:$0xff] %v3959_v43  ;;  %3972 = vst [vmem:[%s6359_s7 + $0x58] sm:$0xff] %v3960_v14 }
 0x54a PF: > { %p17_p2 = scmp.ge.s32.totalorder %s5241_s29, 8   ;;  %s6362_s24 = smov %s5165_s25 }
 0x54b   : > { %s6363_s25 = smov %s5169_s26  ;;  %s6364_s26 = smov %s5251_s9 }
 0x54c   : > { %s6365_s27 = smov %s5241_s29  ;;  %19 = sbr.rel (!%p17_p2) target bundleno = 3 (0x3), region = 126 }
 0x553   :  { %3984 = vsyncpa [#allocation5], 1 }
 0x554   :  { %3986 = vsyncpa [#allocation5 + $0x1], 1 }

// kernel: custom_bert_forward.17
= control target key start
LH: loop header
LB: loop body
LE: loop exit
PB: predicated region body
PF: predicated region fallthrough
CT: control target
= control target key end

     0   :  { %s5134_s24 = smov 0   ;;  %s5136_s25 = smov 0   ;;  %s6216_s0 = inlined_call_operand.vmem [shape: f32[16,768], index: 0, kind: input, shape index: {}]   ;;  %s6217_s1 = inlined_call_operand.vmem [shape: bf16[768,3072], index: 1, kind: input, shape index: {}]   ;;  %s6218_s2 = inlined_call_operand.vmem [shape: f32[1,3072], index: 2, kind: input, shape index: {}]   ;;  %s6219_s3 = inlined_call_operand.vmem [shape: bf16[3072,768], index: 3, kind: input, shape index: {}]   ;;  %s6220_s4 = inlined_call_operand.vmem [shape: f32[1,768], index: 4, kind: input, shape index: {}]   ;;  %s6221_s5 = inlined_call_operand.vmem [shape: f32[1,768], index: 5, kind: input, shape index: {}]   ;;  %s6222_s6 = inlined_call_operand.vmem [shape: f32[1,768], index: 6, kind: input, shape index: {}]   ;;  %s6223_s7 = inlined_call_operand.vmem [shape: f32[16,768], index: 7, kind: output, shape index: {}]  }
   0x1   :  { %s5138_s26 = smov 0  }
   0x2 LB: > { %s5150_s27 = sadd.s32 4294967295, %s5091_s26   ;;  %s5153_s28 = sadd.s32 1, %s5091_s26   ;;  %s5091_s26 = sphi %s5138_s26, %s6226_s26   ;;  %s5087_s25 = sphi %s5136_s25, %s6225_s25   ;;  %s5083_s24 = sphi %s5134_s24, %s6224_s24  }
   0x3   : > { %s42_s29 = ssub.s32 %s5091_s26, %s5153_s28  ;;  %s45_s30 = sadd.s32 1, %s5087_s25 }
   0x4   : > { %p43_p0 = scmp.eq.s32.totalorder %s42_s29, 0  ;;  %p52_p1 = scmp.ne.s32.totalorder %s5087_s25, %s5083_s24 }
   0x5   : > { %p53_p2 = scmp.eq.s32.totalorder %s5091_s26, 0  ;;  %p4013_p4 = scmp.ge.s32.totalorder %s5091_s26, 6 }
   0x6   : > { %s5162_s8 = scalar_select %p43_p0, %s5087_s25, %s45_s30  }
   0x7   : > { %p54_p3 = por %p53_p2, %p52_p1  ;;  %226 = sbr.rel (%p4013_p4) target bundleno = 114 (0x72), region = 32 }
   0xe   : > { %229 = sbr.rel (!%p54_p3) target bundleno = 114 (0x72), region = 36  ;;  %s231_s9 = sand.u32 (%p54_p3), 1, %s5087_s25  }
   0xf   : > { %s4408_s10 = sshll.u32 (%p54_p3), %s5091_s26, 4  ;;  %s4445_s11 = smul.u32 (%p54_p3), 1536, %s231_s9 }
  0x10   : > { %s5170_s14 = scalar_lea.vmem (%p54_p3), %s6217_s1, %s4408_s10 }
  0x11   : > { %v249_v0 = vld [vmem:[%s5170_s14] sm:$0xff] (%p54_p3)  ;;  %v251_v1 = vld [vmem:[%s5170_s14 + $0x8] sm:$0xff] (%p54_p3)  ;;  %s5178_s15 = scalar_lea.vmem (%p54_p3), [#allocation3], %s4445_s11 }
  0x12   : > { %v253_v2 = vld [vmem:[%s5170_s14 + $0x60] sm:$0xff] (%p54_p3)  ;;  %v255_v3 = vld [vmem:[%s5170_s14 + $0x68] sm:$0xff] (%p54_p3)  ;;  %250 = vst [vmem:[%s5178_s15] sm:$0xff] (%p54_p3), %v249_v0  ;;  %252 = vst [vmem:[%s5178_s15 + $0x8] sm:$0xff] (%p54_p3), %v251_v1 }
  0x13   : > { %v257_v4 = vld [vmem:[%s5170_s14 + $0xc0] sm:$0xff] (%p54_p3)  ;;  %v259_v5 = vld [vmem:[%s5170_s14 + $0xc8] sm:$0xff] (%p54_p3)  ;;  %254 = vst [vmem:[%s5178_s15 + $0x10] sm:$0xff] (%p54_p3), %v253_v2  ;;  %256 = vst [vmem:[%s5178_s15 + $0x18] sm:$0xff] (%p54_p3), %v255_v3 }
  0x14   : > { %258 = vst [vmem:[%s5178_s15 + $0x20] sm:$0xff] (%p54_p3), %v257_v4  ;;  %260 = vst [vmem:[%s5178_s15 + $0x28] sm:$0xff] (%p54_p3), %v259_v5  ;;  %v261_v6 = vld [vmem:[%s5170_s14 + $0x120] sm:$0xff] (%p54_p3)  ;;  %v263_v7 = vld [vmem:[%s5170_s14 + $0x128] sm:$0xff] (%p54_p3) }
  0x15   : > { %v265_v8 = vld [vmem:[%s5170_s14 + $0x180] sm:$0xff]  ;;  %262 = vst [vmem:[%s5178_s15 + $0x30] sm:$0xff] %v261_v6  ;;  %264 = vst [vmem:[%s5178_s15 + $0x38] sm:$0xff] %v263_v7  ;;  %v267_v9 = vld [vmem:[%s5170_s14 + $0x188] sm:$0xff] }
  0x16   : > { %266 = vst [vmem:[%s5178_s15 + $0x40] sm:$0xff] %v265_v8  ;;  %v269_v10 = vld [vmem:[%s5170_s14 + $0x1e0] sm:$0xff]  ;;  %v271_v11 = vld [vmem:[%s5170_s14 + $0x1e8] sm:$0xff]  ;;  %268 = vst [vmem:[%s5178_s15 + $0x48] sm:$0xff] %v267_v9 }
  0x17   : > { %270 = vst [vmem:[%s5178_s15 + $0x50] sm:$0xff] %v269_v10  ;;  %272 = vst [vmem:[%s5178_s15 + $0x58] sm:$0xff] %v271_v11  ;;  %v273_v12 = vld [vmem:[%s5170_s14 + $0x240] sm:$0xff]  ;;  %v275_v13 = vld [vmem:[%s5170_s14 + $0x248] sm:$0xff] }
  0x18   : > { %v277_v14 = vld [vmem:[%s5170_s14 + $0x2a0] sm:$0xff]  ;;  %274 = vst [vmem:[%s5178_s15 + $0x60] sm:$0xff] %v273_v12  ;;  %276 = vst [vmem:[%s5178_s15 + $0x68] sm:$0xff] %v275_v13  ;;  %v279_v15 = vld [vmem:[%s5170_s14 + $0x2a8] sm:$0xff] }
  0x19   : > { %278 = vst [vmem:[%s5178_s15 + $0x70] sm:$0xff] %v277_v14  ;;  %v281_v16 = vld [vmem:[%s5170_s14 + $0x300] sm:$0xff]  ;;  %v283_v17 = vld [vmem:[%s5170_s14 + $0x308] sm:$0xff]  ;;  %280 = vst [vmem:[%s5178_s15 + $0x78] sm:$0xff] %v279_v15 }
  0x1a   : > { %282 = vst [vmem:[%s5178_s15 + $0x80] sm:$0xff] %v281_v16  ;;  %284 = vst [vmem:[%s5178_s15 + $0x88] sm:$0xff] %v283_v17  ;;  %v285_v18 = vld [vmem:[%s5170_s14 + $0x360] sm:$0xff]  ;;  %v287_v19 = vld [vmem:[%s5170_s14 + $0x368] sm:$0xff] }
  0x1b   : > { %v289_v20 = vld [vmem:[%s5170_s14 + $0x3c0] sm:$0xff]  ;;  %286 = vst [vmem:[%s5178_s15 + $0x90] sm:$0xff] %v285_v18  ;;  %288 = vst [vmem:[%s5178_s15 + $0x98] sm:$0xff] %v287_v19  ;;  %v291_v21 = vld [vmem:[%s5170_s14 + $0x3c8] sm:$0xff] }
  0x1c   : > { %290 = vst [vmem:[%s5178_s15 + $0xa0] sm:$0xff] %v289_v20  ;;  %v293_v22 = vld [vmem:[%s5170_s14 + $0x420] sm:$0xff]  ;;  %v295_v23 = vld [vmem:[%s5170_s14 + $0x428] sm:$0xff]  ;;  %292 = vst [vmem:[%s5178_s15 + $0xa8] sm:$0xff] %v291_v21 }
  0x1d   : > { %294 = vst [vmem:[%s5178_s15 + $0xb0] sm:$0xff] %v293_v22  ;;  %296 = vst [vmem:[%s5178_s15 + $0xb8] sm:$0xff] %v295_v23  ;;  %v297_v24 = vld [vmem:[%s5170_s14 + $0x480] sm:$0xff]  ;;  %v299_v25 = vld [vmem:[%s5170_s14 + $0x488] sm:$0xff] }
  0x1e   : > { %v301_v26 = vld [vmem:[%s5170_s14 + $0x4e0] sm:$0xff]  ;;  %298 = vst [vmem:[%s5178_s15 + $0xc0] sm:$0xff] %v297_v24  ;;  %300 = vst [vmem:[%s5178_s15 + $0xc8] sm:$0xff] %v299_v25  ;;  %v303_v27 = vld [vmem:[%s5170_s14 + $0x4e8] sm:$0xff] }
  0x1f   : > { %302 = vst [vmem:[%s5178_s15 + $0xd0] sm:$0xff] %v301_v26  ;;  %v305_v28 = vld [vmem:[%s5170_s14 + $0x540] sm:$0xff]  ;;  %v307_v29 = vld [vmem:[%s5170_s14 + $0x548] sm:$0xff]  ;;  %304 = vst [vmem:[%s5178_s15 + $0xd8] sm:$0xff] %v303_v27 }
  0x20   : > { %306 = vst [vmem:[%s5178_s15 + $0xe0] sm:$0xff] %v305_v28  ;;  %308 = vst [vmem:[%s5178_s15 + $0xe8] sm:$0xff] %v307_v29  ;;  %v309_v30 = vld [vmem:[%s5170_s14 + $0x5a0] sm:$0xff]  ;;  %v311_v31 = vld [vmem:[%s5170_s14 + $0x5a8] sm:$0xff] }
  0x21   : > { %v313_v32 = vld [vmem:[%s5170_s14 + $0x600] sm:$0xff]  ;;  %310 = vst [vmem:[%s5178_s15 + $0xf0] sm:$0xff] %v309_v30  ;;  %312 = vst [vmem:[%s5178_s15 + $0xf8] sm:$0xff] %v311_v31  ;;  %v315_v33 = vld [vmem:[%s5170_s14 + $0x608] sm:$0xff] }
  0x22   : > { %314 = vst [vmem:[%s5178_s15 + $0x100] sm:$0xff] %v313_v32  ;;  %v317_v34 = vld [vmem:[%s5170_s14 + $0x660] sm:$0xff]  ;;  %v319_v35 = vld [vmem:[%s5170_s14 + $0x668] sm:$0xff]  ;;  %316 = vst [vmem:[%s5178_s15 + $0x108] sm:$0xff] %v315_v33 }
  0x23   : > { %318 = vst [vmem:[%s5178_s15 + $0x110] sm:$0xff] %v317_v34  ;;  %320 = vst [vmem:[%s5178_s15 + $0x118] sm:$0xff] %v319_v35  ;;  %v321_v36 = vld [vmem:[%s5170_s14 + $0x6c0] sm:$0xff]  ;;  %v323_v37 = vld [vmem:[%s5170_s14 + $0x6c8] sm:$0xff] }
  0x24   : > { %v325_v38 = vld [vmem:[%s5170_s14 + $0x720] sm:$0xff]  ;;  %322 = vst [vmem:[%s5178_s15 + $0x120] sm:$0xff] %v321_v36  ;;  %324 = vst [vmem:[%s5178_s15 + $0x128] sm:$0xff] %v323_v37  ;;  %v327_v39 = vld [vmem:[%s5170_s14 + $0x728] sm:$0xff] }
  0x25   : > { %326 = vst [vmem:[%s5178_s15 + $0x130] sm:$0xff] %v325_v38  ;;  %v329_v40 = vld [vmem:[%s5170_s14 + $0x780] sm:$0xff]  ;;  %v331_v41 = vld [vmem:[%s5170_s14 + $0x788] sm:$0xff]  ;;  %328 = vst [vmem:[%s5178_s15 + $0x138] sm:$0xff] %v327_v39 }
  0x26   : > { %330 = vst [vmem:[%s5178_s15 + $0x140] sm:$0xff] %v329_v40  ;;  %332 = vst [vmem:[%s5178_s15 + $0x148] sm:$0xff] %v331_v41  ;;  %v333_v42 = vld [vmem:[%s5170_s14 + $0x7e0] sm:$0xff]  ;;  %v335_v43 = vld [vmem:[%s5170_s14 + $0x7e8] sm:$0xff] }
  0x27   : > { %v337_v44 = vld [vmem:[%s5170_s14 + $0x840] sm:$0xff]  ;;  %334 = vst [vmem:[%s5178_s15 + $0x150] sm:$0xff] %v333_v42  ;;  %336 = vst [vmem:[%s5178_s15 + $0x158] sm:$0xff] %v335_v43  ;;  %v339_v45 = vld [vmem:[%s5170_s14 + $0x848] sm:$0xff] }
  0x28   : > { %338 = vst [vmem:[%s5178_s15 + $0x160] sm:$0xff] %v337_v44  ;;  %v341_v46 = vld [vmem:[%s5170_s14 + $0x8a0] sm:$0xff]  ;;  %v343_v47 = vld [vmem:[%s5170_s14 + $0x8a8] sm:$0xff]  ;;  %340 = vst [vmem:[%s5178_s15 + $0x168] sm:$0xff] %v339_v45 }
  0x29   : > { %342 = vst [vmem:[%s5178_s15 + $0x170] sm:$0xff] %v341_v46  ;;  %344 = vst [vmem:[%s5178_s15 + $0x178] sm:$0xff] %v343_v47  ;;  %v345_v48 = vld [vmem:[%s5170_s14 + $0x900] sm:$0xff]  ;;  %v347_v49 = vld [vmem:[%s5170_s14 + $0x908] sm:$0xff] }
  0x2a   : > { %v349_v50 = vld [vmem:[%s5170_s14 + $0x960] sm:$0xff]  ;;  %346 = vst [vmem:[%s5178_s15 + $0x180] sm:$0xff] %v345_v48  ;;  %348 = vst [vmem:[%s5178_s15 + $0x188] sm:$0xff] %v347_v49  ;;  %v351_v51 = vld [vmem:[%s5170_s14 + $0x968] sm:$0xff] }
  0x2b   : > { %350 = vst [vmem:[%s5178_s15 + $0x190] sm:$0xff] %v349_v50  ;;  %v353_v52 = vld [vmem:[%s5170_s14 + $0x9c0] sm:$0xff]  ;;  %v355_v53 = vld [vmem:[%s5170_s14 + $0x9c8] sm:$0xff]  ;;  %352 = vst [vmem:[%s5178_s15 + $0x198] sm:$0xff] %v351_v51 }
  0x2c   : > { %354 = vst [vmem:[%s5178_s15 + $0x1a0] sm:$0xff] %v353_v52  ;;  %356 = vst [vmem:[%s5178_s15 + $0x1a8] sm:$0xff] %v355_v53  ;;  %v357_v54 = vld [vmem:[%s5170_s14 + $0xa20] sm:$0xff]  ;;  %v359_v55 = vld [vmem:[%s5170_s14 + $0xa28] sm:$0xff] }
  0x2d   : > { %v361_v56 = vld [vmem:[%s5170_s14 + $0xa80] sm:$0xff]  ;;  %358 = vst [vmem:[%s5178_s15 + $0x1b0] sm:$0xff] %v357_v54  ;;  %360 = vst [vmem:[%s5178_s15 + $0x1b8] sm:$0xff] %v359_v55  ;;  %v363_v57 = vld [vmem:[%s5170_s14 + $0xa88] sm:$0xff] }
  0x2e   : > { %362 = vst [vmem:[%s5178_s15 + $0x1c0] sm:$0xff] %v361_v56  ;;  %v365_v58 = vld [vmem:[%s5170_s14 + $0xae0] sm:$0xff]  ;;  %v367_v59 = vld [vmem:[%s5170_s14 + $0xae8] sm:$0xff]  ;;  %364 = vst [vmem:[%s5178_s15 + $0x1c8] sm:$0xff] %v363_v57 }
  0x2f   : > { %366 = vst [vmem:[%s5178_s15 + $0x1d0] sm:$0xff] %v365_v58  ;;  %368 = vst [vmem:[%s5178_s15 + $0x1d8] sm:$0xff] %v367_v59  ;;  %v369_v60 = vld [vmem:[%s5170_s14 + $0xb40] sm:$0xff]  ;;  %v371_v61 = vld [vmem:[%s5170_s14 + $0xb48] sm:$0xff] }
  0x30   : > { %v373_v62 = vld [vmem:[%s5170_s14 + $0xba0] sm:$0xff]  ;;  %370 = vst [vmem:[%s5178_s15 + $0x1e0] sm:$0xff] %v369_v60  ;;  %372 = vst [vmem:[%s5178_s15 + $0x1e8] sm:$0xff] %v371_v61  ;;  %v375_v63 = vld [vmem:[%s5170_s14 + $0xba8] sm:$0xff] }
  0x31   : > { %374 = vst [vmem:[%s5178_s15 + $0x1f0] sm:$0xff] %v373_v62  ;;  %v377_v0 = vld [vmem:[%s5170_s14 + $0xc00] sm:$0xff]  ;;  %v379_v1 = vld [vmem:[%s5170_s14 + $0xc08] sm:$0xff]  ;;  %376 = vst [vmem:[%s5178_s15 + $0x1f8] sm:$0xff] %v375_v63 }
  0x32   : > { %378 = vst [vmem:[%s5178_s15 + $0x200] sm:$0xff] %v377_v0  ;;  %380 = vst [vmem:[%s5178_s15 + $0x208] sm:$0xff] %v379_v1  ;;  %v381_v2 = vld [vmem:[%s5170_s14 + $0xc60] sm:$0xff]  ;;  %v383_v3 = vld [vmem:[%s5170_s14 + $0xc68] sm:$0xff] }
  0x33   : > { %v385_v4 = vld [vmem:[%s5170_s14 + $0xcc0] sm:$0xff]  ;;  %382 = vst [vmem:[%s5178_s15 + $0x210] sm:$0xff] %v381_v2  ;;  %384 = vst [vmem:[%s5178_s15 + $0x218] sm:$0xff] %v383_v3  ;;  %v387_v5 = vld [vmem:[%s5170_s14 + $0xcc8] sm:$0xff] }
  0x34   : > { %386 = vst [vmem:[%s5178_s15 + $0x220] sm:$0xff] %v385_v4  ;;  %v389_v6 = vld [vmem:[%s5170_s14 + $0xd20] sm:$0xff]  ;;  %v391_v7 = vld [vmem:[%s5170_s14 + $0xd28] sm:$0xff]  ;;  %388 = vst [vmem:[%s5178_s15 + $0x228] sm:$0xff] %v387_v5 }
  0x35   : > { %390 = vst [vmem:[%s5178_s15 + $0x230] sm:$0xff] %v389_v6  ;;  %392 = vst [vmem:[%s5178_s15 + $0x238] sm:$0xff] %v391_v7  ;;  %v393_v8 = vld [vmem:[%s5170_s14 + $0xd80] sm:$0xff]  ;;  %v395_v9 = vld [vmem:[%s5170_s14 + $0xd88] sm:$0xff] }
  0x36   : > { %v397_v10 = vld [vmem:[%s5170_s14 + $0xde0] sm:$0xff]  ;;  %394 = vst [vmem:[%s5178_s15 + $0x240] sm:$0xff] %v393_v8  ;;  %396 = vst [vmem:[%s5178_s15 + $0x248] sm:$0xff] %v395_v9  ;;  %v399_v11 = vld [vmem:[%s5170_s14 + $0xde8] sm:$0xff] }
  0x37   : > { %398 = vst [vmem:[%s5178_s15 + $0x250] sm:$0xff] %v397_v10  ;;  %v401_v12 = vld [vmem:[%s5170_s14 + $0xe40] sm:$0xff]  ;;  %v403_v13 = vld [vmem:[%s5170_s14 + $0xe48] sm:$0xff]  ;;  %400 = vst [vmem:[%s5178_s15 + $0x258] sm:$0xff] %v399_v11 }
  0x38   : > { %402 = vst [vmem:[%s5178_s15 + $0x260] sm:$0xff] %v401_v12  ;;  %404 = vst [vmem:[%s5178_s15 + $0x268] sm:$0xff] %v403_v13  ;;  %v405_v14 = vld [vmem:[%s5170_s14 + $0xea0] sm:$0xff]  ;;  %v407_v15 = vld [vmem:[%s5170_s14 + $0xea8] sm:$0xff] }
  0x39   : > { %v409_v16 = vld [vmem:[%s5170_s14 + $0xf00] sm:$0xff]  ;;  %406 = vst [vmem:[%s5178_s15 + $0x270] sm:$0xff] %v405_v14  ;;  %408 = vst [vmem:[%s5178_s15 + $0x278] sm:$0xff] %v407_v15  ;;  %v411_v17 = vld [vmem:[%s5170_s14 + $0xf08] sm:$0xff] }
  0x3a   : > { %410 = vst [vmem:[%s5178_s15 + $0x280] sm:$0xff] %v409_v16  ;;  %v413_v18 = vld [vmem:[%s5170_s14 + $0xf60] sm:$0xff]  ;;  %v415_v19 = vld [vmem:[%s5170_s14 + $0xf68] sm:$0xff]  ;;  %412 = vst [vmem:[%s5178_s15 + $0x288] sm:$0xff] %v411_v17 }
  0x3b   : > { %414 = vst [vmem:[%s5178_s15 + $0x290] sm:$0xff] %v413_v18  ;;  %416 = vst [vmem:[%s5178_s15 + $0x298] sm:$0xff] %v415_v19  ;;  %v417_v20 = vld [vmem:[%s5170_s14 + $0xfc0] sm:$0xff]  ;;  %v419_v21 = vld [vmem:[%s5170_s14 + $0xfc8] sm:$0xff] }
  0x3c   : > { %v421_v22 = vld [vmem:[%s5170_s14 + $0x1020] sm:$0xff]  ;;  %418 = vst [vmem:[%s5178_s15 + $0x2a0] sm:$0xff] %v417_v20  ;;  %420 = vst [vmem:[%s5178_s15 + $0x2a8] sm:$0xff] %v419_v21  ;;  %v423_v23 = vld [vmem:[%s5170_s14 + $0x1028] sm:$0xff] }
  0x3d   : > { %422 = vst [vmem:[%s5178_s15 + $0x2b0] sm:$0xff] %v421_v22  ;;  %v425_v24 = vld [vmem:[%s5170_s14 + $0x1080] sm:$0xff]  ;;  %v427_v25 = vld [vmem:[%s5170_s14 + $0x1088] sm:$0xff]  ;;  %424 = vst [vmem:[%s5178_s15 + $0x2b8] sm:$0xff] %v423_v23 }
  0x3e   : > { %426 = vst [vmem:[%s5178_s15 + $0x2c0] sm:$0xff] %v425_v24  ;;  %428 = vst [vmem:[%s5178_s15 + $0x2c8] sm:$0xff] %v427_v25  ;;  %v429_v26 = vld [vmem:[%s5170_s14 + $0x10e0] sm:$0xff]  ;;  %v431_v27 = vld [vmem:[%s5170_s14 + $0x10e8] sm:$0xff] }
  0x3f   : > { %v433_v28 = vld [vmem:[%s5170_s14 + $0x1140] sm:$0xff]  ;;  %430 = vst [vmem:[%s5178_s15 + $0x2d0] sm:$0xff] %v429_v26  ;;  %432 = vst [vmem:[%s5178_s15 + $0x2d8] sm:$0xff] %v431_v27  ;;  %v435_v29 = vld [vmem:[%s5170_s14 + $0x1148] sm:$0xff] }
  0x40   : > { %434 = vst [vmem:[%s5178_s15 + $0x2e0] sm:$0xff] %v433_v28  ;;  %v437_v30 = vld [vmem:[%s5170_s14 + $0x11a0] sm:$0xff]  ;;  %v439_v31 = vld [vmem:[%s5170_s14 + $0x11a8] sm:$0xff]  ;;  %436 = vst [vmem:[%s5178_s15 + $0x2e8] sm:$0xff] %v435_v29 }
  0x41   : > { %438 = vst [vmem:[%s5178_s15 + $0x2f0] sm:$0xff] %v437_v30  ;;  %440 = vst [vmem:[%s5178_s15 + $0x2f8] sm:$0xff] %v439_v31  ;;  %v441_v32 = vld [vmem:[%s5170_s14 + $0x1200] sm:$0xff]  ;;  %v443_v33 = vld [vmem:[%s5170_s14 + $0x1208] sm:$0xff] }
  0x42   : > { %v445_v34 = vld [vmem:[%s5170_s14 + $0x1260] sm:$0xff]  ;;  %442 = vst [vmem:[%s5178_s15 + $0x300] sm:$0xff] %v441_v32  ;;  %444 = vst [vmem:[%s5178_s15 + $0x308] sm:$0xff] %v443_v33  ;;  %v447_v35 = vld [vmem:[%s5170_s14 + $0x1268] sm:$0xff] }
  0x43   : > { %446 = vst [vmem:[%s5178_s15 + $0x310] sm:$0xff] %v445_v34  ;;  %v449_v36 = vld [vmem:[%s5170_s14 + $0x12c0] sm:$0xff]  ;;  %v451_v37 = vld [vmem:[%s5170_s14 + $0x12c8] sm:$0xff]  ;;  %448 = vst [vmem:[%s5178_s15 + $0x318] sm:$0xff] %v447_v35 }
  0x44   : > { %450 = vst [vmem:[%s5178_s15 + $0x320] sm:$0xff] %v449_v36  ;;  %452 = vst [vmem:[%s5178_s15 + $0x328] sm:$0xff] %v451_v37  ;;  %v453_v38 = vld [vmem:[%s5170_s14 + $0x1320] sm:$0xff]  ;;  %v455_v39 = vld [vmem:[%s5170_s14 + $0x1328] sm:$0xff] }
  0x45   : > { %v457_v40 = vld [vmem:[%s5170_s14 + $0x1380] sm:$0xff]  ;;  %454 = vst [vmem:[%s5178_s15 + $0x330] sm:$0xff] %v453_v38  ;;  %456 = vst [vmem:[%s5178_s15 + $0x338] sm:$0xff] %v455_v39  ;;  %v459_v41 = vld [vmem:[%s5170_s14 + $0x1388] sm:$0xff] }
  0x46   : > { %458 = vst [vmem:[%s5178_s15 + $0x340] sm:$0xff] %v457_v40  ;;  %v461_v42 = vld [vmem:[%s5170_s14 + $0x13e0] sm:$0xff]  ;;  %v463_v43 = vld [vmem:[%s5170_s14 + $0x13e8] sm:$0xff]  ;;  %460 = vst [vmem:[%s5178_s15 + $0x348] sm:$0xff] %v459_v41 }
  0x47   : > { %462 = vst [vmem:[%s5178_s15 + $0x350] sm:$0xff] %v461_v42  ;;  %464 = vst [vmem:[%s5178_s15 + $0x358] sm:$0xff] %v463_v43  ;;  %v465_v44 = vld [vmem:[%s5170_s14 + $0x1440] sm:$0xff]  ;;  %v467_v45 = vld [vmem:[%s5170_s14 + $0x1448] sm:$0xff] }
  0x48   : > { %v469_v46 = vld [vmem:[%s5170_s14 + $0x14a0] sm:$0xff]  ;;  %466 = vst [vmem:[%s5178_s15 + $0x360] sm:$0xff] %v465_v44  ;;  %468 = vst [vmem:[%s5178_s15 + $0x368] sm:$0xff] %v467_v45  ;;  %v471_v47 = vld [vmem:[%s5170_s14 + $0x14a8] sm:$0xff] }
  0x49   : > { %470 = vst [vmem:[%s5178_s15 + $0x370] sm:$0xff] %v469_v46  ;;  %v473_v48 = vld [vmem:[%s5170_s14 + $0x1500] sm:$0xff]  ;;  %v475_v49 = vld [vmem:[%s5170_s14 + $0x1508] sm:$0xff]  ;;  %472 = vst [vmem:[%s5178_s15 + $0x378] sm:$0xff] %v471_v47 }
  0x4a   : > { %474 = vst [vmem:[%s5178_s15 + $0x380] sm:$0xff] %v473_v48  ;;  %476 = vst [vmem:[%s5178_s15 + $0x388] sm:$0xff] %v475_v49  ;;  %v477_v50 = vld [vmem:[%s5170_s14 + $0x1560] sm:$0xff]  ;;  %v479_v51 = vld [vmem:[%s5170_s14 + $0x1568] sm:$0xff] }
  0x4b   : > { %v481_v52 = vld [vmem:[%s5170_s14 + $0x15c0] sm:$0xff]  ;;  %478 = vst [vmem:[%s5178_s15 + $0x390] sm:$0xff] %v477_v50  ;;  %480 = vst [vmem:[%s5178_s15 + $0x398] sm:$0xff] %v479_v51  ;;  %v483_v53 = vld [vmem:[%s5170_s14 + $0x15c8] sm:$0xff] }
  0x4c   : > { %482 = vst [vmem:[%s5178_s15 + $0x3a0] sm:$0xff] %v481_v52  ;;  %v485_v54 = vld [vmem:[%s5170_s14 + $0x1620] sm:$0xff]  ;;  %v487_v55 = vld [vmem:[%s5170_s14 + $0x1628] sm:$0xff]  ;;  %484 = vst [vmem:[%s5178_s15 + $0x3a8] sm:$0xff] %v483_v53 }
  0x4d   : > { %486 = vst [vmem:[%s5178_s15 + $0x3b0] sm:$0xff] %v485_v54  ;;  %488 = vst [vmem:[%s5178_s15 + $0x3b8] sm:$0xff] %v487_v55  ;;  %v489_v56 = vld [vmem:[%s5170_s14 + $0x1680] sm:$0xff]  ;;  %v491_v57 = vld [vmem:[%s5170_s14 + $0x1688] sm:$0xff] }
  0x4e   : > { %v493_v58 = vld [vmem:[%s5170_s14 + $0x16e0] sm:$0xff]  ;;  %490 = vst [vmem:[%s5178_s15 + $0x3c0] sm:$0xff] %v489_v56  ;;  %492 = vst [vmem:[%s5178_s15 + $0x3c8] sm:$0xff] %v491_v57  ;;  %v495_v59 = vld [vmem:[%s5170_s14 + $0x16e8] sm:$0xff] }
  0x4f   : > { %494 = vst [vmem:[%s5178_s15 + $0x3d0] sm:$0xff] %v493_v58  ;;  %v497_v60 = vld [vmem:[%s5170_s14 + $0x1740] sm:$0xff]  ;;  %v499_v61 = vld [vmem:[%s5170_s14 + $0x1748] sm:$0xff]  ;;  %496 = vst [vmem:[%s5178_s15 + $0x3d8] sm:$0xff] %v495_v59 }
  0x50   : > { %498 = vst [vmem:[%s5178_s15 + $0x3e0] sm:$0xff] %v497_v60  ;;  %500 = vst [vmem:[%s5178_s15 + $0x3e8] sm:$0xff] %v499_v61  ;;  %v501_v62 = vld [vmem:[%s5170_s14 + $0x17a0] sm:$0xff]  ;;  %v503_v63 = vld [vmem:[%s5170_s14 + $0x17a8] sm:$0xff] }
  0x51   : > { %v505_v0 = vld [vmem:[%s5170_s14 + $0x1800] sm:$0xff]  ;;  %502 = vst [vmem:[%s5178_s15 + $0x3f0] sm:$0xff] %v501_v62  ;;  %504 = vst [vmem:[%s5178_s15 + $0x3f8] sm:$0xff] %v503_v63  ;;  %v507_v1 = vld [vmem:[%s5170_s14 + $0x1808] sm:$0xff] }
  0x52   : > { %506 = vst [vmem:[%s5178_s15 + $0x400] sm:$0xff] %v505_v0  ;;  %v509_v2 = vld [vmem:[%s5170_s14 + $0x1860] sm:$0xff]  ;;  %v511_v3 = vld [vmem:[%s5170_s14 + $0x1868] sm:$0xff]  ;;  %508 = vst [vmem:[%s5178_s15 + $0x408] sm:$0xff] %v507_v1 }
  0x53   : > { %510 = vst [vmem:[%s5178_s15 + $0x410] sm:$0xff] %v509_v2  ;;  %512 = vst [vmem:[%s5178_s15 + $0x418] sm:$0xff] %v511_v3  ;;  %v513_v4 = vld [vmem:[%s5170_s14 + $0x18c0] sm:$0xff]  ;;  %v515_v5 = vld [vmem:[%s5170_s14 + $0x18c8] sm:$0xff] }
  0x54   : > { %v517_v6 = vld [vmem:[%s5170_s14 + $0x1920] sm:$0xff]  ;;  %514 = vst [vmem:[%s5178_s15 + $0x420] sm:$0xff] %v513_v4  ;;  %516 = vst [vmem:[%s5178_s15 + $0x428] sm:$0xff] %v515_v5  ;;  %v519_v7 = vld [vmem:[%s5170_s14 + $0x1928] sm:$0xff] }
  0x55   : > { %518 = vst [vmem:[%s5178_s15 + $0x430] sm:$0xff] %v517_v6  ;;  %v521_v8 = vld [vmem:[%s5170_s14 + $0x1980] sm:$0xff]  ;;  %v523_v9 = vld [vmem:[%s5170_s14 + $0x1988] sm:$0xff]  ;;  %520 = vst [vmem:[%s5178_s15 + $0x438] sm:$0xff] %v519_v7 }
  0x56   : > { %522 = vst [vmem:[%s5178_s15 + $0x440] sm:$0xff] %v521_v8  ;;  %524 = vst [vmem:[%s5178_s15 + $0x448] sm:$0xff] %v523_v9  ;;  %v525_v10 = vld [vmem:[%s5170_s14 + $0x19e0] sm:$0xff]  ;;  %v527_v11 = vld [vmem:[%s5170_s14 + $0x19e8] sm:$0xff] }
  0x57   : > { %v529_v12 = vld [vmem:[%s5170_s14 + $0x1a40] sm:$0xff]  ;;  %526 = vst [vmem:[%s5178_s15 + $0x450] sm:$0xff] %v525_v10  ;;  %528 = vst [vmem:[%s5178_s15 + $0x458] sm:$0xff] %v527_v11  ;;  %v531_v13 = vld [vmem:[%s5170_s14 + $0x1a48] sm:$0xff] }
  0x58   : > { %530 = vst [vmem:[%s5178_s15 + $0x460] sm:$0xff] %v529_v12  ;;  %v533_v14 = vld [vmem:[%s5170_s14 + $0x1aa0] sm:$0xff]  ;;  %v535_v15 = vld [vmem:[%s5170_s14 + $0x1aa8] sm:$0xff]  ;;  %532 = vst [vmem:[%s5178_s15 + $0x468] sm:$0xff] %v531_v13 }
  0x59   : > { %534 = vst [vmem:[%s5178_s15 + $0x470] sm:$0xff] %v533_v14  ;;  %536 = vst [vmem:[%s5178_s15 + $0x478] sm:$0xff] %v535_v15  ;;  %v537_v16 = vld [vmem:[%s5170_s14 + $0x1b00] sm:$0xff]  ;;  %v539_v17 = vld [vmem:[%s5170_s14 + $0x1b08] sm:$0xff] }
  0x5a   : > { %v541_v18 = vld [vmem:[%s5170_s14 + $0x1b60] sm:$0xff]  ;;  %538 = vst [vmem:[%s5178_s15 + $0x480] sm:$0xff] %v537_v16  ;;  %540 = vst [vmem:[%s5178_s15 + $0x488] sm:$0xff] %v539_v17  ;;  %v543_v19 = vld [vmem:[%s5170_s14 + $0x1b68] sm:$0xff] }
  0x5b   : > { %542 = vst [vmem:[%s5178_s15 + $0x490] sm:$0xff] %v541_v18  ;;  %v545_v20 = vld [vmem:[%s5170_s14 + $0x1bc0] sm:$0xff]  ;;  %v547_v21 = vld [vmem:[%s5170_s14 + $0x1bc8] sm:$0xff]  ;;  %544 = vst [vmem:[%s5178_s15 + $0x498] sm:$0xff] %v543_v19 }
  0x5c   : > { %546 = vst [vmem:[%s5178_s15 + $0x4a0] sm:$0xff] %v545_v20  ;;  %548 = vst [vmem:[%s5178_s15 + $0x4a8] sm:$0xff] %v547_v21  ;;  %v549_v22 = vld [vmem:[%s5170_s14 + $0x1c20] sm:$0xff]  ;;  %v551_v23 = vld [vmem:[%s5170_s14 + $0x1c28] sm:$0xff] }
  0x5d   : > { %v553_v24 = vld [vmem:[%s5170_s14 + $0x1c80] sm:$0xff]  ;;  %550 = vst [vmem:[%s5178_s15 + $0x4b0] sm:$0xff] %v549_v22  ;;  %552 = vst [vmem:[%s5178_s15 + $0x4b8] sm:$0xff] %v551_v23  ;;  %v555_v25 = vld [vmem:[%s5170_s14 + $0x1c88] sm:$0xff] }
  0x5e   : > { %554 = vst [vmem:[%s5178_s15 + $0x4c0] sm:$0xff] %v553_v24  ;;  %v557_v26 = vld [vmem:[%s5170_s14 + $0x1ce0] sm:$0xff]  ;;  %v559_v27 = vld [vmem:[%s5170_s14 + $0x1ce8] sm:$0xff]  ;;  %556 = vst [vmem:[%s5178_s15 + $0x4c8] sm:$0xff] %v555_v25 }
  0x5f   : > { %558 = vst [vmem:[%s5178_s15 + $0x4d0] sm:$0xff] %v557_v26  ;;  %560 = vst [vmem:[%s5178_s15 + $0x4d8] sm:$0xff] %v559_v27  ;;  %v561_v28 = vld [vmem:[%s5170_s14 + $0x1d40] sm:$0xff]  ;;  %v563_v29 = vld [vmem:[%s5170_s14 + $0x1d48] sm:$0xff] }
  0x60   : > { %v565_v30 = vld [vmem:[%s5170_s14 + $0x1da0] sm:$0xff]  ;;  %562 = vst [vmem:[%s5178_s15 + $0x4e0] sm:$0xff] %v561_v28  ;;  %564 = vst [vmem:[%s5178_s15 + $0x4e8] sm:$0xff] %v563_v29  ;;  %v567_v31 = vld [vmem:[%s5170_s14 + $0x1da8] sm:$0xff] }
  0x61   : > { %566 = vst [vmem:[%s5178_s15 + $0x4f0] sm:$0xff] %v565_v30  ;;  %v569_v32 = vld [vmem:[%s5170_s14 + $0x1e00] sm:$0xff]  ;;  %v571_v33 = vld [vmem:[%s5170_s14 + $0x1e08] sm:$0xff]  ;;  %568 = vst [vmem:[%s5178_s15 + $0x4f8] sm:$0xff] %v567_v31 }
  0x62   : > { %570 = vst [vmem:[%s5178_s15 + $0x500] sm:$0xff] %v569_v32  ;;  %572 = vst [vmem:[%s5178_s15 + $0x508] sm:$0xff] %v571_v33  ;;  %v573_v34 = vld [vmem:[%s5170_s14 + $0x1e60] sm:$0xff]  ;;  %v575_v35 = vld [vmem:[%s5170_s14 + $0x1e68] sm:$0xff] }
  0x63   : > { %v577_v36 = vld [vmem:[%s5170_s14 + $0x1ec0] sm:$0xff]  ;;  %574 = vst [vmem:[%s5178_s15 + $0x510] sm:$0xff] %v573_v34  ;;  %576 = vst [vmem:[%s5178_s15 + $0x518] sm:$0xff] %v575_v35  ;;  %v579_v37 = vld [vmem:[%s5170_s14 + $0x1ec8] sm:$0xff] }
  0x64   : > { %578 = vst [vmem:[%s5178_s15 + $0x520] sm:$0xff] %v577_v36  ;;  %v581_v38 = vld [vmem:[%s5170_s14 + $0x1f20] sm:$0xff]  ;;  %v583_v39 = vld [vmem:[%s5170_s14 + $0x1f28] sm:$0xff]  ;;  %580 = vst [vmem:[%s5178_s15 + $0x528] sm:$0xff] %v579_v37 }
  0x65   : > { %582 = vst [vmem:[%s5178_s15 + $0x530] sm:$0xff] %v581_v38  ;;  %584 = vst [vmem:[%s5178_s15 + $0x538] sm:$0xff] %v583_v39  ;;  %v585_v40 = vld [vmem:[%s5170_s14 + $0x1f80] sm:$0xff]  ;;  %v587_v41 = vld [vmem:[%s5170_s14 + $0x1f88] sm:$0xff] }
  0x66   : > { %v589_v42 = vld [vmem:[%s5170_s14 + $0x1fe0] sm:$0xff]  ;;  %586 = vst [vmem:[%s5178_s15 + $0x540] sm:$0xff] %v585_v40  ;;  %588 = vst [vmem:[%s5178_s15 + $0x548] sm:$0xff] %v587_v41  ;;  %v591_v43 = vld [vmem:[%s5170_s14 + $0x1fe8] sm:$0xff] }
  0x67   : > { %590 = vst [vmem:[%s5178_s15 + $0x550] sm:$0xff] %v589_v42  ;;  %v593_v44 = vld [vmem:[%s5170_s14 + $0x2040] sm:$0xff]  ;;  %v595_v45 = vld [vmem:[%s5170_s14 + $0x2048] sm:$0xff]  ;;  %592 = vst [vmem:[%s5178_s15 + $0x558] sm:$0xff] %v591_v43 }
  0x68   : > { %594 = vst [vmem:[%s5178_s15 + $0x560] sm:$0xff] %v593_v44  ;;  %596 = vst [vmem:[%s5178_s15 + $0x568] sm:$0xff] %v595_v45  ;;  %v597_v46 = vld [vmem:[%s5170_s14 + $0x20a0] sm:$0xff]  ;;  %v599_v47 = vld [vmem:[%s5170_s14 + $0x20a8] sm:$0xff] }
  0x69   : > { %v601_v48 = vld [vmem:[%s5170_s14 + $0x2100] sm:$0xff]  ;;  %598 = vst [vmem:[%s5178_s15 + $0x570] sm:$0xff] %v597_v46  ;;  %600 = vst [vmem:[%s5178_s15 + $0x578] sm:$0xff] %v599_v47  ;;  %v603_v49 = vld [vmem:[%s5170_s14 + $0x2108] sm:$0xff] }
  0x6a   : > { %602 = vst [vmem:[%s5178_s15 + $0x580] sm:$0xff] %v601_v48  ;;  %v605_v50 = vld [vmem:[%s5170_s14 + $0x2160] sm:$0xff]  ;;  %v607_v51 = vld [vmem:[%s5170_s14 + $0x2168] sm:$0xff]  ;;  %604 = vst [vmem:[%s5178_s15 + $0x588] sm:$0xff] %v603_v49 }
  0x6b   : > { %606 = vst [vmem:[%s5178_s15 + $0x590] sm:$0xff] %v605_v50  ;;  %608 = vst [vmem:[%s5178_s15 + $0x598] sm:$0xff] %v607_v51  ;;  %v609_v52 = vld [vmem:[%s5170_s14 + $0x21c0] sm:$0xff]  ;;  %v611_v53 = vld [vmem:[%s5170_s14 + $0x21c8] sm:$0xff] }
  0x6c   : > { %v613_v54 = vld [vmem:[%s5170_s14 + $0x2220] sm:$0xff]  ;;  %610 = vst [vmem:[%s5178_s15 + $0x5a0] sm:$0xff] %v609_v52  ;;  %612 = vst [vmem:[%s5178_s15 + $0x5a8] sm:$0xff] %v611_v53  ;;  %v615_v55 = vld [vmem:[%s5170_s14 + $0x2228] sm:$0xff] }
  0x6d   : > { %614 = vst [vmem:[%s5178_s15 + $0x5b0] sm:$0xff] %v613_v54  ;;  %v617_v56 = vld [vmem:[%s5170_s14 + $0x2280] sm:$0xff]  ;;  %v619_v57 = vld [vmem:[%s5170_s14 + $0x2288] sm:$0xff]  ;;  %616 = vst [vmem:[%s5178_s15 + $0x5b8] sm:$0xff] %v615_v55 }
  0x6e   : > { %618 = vst [vmem:[%s5178_s15 + $0x5c0] sm:$0xff] %v617_v56  ;;  %620 = vst [vmem:[%s5178_s15 + $0x5c8] sm:$0xff] %v619_v57  ;;  %v621_v58 = vld [vmem:[%s5170_s14 + $0x22e0] sm:$0xff]  ;;  %v623_v59 = vld [vmem:[%s5170_s14 + $0x22e8] sm:$0xff] }
  0x6f   : > { %v625_v60 = vld [vmem:[%s5170_s14 + $0x2340] sm:$0xff]  ;;  %622 = vst [vmem:[%s5178_s15 + $0x5d0] sm:$0xff] %v621_v58  ;;  %624 = vst [vmem:[%s5178_s15 + $0x5d8] sm:$0xff] %v623_v59  ;;  %v627_v61 = vld [vmem:[%s5170_s14 + $0x2348] sm:$0xff] }
  0x70   : > { %626 = vst [vmem:[%s5178_s15 + $0x5e0] sm:$0xff] %v625_v60  ;;  %v629_v62 = vld [vmem:[%s5170_s14 + $0x23a0] sm:$0xff]  ;;  %v631_v63 = vld [vmem:[%s5170_s14 + $0x23a8] sm:$0xff]  ;;  %628 = vst [vmem:[%s5178_s15 + $0x5e8] sm:$0xff] %v627_v61 }
  0x71   : > { %630 = vst [vmem:[%s5178_s15 + $0x5f0] sm:$0xff] %v629_v62  ;;  %632 = vst [vmem:[%s5178_s15 + $0x5f8] sm:$0xff] %v631_v63 }
  0x72 PF: > { %p4016_p5 = scmp.ge.s32.totalorder %s5091_s26, 1  ;;  %p655_p6 = scmp.lt.s32.totalorder %s5091_s26, 7 }
  0x74   : > { %p656_p7 = pnand %p4016_p5, %p655_p6 }
  0x75   : > { %s662_s16 = sand.u32 (!%p656_p7), 1, %s5083_s24   ;;  %s4017_s17 = sshll.u32 (!%p656_p7), %s5150_s27, 2 }
  0x76   : > { %659 = sbr.rel (%p656_p7) target bundleno = 1323 (0x52b), region = 67  ;;  %p700_p8 = scmp.lt.s32.totalorder (!%p656_p7), %s4017_s17, 23 }
  0x77   : > { %s4446_s18 = smul.u32 (!%p656_p7), 1536, %s662_s16  ;;  %s4018_s19 = sshll.u32 (!%p656_p7), %s5150_s27, 6 }
  0x78   : > { %p705_p9 = scmp.lt.s32.totalorder (!%p656_p7), %s4018_s19, 383  ;;  %p4020_p10 = scmp.ne.s32.totalorder (!%p656_p7), %s5150_s27, 0 }
  0x79   : > { %s5574_s24 = scalar_lea.vmem (!%p656_p7), [#allocation3], %s4446_s18 }
  0x7d   : > { %s6228_s17 = smov (!%p700_p8, %s4017_s17), 23  ;;  %s6230_s19 = smov (!%p705_p9, %s4018_s19), 383 }
  0x7e   : > { %s702_s22 = scalar_lea.vmem %s6218_s2, %s6228_s17  ;;  %s4447_s23 = smul.u32 24, %s6230_s19  ;;  %v5093_v0 = vmov (!%p4020_p10), 0.0  }
  0x7f   : > { %714 = sbr.rel (%p4020_p10) target bundleno = 134 (0x86), region = 75  ;;  %715 = vst [vmem:[#allocation2] sm:$0xff] (!%p4020_p10), %v5093_v0  ;;  %716 = vst [vmem:[#allocation2 + $0x8] sm:$0xff] (!%p4020_p10), %v5093_v0 }
  0x80   : > { %s5572_s30 = scalar_lea.vmem %s6219_s3, %s4447_s23  ;;  %717 = vst [vmem:[#allocation2 + $0x10] sm:$0xff] (!%p4020_p10), %v5093_v0  ;;  %718 = vst [vmem:[#allocation2 + $0x18] sm:$0xff] (!%p4020_p10), %v5093_v0 }
  0x81   : > { %719 = vst [vmem:[#allocation2 + $0x20] sm:$0xff] (!%p4020_p10), %v5093_v0  ;;  %720 = vst [vmem:[#allocation2 + $0x28] sm:$0xff] (!%p4020_p10), %v5093_v0 }
  0x82   : > { %721 = vst [vmem:[#allocation2 + $0x30] sm:$0xff] (!%p4020_p10), %v5093_v0  ;;  %722 = vst [vmem:[#allocation2 + $0x38] sm:$0xff] (!%p4020_p10), %v5093_v0 }
  0x83   : > { %723 = vst [vmem:[#allocation2 + $0x40] sm:$0xff] (!%p4020_p10), %v5093_v0  ;;  %724 = vst [vmem:[#allocation2 + $0x48] sm:$0xff] (!%p4020_p10), %v5093_v0 }
  0x84   : > { %725 = vst [vmem:[#allocation2 + $0x50] sm:$0xff] (!%p4020_p10), %v5093_v0  ;;  %726 = vst [vmem:[#allocation2 + $0x58] sm:$0xff] (!%p4020_p10), %v5093_v0 }
  0x86 PF: > { %v4473_v1 = vld [vmem:[%s5574_s24 + $0x4] ss:$16 sps:$4 sm:$0xff]   ;;  %v4477_v3 = vld [vmem:[%s5574_s24] ss:$16 sps:$4 sm:$0xff]   ;;  %v728_v47 = vld [vmem:[%s6216_s0 + $0x8] sm:$0xff]  ;;  %p4405_p11 = scmp.ne.s32.totalorder %s5150_s27, 5 }
  0x87   : > { %v4475_v2 = vld [vmem:[%s5574_s24 + $0x204] ss:$16 sps:$4 sm:$0xff]   ;;  %1919 = vmatprep.subr.bf16.mxu1 %v4473_v1  ;;  %v4478_v4 = vld [vmem:[%s5574_s24 + $0x200] ss:$16 sps:$4 sm:$0xff]   ;;  %v734_v50 = vld [vmem:[%s6216_s0 + $0x38] sm:$0xff] }
  0x88   : > { %1962 = vmatprep.subr.bf16.mxu0 %v4475_v2  ;;  %v4479_v5 = vld [vmem:[%s5574_s24 + $0x24] ss:$16 sps:$4 sm:$0xff]   ;;  %1920 = vmatpush1.bf16.msra.mxu1 %v4477_v3  ;;  %v4483_v7 = vld [vmem:[%s5574_s24 + $0x20] ss:$16 sps:$4 sm:$0xff]   ;;  %v5631_v51 = vpack.c.bf16 %v734_v50, %v728_v47  ;;  %v730_v52 = vld [vmem:[%s6216_s0 + $0x18] sm:$0xff] }
  0x89   : > { %1963 = vmatpush1.bf16.msra.mxu0 %v4478_v4  ;;  %v4481_v6 = vld [vmem:[%s5574_s24 + $0x224] ss:$16 sps:$4 sm:$0xff]   ;;  %1921 = vmatprep.subr.bf16.mxu1 %v4479_v5  ;;  %v4484_v8 = vld [vmem:[%s5574_s24 + $0x220] ss:$16 sps:$4 sm:$0xff]   ;;  %v736_v53 = vld [vmem:[%s6216_s0 + $0x48] sm:$0xff] }
  0x8a   : > { %1964 = vmatprep.subr.bf16.mxu0 %v4481_v6  ;;  %v4485_v9 = vld [vmem:[%s5574_s24 + $0x44] ss:$16 sps:$4 sm:$0xff]   ;;  %v4489_v11 = vld [vmem:[%s5574_s24 + $0x40] ss:$16 sps:$4 sm:$0xff]   ;;  %v5641_v56 = vpack.c.bf16 %v736_v53, %v730_v52  ;;  %1951 = vmatprep.mubr.bf16.mxu1 %v5631_v51  ;;  %v4614_v47 = vld [vmem:[%s5574_s24 + $0xe8] ss:$16 sps:$4 sm:$0xff]  }
  0x8b   : > { %v4487_v10 = vld [vmem:[%s5574_s24 + $0x244] ss:$16 sps:$4 sm:$0xff]   ;;  %v4490_v12 = vld [vmem:[%s5574_s24 + $0x240] ss:$16 sps:$4 sm:$0xff]   ;;  %v4628_v53 = vld [vmem:[%s5574_s24 + $0x12c] ss:$16 sps:$4 sm:$0xff]  }
  0x8c   : > { %1922 = vmatpush1.bf16.msra.mxu1 %v4483_v7  ;;  %v4491_v13 = vld [vmem:[%s5574_s24 + $0x64] ss:$16 sps:$4 sm:$0xff]   ;;  %v4495_v15 = vld [vmem:[%s5574_s24 + $0x60] ss:$16 sps:$4 sm:$0xff]   ;;  %1994 = vmatprep.mubr.bf16.mxu0 %v5641_v56 }
  0x8d   : > { %1965 = vmatpush1.bf16.msra.mxu0 %v4484_v8  ;;  %1923 = vmatprep.subr.bf16.mxu1 %v4485_v9  ;;  %v4493_v14 = vld [vmem:[%s5574_s24 + $0x264] ss:$16 sps:$4 sm:$0xff]   ;;  %v4496_v16 = vld [vmem:[%s5574_s24 + $0x260] ss:$16 sps:$4 sm:$0xff]  }
  0x8e   : > { %1966 = vmatprep.subr.bf16.mxu0 %v4487_v10  ;;  %v4497_v17 = vld [vmem:[%s5574_s24 + $0x84] ss:$16 sps:$4 sm:$0xff]   ;;  %v4501_v19 = vld [vmem:[%s5574_s24 + $0x80] ss:$16 sps:$4 sm:$0xff]  }
  0x8f   : > { %v4499_v18 = vld [vmem:[%s5574_s24 + $0x284] ss:$16 sps:$4 sm:$0xff]   ;;  %v4502_v20 = vld [vmem:[%s5574_s24 + $0x280] ss:$16 sps:$4 sm:$0xff]  }
  0x90   : > { %1924 = vmatpush1.bf16.msra.mxu1 %v4489_v11  ;;  %v4503_v21 = vld [vmem:[%s5574_s24 + $0xa4] ss:$16 sps:$4 sm:$0xff]   ;;  %v4507_v23 = vld [vmem:[%s5574_s24 + $0xa0] ss:$16 sps:$4 sm:$0xff]  }
  0x91   : > { %1967 = vmatpush1.bf16.msra.mxu0 %v4490_v12  ;;  %1925 = vmatprep.subr.bf16.mxu1 %v4491_v13  ;;  %v4505_v22 = vld [vmem:[%s5574_s24 + $0x2a4] ss:$16 sps:$4 sm:$0xff]   ;;  %v4508_v24 = vld [vmem:[%s5574_s24 + $0x2a0] ss:$16 sps:$4 sm:$0xff]   ;;  %v4574_v12 = vld [vmem:[%s5574_s24 + $0xc] ss:$16 sps:$4 sm:$0xff]  }
  0x92   : > { %1968 = vmatprep.subr.bf16.mxu0 %v4493_v14  ;;  %v4509_v25 = vld [vmem:[%s5574_s24 + $0xc4] ss:$16 sps:$4 sm:$0xff]   ;;  %v4513_v27 = vld [vmem:[%s5574_s24 + $0xc0] ss:$16 sps:$4 sm:$0xff]  }
  0x93   : > { %v4511_v26 = vld [vmem:[%s5574_s24 + $0x2c4] ss:$16 sps:$4 sm:$0xff]   ;;  %v4514_v28 = vld [vmem:[%s5574_s24 + $0x2c0] ss:$16 sps:$4 sm:$0xff]  }
  0x94   : > { %1926 = vmatpush1.bf16.msra.mxu1 %v4495_v15  ;;  %v4515_v29 = vld [vmem:[%s5574_s24 + $0xe4] ss:$16 sps:$4 sm:$0xff]   ;;  %v4519_v31 = vld [vmem:[%s5574_s24 + $0xe0] ss:$16 sps:$4 sm:$0xff]   ;;  %v4572_v15 = vld [vmem:[%s5574_s24 + $0x8] ss:$16 sps:$4 sm:$0xff]  }
  0x95   : > { %1969 = vmatpush1.bf16.msra.mxu0 %v4496_v16  ;;  %1927 = vmatprep.subr.bf16.mxu1 %v4497_v17  ;;  %v4517_v30 = vld [vmem:[%s5574_s24 + $0x2e4] ss:$16 sps:$4 sm:$0xff]   ;;  %v4520_v32 = vld [vmem:[%s5574_s24 + $0x2e0] ss:$16 sps:$4 sm:$0xff]  }
  0x96   : > { %1970 = vmatprep.subr.bf16.mxu0 %v4499_v18  ;;  %v4521_v33 = vld [vmem:[%s5574_s24 + $0x104] ss:$16 sps:$4 sm:$0xff]   ;;  %v4525_v35 = vld [vmem:[%s5574_s24 + $0x100] ss:$16 sps:$4 sm:$0xff]   ;;  %v4580_v18 = vld [vmem:[%s5574_s24 + $0x2c] ss:$16 sps:$4 sm:$0xff]  }
  0x97   : > { %v4523_v34 = vld [vmem:[%s5574_s24 + $0x304] ss:$16 sps:$4 sm:$0xff]   ;;  %v4526_v36 = vld [vmem:[%s5574_s24 + $0x300] ss:$16 sps:$4 sm:$0xff]  }
  0x98   : > { %1928 = vmatpush1.bf16.msra.mxu1 %v4501_v19  ;;  %v4527_v37 = vld [vmem:[%s5574_s24 + $0x124] ss:$16 sps:$4 sm:$0xff]   ;;  %v4531_v39 = vld [vmem:[%s5574_s24 + $0x120] ss:$16 sps:$4 sm:$0xff]  }
  0x99   : > { %1971 = vmatpush1.bf16.msra.mxu0 %v4502_v20  ;;  %1929 = vmatprep.subr.bf16.mxu1 %v4503_v21  ;;  %v4529_v38 = vld [vmem:[%s5574_s24 + $0x324] ss:$16 sps:$4 sm:$0xff]   ;;  %v4532_v40 = vld [vmem:[%s5574_s24 + $0x320] ss:$16 sps:$4 sm:$0xff]   ;;  %v4578_v20 = vld [vmem:[%s5574_s24 + $0x28] ss:$16 sps:$4 sm:$0xff]  }
  0x9a   : > { %1972 = vmatprep.subr.bf16.mxu0 %v4505_v22  ;;  %v4533_v41 = vld [vmem:[%s5574_s24 + $0x144] ss:$16 sps:$4 sm:$0xff]   ;;  %v4537_v43 = vld [vmem:[%s5574_s24 + $0x140] ss:$16 sps:$4 sm:$0xff]   ;;  %v4586_v22 = vld [vmem:[%s5574_s24 + $0x4c] ss:$16 sps:$4 sm:$0xff]  }
  0x9b   : > { %v4535_v42 = vld [vmem:[%s5574_s24 + $0x344] ss:$16 sps:$4 sm:$0xff]   ;;  %v4538_v44 = vld [vmem:[%s5574_s24 + $0x340] ss:$16 sps:$4 sm:$0xff]  }
  0x9c   : > { %1930 = vmatpush1.bf16.msra.mxu1 %v4507_v23  ;;  %v4539_v45 = vld [vmem:[%s5574_s24 + $0x164] ss:$16 sps:$4 sm:$0xff]   ;;  %v4543_v48 = vld [vmem:[%s5574_s24 + $0x160] ss:$16 sps:$4 sm:$0xff]  }
  0x9d   : > { %1973 = vmatpush1.bf16.msra.mxu0 %v4508_v24  ;;  %1931 = vmatprep.subr.bf16.mxu1 %v4509_v25  ;;  %v4541_v46 = vld [vmem:[%s5574_s24 + $0x364] ss:$16 sps:$4 sm:$0xff]   ;;  %v4544_v49 = vld [vmem:[%s5574_s24 + $0x360] ss:$16 sps:$4 sm:$0xff]   ;;  %v4584_v24 = vld [vmem:[%s5574_s24 + $0x48] ss:$16 sps:$4 sm:$0xff]  }
  0x9e   : > { %1974 = vmatprep.subr.bf16.mxu0 %v4511_v26  ;;  %v4545_v54 = vld [vmem:[%s5574_s24 + $0x184] ss:$16 sps:$4 sm:$0xff]   ;;  %v4549_v57 = vld [vmem:[%s5574_s24 + $0x180] ss:$16 sps:$4 sm:$0xff]   ;;  %v4592_v26 = vld [vmem:[%s5574_s24 + $0x6c] ss:$16 sps:$4 sm:$0xff]  }
  0x9f   : > { %v4547_v55 = vld [vmem:[%s5574_s24 + $0x384] ss:$16 sps:$4 sm:$0xff]   ;;  %v4550_v58 = vld [vmem:[%s5574_s24 + $0x380] ss:$16 sps:$4 sm:$0xff]  }
  0xa0   : > { %1932 = vmatpush1.bf16.msra.mxu1 %v4513_v27  ;;  %v4551_v59 = vld [vmem:[%s5574_s24 + $0x1a4] ss:$16 sps:$4 sm:$0xff]   ;;  %v4555_v61 = vld [vmem:[%s5574_s24 + $0x1a0] ss:$16 sps:$4 sm:$0xff]  }
  0xa1   : > { %1975 = vmatpush1.bf16.msra.mxu0 %v4514_v28  ;;  %1933 = vmatprep.subr.bf16.mxu1 %v4515_v29  ;;  %v4553_v60 = vld [vmem:[%s5574_s24 + $0x3a4] ss:$16 sps:$4 sm:$0xff]   ;;  %v4556_v62 = vld [vmem:[%s5574_s24 + $0x3a0] ss:$16 sps:$4 sm:$0xff]   ;;  %v4590_v28 = vld [vmem:[%s5574_s24 + $0x68] ss:$16 sps:$4 sm:$0xff]  }
  0xa2   : > { %1976 = vmatprep.subr.bf16.mxu0 %v4517_v30  ;;  %v4557_v63 = vld [vmem:[%s5574_s24 + $0x1c4] ss:$16 sps:$4 sm:$0xff]   ;;  %v4561_v1 = vld [vmem:[%s5574_s24 + $0x1c0] ss:$16 sps:$4 sm:$0xff]   ;;  %v4598_v30 = vld [vmem:[%s5574_s24 + $0x8c] ss:$16 sps:$4 sm:$0xff]  }
  0xa3   : > { %v4559_v0 = vld [vmem:[%s5574_s24 + $0x3c4] ss:$16 sps:$4 sm:$0xff]   ;;  %v4562_v2 = vld [vmem:[%s5574_s24 + $0x3c0] ss:$16 sps:$4 sm:$0xff]  }
  0xa4   : > { %1934 = vmatpush1.bf16.msra.mxu1 %v4519_v31  ;;  %v4563_v3 = vld [vmem:[%s5574_s24 + $0x1e4] ss:$16 sps:$4 sm:$0xff]   ;;  %v4567_v5 = vld [vmem:[%s5574_s24 + $0x1e0] ss:$16 sps:$4 sm:$0xff]  }
  0xa5   : > { %1977 = vmatpush1.bf16.msra.mxu0 %v4520_v32  ;;  %1935 = vmatprep.subr.bf16.mxu1 %v4521_v33  ;;  %v4565_v4 = vld [vmem:[%s5574_s24 + $0x3e4] ss:$16 sps:$4 sm:$0xff]   ;;  %v4568_v6 = vld [vmem:[%s5574_s24 + $0x3e0] ss:$16 sps:$4 sm:$0xff]   ;;  %v4596_v32 = vld [vmem:[%s5574_s24 + $0x88] ss:$16 sps:$4 sm:$0xff]  }
  0xa6   : > { %1978 = vmatprep.subr.bf16.mxu0 %v4523_v34  ;;  %v727_v7 = vld [vmem:[%s6216_s0] sm:$0xff]  ;;  %v733_v8 = vld [vmem:[%s6216_s0 + $0x30] sm:$0xff]  ;;  %v4604_v34 = vld [vmem:[%s5574_s24 + $0xac] ss:$16 sps:$4 sm:$0xff]  }
  0xa7   : > { %v4571_v9 = vld [vmem:[%s5574_s24 + $0x404] ss:$16 sps:$4 sm:$0xff]   ;;  %v5673_v13 = vpack.c.bf16 %v733_v8, %v727_v7  ;;  %v4569_v14 = vld [vmem:[%s5574_s24 + $0x400] ss:$16 sps:$4 sm:$0xff]   ;;  %v4650_v8 = vld [vmem:[%s5574_s24 + $0x1a8] ss:$16 sps:$4 sm:$0xff]  }
  0xa8   : > { %1936 = vmatpush1.bf16.msra.mxu1 %v4525_v35  ;;  %v729_v10 = vld [vmem:[%s6216_s0 + $0x10] sm:$0xff]  ;;  %v735_v11 = vld [vmem:[%s6216_s0 + $0x40] sm:$0xff] }
  0xa9   : > { %1979 = vmatpush1.bf16.msra.mxu0 %v4526_v36  ;;  %1937 = vmatprep.subr.bf16.mxu1 %v4527_v37  ;;  %v5677_v16 = vpack.c.bf16 %v735_v11, %v729_v10  ;;  %v4577_v17 = vld [vmem:[%s5574_s24 + $0x424] ss:$16 sps:$4 sm:$0xff]   ;;  %v4575_v19 = vld [vmem:[%s5574_s24 + $0x420] ss:$16 sps:$4 sm:$0xff]   ;;  %v4602_v36 = vld [vmem:[%s5574_s24 + $0xa8] ss:$16 sps:$4 sm:$0xff]  }
  0xaa   : > { %1980 = vmatprep.subr.bf16.mxu0 %v4529_v38  ;;  %v4583_v21 = vld [vmem:[%s5574_s24 + $0x444] ss:$16 sps:$4 sm:$0xff]   ;;  %v4581_v23 = vld [vmem:[%s5574_s24 + $0x440] ss:$16 sps:$4 sm:$0xff]   ;;  %v4610_v38 = vld [vmem:[%s5574_s24 + $0xcc] ss:$16 sps:$4 sm:$0xff]  }
  0xab   : > { %v4589_v25 = vld [vmem:[%s5574_s24 + $0x464] ss:$16 sps:$4 sm:$0xff]   ;;  %v4587_v27 = vld [vmem:[%s5574_s24 + $0x460] ss:$16 sps:$4 sm:$0xff]   ;;  %v4658_v10 = vld [vmem:[%s5574_s24 + $0x1cc] ss:$16 sps:$4 sm:$0xff]  }
  0xac   : > { %1938 = vmatpush1.bf16.msra.mxu1 %v4531_v39  ;;  %v4595_v29 = vld [vmem:[%s5574_s24 + $0x484] ss:$16 sps:$4 sm:$0xff]   ;;  %v4593_v31 = vld [vmem:[%s5574_s24 + $0x480] ss:$16 sps:$4 sm:$0xff]  }
  0xad   : > { %1981 = vmatpush1.bf16.msra.mxu0 %v4532_v40  ;;  %1939 = vmatprep.subr.bf16.mxu1 %v4533_v41  ;;  %v4601_v33 = vld [vmem:[%s5574_s24 + $0x4a4] ss:$16 sps:$4 sm:$0xff]   ;;  %v4599_v35 = vld [vmem:[%s5574_s24 + $0x4a0] ss:$16 sps:$4 sm:$0xff]   ;;  %v4608_v40 = vld [vmem:[%s5574_s24 + $0xc8] ss:$16 sps:$4 sm:$0xff]  }
  0xae   : > { %1982 = vmatprep.subr.bf16.mxu0 %v4535_v42  ;;  %v4607_v37 = vld [vmem:[%s5574_s24 + $0x4c4] ss:$16 sps:$4 sm:$0xff]   ;;  %v4605_v39 = vld [vmem:[%s5574_s24 + $0x4c0] ss:$16 sps:$4 sm:$0xff]   ;;  %v732_v42 = vld [vmem:[%s6216_s0 + $0x28] sm:$0xff] }
  0xaf   : > { %v4613_v41 = vld [vmem:[%s5574_s24 + $0x4e4] ss:$16 sps:$4 sm:$0xff]   ;;  %v4617_v50 = vld [vmem:[%s5574_s24 + $0x500] ss:$16 sps:$4 sm:$0xff]  }
  0xb0   : > { %1940 = vmatpush1.bf16.msra.mxu1 %v4537_v43  ;;  %v738_v43 = vld [vmem:[%s6216_s0 + $0x58] sm:$0xff]  ;;  %v4625_v52 = vld [vmem:[%s5574_s24 + $0x524] ss:$16 sps:$4 sm:$0xff]   ;;  %v4647_v7 = vld [vmem:[%s5574_s24 + $0x5a0] ss:$16 sps:$4 sm:$0xff]  }
  0xb1   : > { %1983 = vmatpush1.bf16.msra.mxu0 %v4538_v44  ;;  %1941 = vmatprep.subr.bf16.mxu1 %v4539_v45  ;;  %v4616_v44 = vld [vmem:[%s5574_s24 + $0xec] ss:$16 sps:$4 sm:$0xff]   ;;  %v5714_v45 = vpack.c.bf16 %v738_v43, %v732_v42  ;;  %v4653_v11 = vld [vmem:[%s5574_s24 + $0x5c0] ss:$16 sps:$4 sm:$0xff]   ;;  %v4689_v42 = vld [vmem:[%s5574_s24 + $0x308] ss:$16 sps:$4 sm:$0xff]  }
  0xb2   : > { %1984 = vmatprep.subr.bf16.mxu0 %v4541_v46  ;;  %v4611_v46 = vld [vmem:[%s5574_s24 + $0x4e0] ss:$16 sps:$4 sm:$0xff]   ;;  %v4694_v43 = vld [vmem:[%s5574_s24 + $0x32c] ss:$16 sps:$4 sm:$0xff]  }
  0xb4   : > { %1942 = vmatpush1.bf16.msra.mxu1 %v4543_v48  ;;  %v4619_v48 = vld [vmem:[%s5574_s24 + $0x504] ss:$16 sps:$4 sm:$0xff]  }
  0xb5   : > { %1985 = vmatpush1.bf16.msra.mxu0 %v4544_v49  ;;  %1943 = vmatprep.subr.bf16.mxu1 %v4545_v54  ;;  %v4622_v49 = vld [vmem:[%s5574_s24 + $0x10c] ss:$16 sps:$4 sm:$0xff]   ;;  %v4623_v54 = vld [vmem:[%s5574_s24 + $0x520] ss:$16 sps:$4 sm:$0xff]  }
  0xb6   : > { %1986 = vmatprep.subr.bf16.mxu0 %v4547_v55  ;;  %v4626_v55 = vld [vmem:[%s5574_s24 + $0x128] ss:$16 sps:$4 sm:$0xff]  }
  0xb8   : > { %1944 = vmatpush1.bf16.msra.mxu1 %v4549_v57  ;;  %v4631_v57 = vld [vmem:[%s5574_s24 + $0x544] ss:$16 sps:$4 sm:$0xff]  }
  0xb9   : > { %1987 = vmatpush1.bf16.msra.mxu0 %v4550_v58  ;;  %1945 = vmatprep.subr.bf16.mxu1 %v4551_v59  ;;  %v4634_v58 = vld [vmem:[%s5574_s24 + $0x14c] ss:$16 sps:$4 sm:$0xff]   ;;  %v4629_v59 = vld [vmem:[%s5574_s24 + $0x540] ss:$16 sps:$4 sm:$0xff]  }
  0xba   : > { %1988 = vmatprep.subr.bf16.mxu0 %v4553_v60  ;;  %v4632_v60 = vld [vmem:[%s5574_s24 + $0x148] ss:$16 sps:$4 sm:$0xff]  }
  0xbc   : > { %1946 = vmatpush1.bf16.msra.mxu1 %v4555_v61  ;;  %v4637_v61 = vld [vmem:[%s5574_s24 + $0x564] ss:$16 sps:$4 sm:$0xff]  }
  0xbd   : > { %1989 = vmatpush1.bf16.msra.mxu0 %v4556_v62  ;;  %1947 = vmatprep.subr.bf16.mxu1 %v4557_v63  ;;  %v4640_v62 = vld [vmem:[%s5574_s24 + $0x16c] ss:$16 sps:$4 sm:$0xff]   ;;  %v4635_v63 = vld [vmem:[%s5574_s24 + $0x560] ss:$16 sps:$4 sm:$0xff]  }
  0xbe   : > { %1990 = vmatprep.subr.bf16.mxu0 %v4559_v0  ;;  %v4638_v0 = vld [vmem:[%s5574_s24 + $0x168] ss:$16 sps:$4 sm:$0xff]  }
  0xc0   : > { %1948 = vmatpush1.bf16.msra.mxu1 %v4561_v1  ;;  %v4643_v1 = vld [vmem:[%s5574_s24 + $0x584] ss:$16 sps:$4 sm:$0xff]  }
  0xc1   : > { %1991 = vmatpush1.bf16.msra.mxu0 %v4562_v2  ;;  %1949 = vmatprep.subr.bf16.mxu1 %v4563_v3  ;;  %v4646_v2 = vld [vmem:[%s5574_s24 + $0x18c] ss:$16 sps:$4 sm:$0xff]   ;;  %v4641_v3 = vld [vmem:[%s5574_s24 + $0x580] ss:$16 sps:$4 sm:$0xff]  }
  0xc2   : > { %1992 = vmatprep.subr.bf16.mxu0 %v4565_v4  ;;  %v4644_v4 = vld [vmem:[%s5574_s24 + $0x188] ss:$16 sps:$4 sm:$0xff]  }
  0xc4   : > { %1950 = vmatpush1.bf16.msra.mxu1 %v4567_v5  ;;  %v4649_v5 = vld [vmem:[%s5574_s24 + $0x5a4] ss:$16 sps:$4 sm:$0xff]  }
  0xc5   : > { %1993 = vmatpush1.bf16.msra.mxu0 %v4568_v6  ;;  %2048 = vmatprep.subr.bf16.mxu1 %v4574_v12  ;;  %v4652_v6 = vld [vmem:[%s5574_s24 + $0x1ac] ss:$16 sps:$4 sm:$0xff]   ;;  %v4656_v12 = vld [vmem:[%s5574_s24 + $0x1c8] ss:$16 sps:$4 sm:$0xff]  }
  0xc6   : > { %2005 = vmatprep.subr.bf16.mxu0 %v4571_v9  ;;  %v4655_v9 = vld [vmem:[%s5574_s24 + $0x5c4] ss:$16 sps:$4 sm:$0xff]  }
  0xc7   : > { %1952 = vmatmul.mubr.bf16.vlgmr.msra.gmra.mrb[0].mxu1 %v5673_v13 }
  0xc8   : > { %1995 = vmatmul.mubr.bf16.vlgmr.msra.gmra.mrb[0].mxu0 %v5677_v16  ;;  %2049 = vmatpush1.bf16.msra.mxu1 %v4572_v15  ;;  %v4664_v15 = vld [vmem:[%s5574_s24 + $0x1ec] ss:$16 sps:$4 sm:$0xff]  }
  0xc9   : > { %2006 = vmatpush1.bf16.msra.mxu0 %v4569_v14  ;;  %2050 = vmatprep.subr.bf16.mxu1 %v4580_v18  ;;  %v4661_v14 = vld [vmem:[%s5574_s24 + $0x5e4] ss:$16 sps:$4 sm:$0xff]   ;;  %v4662_v18 = vld [vmem:[%s5574_s24 + $0x1e8] ss:$16 sps:$4 sm:$0xff]  }
  0xca   : > { %2007 = vmatprep.subr.bf16.mxu0 %v4577_v17  ;;  %2080 = vmatprep.mubr.bf16.mxu1 %v5631_v51  ;;  %v4620_v51 = vld [vmem:[%s5574_s24 + $0x108] ss:$16 sps:$4 sm:$0xff]   ;;  %v4659_v17 = vld [vmem:[%s5574_s24 + $0x5e0] ss:$16 sps:$4 sm:$0xff]  }
  0xcb   : > { %2037 = vmatprep.mubr.bf16.mxu0 %v5714_v45 }
  0xcc   : > { %2051 = vmatpush1.bf16.msra.mxu1 %v4578_v20  ;;  %v737_v20 = vld [vmem:[%s6216_s0 + $0x50] sm:$0xff] }
  0xcd   : > { %2008 = vmatpush1.bf16.msra.mxu0 %v4575_v19  ;;  %2052 = vmatprep.subr.bf16.mxu1 %v4586_v22  ;;  %v731_v19 = vld [vmem:[%s6216_s0 + $0x20] sm:$0xff] }
  0xce   : > { %2009 = vmatprep.subr.bf16.mxu0 %v4583_v21  ;;  %v4667_v21 = vld [vmem:[%s5574_s24 + $0x20c] ss:$16 sps:$4 sm:$0xff]   ;;  %v5758_v22 = vpack.c.bf16 %v737_v20, %v731_v19  ;;  %v4809_v20 = vld [vmem:[%s5572_s30 + $0x180] ss:$24 sps:$4 sm:$0xff]  }
  0xcf   : > { %v4811_v19 = vld [vmem:[%s5572_s30 + $0x184] ss:$24 sps:$4 sm:$0xff]  }
  0xd0   : > { %2053 = vmatpush1.bf16.msra.mxu1 %v4584_v24  ;;  %v4670_v24 = vld [vmem:[%s5574_s24 + $0x22c] ss:$16 sps:$4 sm:$0xff]  }
  0xd1   : > { %2010 = vmatpush1.bf16.msra.mxu0 %v4581_v23  ;;  %2054 = vmatprep.subr.bf16.mxu1 %v4592_v26  ;;  %v4665_v23 = vld [vmem:[%s5574_s24 + $0x208] ss:$16 sps:$4 sm:$0xff]   ;;  %v4673_v26 = vld [vmem:[%s5574_s24 + $0x24c] ss:$16 sps:$4 sm:$0xff]  }
  0xd2   : > { %2011 = vmatprep.subr.bf16.mxu0 %v4589_v25  ;;  %v4668_v25 = vld [vmem:[%s5574_s24 + $0x228] ss:$16 sps:$4 sm:$0xff]  }
  0xd4   : > { %2055 = vmatpush1.bf16.msra.mxu1 %v4590_v28  ;;  %v4676_v28 = vld [vmem:[%s5574_s24 + $0x26c] ss:$16 sps:$4 sm:$0xff]  }
  0xd5   : > { %2012 = vmatpush1.bf16.msra.mxu0 %v4587_v27  ;;  %2056 = vmatprep.subr.bf16.mxu1 %v4598_v30  ;;  %v4671_v27 = vld [vmem:[%s5574_s24 + $0x248] ss:$16 sps:$4 sm:$0xff]   ;;  %v4679_v30 = vld [vmem:[%s5574_s24 + $0x28c] ss:$16 sps:$4 sm:$0xff]  }
  0xd6   : > { %2013 = vmatprep.subr.bf16.mxu0 %v4595_v29  ;;  %v4674_v29 = vld [vmem:[%s5574_s24 + $0x268] ss:$16 sps:$4 sm:$0xff]  }
  0xd8   : > { %2057 = vmatpush1.bf16.msra.mxu1 %v4596_v32  ;;  %v4685_v32 = vld [vmem:[%s5574_s24 + $0x2cc] ss:$16 sps:$4 sm:$0xff]  }
  0xd9   : > { %2014 = vmatpush1.bf16.msra.mxu0 %v4593_v31  ;;  %2058 = vmatprep.subr.bf16.mxu1 %v4604_v34  ;;  %v4682_v31 = vld [vmem:[%s5574_s24 + $0x2ac] ss:$16 sps:$4 sm:$0xff]  }
  0xda   : > { %2015 = vmatprep.subr.bf16.mxu0 %v4601_v33  ;;  %v4683_v33 = vld [vmem:[%s5574_s24 + $0x2c8] ss:$16 sps:$4 sm:$0xff]   ;;  %v4688_v34 = vld [vmem:[%s5574_s24 + $0x2ec] ss:$16 sps:$4 sm:$0xff]  }
  0xdc   : > { %2059 = vmatpush1.bf16.msra.mxu1 %v4602_v36  ;;  %v4763_v36 = vld [vmem:[%s5572_s30 + $0x4] ss:$24 sps:$4 sm:$0xff]  }
  0xdd   : > { %2016 = vmatpush1.bf16.msra.mxu0 %v4599_v35  ;;  %2060 = vmatprep.subr.bf16.mxu1 %v4610_v38  ;;  %v4761_v35 = vld [vmem:[%s5572_s30] ss:$24 sps:$4 sm:$0xff]  }
  0xde   : > { %2017 = vmatprep.subr.bf16.mxu0 %v4607_v37  ;;  %v4769_v37 = vld [vmem:[%s5572_s30 + $0x34] ss:$24 sps:$4 sm:$0xff]   ;;  %v4686_v38 = vld [vmem:[%s5574_s24 + $0x2e8] ss:$16 sps:$4 sm:$0xff]  }
  0xe0   : > { %2061 = vmatpush1.bf16.msra.mxu1 %v4608_v40  ;;  %v4767_v40 = vld [vmem:[%s5572_s30 + $0x30] ss:$24 sps:$4 sm:$0xff]  }
  0xe1   : > { %2018 = vmatpush1.bf16.msra.mxu0 %v4605_v39  ;;  %2062 = vmatprep.subr.bf16.mxu1 %v4616_v44  ;;  %v4691_v39 = vld [vmem:[%s5574_s24 + $0x30c] ss:$16 sps:$4 sm:$0xff]   ;;  %v4773_v44 = vld [vmem:[%s5572_s30 + $0x60] ss:$24 sps:$4 sm:$0xff]  }
  0xe2   : > { %2019 = vmatprep.subr.bf16.mxu0 %v4613_v41  ;;  %v4775_v41 = vld [vmem:[%s5572_s30 + $0x64] ss:$24 sps:$4 sm:$0xff]  }
  0xe4   : > { %2063 = vmatpush1.bf16.msra.mxu1 %v4614_v47  ;;  %v4692_v47 = vld [vmem:[%s5574_s24 + $0x328] ss:$16 sps:$4 sm:$0xff]  }
  0xe5   : > { %2020 = vmatpush1.bf16.msra.mxu0 %v4611_v46  ;;  %2064 = vmatprep.subr.bf16.mxu1 %v4622_v49  ;;  %v4781_v46 = vld [vmem:[%s5572_s30 + $0x94] ss:$24 sps:$4 sm:$0xff]   ;;  %v4779_v49 = vld [vmem:[%s5572_s30 + $0x90] ss:$24 sps:$4 sm:$0xff]  }
  0xe6   : > { %2021 = vmatprep.subr.bf16.mxu0 %v4619_v48  ;;  %v4697_v48 = vld [vmem:[%s5574_s24 + $0x34c] ss:$16 sps:$4 sm:$0xff]  }
  0xe8   : > { %2065 = vmatpush1.bf16.msra.mxu1 %v4620_v51  ;;  %v4695_v51 = vld [vmem:[%s5574_s24 + $0x348] ss:$16 sps:$4 sm:$0xff]  }
  0xe9   : > { %2022 = vmatpush1.bf16.msra.mxu0 %v4617_v50  ;;  %2066 = vmatprep.subr.bf16.mxu1 %v4628_v53  ;;  %v4787_v50 = vld [vmem:[%s5572_s30 + $0xc4] ss:$24 sps:$4 sm:$0xff]   ;;  %v4785_v53 = vld [vmem:[%s5572_s30 + $0xc0] ss:$24 sps:$4 sm:$0xff]  }
  0xea   : > { %2023 = vmatprep.subr.bf16.mxu0 %v4625_v52  ;;  %v4700_v52 = vld [vmem:[%s5574_s24 + $0x36c] ss:$16 sps:$4 sm:$0xff]  }
  0xec   : > { %2067 = vmatpush1.bf16.msra.mxu1 %v4626_v55  ;;  %v4698_v55 = vld [vmem:[%s5574_s24 + $0x368] ss:$16 sps:$4 sm:$0xff]  }
  0xed   : > { %2024 = vmatpush1.bf16.msra.mxu0 %v4623_v54  ;;  %2068 = vmatprep.subr.bf16.mxu1 %v4634_v58  ;;  %v4793_v54 = vld [vmem:[%s5572_s30 + $0xf4] ss:$24 sps:$4 sm:$0xff]   ;;  %v4791_v58 = vld [vmem:[%s5572_s30 + $0xf0] ss:$24 sps:$4 sm:$0xff]  }
  0xee   : > { %2025 = vmatprep.subr.bf16.mxu0 %v4631_v57  ;;  %v4703_v57 = vld [vmem:[%s5574_s24 + $0x38c] ss:$16 sps:$4 sm:$0xff]  }
  0xf0   : > { %2069 = vmatpush1.bf16.msra.mxu1 %v4632_v60  ;;  %v4701_v60 = vld [vmem:[%s5574_s24 + $0x388] ss:$16 sps:$4 sm:$0xff]  }
  0xf1   : > { %2026 = vmatpush1.bf16.msra.mxu0 %v4629_v59  ;;  %2070 = vmatprep.subr.bf16.mxu1 %v4640_v62  ;;  %v4799_v59 = vld [vmem:[%s5572_s30 + $0x124] ss:$24 sps:$4 sm:$0xff]   ;;  %v4797_v62 = vld [vmem:[%s5572_s30 + $0x120] ss:$24 sps:$4 sm:$0xff]  }
  0xf2   : > { %2027 = vmatprep.subr.bf16.mxu0 %v4637_v61  ;;  %v4706_v61 = vld [vmem:[%s5574_s24 + $0x3ac] ss:$16 sps:$4 sm:$0xff]  }
  0xf4   : > { %2071 = vmatpush1.bf16.msra.mxu1 %v4638_v0  ;;  %v4704_v0 = vld [vmem:[%s5574_s24 + $0x3a8] ss:$16 sps:$4 sm:$0xff]  }
  0xf5   : > { %2028 = vmatpush1.bf16.msra.mxu0 %v4635_v63  ;;  %2072 = vmatprep.subr.bf16.mxu1 %v4646_v2  ;;  %v4805_v63 = vld [vmem:[%s5572_s30 + $0x154] ss:$24 sps:$4 sm:$0xff]   ;;  %v4803_v2 = vld [vmem:[%s5572_s30 + $0x150] ss:$24 sps:$4 sm:$0xff]  }
  0xf6   : > { %2029 = vmatprep.subr.bf16.mxu0 %v4643_v1  ;;  %v4709_v1 = vld [vmem:[%s5574_s24 + $0x3cc] ss:$16 sps:$4 sm:$0xff]  }
  0xf8   : > { %2073 = vmatpush1.bf16.msra.mxu1 %v4644_v4  ;;  %v4712_v4 = vld [vmem:[%s5574_s24 + $0x3ec] ss:$16 sps:$4 sm:$0xff]  }
  0xf9   : > { %2030 = vmatpush1.bf16.msra.mxu0 %v4641_v3  ;;  %2074 = vmatprep.subr.bf16.mxu1 %v4652_v6  ;;  %v4707_v3 = vld [vmem:[%s5574_s24 + $0x3c8] ss:$16 sps:$4 sm:$0xff]   ;;  %v4715_v6 = vld [vmem:[%s5574_s24 + $0x40c] ss:$16 sps:$4 sm:$0xff]  }
  0xfa   : > { %2031 = vmatprep.subr.bf16.mxu0 %v4649_v5  ;;  %v4710_v5 = vld [vmem:[%s5574_s24 + $0x3e8] ss:$16 sps:$4 sm:$0xff]  }
  0xfc   : > { %2075 = vmatpush1.bf16.msra.mxu1 %v4650_v8  ;;  %v4718_v8 = vld [vmem:[%s5574_s24 + $0x42c] ss:$16 sps:$4 sm:$0xff]  }
  0xfd   : > { %2032 = vmatpush1.bf16.msra.mxu0 %v4647_v7  ;;  %2076 = vmatprep.subr.bf16.mxu1 %v4658_v10  ;;  %v4713_v7 = vld [vmem:[%s5574_s24 + $0x408] ss:$16 sps:$4 sm:$0xff]   ;;  %v4721_v10 = vld [vmem:[%s5574_s24 + $0x44c] ss:$16 sps:$4 sm:$0xff]  }
  0xfe   : > { %2033 = vmatprep.subr.bf16.mxu0 %v4655_v9  ;;  %v4716_v9 = vld [vmem:[%s5574_s24 + $0x428] ss:$16 sps:$4 sm:$0xff]  }
 0x100   : > { %2077 = vmatpush1.bf16.msra.mxu1 %v4656_v12  ;;  %v4724_v12 = vld [vmem:[%s5574_s24 + $0x46c] ss:$16 sps:$4 sm:$0xff]  }
 0x101   : > { %2034 = vmatpush1.bf16.msra.mxu0 %v4653_v11  ;;  %2078 = vmatprep.subr.bf16.mxu1 %v4664_v15  ;;  %v4719_v11 = vld [vmem:[%s5574_s24 + $0x448] ss:$16 sps:$4 sm:$0xff]   ;;  %v4727_v15 = vld [vmem:[%s5574_s24 + $0x48c] ss:$16 sps:$4 sm:$0xff]  }
 0x102   : > { %2035 = vmatprep.subr.bf16.mxu0 %v4661_v14  ;;  %v4722_v14 = vld [vmem:[%s5574_s24 + $0x468] ss:$16 sps:$4 sm:$0xff]  }
 0x104   : > { %2079 = vmatpush1.bf16.msra.mxu1 %v4662_v18  ;;  %v4733_v18 = vld [vmem:[%s5574_s24 + $0x4cc] ss:$16 sps:$4 sm:$0xff]  }
 0x105   : > { %2036 = vmatpush1.bf16.msra.mxu0 %v4659_v17  ;;  %2091 = vmatprep.subr.bf16.mxu1 %v4667_v21  ;;  %v4728_v17 = vld [vmem:[%s5574_s24 + $0x4a8] ss:$16 sps:$4 sm:$0xff]  }
 0x106   : > { %3417 = vmatprep.subr.bf16.mxu0 %v4763_v36  ;;  %v4731_v21 = vld [vmem:[%s5574_s24 + $0x4c8] ss:$16 sps:$4 sm:$0xff]   ;;  %v4841_v36 = vld [vmem:[%s5572_s30 + $0x274] ss:$24 sps:$4 sm:$0xff]  }
 0x107   : > { %2081 = vmatmul.mubr.bf16.vlgmr.msra.gmra.mrb[4].mxu1 %v5673_v13  ;;  %v4677_v13 = vld [vmem:[%s5574_s24 + $0x288] ss:$16 sps:$4 sm:$0xff]  }
 0x108   : > { %2038 = vmatmul.mubr.bf16.vlgmr.msra.gmra.mrb[0].mxu0 %v5758_v22  ;;  %2092 = vmatpush1.bf16.msra.mxu1 %v4665_v23  ;;  %v4736_v23 = vld [vmem:[%s5574_s24 + $0x4ec] ss:$16 sps:$4 sm:$0xff]  }
 0x109   : > { %2123 = vmatprep.mubr.bf16.mxu1 %v5641_v56  ;;  %2093 = vmatprep.subr.bf16.mxu1 %v4670_v24  ;;  %v4680_v56 = vld [vmem:[%s5574_s24 + $0x2a8] ss:$16 sps:$4 sm:$0xff]   ;;  %v4817_v24 = vld [vmem:[%s5572_s30 + $0x1b4] ss:$24 sps:$4 sm:$0xff]  }
 0x10a   : > { %3418 = vmatpush1.bf16.msra.mxu0 %v4761_v35  ;;  %v4835_v35 = vld [vmem:[%s5572_s30 + $0x244] ss:$24 sps:$4 sm:$0xff]  }
 0x10b   : > { %3419 = vmatprep.subr.bf16.mxu0 %v4769_v37  ;;  %v4743_v37 = vld [vmem:[%s5574_s24 + $0x548] ss:$16 sps:$4 sm:$0xff]  }
 0x10c   : > { %2094 = vmatpush1.bf16.msra.mxu1 %v4668_v25  ;;  %v4815_v25 = vld [vmem:[%s5572_s30 + $0x1b0] ss:$24 sps:$4 sm:$0xff]  }
 0x10d   : > { %2095 = vmatprep.subr.bf16.mxu1 %v4673_v26  ;;  %v4734_v26 = vld [vmem:[%s5574_s24 + $0x4e8] ss:$16 sps:$4 sm:$0xff]  }
 0x10e   : > { %3420 = vmatpush1.bf16.msra.mxu0 %v4767_v40  ;;  %v4847_v40 = vld [vmem:[%s5572_s30 + $0x2a4] ss:$24 sps:$4 sm:$0xff]  }
 0x10f   : > { %3421 = vmatprep.subr.bf16.mxu0 %v4775_v41  ;;  %v4746_v41 = vld [vmem:[%s5574_s24 + $0x568] ss:$16 sps:$4 sm:$0xff]  }
 0x110   : > { %2096 = vmatpush1.bf16.msra.mxu1 %v4671_v27  ;;  %v4739_v27 = vld [vmem:[%s5574_s24 + $0x50c] ss:$16 sps:$4 sm:$0xff]  }
 0x111   : > { %2097 = vmatprep.subr.bf16.mxu1 %v4676_v28  ;;  %v4823_v28 = vld [vmem:[%s5572_s30 + $0x1e4] ss:$24 sps:$4 sm:$0xff]  }
 0x112   : > { %3422 = vmatpush1.bf16.msra.mxu0 %v4773_v44  ;;  %v4853_v44 = vld [vmem:[%s5572_s30 + $0x2d4] ss:$24 sps:$4 sm:$0xff]  }
 0x113   : > { %3423 = vmatprep.subr.bf16.mxu0 %v4781_v46  ;;  %v4749_v46 = vld [vmem:[%s5574_s24 + $0x588] ss:$16 sps:$4 sm:$0xff]  }
 0x114   : > { %2098 = vmatpush1.bf16.msra.mxu1 %v4674_v29  ;;  %v4821_v29 = vld [vmem:[%s5572_s30 + $0x1e0] ss:$24 sps:$4 sm:$0xff]  }
 0x115   : > { %2099 = vmatprep.subr.bf16.mxu1 %v4679_v30  ;;  %v4737_v30 = vld [vmem:[%s5574_s24 + $0x508] ss:$16 sps:$4 sm:$0xff]  }
 0x116   : > { %3424 = vmatpush1.bf16.msra.mxu0 %v4779_v49  ;;  %v4752_v49 = vld [vmem:[%s5574_s24 + $0x5a8] ss:$16 sps:$4 sm:$0xff]  }
 0x117   : > { %3425 = vmatprep.subr.bf16.mxu0 %v4787_v50  ;;  %v4757_v50 = vld [vmem:[%s5574_s24 + $0x5cc] ss:$16 sps:$4 sm:$0xff]  }
 0x118   : > { %2100 = vmatpush1.bf16.msra.mxu1 %v4677_v13  ;;  %v4742_v13 = vld [vmem:[%s5574_s24 + $0x52c] ss:$16 sps:$4 sm:$0xff]  }
 0x119   : > { %2101 = vmatprep.subr.bf16.mxu1 %v4682_v31  ;;  %v4829_v31 = vld [vmem:[%s5572_s30 + $0x214] ss:$24 sps:$4 sm:$0xff]  }
 0x11a   : > { %3426 = vmatpush1.bf16.msra.mxu0 %v4785_v53  ;;  %v4760_v53 = vld [vmem:[%s5574_s24 + $0x5ec] ss:$16 sps:$4 sm:$0xff]  }
 0x11b   : > { %3427 = vmatprep.subr.bf16.mxu0 %v4793_v54  ;;  %v4758_v54 = vld [vmem:[%s5574_s24 + $0x5e8] ss:$16 sps:$4 sm:$0xff]  }
 0x11c   : > { %2102 = vmatpush1.bf16.msra.mxu1 %v4680_v56  ;;  %v4827_v56 = vld [vmem:[%s5572_s30 + $0x210] ss:$24 sps:$4 sm:$0xff]  }
 0x11d   : > { %2103 = vmatprep.subr.bf16.mxu1 %v4685_v32  ;;  %v4740_v32 = vld [vmem:[%s5574_s24 + $0x528] ss:$16 sps:$4 sm:$0xff]  }
 0x11e   : > { %3428 = vmatpush1.bf16.msra.mxu0 %v4791_v58  ;;  %v4772_v58 = vld [vmem:[%s5572_s30 + $0x3c] ss:$24 sps:$4 sm:$0xff]  }
 0x11f   : > { %3429 = vmatprep.subr.bf16.mxu0 %v4799_v59  ;;  %v4770_v59 = vld [vmem:[%s5572_s30 + $0x38] ss:$24 sps:$4 sm:$0xff]  }
 0x120   : > { %2104 = vmatpush1.bf16.msra.mxu1 %v4683_v33  ;;  %v4745_v33 = vld [vmem:[%s5574_s24 + $0x54c] ss:$16 sps:$4 sm:$0xff]  }
 0x121   : > { %2105 = vmatprep.subr.bf16.mxu1 %v4688_v34  ;;  %v4833_v34 = vld [vmem:[%s5572_s30 + $0x240] ss:$24 sps:$4 sm:$0xff]  }
 0x122   : > { %3430 = vmatpush1.bf16.msra.mxu0 %v4797_v62  ;;  %v4784_v62 = vld [vmem:[%s5572_s30 + $0x9c] ss:$24 sps:$4 sm:$0xff]  }
 0x123   : > { %3431 = vmatprep.subr.bf16.mxu0 %v4805_v63  ;;  %v4782_v63 = vld [vmem:[%s5572_s30 + $0x98] ss:$24 sps:$4 sm:$0xff]  }
 0x124   : > { %2106 = vmatpush1.bf16.msra.mxu1 %v4686_v38  ;;  %v4748_v38 = vld [vmem:[%s5574_s24 + $0x56c] ss:$16 sps:$4 sm:$0xff]  }
 0x125   : > { %2107 = vmatprep.subr.bf16.mxu1 %v4691_v39  ;;  %v4839_v39 = vld [vmem:[%s5572_s30 + $0x270] ss:$24 sps:$4 sm:$0xff]  }
 0x126   : > { %3432 = vmatpush1.bf16.msra.mxu0 %v4803_v2  ;;  %v4794_v2 = vld [vmem:[%s5572_s30 + $0xf8] ss:$24 sps:$4 sm:$0xff]  }
 0x127   : > { %3433 = vmatprep.subr.bf16.mxu0 %v4811_v19  ;;  %v4838_v19 = vld [vmem:[%s5572_s30 + $0x24c] ss:$24 sps:$4 sm:$0xff]  }
 0x128   : > { %2108 = vmatpush1.bf16.msra.mxu1 %v4689_v42  ;;  %v4751_v42 = vld [vmem:[%s5574_s24 + $0x58c] ss:$16 sps:$4 sm:$0xff]  }
 0x129   : > { %2109 = vmatprep.subr.bf16.mxu1 %v4694_v43  ;;  %v4845_v43 = vld [vmem:[%s5572_s30 + $0x2a0] ss:$24 sps:$4 sm:$0xff]  }
 0x12a   : > { %3434 = vmatpush1.bf16.msra.mxu0 %v4809_v20  ;;  %v4836_v20 = vld [vmem:[%s5572_s30 + $0x248] ss:$24 sps:$4 sm:$0xff]  }
 0x12b   : > { %3435 = vmatprep.subr.bf16.mxu0 %v4817_v24  ;;  %v4850_v24 = vld [vmem:[%s5572_s30 + $0x2ac] ss:$24 sps:$4 sm:$0xff]  }
 0x12c   : > { %2110 = vmatpush1.bf16.msra.mxu1 %v4692_v47  ;;  %v4754_v47 = vld [vmem:[%s5574_s24 + $0x5ac] ss:$16 sps:$4 sm:$0xff]  }
 0x12d   : > { %2111 = vmatprep.subr.bf16.mxu1 %v4697_v48  ;;  %v4851_v48 = vld [vmem:[%s5572_s30 + $0x2d0] ss:$24 sps:$4 sm:$0xff]  }
 0x12e   : > { %3436 = vmatpush1.bf16.msra.mxu0 %v4815_v25  ;;  %v4848_v25 = vld [vmem:[%s5572_s30 + $0x2a8] ss:$24 sps:$4 sm:$0xff]  }
 0x12f   : > { %3437 = vmatprep.subr.bf16.mxu0 %v4823_v28  ;;  %v4862_v28 = vld [vmem:[%s5572_s30 + $0x30c] ss:$24 sps:$4 sm:$0xff]  }
 0x130   : > { %2112 = vmatpush1.bf16.msra.mxu1 %v4695_v51  ;;  %v4755_v51 = vld [vmem:[%s5574_s24 + $0x5c8] ss:$16 sps:$4 sm:$0xff]  }
 0x131   : > { %2113 = vmatprep.subr.bf16.mxu1 %v4700_v52  ;;  %v4859_v52 = vld [vmem:[%s5572_s30 + $0x304] ss:$24 sps:$4 sm:$0xff]  }
 0x132   : > { %3438 = vmatpush1.bf16.msra.mxu0 %v4821_v29  ;;  %v939_v29 = vlaneseq }
 0x133   : > { %3439 = vmatprep.subr.bf16.mxu0 %v4829_v31  ;;  %v5905_v31 = vld [vmem:[%s702_s22] sm:$0xf] }
 0x134   : > { %2114 = vmatpush1.bf16.msra.mxu1 %v4698_v55  ;;  %v4766_v55 = vld [vmem:[%s5572_s30 + $0xc] ss:$24 sps:$4 sm:$0xff]  }
 0x135   : > { %2115 = vmatprep.subr.bf16.mxu1 %v4703_v57  ;;  %v4764_v57 = vld [vmem:[%s5572_s30 + $0x8] ss:$24 sps:$4 sm:$0xff]  }
 0x136   : > { %3440 = vmatpush1.bf16.msra.mxu0 %v4827_v56 }
 0x137   : > { %3441 = vmatprep.subr.bf16.mxu0 %v4835_v35 }
 0x138   : > { %2116 = vmatpush1.bf16.msra.mxu1 %v4701_v60  ;;  %v4778_v60 = vld [vmem:[%s5572_s30 + $0x6c] ss:$24 sps:$4 sm:$0xff]  }
 0x139   : > { %2117 = vmatprep.subr.bf16.mxu1 %v4706_v61  ;;  %v4776_v61 = vld [vmem:[%s5572_s30 + $0x68] ss:$24 sps:$4 sm:$0xff]  }
 0x13a   : > { %3442 = vmatpush1.bf16.msra.mxu0 %v4833_v34 }
 0x13b   : > { %3443 = vmatprep.subr.bf16.mxu0 %v4841_v36 }
 0x13c   : > { %2118 = vmatpush1.bf16.msra.mxu1 %v4704_v0  ;;  %v4790_v0 = vld [vmem:[%s5572_s30 + $0xcc] ss:$24 sps:$4 sm:$0xff]  }
 0x13d   : > { %2119 = vmatprep.subr.bf16.mxu1 %v4709_v1  ;;  %v4788_v1 = vld [vmem:[%s5572_s30 + $0xc8] ss:$24 sps:$4 sm:$0xff]  }
 0x13e   : > { %3444 = vmatpush1.bf16.msra.mxu0 %v4839_v39 }
 0x13f   : > { %3445 = vmatprep.subr.bf16.mxu0 %v4847_v40 }
 0x140   : > { %2120 = vmatpush1.bf16.msra.mxu1 %v4707_v3  ;;  %v4802_v3 = vld [vmem:[%s5572_s30 + $0x12c] ss:$24 sps:$4 sm:$0xff]  }
 0x141   : > { %2121 = vmatprep.subr.bf16.mxu1 %v4712_v4 }
 0x142   : > { %3446 = vmatpush1.bf16.msra.mxu0 %v4845_v43 }
 0x143   : > { %3447 = vmatprep.subr.bf16.mxu0 %v4853_v44 }
 0x144   : > { %2122 = vmatpush1.bf16.msra.mxu1 %v4710_v5 }
 0x145   : > { %2134 = vmatprep.subr.bf16.mxu1 %v4715_v6 }
 0x146   : > { %3448 = vmatpush1.bf16.msra.mxu0 %v4851_v48 }
 0x147   : > { %2124 = vmatmul.mubr.bf16.vlgmr.msra.gmra.mrb[4].mxu1 %v5677_v16  ;;  %v4725_v16 = vld [vmem:[%s5574_s24 + $0x488] ss:$16 sps:$4 sm:$0xff]   ;;  %3460 = vmatprep.subr.bf16.mxu0 %v4859_v52 }
 0x148   : > { %2135 = vmatpush1.bf16.msra.mxu1 %v4713_v7  ;;  %2166 = vmatprep.mubr.bf16.mxu1 %v5714_v45  ;;  %v4730_v45 = vld [vmem:[%s5574_s24 + $0x4ac] ss:$16 sps:$4 sm:$0xff]   ;;  %v4800_v7 = vld [vmem:[%s5572_s30 + $0x128] ss:$24 sps:$4 sm:$0xff]  }
 0x149   : > { %2136 = vmatprep.subr.bf16.mxu1 %v4718_v8 }
 0x14c   : > { %2137 = vmatpush1.bf16.msra.mxu1 %v4716_v9  ;;  %v4808_v9 = vld [vmem:[%s5572_s30 + $0x15c] ss:$24 sps:$4 sm:$0xff]  }
 0x14d   : > { %2138 = vmatprep.subr.bf16.mxu1 %v4721_v10  ;;  %v4806_v10 = vld [vmem:[%s5572_s30 + $0x158] ss:$24 sps:$4 sm:$0xff]  }
 0x150   : > { %2139 = vmatpush1.bf16.msra.mxu1 %v4719_v11  ;;  %v4814_v11 = vld [vmem:[%s5572_s30 + $0x18c] ss:$24 sps:$4 sm:$0xff]  }
 0x151   : > { %2140 = vmatprep.subr.bf16.mxu1 %v4724_v12  ;;  %v4812_v12 = vld [vmem:[%s5572_s30 + $0x188] ss:$24 sps:$4 sm:$0xff]  }
 0x154   : > { %2141 = vmatpush1.bf16.msra.mxu1 %v4722_v14  ;;  %v4820_v14 = vld [vmem:[%s5572_s30 + $0x1bc] ss:$24 sps:$4 sm:$0xff]  }
 0x155   : > { %2142 = vmatprep.subr.bf16.mxu1 %v4727_v15  ;;  %v4818_v15 = vld [vmem:[%s5572_s30 + $0x1b8] ss:$24 sps:$4 sm:$0xff]  }
 0x158   : > { %2143 = vmatpush1.bf16.msra.mxu1 %v4725_v16  ;;  %v4826_v16 = vld [vmem:[%s5572_s30 + $0x1ec] ss:$24 sps:$4 sm:$0xff]  }
 0x159   : > { %2144 = vmatprep.subr.bf16.mxu1 %v4730_v45  ;;  %v4824_v45 = vld [vmem:[%s5572_s30 + $0x1e8] ss:$24 sps:$4 sm:$0xff]  }
 0x15c   : > { %2145 = vmatpush1.bf16.msra.mxu1 %v4728_v17  ;;  %v4832_v17 = vld [vmem:[%s5572_s30 + $0x21c] ss:$24 sps:$4 sm:$0xff]  }
 0x15d   : > { %2146 = vmatprep.subr.bf16.mxu1 %v4733_v18  ;;  %v4830_v18 = vld [vmem:[%s5572_s30 + $0x218] ss:$24 sps:$4 sm:$0xff]  }
 0x160   : > { %2147 = vmatpush1.bf16.msra.mxu1 %v4731_v21  ;;  %v4844_v21 = vld [vmem:[%s5572_s30 + $0x27c] ss:$24 sps:$4 sm:$0xff]  }
 0x161   : > { %2148 = vmatprep.subr.bf16.mxu1 %v4736_v23  ;;  %v4842_v23 = vld [vmem:[%s5572_s30 + $0x278] ss:$24 sps:$4 sm:$0xff]  }
 0x164   : > { %2149 = vmatpush1.bf16.msra.mxu1 %v4734_v26  ;;  %v4856_v26 = vld [vmem:[%s5572_s30 + $0x2dc] ss:$24 sps:$4 sm:$0xff]  }
 0x165   : > { %2150 = vmatprep.subr.bf16.mxu1 %v4739_v27  ;;  %v4854_v27 = vld [vmem:[%s5572_s30 + $0x2d8] ss:$24 sps:$4 sm:$0xff]  }
 0x168   : > { %2151 = vmatpush1.bf16.msra.mxu1 %v4737_v30  ;;  %v5895_v30 = vshrl.u32 %v939_v29, 7  ;;  %v4874_v29 = vld [vmem:[%s5572_s30 + $0x36c] ss:$24 sps:$4 sm:$0xff]  }
 0x169   : > { %2152 = vmatprep.subr.bf16.mxu1 %v4742_v13 }
 0x16a   : > { %v5898_v13 = vsub.s32 0, %v5895_v30  ;;  %v5908_v56 = vsub.s32 1, %v5895_v30 }
 0x16c   : > { %2153 = vmatpush1.bf16.msra.mxu1 %v4740_v32  ;;  %v942_v32 = vrot.slane %v5905_v31, %v5898_v13 }
 0x16d   : > { %2154 = vmatprep.subr.bf16.mxu1 %v4745_v33  ;;  %v946_v33 = vrot.slane %v5905_v31, %v5908_v56 }
 0x170   : > { %2155 = vmatpush1.bf16.msra.mxu1 %v4743_v37 }
 0x171   : > { %2156 = vmatprep.subr.bf16.mxu1 %v4748_v38 }
 0x174   : > { %2157 = vmatpush1.bf16.msra.mxu1 %v4746_v41 }
 0x175   : > { %2158 = vmatprep.subr.bf16.mxu1 %v4751_v42 }
 0x178   : > { %2159 = vmatpush1.bf16.msra.mxu1 %v4749_v46 }
 0x179   : > { %2160 = vmatprep.subr.bf16.mxu1 %v4754_v47 }
 0x17c   : > { %2161 = vmatpush1.bf16.msra.mxu1 %v4752_v49 }
 0x17d   : > { %2162 = vmatprep.subr.bf16.mxu1 %v4757_v50 }
 0x180   : > { %2163 = vmatpush1.bf16.msra.mxu1 %v4755_v51 }
 0x181   : > { %2164 = vmatprep.subr.bf16.mxu1 %v4760_v53 }
 0x184   : > { %2165 = vmatpush1.bf16.msra.mxu1 %v4758_v54 }
 0x185   : > { %3503 = vmatprep.subr.bf16.mxu1 %v4766_v55 }
 0x187   : > { %2167 = vmatmul.mubr.bf16.vlgmr.msra.gmra.mrb[4].mxu1 %v5758_v22  ;;  %v4796_v22 = vld [vmem:[%s5572_s30 + $0xfc] ss:$24 sps:$4 sm:$0xff]  }
 0x188   : > { %3504 = vmatpush1.bf16.msra.mxu1 %v4764_v57 }
 0x189   : > { %3505 = vmatprep.subr.bf16.mxu1 %v4772_v58 }
 0x18c   : > { %3506 = vmatpush1.bf16.msra.mxu1 %v4770_v59 }
 0x18d   : > { %3507 = vmatprep.subr.bf16.mxu1 %v4778_v60 }
 0x190   : > { %3508 = vmatpush1.bf16.msra.mxu1 %v4776_v61 }
 0x191   : > { %3509 = vmatprep.subr.bf16.mxu1 %v4784_v62 }
 0x194   : > { %3510 = vmatpush1.bf16.msra.mxu1 %v4782_v63 }
 0x195   : > { %3511 = vmatprep.subr.bf16.mxu1 %v4790_v0 }
 0x198   : > { %3512 = vmatpush1.bf16.msra.mxu1 %v4788_v1 }
 0x199   : > { %3513 = vmatprep.subr.bf16.mxu1 %v4796_v22 }
 0x19a   : > { %v1953_v4 = vpop.f32.mrb[0].mxu1 }
 0x19b   : > { %v1955_v5 = vpop.f32.mrb[1].mxu1  ;;  %v1954_v34 = vadd.f32 %v1953_v4, %v942_v32 }
 0x19c   : > { %v1957_v6 = vpop.f32.mrb[2].mxu1  ;;  %3514 = vmatpush1.bf16.msra.mxu1 %v4794_v2  ;;  %v1956_v35 = vadd.f32 %v1955_v5, %v946_v33 }
 0x19d   : > { %v1959_v8 = vpop.f32.mrb[3].mxu1  ;;  %3515 = vmatprep.subr.bf16.mxu1 %v4802_v3  ;;  %v1958_v37 = vadd.f32 %v1957_v6, %v942_v32  ;;  %v4869_v32 = vld [vmem:[%s5572_s30 + $0x360] ss:$24 sps:$4 sm:$0xff]  }
 0x19e   : > { %v1960_v40 = vadd.f32 %v1959_v8, %v946_v33  ;;  %v4872_v33 = vld [vmem:[%s5572_s30 + $0x368] ss:$24 sps:$4 sm:$0xff]  }
 0x1a0   : > { %3516 = vmatpush1.bf16.msra.mxu1 %v4800_v7 }
 0x1a1   : > { %3517 = vmatprep.subr.bf16.mxu1 %v4808_v9 }
 0x1a4   : > { %3518 = vmatpush1.bf16.msra.mxu1 %v4806_v10 }
 0x1a5   : > { %3519 = vmatprep.subr.bf16.mxu1 %v4814_v11 }
 0x1a8   : > { %3520 = vmatpush1.bf16.msra.mxu1 %v4812_v12 }
 0x1a9   : > { %3521 = vmatprep.subr.bf16.mxu1 %v4820_v14 }
 0x1ac   : > { %3522 = vmatpush1.bf16.msra.mxu1 %v4818_v15 }
 0x1ad   : > { %3523 = vmatprep.subr.bf16.mxu1 %v4826_v16 }
 0x1b0   : > { %3524 = vmatpush1.bf16.msra.mxu1 %v4824_v45 }
 0x1b1   : > { %3525 = vmatprep.subr.bf16.mxu1 %v4832_v17 }
 0x1b4   : > { %3526 = vmatpush1.bf16.msra.mxu1 %v4830_v18 }
 0x1b5   : > { %3527 = vmatprep.subr.bf16.mxu1 %v4838_v19 }
 0x1b8   : > { %3528 = vmatpush1.bf16.msra.mxu1 %v4836_v20 }
 0x1b9   : > { %3529 = vmatprep.subr.bf16.mxu1 %v4844_v21  ;;  %v4857_v21 = vld [vmem:[%s5572_s30 + $0x300] ss:$24 sps:$4 sm:$0xff]  }
 0x1bc   : > { %3530 = vmatpush1.bf16.msra.mxu1 %v4842_v23  ;;  %v4860_v23 = vld [vmem:[%s5572_s30 + $0x308] ss:$24 sps:$4 sm:$0xff]  }
 0x1bd   : > { %3531 = vmatprep.subr.bf16.mxu1 %v4850_v24  ;;  %v4865_v24 = vld [vmem:[%s5572_s30 + $0x334] ss:$24 sps:$4 sm:$0xff]  }
 0x1c0   : > { %3532 = vmatpush1.bf16.msra.mxu1 %v4848_v25  ;;  %v4868_v25 = vld [vmem:[%s5572_s30 + $0x33c] ss:$24 sps:$4 sm:$0xff]  }
 0x1c1   : > { %3533 = vmatprep.subr.bf16.mxu1 %v4856_v26  ;;  %v4863_v26 = vld [vmem:[%s5572_s30 + $0x330] ss:$24 sps:$4 sm:$0xff]  }
 0x1c4   : > { %3534 = vmatpush1.bf16.msra.mxu1 %v4854_v27  ;;  %v4866_v27 = vld [vmem:[%s5572_s30 + $0x338] ss:$24 sps:$4 sm:$0xff]  }
 0x1c5   : > { %3546 = vmatprep.subr.bf16.mxu1 %v4862_v28  ;;  %v4871_v28 = vld [vmem:[%s5572_s30 + $0x364] ss:$24 sps:$4 sm:$0xff]  }
 0x1db   : > { %v2039_v36 = vpop.f32.mrb[0].mxu0 }
 0x1dc   : > { %v4410_v38 = vadd.f32 %v2039_v36, %v1954_v34  ;;  %v2041_v39 = vpop.f32.mrb[1].mxu0  ;;  %v4877_v34 = vld [vmem:[%s5572_s30 + $0x394] ss:$24 sps:$4 sm:$0xff]   ;;  %v4875_v36 = vld [vmem:[%s5572_s30 + $0x390] ss:$24 sps:$4 sm:$0xff]  }
 0x1dd   : > { %v4412_v41 = vadd.f32 %v2041_v39, %v1956_v35  ;;  %v2043_v42 = vpop.f32.mrb[2].mxu0  ;;  %v4880_v35 = vld [vmem:[%s5572_s30 + $0x39c] ss:$24 sps:$4 sm:$0xff]   ;;  %v4886_v39 = vld [vmem:[%s5572_s30 + $0x3cc] ss:$24 sps:$4 sm:$0xff]  }
 0x1de   : > { %v2185_v43 = vmul.f32 0.044715, %v4410_v38  ;;  %v4414_v44 = vadd.f32 %v2043_v42, %v1958_v37  ;;  %v2045_v46 = vpop.f32.mrb[3].mxu0  ;;  %v2177_v9 = vmul.f32 0.5, %v4410_v38  ;;  %v4878_v37 = vld [vmem:[%s5572_s30 + $0x398] ss:$24 sps:$4 sm:$0xff]  }
 0x1df   : > { %v2186_v47 = vmul.f32 0.044715, %v4412_v41  ;;  %v4416_v48 = vadd.f32 %v2045_v46, %v1960_v40  ;;  %v2178_v12 = vmul.f32 0.5, %v4412_v41  ;;  %v4881_v40 = vld [vmem:[%s5572_s30 + $0x3c0] ss:$24 sps:$4 sm:$0xff]  }
 0x1e0   : > { %v2193_v49 = vmul.f32 %v4410_v38, %v2185_v43  ;;  %v2189_v50 = vmul.f32 0.044715, %v4414_v44  ;;  %v2181_v10 = vmul.f32 0.5, %v4414_v44  ;;  %v4889_v42 = vld [vmem:[%s5572_s30 + $0x3f4] ss:$24 sps:$4 sm:$0xff]  }
 0x1e1   : > { %v2194_v51 = vmul.f32 %v4412_v41, %v2186_v47  ;;  %v2190_v52 = vmul.f32 0.044715, %v4416_v48  ;;  %v2182_v14 = vmul.f32 0.5, %v4416_v48  ;;  %v4892_v43 = vld [vmem:[%s5572_s30 + $0x3fc] ss:$24 sps:$4 sm:$0xff]  }
 0x1e2   : > { %v2201_v53 = vmul.f32 %v4410_v38, %v2193_v49  ;;  %v2197_v54 = vmul.f32 %v4414_v44, %v2189_v50  ;;  %v4890_v46 = vld [vmem:[%s5572_s30 + $0x3f8] ss:$24 sps:$4 sm:$0xff]   ;;  %v4895_v47 = vld [vmem:[%s5572_s30 + $0x424] ss:$24 sps:$4 sm:$0xff]   ;;  %v4896_v50 = vld [vmem:[%s5572_s30 + $0x428] ss:$24 sps:$4 sm:$0xff]  }
 0x1e3   : > { %v2202_v55 = vmul.f32 %v4412_v41, %v2194_v51  ;;  %v2198_v57 = vmul.f32 %v4416_v48, %v2190_v52  ;;  %v4893_v49 = vld [vmem:[%s5572_s30 + $0x420] ss:$24 sps:$4 sm:$0xff]   ;;  %v4901_v51 = vld [vmem:[%s5572_s30 + $0x454] ss:$24 sps:$4 sm:$0xff]  }
 0x1e4   : > { %v2209_v58 = vadd.f32 %v4410_v38, %v2201_v53  ;;  %v2205_v59 = vmul.f32 %v4414_v44, %v2197_v54  ;;  %v4883_v38 = vld [vmem:[%s5572_s30 + $0x3c4] ss:$24 sps:$4 sm:$0xff]   ;;  %v4899_v53 = vld [vmem:[%s5572_s30 + $0x450] ss:$24 sps:$4 sm:$0xff]  }
 0x1e5   : > { %v2206_v60 = vmul.f32 %v4416_v48, %v2198_v57  ;;  %v2210_v61 = vadd.f32 %v4412_v41, %v2202_v55  ;;  %v4884_v41 = vld [vmem:[%s5572_s30 + $0x3c8] ss:$24 sps:$4 sm:$0xff]   ;;  %v4904_v52 = vld [vmem:[%s5572_s30 + $0x45c] ss:$24 sps:$4 sm:$0xff]   ;;  %v4902_v54 = vld [vmem:[%s5572_s30 + $0x458] ss:$24 sps:$4 sm:$0xff]  }
 0x1e6   : > { %v2217_v62 = vmul.f32 0.7978846, %v2209_v58  ;;  %v2213_v63 = vadd.f32 %v4414_v44, %v2205_v59  ;;  %v4887_v44 = vld [vmem:[%s5572_s30 + $0x3f0] ss:$24 sps:$4 sm:$0xff]   ;;  %v4907_v55 = vld [vmem:[%s5572_s30 + $0x484] ss:$24 sps:$4 sm:$0xff]  }
 0x1e7   : > { %v2214_v0 = vadd.f32 %v4416_v48, %v2206_v60  ;;  %v2218_v1 = vmul.f32 0.7978846, %v2210_v61  ;;  %v4898_v48 = vld [vmem:[%s5572_s30 + $0x42c] ss:$24 sps:$4 sm:$0xff]   ;;  %v4905_v58 = vld [vmem:[%s5572_s30 + $0x480] ss:$24 sps:$4 sm:$0xff]  }
 0x1e8   : > { %5049 = vtanh.f32 %v2217_v62  ;;  %v2221_v22 = vmul.f32 0.7978846, %v2213_v63  ;;  %v4910_v57 = vld [vmem:[%s5572_s30 + $0x48c] ss:$24 sps:$4 sm:$0xff]   ;;  %v4908_v59 = vld [vmem:[%s5572_s30 + $0x488] ss:$24 sps:$4 sm:$0xff]  }
 0x1e9   : > { %v2222_v2 = vmul.f32 0.7978846, %v2214_v0  ;;  %5051 = vtanh.f32 %v2218_v1  ;;  %v4913_v60 = vld [vmem:[%s5572_s30 + $0x4b4] ss:$24 sps:$4 sm:$0xff]   ;;  %v4911_v62 = vld [vmem:[%s5572_s30 + $0x4b0] ss:$24 sps:$4 sm:$0xff]  }
 0x1ea   : > { %5053 = vtanh.f32 %v2221_v22  ;;  %v4916_v61 = vld [vmem:[%s5572_s30 + $0x4bc] ss:$24 sps:$4 sm:$0xff]   ;;  %v4914_v63 = vld [vmem:[%s5572_s30 + $0x4b8] ss:$24 sps:$4 sm:$0xff]   ;;  %v4922_v1 = vld [vmem:[%s5572_s30 + $0x4ec] ss:$24 sps:$4 sm:$0xff]  }
 0x1eb   : > { %5055 = vtanh.f32 %v2222_v2  ;;  %v4919_v0 = vld [vmem:[%s5572_s30 + $0x4e4] ss:$24 sps:$4 sm:$0xff]   ;;  %v4917_v22 = vld [vmem:[%s5572_s30 + $0x4e0] ss:$24 sps:$4 sm:$0xff]  }
 0x1ec   : > { %v4920_v2 = vld [vmem:[%s5572_s30 + $0x4e8] ss:$24 sps:$4 sm:$0xff]  }
 0x1f2   : > { %v5050_v3 = vpop.eup %5049 }
 0x1f3   : > { %v5052_v4 = vpop.eup %5051  ;;  %v2233_v5 = vadd.f32 1.0, %v5050_v3  ;;  %v4925_v3 = vld [vmem:[%s5572_s30 + $0x514] ss:$24 sps:$4 sm:$0xff]  }
 0x1f4   : > { %v5054_v6 = vpop.eup %5053  ;;  %v2234_v7 = vadd.f32 1.0, %v5052_v4  ;;  %v4928_v4 = vld [vmem:[%s5572_s30 + $0x51c] ss:$24 sps:$4 sm:$0xff]  }
 0x1f5   : > { %v5056_v8 = vpop.eup %5055  ;;  %v2237_v11 = vadd.f32 1.0, %v5054_v6  ;;  %v2241_v16 = vmul.f32 %v2233_v5, %v2177_v9  ;;  %v4923_v5 = vld [vmem:[%s5572_s30 + $0x510] ss:$24 sps:$4 sm:$0xff]   ;;  %v4929_v9 = vld [vmem:[%s5572_s30 + $0x540] ss:$24 sps:$4 sm:$0xff]  }
 0x1f6   : > { %v2238_v15 = vadd.f32 1.0, %v5056_v8  ;;  %v2242_v17 = vmul.f32 %v2234_v7, %v2178_v12  ;;  %v4926_v6 = vld [vmem:[%s5572_s30 + $0x518] ss:$24 sps:$4 sm:$0xff]   ;;  %v4931_v7 = vld [vmem:[%s5572_s30 + $0x544] ss:$24 sps:$4 sm:$0xff]  }
 0x1f7   : > { %v2245_v45 = vmul.f32 %v2237_v11, %v2181_v10  ;;  %v4934_v8 = vld [vmem:[%s5572_s30 + $0x54c] ss:$24 sps:$4 sm:$0xff]   ;;  %v4932_v10 = vld [vmem:[%s5572_s30 + $0x548] ss:$24 sps:$4 sm:$0xff]   ;;  %v4940_v12 = vld [vmem:[%s5572_s30 + $0x57c] ss:$24 sps:$4 sm:$0xff]  }
 0x1f8   : > { %v2246_v18 = vmul.f32 %v2238_v15, %v2182_v14  ;;  %v4937_v11 = vld [vmem:[%s5572_s30 + $0x574] ss:$24 sps:$4 sm:$0xff]   ;;  %v4935_v14 = vld [vmem:[%s5572_s30 + $0x570] ss:$24 sps:$4 sm:$0xff]  }
 0x1f9   : > { %v5914_v19 = vpack.c.bf16 %v2245_v45, %v2241_v16  ;;  %v4938_v15 = vld [vmem:[%s5572_s30 + $0x578] ss:$24 sps:$4 sm:$0xff]   ;;  %v4943_v16 = vld [vmem:[%s5572_s30 + $0x5a4] ss:$24 sps:$4 sm:$0xff]  }
 0x1fa   : > { %v5916_v20 = vpack.c.bf16 %v2246_v18, %v2242_v17  ;;  %v4946_v45 = vld [vmem:[%s5572_s30 + $0x5ac] ss:$24 sps:$4 sm:$0xff]   ;;  %v4941_v17 = vld [vmem:[%s5572_s30 + $0x5a0] ss:$24 sps:$4 sm:$0xff]  }
 0x1fb   : > { %v4944_v18 = vld [vmem:[%s5572_s30 + $0x5a8] ss:$24 sps:$4 sm:$0xff]  }
 0x1fc   : > { %3449 = vmatprep.mubr.bf16.mxu0 %v5916_v20  ;;  %3535 = vmatprep.mubr.bf16.mxu1 %v5916_v20 }
 0x1fd   : > { %3450 = vmatmul.mubr.bf16.vlgmr.msra.gmra.mrb[4].mxu0 %v5914_v19  ;;  %3536 = vmatmul.mubr.bf16.vlgmr.msra.gmra.mrb[8].mxu1 %v5914_v19 }
 0x1fe   : > { %3461 = vmatpush1.bf16.msra.mxu0 %v4857_v21  ;;  %3547 = vmatpush1.bf16.msra.mxu1 %v4860_v23  ;;  %v4949_v21 = vld [vmem:[%s5572_s30 + $0x5d4] ss:$24 sps:$4 sm:$0xff]  }
 0x1ff   : > { %3462 = vmatprep.subr.bf16.mxu0 %v4865_v24  ;;  %3548 = vmatprep.subr.bf16.mxu1 %v4868_v25  ;;  %v4952_v23 = vld [vmem:[%s5572_s30 + $0x5dc] ss:$24 sps:$4 sm:$0xff]   ;;  %v4947_v24 = vld [vmem:[%s5572_s30 + $0x5d0] ss:$24 sps:$4 sm:$0xff]  }
 0x200   : > { %v4950_v25 = vld [vmem:[%s5572_s30 + $0x5d8] ss:$24 sps:$4 sm:$0xff]  }
 0x202   : > { %3463 = vmatpush1.bf16.msra.mxu0 %v4863_v26  ;;  %3549 = vmatpush1.bf16.msra.mxu1 %v4866_v27  ;;  %v4955_v26 = vld [vmem:[%s5572_s30 + $0x14] ss:$24 sps:$4 sm:$0xff]   ;;  %v5986_v27 = vsub.s32 2, %v5895_v30 }
 0x203   : > { %3464 = vmatprep.subr.bf16.mxu0 %v4871_v28  ;;  %3550 = vmatprep.subr.bf16.mxu1 %v4874_v29  ;;  %v5989_v28 = vsub.s32 3, %v5895_v30 }
 0x204   : > { %v950_v29 = vrot.slane %v5905_v31, %v5986_v27 }
 0x206   : > { %3465 = vmatpush1.bf16.msra.mxu0 %v4869_v32  ;;  %3551 = vmatpush1.bf16.msra.mxu1 %v4872_v33  ;;  %v954_v32 = vrot.slane %v5905_v31, %v5989_v28 }
 0x207   : > { %3466 = vmatprep.subr.bf16.mxu0 %v4877_v34  ;;  %3552 = vmatprep.subr.bf16.mxu1 %v4880_v35 }
 0x20a   : > { %3467 = vmatpush1.bf16.msra.mxu0 %v4875_v36  ;;  %3553 = vmatpush1.bf16.msra.mxu1 %v4878_v37 }
 0x20b   : > { %3468 = vmatprep.subr.bf16.mxu0 %v4883_v38  ;;  %3554 = vmatprep.subr.bf16.mxu1 %v4886_v39 }
 0x20e   : > { %3469 = vmatpush1.bf16.msra.mxu0 %v4881_v40  ;;  %3555 = vmatpush1.bf16.msra.mxu1 %v4884_v41 }
 0x20f   : > { %3470 = vmatprep.subr.bf16.mxu0 %v4889_v42  ;;  %3556 = vmatprep.subr.bf16.mxu1 %v4892_v43 }
 0x212   : > { %3471 = vmatpush1.bf16.msra.mxu0 %v4887_v44  ;;  %3557 = vmatpush1.bf16.msra.mxu1 %v4890_v46 }
 0x213   : > { %3472 = vmatprep.subr.bf16.mxu0 %v4895_v47  ;;  %3558 = vmatprep.subr.bf16.mxu1 %v4898_v48 }
 0x216   : > { %3473 = vmatpush1.bf16.msra.mxu0 %v4893_v49  ;;  %3559 = vmatpush1.bf16.msra.mxu1 %v4896_v50 }
 0x217   : > { %3474 = vmatprep.subr.bf16.mxu0 %v4901_v51  ;;  %3560 = vmatprep.subr.bf16.mxu1 %v4904_v52 }
 0x21a   : > { %3475 = vmatpush1.bf16.msra.mxu0 %v4899_v53  ;;  %3561 = vmatpush1.bf16.msra.mxu1 %v4902_v54 }
 0x21b   : > { %3476 = vmatprep.subr.bf16.mxu0 %v4907_v55  ;;  %3562 = vmatprep.subr.bf16.mxu1 %v4910_v57 }
 0x21e   : > { %3477 = vmatpush1.bf16.msra.mxu0 %v4905_v58  ;;  %3563 = vmatpush1.bf16.msra.mxu1 %v4908_v59 }
 0x21f   : > { %3478 = vmatprep.subr.bf16.mxu0 %v4913_v60  ;;  %3564 = vmatprep.subr.bf16.mxu1 %v4916_v61 }
 0x222   : > { %3479 = vmatpush1.bf16.msra.mxu0 %v4911_v62  ;;  %3565 = vmatpush1.bf16.msra.mxu1 %v4914_v63 }
 0x223   : > { %3480 = vmatprep.subr.bf16.mxu0 %v4919_v0  ;;  %3566 = vmatprep.subr.bf16.mxu1 %v4922_v1 }
 0x226   : > { %3481 = vmatpush1.bf16.msra.mxu0 %v4917_v22  ;;  %3567 = vmatpush1.bf16.msra.mxu1 %v4920_v2 }
 0x227   : > { %3482 = vmatprep.subr.bf16.mxu0 %v4925_v3  ;;  %3568 = vmatprep.subr.bf16.mxu1 %v4928_v4 }
 0x22a   : > { %3483 = vmatpush1.bf16.msra.mxu0 %v4923_v5  ;;  %3569 = vmatpush1.bf16.msra.mxu1 %v4926_v6 }
 0x22b   : > { %3484 = vmatprep.subr.bf16.mxu0 %v4931_v7  ;;  %3570 = vmatprep.subr.bf16.mxu1 %v4934_v8 }
 0x22e   : > { %3485 = vmatpush1.bf16.msra.mxu0 %v4929_v9  ;;  %3571 = vmatpush1.bf16.msra.mxu1 %v4932_v10 }
 0x22f   : > { %3486 = vmatprep.subr.bf16.mxu0 %v4937_v11  ;;  %3572 = vmatprep.subr.bf16.mxu1 %v4940_v12 }
 0x232   : > { %3487 = vmatpush1.bf16.msra.mxu0 %v4935_v14  ;;  %3573 = vmatpush1.bf16.msra.mxu1 %v4938_v15 }
 0x233   : > { %3488 = vmatprep.subr.bf16.mxu0 %v4943_v16  ;;  %3574 = vmatprep.subr.bf16.mxu1 %v4946_v45  ;;  %v4953_v16 = vld [vmem:[%s5572_s30 + $0x10] ss:$24 sps:$4 sm:$0xff]   ;;  %v4958_v45 = vld [vmem:[%s5572_s30 + $0x44] ss:$24 sps:$4 sm:$0xff]  }
 0x236   : > { %3489 = vmatpush1.bf16.msra.mxu0 %v4941_v17  ;;  %3575 = vmatpush1.bf16.msra.mxu1 %v4944_v18  ;;  %v4956_v17 = vld [vmem:[%s5572_s30 + $0x40] ss:$24 sps:$4 sm:$0xff]   ;;  %v4961_v18 = vld [vmem:[%s5572_s30 + $0x74] ss:$24 sps:$4 sm:$0xff]  }
 0x237   : > { %3490 = vmatprep.subr.bf16.mxu0 %v4949_v21  ;;  %3576 = vmatprep.subr.bf16.mxu1 %v4952_v23  ;;  %v4959_v21 = vld [vmem:[%s5572_s30 + $0x70] ss:$24 sps:$4 sm:$0xff]   ;;  %v4964_v23 = vld [vmem:[%s5572_s30 + $0xa4] ss:$24 sps:$4 sm:$0xff]  }
 0x23a   : > { %3491 = vmatpush1.bf16.msra.mxu0 %v4947_v24  ;;  %3577 = vmatpush1.bf16.msra.mxu1 %v4950_v25  ;;  %v4962_v24 = vld [vmem:[%s5572_s30 + $0xa0] ss:$24 sps:$4 sm:$0xff]   ;;  %v4967_v25 = vld [vmem:[%s5572_s30 + $0xd4] ss:$24 sps:$4 sm:$0xff]  }
 0x23b   : > { %3589 = vmatprep.subr.bf16.mxu0 %v4955_v26  ;;  %v4965_v26 = vld [vmem:[%s5572_s30 + $0xd0] ss:$24 sps:$4 sm:$0xff]  }
 0x25a   : > { %v2168_v33 = vpop.f32.mrb[4].mxu1 }
 0x25b   : > { %v4417_v34 = vadd.f32 %v2168_v33, %v950_v29  ;;  %v2170_v35 = vpop.f32.mrb[5].mxu1  ;;  %v4971_v33 = vld [vmem:[%s5572_s30 + $0x130] ss:$24 sps:$4 sm:$0xff]  }
 0x25c   : > { %v4418_v36 = vadd.f32 %v2170_v35, %v954_v32  ;;  %v2172_v37 = vpop.f32.mrb[6].mxu1  ;;  %v4974_v35 = vld [vmem:[%s5572_s30 + $0x160] ss:$24 sps:$4 sm:$0xff]  }
 0x25d   : > { %v2187_v38 = vmul.f32 0.044715, %v4417_v34  ;;  %v4419_v39 = vadd.f32 %v2172_v37, %v950_v29  ;;  %v2174_v40 = vpop.f32.mrb[7].mxu1  ;;  %v2179_v3 = vmul.f32 0.5, %v4417_v34  ;;  %v4968_v29 = vld [vmem:[%s5572_s30 + $0x100] ss:$24 sps:$4 sm:$0xff]  }
 0x25e   : > { %v2188_v41 = vmul.f32 0.044715, %v4418_v36  ;;  %v4420_v42 = vadd.f32 %v2174_v40, %v954_v32  ;;  %v2180_v6 = vmul.f32 0.5, %v4418_v36  ;;  %v4973_v32 = vld [vmem:[%s5572_s30 + $0x134] ss:$24 sps:$4 sm:$0xff]  }
 0x25f   : > { %v2195_v43 = vmul.f32 %v4417_v34, %v2187_v38  ;;  %v2191_v44 = vmul.f32 0.044715, %v4419_v39  ;;  %v2183_v4 = vmul.f32 0.5, %v4419_v39  ;;  %v4977_v37 = vld [vmem:[%s5572_s30 + $0x190] ss:$24 sps:$4 sm:$0xff]  }
 0x260   : > { %v2196_v46 = vmul.f32 %v4418_v36, %v2188_v41  ;;  %v2192_v47 = vmul.f32 0.044715, %v4420_v42  ;;  %v2184_v7 = vmul.f32 0.5, %v4420_v42  ;;  %v4982_v38 = vld [vmem:[%s5572_s30 + $0x1c4] ss:$24 sps:$4 sm:$0xff]  }
 0x261   : > { %v2203_v48 = vmul.f32 %v4417_v34, %v2195_v43  ;;  %v2199_v49 = vmul.f32 %v4419_v39, %v2191_v44  ;;  %v4985_v40 = vld [vmem:[%s5572_s30 + $0x1f4] ss:$24 sps:$4 sm:$0xff]   ;;  %v4983_v41 = vld [vmem:[%s5572_s30 + $0x1f0] ss:$24 sps:$4 sm:$0xff]   ;;  %v4986_v43 = vld [vmem:[%s5572_s30 + $0x220] ss:$24 sps:$4 sm:$0xff]  }
 0x262   : > { %v2204_v50 = vmul.f32 %v4418_v36, %v2196_v46  ;;  %v2200_v51 = vmul.f32 %v4420_v42, %v2192_v47  ;;  %v4991_v44 = vld [vmem:[%s5572_s30 + $0x254] ss:$24 sps:$4 sm:$0xff]   ;;  %v4989_v46 = vld [vmem:[%s5572_s30 + $0x250] ss:$24 sps:$4 sm:$0xff]   ;;  %v4994_v47 = vld [vmem:[%s5572_s30 + $0x284] ss:$24 sps:$4 sm:$0xff]  }
 0x263   : > { %v2211_v52 = vadd.f32 %v4417_v34, %v2203_v48  ;;  %v2207_v31 = vmul.f32 %v4419_v39, %v2199_v49  ;;  %v4976_v34 = vld [vmem:[%s5572_s30 + $0x164] ss:$24 sps:$4 sm:$0xff]   ;;  %v4992_v48 = vld [vmem:[%s5572_s30 + $0x280] ss:$24 sps:$4 sm:$0xff]   ;;  %v4997_v49 = vld [vmem:[%s5572_s30 + $0x2b4] ss:$24 sps:$4 sm:$0xff]  }
 0x264   : > { %v2208_v53 = vmul.f32 %v4420_v42, %v2200_v51  ;;  %v2212_v54 = vadd.f32 %v4418_v36, %v2204_v50  ;;  %v4979_v36 = vld [vmem:[%s5572_s30 + $0x194] ss:$24 sps:$4 sm:$0xff]   ;;  %v4995_v50 = vld [vmem:[%s5572_s30 + $0x2b0] ss:$24 sps:$4 sm:$0xff]   ;;  %v5000_v51 = vld [vmem:[%s5572_s30 + $0x2e4] ss:$24 sps:$4 sm:$0xff]  }
 0x265   : > { %v2219_v55 = vmul.f32 0.7978846, %v2211_v52  ;;  %v2215_v57 = vadd.f32 %v4419_v39, %v2207_v31  ;;  %v4980_v39 = vld [vmem:[%s5572_s30 + $0x1c0] ss:$24 sps:$4 sm:$0xff]   ;;  %v5003_v31 = vld [vmem:[%s5572_s30 + $0x314] ss:$24 sps:$4 sm:$0xff]  }
 0x266   : > { %v2216_v58 = vadd.f32 %v4420_v42, %v2208_v53  ;;  %v2220_v59 = vmul.f32 0.7978846, %v2212_v54  ;;  %v4988_v42 = vld [vmem:[%s5572_s30 + $0x224] ss:$24 sps:$4 sm:$0xff]   ;;  %v4998_v52 = vld [vmem:[%s5572_s30 + $0x2e0] ss:$24 sps:$4 sm:$0xff]  }
 0x267   : > { %5057 = vtanh.f32 %v2219_v55  ;;  %v2223_v60 = vmul.f32 0.7978846, %v2215_v57  ;;  %v5001_v53 = vld [vmem:[%s5572_s30 + $0x310] ss:$24 sps:$4 sm:$0xff]   ;;  %v5006_v54 = vld [vmem:[%s5572_s30 + $0x344] ss:$24 sps:$4 sm:$0xff]  }
 0x268   : > { %v2224_v61 = vmul.f32 0.7978846, %v2216_v58  ;;  %5059 = vtanh.f32 %v2220_v59  ;;  %v5004_v55 = vld [vmem:[%s5572_s30 + $0x340] ss:$24 sps:$4 sm:$0xff]   ;;  %v5009_v57 = vld [vmem:[%s5572_s30 + $0x374] ss:$24 sps:$4 sm:$0xff]  }
 0x269   : > { %5061 = vtanh.f32 %v2223_v60  ;;  %v5007_v58 = vld [vmem:[%s5572_s30 + $0x370] ss:$24 sps:$4 sm:$0xff]   ;;  %v5012_v59 = vld [vmem:[%s5572_s30 + $0x3a4] ss:$24 sps:$4 sm:$0xff]   ;;  %v5010_v60 = vld [vmem:[%s5572_s30 + $0x3a0] ss:$24 sps:$4 sm:$0xff]  }
 0x26a   : > { %5063 = vtanh.f32 %v2224_v61  ;;  %v5013_v61 = vld [vmem:[%s5572_s30 + $0x3d0] ss:$24 sps:$4 sm:$0xff]  }
 0x271   : > { %v5058_v62 = vpop.eup %5057 }
 0x272   : > { %v5060_v63 = vpop.eup %5059  ;;  %v2235_v0 = vadd.f32 1.0, %v5058_v62  ;;  %v5018_v62 = vld [vmem:[%s5572_s30 + $0x404] ss:$24 sps:$4 sm:$0xff]  }
 0x273   : > { %v5062_v1 = vpop.eup %5061  ;;  %v2236_v22 = vadd.f32 1.0, %v5060_v63  ;;  %v5016_v63 = vld [vmem:[%s5572_s30 + $0x400] ss:$24 sps:$4 sm:$0xff]  }
 0x274   : > { %v5064_v2 = vpop.eup %5063  ;;  %v2239_v5 = vadd.f32 1.0, %v5062_v1  ;;  %v2243_v9 = vmul.f32 %v2235_v0, %v2179_v3  ;;  %v5021_v0 = vld [vmem:[%s5572_s30 + $0x434] ss:$24 sps:$4 sm:$0xff]   ;;  %v5019_v1 = vld [vmem:[%s5572_s30 + $0x430] ss:$24 sps:$4 sm:$0xff]  }
 0x275   : > { %v2240_v8 = vadd.f32 1.0, %v5064_v2  ;;  %v2244_v11 = vmul.f32 %v2236_v22, %v2180_v6  ;;  %v5024_v22 = vld [vmem:[%s5572_s30 + $0x464] ss:$24 sps:$4 sm:$0xff]   ;;  %v5022_v2 = vld [vmem:[%s5572_s30 + $0x460] ss:$24 sps:$4 sm:$0xff]  }
 0x276   : > { %v2247_v10 = vmul.f32 %v2239_v5, %v2183_v4  ;;  %v5027_v3 = vld [vmem:[%s5572_s30 + $0x494] ss:$24 sps:$4 sm:$0xff]   ;;  %v5025_v4 = vld [vmem:[%s5572_s30 + $0x490] ss:$24 sps:$4 sm:$0xff]   ;;  %v5030_v5 = vld [vmem:[%s5572_s30 + $0x4c4] ss:$24 sps:$4 sm:$0xff]  }
 0x277   : > { %v2248_v12 = vmul.f32 %v2240_v8, %v2184_v7  ;;  %v5028_v6 = vld [vmem:[%s5572_s30 + $0x4c0] ss:$24 sps:$4 sm:$0xff]   ;;  %v5033_v7 = vld [vmem:[%s5572_s30 + $0x4f4] ss:$24 sps:$4 sm:$0xff]   ;;  %v5031_v8 = vld [vmem:[%s5572_s30 + $0x4f0] ss:$24 sps:$4 sm:$0xff]  }
 0x278   : > { %v5995_v14 = vpack.c.bf16 %v2247_v10, %v2243_v9  ;;  %v5036_v9 = vld [vmem:[%s5572_s30 + $0x524] ss:$24 sps:$4 sm:$0xff]   ;;  %v5034_v10 = vld [vmem:[%s5572_s30 + $0x520] ss:$24 sps:$4 sm:$0xff]  }
 0x279   : > { %v5997_v15 = vpack.c.bf16 %v2248_v12, %v2244_v11  ;;  %v5039_v11 = vld [vmem:[%s5572_s30 + $0x554] ss:$24 sps:$4 sm:$0xff]   ;;  %v5037_v12 = vld [vmem:[%s5572_s30 + $0x550] ss:$24 sps:$4 sm:$0xff]  }
 0x27b   : > { %3492 = vmatprep.mubr.bf16.mxu0 %v5997_v15  ;;  %3578 = vmatprep.mubr.bf16.mxu1 %v5997_v15 }
 0x27c   : > { %3493 = vmatmul.mubr.bf16.vlgmr.msra.gmra.mrb[4].mxu0 %v5995_v14  ;;  %3579 = vmatmul.mubr.bf16.vlgmr.msra.gmra.mrb[8].mxu1 %v5995_v14 }
 0x27d   : > { %3590 = vmatpush1.bf16.msra.mxu0 %v4953_v16  ;;  %3621 = vmatprep.mubr.bf16.mxu0 %v5916_v20  ;;  %v4970_v20 = vld [vmem:[%s5572_s30 + $0x104] ss:$24 sps:$4 sm:$0xff]   ;;  %v5040_v16 = vld [vmem:[%s5572_s30 + $0x580] ss:$24 sps:$4 sm:$0xff]  }
 0x27e   : > { %3591 = vmatprep.subr.bf16.mxu0 %v4958_v45  ;;  %v5045_v45 = vld [vmem:[%s5572_s30 + $0x5b4] ss:$24 sps:$4 sm:$0xff]  }
 0x281   : > { %3592 = vmatpush1.bf16.msra.mxu0 %v4956_v17  ;;  %v5043_v17 = vld [vmem:[%s5572_s30 + $0x5b0] ss:$24 sps:$4 sm:$0xff]  }
 0x282   : > { %3593 = vmatprep.subr.bf16.mxu0 %v4961_v18  ;;  %v5048_v18 = vld [vmem:[%s5572_s30 + $0x5e4] ss:$24 sps:$4 sm:$0xff]  }
 0x285   : > { %3594 = vmatpush1.bf16.msra.mxu0 %v4959_v21  ;;  %v5046_v21 = vld [vmem:[%s5572_s30 + $0x5e0] ss:$24 sps:$4 sm:$0xff]  }
 0x286   : > { %3595 = vmatprep.subr.bf16.mxu0 %v4964_v23  ;;  %v2249_v23 = vld [vmem:[#allocation2] sm:$0xff] }
 0x289   : > { %3596 = vmatpush1.bf16.msra.mxu0 %v4962_v24  ;;  %v2251_v24 = vld [vmem:[#allocation2 + $0x10] sm:$0xff] }
 0x28a   : > { %3597 = vmatprep.subr.bf16.mxu0 %v4967_v25  ;;  %v2250_v25 = vld [vmem:[#allocation2 + $0x8] sm:$0xff] }
 0x28d   : > { %3598 = vmatpush1.bf16.msra.mxu0 %v4965_v26  ;;  %v2252_v26 = vld [vmem:[#allocation2 + $0x18] sm:$0xff] }
 0x28e   : > { %3599 = vmatprep.subr.bf16.mxu0 %v4970_v20 }
 0x291   : > { %3600 = vmatpush1.bf16.msra.mxu0 %v4968_v29 }
 0x292   : > { %3601 = vmatprep.subr.bf16.mxu0 %v4973_v32  ;;  %v2255_v32 = vld [vmem:[#allocation2 + $0x30] sm:$0xff] }
 0x295   : > { %3602 = vmatpush1.bf16.msra.mxu0 %v4971_v33  ;;  %v2257_v33 = vld [vmem:[#allocation2 + $0x40] sm:$0xff] }
 0x296   : > { %3603 = vmatprep.subr.bf16.mxu0 %v4976_v34 }
 0x299   : > { %3604 = vmatpush1.bf16.msra.mxu0 %v4974_v35 }
 0x29a   : > { %3605 = vmatprep.subr.bf16.mxu0 %v4979_v36 }
 0x29d   : > { %3606 = vmatpush1.bf16.msra.mxu0 %v4977_v37 }
 0x29e   : > { %3607 = vmatprep.subr.bf16.mxu0 %v4982_v38  ;;  %v2256_v38 = vld [vmem:[#allocation2 + $0x38] sm:$0xff] }
 0x2a1   : > { %3608 = vmatpush1.bf16.msra.mxu0 %v4980_v39  ;;  %v2258_v39 = vld [vmem:[#allocation2 + $0x48] sm:$0xff] }
 0x2a2   : > { %3609 = vmatprep.subr.bf16.mxu0 %v4985_v40 }
 0x2a5   : > { %3610 = vmatpush1.bf16.msra.mxu0 %v4983_v41 }
 0x2a6   : > { %3611 = vmatprep.subr.bf16.mxu0 %v4988_v42 }
 0x2a9   : > { %3612 = vmatpush1.bf16.msra.mxu0 %v4986_v43 }
 0x2aa   : > { %3613 = vmatprep.subr.bf16.mxu0 %v4991_v44 }
 0x2ad   : > { %3614 = vmatpush1.bf16.msra.mxu0 %v4989_v46 }
 0x2ae   : > { %3615 = vmatprep.subr.bf16.mxu0 %v4994_v47 }
 0x2b1   : > { %3616 = vmatpush1.bf16.msra.mxu0 %v4992_v48 }
 0x2b2   : > { %3617 = vmatprep.subr.bf16.mxu0 %v4997_v49 }
 0x2b5   : > { %3618 = vmatpush1.bf16.msra.mxu0 %v4995_v50  ;;  %v2253_v50 = vld [vmem:[#allocation2 + $0x20] sm:$0xff] }
 0x2b6   : > { %3619 = vmatprep.subr.bf16.mxu0 %v5000_v51  ;;  %v2254_v51 = vld [vmem:[#allocation2 + $0x28] sm:$0xff] }
 0x2b9   : > { %3620 = vmatpush1.bf16.msra.mxu0 %v4998_v52 }
 0x2ba   : > { %3632 = vmatprep.subr.bf16.mxu0 %v5003_v31  ;;  %v2259_v31 = vld [vmem:[#allocation2 + $0x50] sm:$0xff] }
 0x2bc   : > { %3622 = vmatmul.mubr.bf16.vlgmr.msra.gmra.mrb[8].mxu0 %v5914_v19  ;;  %v5015_v19 = vld [vmem:[%s5572_s30 + $0x3d4] ss:$24 sps:$4 sm:$0xff]  }
 0x2bd   : > { %3633 = vmatpush1.bf16.msra.mxu0 %v5001_v53  ;;  %3664 = vmatprep.mubr.bf16.mxu0 %v5997_v15  ;;  %v5042_v15 = vld [vmem:[%s5572_s30 + $0x584] ss:$24 sps:$4 sm:$0xff]  }
 0x2be   : > { %3634 = vmatprep.subr.bf16.mxu0 %v5006_v54 }
 0x2c1   : > { %3635 = vmatpush1.bf16.msra.mxu0 %v5004_v55  ;;  %v2260_v55 = vld [vmem:[#allocation2 + $0x58] sm:$0xff] }
 0x2c2   : > { %3636 = vmatprep.subr.bf16.mxu0 %v5009_v57 }
 0x2c5   : > { %3637 = vmatpush1.bf16.msra.mxu0 %v5007_v58 }
 0x2c6   : > { %3638 = vmatprep.subr.bf16.mxu0 %v5012_v59 }
 0x2c9   : > { %3639 = vmatpush1.bf16.msra.mxu0 %v5010_v60 }
 0x2ca   : > { %3640 = vmatprep.subr.bf16.mxu0 %v5015_v19 }
 0x2cd   : > { %3641 = vmatpush1.bf16.msra.mxu0 %v5013_v61  ;;  %v6072_v61 = vsub.s32 (!%p4405_p11), 4, %v5895_v30 }
 0x2ce   : > { %3642 = vmatprep.subr.bf16.mxu0 %v5018_v62  ;;  %v6075_v62 = vsub.s32 (!%p4405_p11), 5, %v5895_v30 }
 0x2d1   : > { %3643 = vmatpush1.bf16.msra.mxu0 %v5016_v63 }
 0x2d2   : > { %3644 = vmatprep.subr.bf16.mxu0 %v5021_v0 }
 0x2d5   : > { %3645 = vmatpush1.bf16.msra.mxu0 %v5019_v1 }
 0x2d6   : > { %3646 = vmatprep.subr.bf16.mxu0 %v5024_v22 }
 0x2d9   : > { %3647 = vmatpush1.bf16.msra.mxu0 %v5022_v2  ;;  %v3715_v2 = vld [vmem:[%s6220_s4] sm:$0x3f] (!%p4405_p11) }
 0x2da   : > { %3648 = vmatprep.subr.bf16.mxu0 %v5027_v3  ;;  %v3736_v30 = vrot.slane (!%p4405_p11), %v3715_v2, %v6072_v61 }
 0x2dd   : > { %3649 = vmatpush1.bf16.msra.mxu0 %v5025_v4  ;;  %v3720_v4 = vrot.slane (!%p4405_p11), %v3715_v2, %v5898_v13 }
 0x2de   : > { %3650 = vmatprep.subr.bf16.mxu0 %v5030_v5  ;;  %v3724_v5 = vrot.slane (!%p4405_p11), %v3715_v2, %v5908_v56 }
 0x2e1   : > { %3651 = vmatpush1.bf16.msra.mxu0 %v5028_v6  ;;  %v3728_v6 = vrot.slane (!%p4405_p11), %v3715_v2, %v5986_v27 }
 0x2e2   : > { %3652 = vmatprep.subr.bf16.mxu0 %v5033_v7  ;;  %v3732_v7 = vrot.slane (!%p4405_p11), %v3715_v2, %v5989_v28 }
 0x2e5   : > { %3653 = vmatpush1.bf16.msra.mxu0 %v5031_v8  ;;  %v3740_v8 = vrot.slane (!%p4405_p11), %v3715_v2, %v6075_v62 }
 0x2e6   : > { %3654 = vmatprep.subr.bf16.mxu0 %v5036_v9  ;;  %v3759_v9 = vld [vmem:[%s6216_s0] sm:$0xff] (!%p4405_p11) }
 0x2e9   : > { %3655 = vmatpush1.bf16.msra.mxu0 %v5034_v10  ;;  %v3760_v10 = vld [vmem:[%s6216_s0 + $0x8] sm:$0xff] (!%p4405_p11) }
 0x2ea   : > { %3656 = vmatprep.subr.bf16.mxu0 %v5039_v11  ;;  %v3761_v11 = vld [vmem:[%s6216_s0 + $0x10] sm:$0xff] (!%p4405_p11) }
 0x2ed   : > { %3657 = vmatpush1.bf16.msra.mxu0 %v5037_v12 }
 0x2ee   : > { %3658 = vmatprep.subr.bf16.mxu0 %v5042_v15 }
 0x2f1   : > { %3659 = vmatpush1.bf16.msra.mxu0 %v5040_v16 }
 0x2f2   : > { %3660 = vmatprep.subr.bf16.mxu0 %v5045_v45 }
 0x2f5   : > { %3661 = vmatpush1.bf16.msra.mxu0 %v5043_v17 }
 0x2f6   : > { %3662 = vmatprep.subr.bf16.mxu0 %v5048_v18  ;;  %v3762_v18 = vld [vmem:[%s6216_s0 + $0x18] sm:$0xff] (!%p4405_p11) }
 0x2f9   : > { %3663 = vmatpush1.bf16.msra.mxu0 %v5046_v21 }
 0x2fc   : > { %3665 = vmatmul.mubr.bf16.vlgmr.msra.gmra.mrb[8].mxu0 %v5995_v14 }
 0x34f   : > { %v3494_v20 = vpop.f32.mrb[4].mxu0  ;;  %v3580_v29 = vpop.f32.mrb[8].mxu1 }
 0x350   : > { %v3675_v34 = vadd.f32 %v3494_v20, %v2249_v23  ;;  %v3677_v35 = vadd.f32 %v3580_v29, %v2251_v24  ;;  %v3496_v36 = vpop.f32.mrb[5].mxu0  ;;  %v3582_v37 = vpop.f32.mrb[9].mxu1  ;;  %v3763_v20 = vld [vmem:[%s6216_s0 + $0x20] sm:$0xff] (!%p4405_p11) }
 0x351   : > { %v3676_v40 = vadd.f32 %v3496_v36, %v2250_v25  ;;  %v3678_v41 = vadd.f32 %v3582_v37, %v2252_v26  ;;  %v3498_v42 = vpop.f32.mrb[6].mxu0  ;;  %v3584_v43 = vpop.f32.mrb[10].mxu1 }
 0x352   : > { %3687 = vst [vmem:[#allocation2] sm:$0xff] %v3675_v34  ;;  %3689 = vst [vmem:[#allocation2 + $0x10] sm:$0xff] %v3677_v35  ;;  %v3681_v14 = vadd.f32 %v3498_v42, %v2255_v32  ;;  %v3683_v44 = vadd.f32 %v3584_v43, %v2257_v33  ;;  %v3500_v46 = vpop.f32.mrb[7].mxu0  ;;  %v3586_v47 = vpop.f32.mrb[11].mxu1  ;;  %v3764_v33 = vld [vmem:[%s6216_s0 + $0x28] sm:$0xff] (!%p4405_p11) }
 0x353   : > { %3688 = vst [vmem:[#allocation2 + $0x8] sm:$0xff] %v3676_v40  ;;  %3690 = vst [vmem:[#allocation2 + $0x18] sm:$0xff] %v3678_v41  ;;  %v3682_v48 = vadd.f32 %v3500_v46, %v2256_v38  ;;  %v3684_v49 = vadd.f32 %v3586_v47, %v2258_v39  ;;  %v3765_v39 = vld [vmem:[%s6216_s0 + $0x30] sm:$0xff] (!%p4405_p11)  ;;  %v3766_v40 = vld [vmem:[%s6216_s0 + $0x38] sm:$0xff] (!%p4405_p11) }
 0x354   : > { %3693 = vst [vmem:[#allocation2 + $0x30] sm:$0xff] %v3681_v14  ;;  %3695 = vst [vmem:[#allocation2 + $0x40] sm:$0xff] %v3683_v44  ;;  %v3767_v44 = vld [vmem:[%s6216_s0 + $0x40] sm:$0xff] (!%p4405_p11) }
 0x355   : > { %3694 = vst [vmem:[#allocation2 + $0x38] sm:$0xff] %v3682_v48  ;;  %3696 = vst [vmem:[#allocation2 + $0x48] sm:$0xff] %v3684_v49 }
 0x359   : > { %v3703_v63 = vld [vmem:[#allocation2] sm:$0xff] (!%p4405_p11)  ;;  %v3705_v1 = vld [vmem:[#allocation2 + $0x10] sm:$0xff] (!%p4405_p11) }
 0x35a   : > { %v3704_v0 = vld [vmem:[#allocation2 + $0x8] sm:$0xff] (!%p4405_p11)  ;;  %v3706_v22 = vld [vmem:[#allocation2 + $0x18] sm:$0xff] (!%p4405_p11)  ;;  %v3747_v15 = vadd.f32 (!%p4405_p11), %v3720_v4, %v3703_v63  ;;  %v3749_v45 = vadd.f32 (!%p4405_p11), %v3728_v6, %v3705_v1 }
 0x35b   : > { %v3748_v16 = vadd.f32 (!%p4405_p11), %v3724_v5, %v3704_v0  ;;  %v3750_v17 = vadd.f32 (!%p4405_p11), %v3732_v7, %v3706_v22  ;;  %v3709_v29 = vld [vmem:[#allocation2 + $0x30] sm:$0xff] (!%p4405_p11)  ;;  %v3711_v36 = vld [vmem:[#allocation2 + $0x40] sm:$0xff] (!%p4405_p11) }
 0x35c   : > { %v3771_v23 = vadd.f32 (!%p4405_p11), %v3759_v9, %v3747_v15  ;;  %v3773_v25 = vadd.f32 (!%p4405_p11), %v3761_v11, %v3749_v45  ;;  %v3710_v32 = vld [vmem:[#allocation2 + $0x38] sm:$0xff] (!%p4405_p11)  ;;  %v3712_v37 = vld [vmem:[#allocation2 + $0x48] sm:$0xff] (!%p4405_p11)  ;;  %v3753_v43 = vadd.f32 (!%p4405_p11), %v3720_v4, %v3709_v29  ;;  %v3755_v48 = vadd.f32 (!%p4405_p11), %v3728_v6, %v3711_v36 }
 0x35d   : > { %v3772_v24 = vadd.f32 (!%p4405_p11), %v3760_v10, %v3748_v16  ;;  %v3774_v34 = vadd.f32 (!%p4405_p11), %v3762_v18, %v3750_v17  ;;  %v3754_v14 = vadd.f32 (!%p4405_p11), %v3724_v5, %v3710_v32  ;;  %v3756_v49 = vadd.f32 (!%p4405_p11), %v3732_v7, %v3712_v37 }
 0x35f   : > { %v3785_v35 = vadd.f32 (!%p4405_p11), %v3772_v24, %v3771_v23 }
 0x361   : > { %v3786_v42 = vadd.f32 (!%p4405_p11), %v3785_v35, %v3773_v25 }
 0x3cf   : > { %v3666_v52 = vpop.f32.mrb[8].mxu0  ;;  %3702 = sbr.rel (%p4405_p11) target bundleno = 1323 (0x52b), region = 79 }
 0x3d0   : > { %v3679_v53 = vadd.f32 %v3666_v52, %v2253_v50  ;;  %v3668_v54 = vpop.f32.mrb[9].mxu0  ;;  %v3768_v50 = vld [vmem:[%s6216_s0 + $0x48] sm:$0xff] (!%p4405_p11) }
 0x3d1   : > { %v3680_v57 = vadd.f32 %v3668_v54, %v2254_v51  ;;  %v3670_v58 = vpop.f32.mrb[10].mxu0  ;;  %v3787_v51 = vadd.f32 (!%p4405_p11), %v3786_v42, %v3774_v34  ;;  %v3769_v54 = vld [vmem:[%s6216_s0 + $0x50] sm:$0xff] (!%p4405_p11) }
 0x3d2   : > { %3691 = vst [vmem:[#allocation2 + $0x20] sm:$0xff] %v3679_v53  ;;  %v3685_v59 = vadd.f32 %v3670_v58, %v2259_v31  ;;  %v3672_v60 = vpop.f32.mrb[11].mxu0  ;;  %v3777_v31 = vadd.f32 (!%p4405_p11), %v3765_v39, %v3753_v43  ;;  %v3778_v53 = vadd.f32 (!%p4405_p11), %v3766_v40, %v3754_v14 }
 0x3d3   : > { %3692 = vst [vmem:[#allocation2 + $0x28] sm:$0xff] %v3680_v57  ;;  %v3686_v19 = vadd.f32 %v3672_v60, %v2260_v55  ;;  %v3779_v55 = vadd.f32 (!%p4405_p11), %v3767_v44, %v3755_v48 }
 0x3d4   : > { %3697 = vst [vmem:[#allocation2 + $0x50] sm:$0xff] %v3685_v59  ;;  %v3780_v59 = vadd.f32 (!%p4405_p11), %v3768_v50, %v3756_v49  ;;  %v3792_v60 = vadd.f32 (!%p4405_p11), %v3778_v53, %v3777_v31 }
 0x3d5   : > { %3698 = vst [vmem:[#allocation2 + $0x58] sm:$0xff] %v3686_v19  ;;  %v3770_v19 = vld [vmem:[%s6216_s0 + $0x58] sm:$0xff] (!%p4405_p11) }
 0x3d6   : > { %v3793_v1 = vadd.f32 %v3792_v60, %v3779_v55 }
 0x3d8   : > { %v3794_v2 = vadd.f32 %v3793_v1, %v3780_v59 }
 0x3d9   : > { %v3707_v3 = vld [vmem:[#allocation2 + $0x20] sm:$0xff] }
 0x3da   : > { %v3708_v12 = vld [vmem:[#allocation2 + $0x28] sm:$0xff]  ;;  %v3751_v21 = vadd.f32 %v3736_v30, %v3707_v3 }
 0x3db   : > { %v3752_v26 = vadd.f32 %v3740_v8, %v3708_v12  ;;  %v3713_v38 = vld [vmem:[#allocation2 + $0x50] sm:$0xff] }
 0x3dc   : > { %v3775_v41 = vadd.f32 %v3763_v20, %v3751_v21  ;;  %v3714_v47 = vld [vmem:[#allocation2 + $0x58] sm:$0xff]  ;;  %v3757_v52 = vadd.f32 %v3736_v30, %v3713_v38 }
 0x3dd   : > { %v3776_v46 = vadd.f32 %v3764_v33, %v3752_v26  ;;  %v3758_v58 = vadd.f32 %v3740_v8, %v3714_v47 }
 0x3de   : > { %v3788_v57 = vadd.f32 %v3787_v51, %v3775_v41  ;;  %v3781_v0 = vadd.f32 %v3769_v54, %v3757_v52  ;;  %v3783_v54 = vld [vmem:[%s6221_s5] sm:$0x3f] }
 0x3df   : > { %v3782_v22 = vadd.f32 %v3770_v19, %v3758_v58  ;;  %v3866_v58 = vrot.slane %v3783_v54, %v5908_v56  ;;  %v3874_v60 = vrot.slane %v3783_v54, %v5989_v28  ;;  %v3878_v19 = vrot.slane %v3783_v54, %v6072_v61 }
 0x3e0   : > { %v3789_v63 = vadd.f32 %v3788_v57, %v3776_v46  ;;  %v3795_v3 = vadd.f32 %v3794_v2, %v3781_v0  ;;  %v3862_v57 = vrot.slane %v3783_v54, %v5898_v13 }
 0x3e2   : > { %3790 = vadd.xlane.f32.xlu0 %v3789_v63  ;;  %v3796_v4 = vadd.f32 %v3795_v3, %v3782_v22  ;;  %v3882_v63 = vrot.slane %v3783_v54, %v6075_v62 }
 0x3e6   : > { %3797 = vadd.xlane.f32.xlu0 %v3796_v4 }
 0x46f   : > { %v3791_v5 = vpop.xlane.xlu0 %3790 }
 0x470   : > { %v3800_v6 = vmul.f32 0.0013020834, %v3791_v5 }
 0x472   : > { %v3802_v7 = vsub.f32 %v3771_v23, %v3800_v6  ;;  %v3803_v30 = vsub.f32 %v3772_v24, %v3800_v6  ;;  %v3804_v8 = vsub.f32 %v3773_v25, %v3800_v6  ;;  %v3805_v9 = vsub.f32 %v3774_v34, %v3800_v6 }
 0x473   : > { %v3798_v12 = vpop.xlane.xlu0 %3797  ;;  %v3806_v15 = vsub.f32 %v3775_v41, %v3800_v6  ;;  %v3807_v18 = vsub.f32 %v3776_v46, %v3800_v6 }
 0x474   : > { %v3814_v10 = vmul.f32 %v3802_v7, %v3802_v7  ;;  %v3815_v11 = vmul.f32 %v3803_v30, %v3803_v30  ;;  %v3801_v16 = vmul.f32 0.0013020834, %v3798_v12  ;;  %v3816_v45 = vmul.f32 %v3804_v8, %v3804_v8 }
 0x475   : > { %v3817_v21 = vmul.f32 %v3805_v9, %v3805_v9  ;;  %v3818_v23 = vmul.f32 %v3806_v15, %v3806_v15  ;;  %v3819_v35 = vmul.f32 %v3807_v18, %v3807_v18 }
 0x476   : > { %v3826_v17 = vadd.f32 %v3815_v11, %v3814_v10  ;;  %v6122_v20 = vsub.f32 %v3777_v31, %v3801_v16  ;;  %v6124_v29 = vsub.f32 %v3778_v53, %v3801_v16  ;;  %v6126_v32 = vsub.f32 %v3779_v55, %v3801_v16  ;;  %v3784_v55 = vld [vmem:[%s6222_s6] sm:$0x3f] }
 0x477   : > { %v6128_v25 = vsub.f32 %v3780_v59, %v3801_v16  ;;  %v6134_v37 = vsub.f32 %v3781_v0, %v3801_v16  ;;  %v6138_v41 = vsub.f32 %v3782_v22, %v3801_v16  ;;  %v3870_v59 = vrot.slane %v3783_v54, %v5986_v27 }
 0x478   : > { %v3827_v26 = vadd.f32 %v3826_v17, %v3816_v45  ;;  %v3820_v33 = vmul.f32 %v6122_v20, %v6122_v20  ;;  %v3821_v34 = vmul.f32 %v6124_v29, %v6124_v29  ;;  %v3822_v38 = vmul.f32 %v6126_v32, %v6126_v32 }
 0x479   : > { %v3823_v42 = vmul.f32 %v6128_v25, %v6128_v25  ;;  %v3824_v14 = vmul.f32 %v6134_v37, %v6134_v37  ;;  %v3825_v46 = vmul.f32 %v6138_v41, %v6138_v41  ;;  %v3905_v1 = vrot.slane %v3784_v55, %v5898_v13 }
 0x47a   : > { %v3828_v24 = vadd.f32 %v3827_v26, %v3817_v21  ;;  %v3833_v39 = vadd.f32 %v3821_v34, %v3820_v33  ;;  %v3909_v22 = vrot.slane %v3784_v55, %v5908_v56  ;;  %v3913_v2 = vrot.slane %v3784_v55, %v5986_v27 }
 0x47b   : > { %v3917_v3 = vrot.slane %v3784_v55, %v5989_v28  ;;  %v3921_v11 = vrot.slane %v3784_v55, %v6072_v61  ;;  %v3925_v12 = vrot.slane %v3784_v55, %v6075_v62 }
 0x47c   : > { %v3829_v36 = vadd.f32 %v3828_v24, %v3818_v23  ;;  %v3834_v43 = vadd.f32 %v3833_v39, %v3822_v38 }
 0x47e   : > { %v3830_v40 = vadd.f32 %v3829_v36, %v3819_v35  ;;  %v3835_v44 = vadd.f32 %v3834_v43, %v3823_v42 }
 0x480   : > { %3831 = vadd.xlane.f32.xlu1 %v3830_v40  ;;  %v3836_v47 = vadd.f32 %v3835_v44, %v3824_v14 }
 0x482   : > { %v3837_v48 = vadd.f32 %v3836_v47, %v3825_v46 }
 0x484   : > { %3838 = vadd.xlane.f32.xlu1 %v3837_v48 }
 0x50d   : > { %v3832_v49 = vpop.xlane.xlu1 %3831 }
 0x50e   : > { %v3840_v50 = vmul.f32 0.0013020834, %v3832_v49 }
 0x510   : > { %v3842_v51 = vadd.f32 1e-12, %v3840_v50 }
 0x511   : > { %v3839_v52 = vpop.xlane.xlu1 %3838 }
 0x512   : > { %5065 = vrsqrt.f32 %v3842_v51  ;;  %v3841_v31 = vmul.f32 0.0013020834, %v3839_v52 }
 0x514   : > { %v3843_v53 = vadd.f32 1e-12, %v3841_v31 }
 0x516   : > { %5067 = vrsqrt.f32 %v3843_v53 }
 0x51c   : > { %v5066_v0 = vpop.eup %5065 }
 0x51d   : > { %v3846_v4 = vmul.f32 %v5066_v0, %v3802_v7  ;;  %v3847_v5 = vmul.f32 %v5066_v0, %v3803_v30  ;;  %v3848_v6 = vmul.f32 %v5066_v0, %v3804_v8  ;;  %v3849_v10 = vmul.f32 %v5066_v0, %v3805_v9 }
 0x51e   : > { %v3850_v16 = vmul.f32 %v5066_v0, %v3806_v15  ;;  %v3851_v45 = vmul.f32 %v5066_v0, %v3807_v18 }
 0x51f   : > { %v3889_v17 = vmul.f32 %v3862_v57, %v3846_v4  ;;  %v3890_v21 = vmul.f32 %v3866_v58, %v3847_v5  ;;  %v3891_v26 = vmul.f32 %v3870_v59, %v3848_v6  ;;  %v3892_v13 = vmul.f32 %v3874_v60, %v3849_v10 }
 0x520   : > { %v3893_v23 = vmul.f32 %v3878_v19, %v3850_v16  ;;  %v3894_v56 = vmul.f32 %v3882_v63, %v3851_v45  ;;  %v5068_v7 = vpop.eup %5067 }
 0x521   : > { %v3932_v24 = vadd.f32 %v3905_v1, %v3889_v17  ;;  %v3933_v27 = vadd.f32 %v3909_v22, %v3890_v21  ;;  %v3934_v33 = vadd.f32 %v3913_v2, %v3891_v26  ;;  %v3935_v28 = vadd.f32 %v3917_v3, %v3892_v13 }
 0x522   : > { %v3936_v30 = vadd.f32 %v3921_v11, %v3893_v23  ;;  %v3937_v8 = vadd.f32 %v3925_v12, %v3894_v56  ;;  %v3852_v61 = vmul.f32 %v5068_v7, %v6122_v20  ;;  %v3853_v62 = vmul.f32 %v5068_v7, %v6124_v29 }
 0x523   : > { %3944 = vst [vmem:[%s6223_s7] sm:$0xff] %v3932_v24  ;;  %3945 = vst [vmem:[%s6223_s7 + $0x8] sm:$0xff] %v3933_v27  ;;  %v3854_v9 = vmul.f32 %v5068_v7, %v6126_v32  ;;  %v3855_v15 = vmul.f32 %v5068_v7, %v6128_v25  ;;  %v3856_v18 = vmul.f32 %v5068_v7, %v6134_v37 }
 0x524   : > { %3946 = vst [vmem:[%s6223_s7 + $0x10] sm:$0xff] %v3934_v33  ;;  %3947 = vst [vmem:[%s6223_s7 + $0x18] sm:$0xff] %v3935_v28  ;;  %v3857_v34 = vmul.f32 %v5068_v7, %v6138_v41  ;;  %v3895_v35 = vmul.f32 %v3862_v57, %v3852_v61  ;;  %v3896_v20 = vmul.f32 %v3866_v58, %v3853_v62 }
 0x525   : > { %3948 = vst [vmem:[%s6223_s7 + $0x20] sm:$0xff] %v3936_v30  ;;  %3949 = vst [vmem:[%s6223_s7 + $0x28] sm:$0xff] %v3937_v8  ;;  %v3897_v36 = vmul.f32 %v3870_v59, %v3854_v9  ;;  %v3898_v29 = vmul.f32 %v3874_v60, %v3855_v15  ;;  %v3899_v38 = vmul.f32 %v3878_v19, %v3856_v18 }
 0x526   : > { %v3900_v32 = vmul.f32 %v3882_v63, %v3857_v34  ;;  %v3938_v39 = vadd.f32 %v3905_v1, %v3895_v35  ;;  %v3939_v25 = vadd.f32 %v3909_v22, %v3896_v20 }
 0x527   : > { %v3940_v40 = vadd.f32 %v3913_v2, %v3897_v36  ;;  %v3941_v42 = vadd.f32 %v3917_v3, %v3898_v29  ;;  %v3942_v43 = vadd.f32 %v3921_v11, %v3899_v38 }
 0x528   : > { %v3943_v14 = vadd.f32 %v3925_v12, %v3900_v32  ;;  %3950 = vst [vmem:[%s6223_s7 + $0x30] sm:$0xff] %v3938_v39  ;;  %3951 = vst [vmem:[%s6223_s7 + $0x38] sm:$0xff] %v3939_v25 }
 0x529   : > { %3952 = vst [vmem:[%s6223_s7 + $0x40] sm:$0xff] %v3940_v40  ;;  %3953 = vst [vmem:[%s6223_s7 + $0x48] sm:$0xff] %v3941_v42 }
 0x52a   : > { %3954 = vst [vmem:[%s6223_s7 + $0x50] sm:$0xff] %v3942_v43  ;;  %3955 = vst [vmem:[%s6223_s7 + $0x58] sm:$0xff] %v3943_v14 }
 0x52b PF: > { %p14_p12 = scmp.ge.s32.totalorder %s5153_s28, 8   ;;  %s6224_s24 = smov %s5087_s25 }
 0x52c   : > { %s6225_s25 = smov %s5162_s8  ;;  %s6226_s26 = smov %s5153_s28 }
 0x52d   :  { %16 = sbr.rel (!%p14_p12) target bundleno = 2 (0x2), region = 116 }

</bundles_post_ra>
